<compile_context>
chip_gen: v6e
topology: v6e:2x2x1
jax: 0.10.0
libtpu: 0.0.40
codegen_flags: <defaults>
</compile_context>

<pallas_src>
import functools

import numpy as np
import jax
import jax.numpy as jnp
from jax.experimental import pallas as pl
from jax.experimental.pallas import tpu as pltpu

MAX_TM = 256  # max rows per M tile (multiple of 16; nm>=2 at M>=512 for v7x)

_CONV_CFG = [
    #  cin, cout, k, s, p
    (3,   32, 5, 2, 2),   # h1
    (32,  64, 5, 1, 2),   # h2
    (64,  64, 5, 2, 2),   # h3
    (64, 128, 5, 1, 2),   # h4
    (128, 128, 5, 4, 2),  # h5
    (128, 256, 5, 1, 2),  # h6
    (256, 256, 5, 4, 2),  # h7
    (256, 512, 5, 1, 2),  # h8
    (512, 512, 5, 4, 2),  # h9
]
_N_HEAD = 4  # h1..h4 run as standalone im2col + matmul kernels


def _round_up(x, m):
    return (x + m - 1) // m * m


def _split_dim(dim, max_tile, align):
    """(padded_dim, tile) with padded_dim % tile == 0 and tile % align == 0."""
    dim_a = _round_up(dim, align)
    n = max(1, -(-dim_a // max_tile))
    tile = _round_up(-(-dim_a // n), align)
    return n * tile, tile


def _zeros_index_map(ndim, *_):
    return (0,) * ndim


def _full_spec(a):
    return pl.BlockSpec(a.shape, functools.partial(_zeros_index_map, a.ndim))


# ----------------------------------------------------------------------------
# Kernel 1: single-step matmul + bias + LeakyReLU(0.2) (h1..h4).
# ----------------------------------------------------------------------------
def _conv_mm_kernel(x_ref, w_ref, b_ref, o_ref):
    y = jnp.dot(x_ref[...], w_ref[...], preferred_element_type=jnp.float32)
    y = y + b_ref[...]
    y = jnp.where(y > 0.0, y, 0.2 * y)           # LeakyReLU(0.2)
    o_ref[...] = y.astype(o_ref.dtype)           # bf16 out for next layer


def conv_matmul(patches, w_pad, b_pad, cout):
    """leaky(patches @ w + b); patches (M,K) bf16, returns (M, cout) bf16."""
    m, k = patches.shape
    kp, np_out = w_pad.shape
    mp, tm = _split_dim(m, MAX_TM, 16)
    if (mp, kp) != (m, k):
        patches = jnp.pad(patches, ((0, mp - m), (0, kp - k)))
    nm = mp // tm
    out = pl.pallas_call(
        _conv_mm_kernel,
        out_shape=jax.ShapeDtypeStruct((mp, np_out), jnp.bfloat16),
        grid_spec=pltpu.PrefetchScalarGridSpec(
            num_scalar_prefetch=0,
            grid=(nm,),
            in_specs=[
                pl.BlockSpec((tm, kp), lambda i: (i, 0)),
                pl.BlockSpec((kp, np_out), lambda i: (0, 0)),
                pl.BlockSpec((1, np_out), lambda i: (0, 0)),
            ],
            out_specs=pl.BlockSpec((tm, np_out), lambda i: (i, 0)),
        ),
        compiler_params=pltpu.CompilerParams(
            dimension_semantics=("parallel",)),
    )(patches, w_pad, b_pad)
    return out[:m, :cout]


# ----------------------------------------------------------------------------
# Kernel 2: fused tail  h5 -> h6 -> h7 -> h8 -> h9 -> Linear -> Sigmoid.
# All weights VMEM-resident; chain of dots, no HBM roundtrips between layers.
# ----------------------------------------------------------------------------
def _tail_kernel(p5_ref, w5_ref, b5_ref, w6_ref, b6_ref, w7_ref, b7_ref,
                 w8_ref, b8_ref, w9_ref, b9_ref, wl_ref, bl_ref, o_ref):
    # h5: for each of the 4 output spatial positions r, (Mp,3200)@(3200,128);
    # the result feeds h6's dense-matrix slice for input position r, so no
    # in-kernel reshapes are needed.
    w5 = w5_ref[...]
    z6 = None
    for r in range(4):                                      # static unroll
        y5 = jnp.dot(p5_ref[r], w5, preferred_element_type=jnp.float32)
        y5 = y5 + b5_ref[...]
        y5 = jnp.where(y5 > 0.0, y5, 0.2 * y5).astype(jnp.bfloat16)
        t = jnp.dot(y5, w6_ref[r], preferred_element_type=jnp.float32)
        z6 = t if z6 is None else z6 + t
    y = z6 + b6_ref[...]                                    # h6 bias
    y = jnp.where(y > 0.0, y, 0.2 * y)
    # h7, h8, h9: dense matrices over the flattened tiny maps.
    for w_ref, b_ref in ((w7_ref, b7_ref), (w8_ref, b8_ref), (w9_ref, b9_ref)):
        y = jnp.dot(y.astype(jnp.bfloat16), w_ref[...],
                    preferred_element_type=jnp.float32) + b_ref[...]
        y = jnp.where(y > 0.0, y, 0.2 * y)
    # Linear(512, 1) + Sigmoid (output columns padded to 128; col 0 is valid).
    y = jnp.dot(y.astype(jnp.bfloat16), wl_ref[...],
                preferred_element_type=jnp.float32) + bl_ref[...]
    o_ref[...] = jax.nn.sigmoid(y)


def tail_forward(p5, tail_params):
    (w5, b5, w6, b6, w7, b7, w8, b8, w9, b9, wl, bl) = tail_params
    _, mp, _ = p5.shape
    n_lin = wl.shape[1]
    args = (p5, w5, b5, w6, b6, w7, b7, w8, b8, w9, b9, wl, bl)
    return pl.pallas_call(
        _tail_kernel,
        out_shape=jax.ShapeDtypeStruct((mp, n_lin), jnp.float32),
        grid_spec=pltpu.PrefetchScalarGridSpec(
            num_scalar_prefetch=0,
            grid=(1,),
            in_specs=[_full_spec(a) for a in args],
            out_specs=pl.BlockSpec((mp, n_lin), lambda i: (0, 0)),
        ),
        compiler_params=pltpu.CompilerParams(
            dimension_semantics=("arbitrary",)),
    )(*args)


# ----------------------------------------------------------------------------
# JAX glue: im2col (bf16, fuses under jit) and one-time weight preparation.
# ----------------------------------------------------------------------------
def _im2col_nhwc(x, k, s, p, ho, wo):
    """(N,H,W,C) -> (N,Ho,Wo,k*k*C) patches, tap-major / channel-minor."""
    n, h, w, c = x.shape
    xp = jnp.pad(x, ((0, 0), (p, p), (p, p), (0, 0)))
    cols = []
    for kh in range(k):
        for kw in range(k):
            cols.append(xp[:, kh:kh + (ho - 1) * s + 1:s,
                              kw:kw + (wo - 1) * s + 1:s, :])
    return jnp.stack(cols, axis=3).reshape(n, ho, wo, k * k * c)


def _dense_conv_matrix(wc, s, p, hi, wi, ho, wo):
    """Exact dense matrix of a conv over a tiny hi x wi map.

    Maps the NHWC-flattened input (hi*wi*cin,) to the NHWC-flattened output
    (ho*wo*cout,). Taps that only ever see zero padding contribute nothing.
    """
    k, _, cin, cout = wc.shape
    d = np.zeros((hi * wi * cin, ho * wo * cout), np.float32)
    for oi in range(ho):
        for oj in range(wo):
            for kh in range(k):
                for kw in range(k):
                    ii, ij = oi * s + kh - p, oj * s + kw - p
                    if 0 <= ii < hi and 0 <= ij < wi:
                        ri = (ii * wi + ij) * cin
                        ro = (oi * wo + oj) * cout
                        d[ri:ri + cin, ro:ro + cout] = wc[kh, kw]
    return d


def init_raw_params(key):
    """Mirrors Discriminator._init: conv ~ N(0, 0.02), conv bias = 0,
    Linear keeps a PyTorch-default-style uniform init."""
    keys = jax.random.split(key, len(_CONV_CFG) + 2)
    conv_raw = []
    for i, (cin, cout, k, s, p) in enumerate(_CONV_CFG):
        w = 0.02 * jax.random.normal(keys[i], (k, k, cin, cout), jnp.float32)
        b = jnp.zeros((cout,), jnp.float32)
        conv_raw.append((w, b, s, p))
    lim = 1.0 / np.sqrt(512.0)
    wl = jax.random.uniform(keys[-2], (512, 1), jnp.float32, -lim, lim)
    bl = jax.random.uniform(keys[-1], (1,), jnp.float32, -lim, lim)
    return conv_raw, (wl, bl)


def prepare(conv_raw, lin_raw, in_hw):
    """One-time weight prep: reshape, dense-matrix folding, pad, bf16 cast."""
    h, w = in_hw
    spatial = []
    for (wc, bc, s, p) in conv_raw:
        k = wc.shape[0]
        ho = (h + 2 * p - k) // s + 1
        wo = (w + 2 * p - k) // s + 1
        spatial.append((h, w, ho, wo))
        h, w = ho, wo
    assert (h, w) == (1, 1), "input spatial size must reduce to 1x1 (use 32x32)"

    # h1..h4 : im2col weights, K padded to 128 multiple, cout padded to 128.
    head_metas, head_params = [], []
    for i in range(_N_HEAD):
        wc, bc, s, p = conv_raw[i]
        k, _, cin, cout = wc.shape
        _, _, ho, wo = spatial[i]
        kk = k * k * cin
        kp = _round_up(kk, 128)
        np_out = _round_up(cout, 128)
        wp = jnp.pad(wc.reshape(kk, cout).astype(jnp.bfloat16),
                     ((0, kp - kk), (0, np_out - cout)))
        bp = jnp.pad(bc.reshape(1, cout), ((0, 0), (0, np_out - cout)))
        head_metas.append((k, s, p, ho, wo, cout))
        head_params.append((wp, bp))

    # h5 : im2col weight, folded into the fused tail kernel (K = 3200).
    wc, bc, s, p = conv_raw[_N_HEAD]
    k, _, cin, cout = wc.shape
    _, _, ho, wo = spatial[_N_HEAD]
    w5 = wc.reshape(k * k * cin, cout).astype(jnp.bfloat16)
    b5 = bc.reshape(1, cout)
    h5_meta = (k, s, p, ho, wo, cout)

    # h6..h9 : exact dense matrices over the flattened 2x2 / 1x1 maps.
    dense = []
    for i in range(_N_HEAD + 1, len(conv_raw)):
        wc, bc, s, p = conv_raw[i]
        hi, wi, ho, wo = spatial[i]
        d = _dense_conv_matrix(np.asarray(wc), s, p, hi, wi, ho, wo)
        dense.append((jnp.asarray(d, jnp.bfloat16),
                      jnp.tile(bc, ho * wo).reshape(1, -1)))
    (w6, b6), (w7, b7), (w8, b8), (w9, b9) = dense
    cin6 = conv_raw[_N_HEAD + 1][0].shape[2]
    w6 = w6.reshape(4, cin6, w6.shape[1])   # split by h6 input spatial pos r

    # Linear(512, 1) + Sigmoid: pad output columns to 128 lanes.
    wl, bl = lin_raw
    nl = _round_up(wl.shape[1], 128)
    wlp = jnp.pad(wl.astype(jnp.bfloat16), ((0, 0), (0, nl - wl.shape[1])))
    blp = jnp.pad(bl.reshape(1, -1), ((0, 0), (0, nl - bl.shape[0])))

    params = dict(head=tuple(head_params),
                  tail=(w5, b5, w6, b6, w7, b7, w8, b8, w9, b9, wlp, blp))
    metas = dict(head=tuple(head_metas), h5=h5_meta, n_out=wl.shape[1])
    return metas, params


# ----------------------------------------------------------------------------
# Full Discriminator forward (jitted; metadata static, arrays are jit args).
# ----------------------------------------------------------------------------
def make_forward(metas):
    head_metas = metas["head"]
    h5_meta = metas["h5"]
    n_out = metas["n_out"]

    def forward(x_nchw, params):
        x = jnp.transpose(x_nchw, (0, 2, 3, 1)).astype(jnp.bfloat16)  # NHWC bf16
        n = x.shape[0]
        # h1..h4: bf16 im2col + single-step Pallas matmul per layer.
        for (k, s, p, ho, wo, cout), (wp, bp) in zip(head_metas, params["head"]):
            patches = _im2col_nhwc(x, k, s, p, ho, wo).reshape(n * ho * wo, -1)
            y = conv_matmul(patches, wp, bp, cout)
            x = y.reshape(n, ho, wo, cout)
        # h5 patches laid out (spatial position, batch, K) so the fused tail
        # kernel needs no in-kernel reshapes.
        k, s, p, ho, wo, cout = h5_meta
        p5 = _im2col_nhwc(x, k, s, p, ho, wo).reshape(n, ho * wo, -1)
        p5 = jnp.transpose(p5, (1, 0, 2))
        mp = max(8, _round_up(n, 8))
        if mp != n:
            p5 = jnp.pad(p5, ((0, 0), (0, mp - n), (0, 0)))
        out = tail_forward(p5, params["tail"])               # (mp, 128) f32
        return out[:n, :n_out]                               # (N, 1)

    return jax.jit(forward)


# ----------------------------------------------------------------------------
# Pure-JAX f32 reference for a tolerance-based parity check.
# ----------------------------------------------------------------------------
def reference_forward(x_nchw, conv_raw, lin_raw):
    x = jnp.transpose(x_nchw, (0, 2, 3, 1)).astype(jnp.float32)
    for (wc, bc, s, p) in conv_raw:
        y = jax.lax.conv_general_dilated(
            x, wc, window_strides=(s, s), padding=[(p, p), (p, p)],
            dimension_numbers=("NHWC", "HWIO", "NHWC"))
        y = y + bc
        x = jnp.where(y > 0.0, y, 0.2 * y)
    flat = x.reshape(x.shape[0], -1)           # final map is 1x1x512
    wl, bl = lin_raw
    return jax.nn.sigmoid(flat @ wl + bl)


if __name__ == "__main__":
    key = jax.random.PRNGKey(0)
    kx, kp = jax.random.split(key)

    # 3-channel input; 32x32 spatial reduces to 1x1 after the 9 convs, so
    # Flatten -> 512 features matches nn.Linear(512, 1).
    x = jax.random.normal(kx, (2, 3, 32, 32), jnp.float32)

    conv_raw, lin_raw = init_raw_params(kp)
    metas, params = prepare(conv_raw, lin_raw, (32, 32))

    fwd = make_forward(metas)
    out = jax.block_until_ready(fwd(x, params))
    assert out.shape == (2, 1), out.shape
    assert bool(jnp.all(jnp.isfinite(out)))

    ref = jax.block_until_ready(reference_forward(x, conv_raw, lin_raw))
    err = float(jnp.max(jnp.abs(out - ref)))
    assert err < 5e-2, f"max |pallas - reference| = {err}"

    print("KERNEL_OK")
</pallas_src>

<mosaic_0001>
module attributes {stable_mosaic.version = 11 : i64} {
  func.func @_conv_mm_kernel(%arg0: i32, %arg1: memref<256x128xbf16, #tpu.memory_space<vmem>>, %arg2: memref<128x128xbf16, #tpu.memory_space<vmem>>, %arg3: memref<1x128xf32, #tpu.memory_space<vmem>>, %arg4: memref<256x128xbf16, #tpu.memory_space<vmem>>) attributes {dimension_semantics = [#tpu.dimension_semantics<parallel>], iteration_bounds = array<i64: 2>, scalar_prefetch = 0 : i64, scratch_operands = 0 : i64, tpu.core_type = #tpu.core_type<tc>, window_params = [{transform_indices = @transform_0, window_bounds = array<i64: 256, 128>}, {pipeline_mode = #tpu.pipeline_mode<synchronous>, transform_indices = @transform_1, window_bounds = array<i64: 128, 128>}, {pipeline_mode = #tpu.pipeline_mode<synchronous>, transform_indices = @transform_2, window_bounds = array<i64: 1, 128>}, {transform_indices = @transform_3, window_bounds = array<i64: 256, 128>}]} {
    %c0 = arith.constant 0 : index
    %c0_0 = arith.constant 0 : index
    %0 = vector.load %arg1[%c0, %c0_0] : memref<256x128xbf16, #tpu.memory_space<vmem>>, vector<256x128xbf16>
    %c0_1 = arith.constant 0 : index
    %c0_2 = arith.constant 0 : index
    %1 = vector.load %arg2[%c0_1, %c0_2] : memref<128x128xbf16, #tpu.memory_space<vmem>>, vector<128x128xbf16>
    %cst = arith.constant dense<0.000000e+00> : vector<256x128xf32>
    %2 = tpu.matmul %0, %1, %cst {dimension_numbers = #tpu.dot_dimension_numbers<[1], [0], [0], [1], [0, 0, 1, 1], [], []>} : vector<256x128xbf16>, vector<128x128xbf16>, vector<256x128xf32> -> vector<256x128xf32>
    %c0_3 = arith.constant 0 : index
    %c0_4 = arith.constant 0 : index
    %3 = vector.load %arg3[%c0_3, %c0_4] : memref<1x128xf32, #tpu.memory_space<vmem>>, vector<1x128xf32>
    %4 = vector.broadcast %3 : vector<1x128xf32> to vector<256x128xf32>
    %5 = arith.addf %2, %4 : vector<256x128xf32>
    %cst_5 = arith.constant 0.000000e+00 : f32
    %6 = vector.broadcast %cst_5 : f32 to vector<256x128xf32>
    %7 = arith.cmpf ogt, %5, %6 : vector<256x128xf32>
    %cst_6 = arith.constant 2.000000e-01 : f32
    %8 = vector.broadcast %cst_6 : f32 to vector<256x128xf32>
    %9 = arith.mulf %8, %5 : vector<256x128xf32>
    %10 = arith.select %7, %5, %9 : vector<256x128xi1>, vector<256x128xf32>
    %11 = arith.truncf %10 : vector<256x128xf32> to vector<256x128xbf16>
    %c0_7 = arith.constant 0 : index
    %c0_8 = arith.constant 0 : index
    %12 = vector.load %arg4[%c0_7, %c0_8] : memref<256x128xbf16, #tpu.memory_space<vmem>>, vector<256x128xbf16>
    tpu.vector_store %arg4[%c0_7, %c0_8], %11 {strides = array<i32>} : memref<256x128xbf16, #tpu.memory_space<vmem>>, vector<256x128xbf16>,
    return
  }
  func.func @transform_0(%arg0: i32) -> (i32, i32) {
    %c0_i32 = arith.constant 0 : i32
    %c0_i32_0 = arith.constant 0 : i32
    return %arg0, %c0_i32 : i32, i32
  }
  func.func @transform_1(%arg0: i32) -> (i32, i32) {
    %c0_i32 = arith.constant 0 : i32
    %c0_i32_0 = arith.constant 0 : i32
    %c0_i32_1 = arith.constant 0 : i32
    return %c0_i32, %c0_i32_0 : i32, i32
  }
  func.func @transform_2(%arg0: i32) -> (i32, i32) {
    %c0_i32 = arith.constant 0 : i32
    %c0_i32_0 = arith.constant 0 : i32
    %c0_i32_1 = arith.constant 0 : i32
    return %c0_i32, %c0_i32_0 : i32, i32
  }
  func.func @transform_3(%arg0: i32) -> (i32, i32) {
    %c0_i32 = arith.constant 0 : i32
    %c0_i32_0 = arith.constant 0 : i32
    return %arg0, %c0_i32 : i32, i32
  }
}

module attributes {stable_mosaic.version = 11 : i64} {
  func.func @_conv_mm_kernel(%arg0: i32, %arg1: memref<256x896xbf16, #tpu.memory_space<vmem>>, %arg2: memref<896x128xbf16, #tpu.memory_space<vmem>>, %arg3: memref<1x128xf32, #tpu.memory_space<vmem>>, %arg4: memref<256x128xbf16, #tpu.memory_space<vmem>>) attributes {dimension_semantics = [#tpu.dimension_semantics<parallel>], iteration_bounds = array<i64: 2>, scalar_prefetch = 0 : i64, scratch_operands = 0 : i64, tpu.core_type = #tpu.core_type<tc>, window_params = [{transform_indices = @transform_0, window_bounds = array<i64: 256, 896>}, {pipeline_mode = #tpu.pipeline_mode<synchronous>, transform_indices = @transform_1, window_bounds = array<i64: 896, 128>}, {pipeline_mode = #tpu.pipeline_mode<synchronous>, transform_indices = @transform_2, window_bounds = array<i64: 1, 128>}, {transform_indices = @transform_3, window_bounds = array<i64: 256, 128>}]} {
    %c0 = arith.constant 0 : index
    %c0_0 = arith.constant 0 : index
    %0 = vector.load %arg1[%c0, %c0_0] : memref<256x896xbf16, #tpu.memory_space<vmem>>, vector<256x896xbf16>
    %c0_1 = arith.constant 0 : index
    %c0_2 = arith.constant 0 : index
    %1 = vector.load %arg2[%c0_1, %c0_2] : memref<896x128xbf16, #tpu.memory_space<vmem>>, vector<896x128xbf16>
    %cst = arith.constant dense<0.000000e+00> : vector<256x128xf32>
    %2 = tpu.matmul %0, %1, %cst {dimension_numbers = #tpu.dot_dimension_numbers<[1], [0], [0], [1], [0, 0, 1, 1], [], []>} : vector<256x896xbf16>, vector<896x128xbf16>, vector<256x128xf32> -> vector<256x128xf32>
    %c0_3 = arith.constant 0 : index
    %c0_4 = arith.constant 0 : index
    %3 = vector.load %arg3[%c0_3, %c0_4] : memref<1x128xf32, #tpu.memory_space<vmem>>, vector<1x128xf32>
    %4 = vector.broadcast %3 : vector<1x128xf32> to vector<256x128xf32>
    %5 = arith.addf %2, %4 : vector<256x128xf32>
    %cst_5 = arith.constant 0.000000e+00 : f32
    %6 = vector.broadcast %cst_5 : f32 to vector<256x128xf32>
    %7 = arith.cmpf ogt, %5, %6 : vector<256x128xf32>
    %cst_6 = arith.constant 2.000000e-01 : f32
    %8 = vector.broadcast %cst_6 : f32 to vector<256x128xf32>
    %9 = arith.mulf %8, %5 : vector<256x128xf32>
    %10 = arith.select %7, %5, %9 : vector<256x128xi1>, vector<256x128xf32>
    %11 = arith.truncf %10 : vector<256x128xf32> to vector<256x128xbf16>
    %c0_7 = arith.constant 0 : index
    %c0_8 = arith.constant 0 : index
    %12 = vector.load %arg4[%c0_7, %c0_8] : memref<256x128xbf16, #tpu.memory_space<vmem>>, vector<256x128xbf16>
    tpu.vector_store %arg4[%c0_7, %c0_8], %11 {strides = array<i32>} : memref<256x128xbf16, #tpu.memory_space<vmem>>, vector<256x128xbf16>,
    return
  }
  func.func @transform_0(%arg0: i32) -> (i32, i32) {
    %c0_i32 = arith.constant 0 : i32
    %c0_i32_0 = arith.constant 0 : i32
    return %arg0, %c0_i32 : i32, i32
  }
  func.func @transform_1(%arg0: i32) -> (i32, i32) {
    %c0_i32 = arith.constant 0 : i32
    %c0_i32_0 = arith.constant 0 : i32
    %c0_i32_1 = arith.constant 0 : i32
    return %c0_i32, %c0_i32_0 : i32, i32
  }
  func.func @transform_2(%arg0: i32) -> (i32, i32) {
    %c0_i32 = arith.constant 0 : i32
    %c0_i32_0 = arith.constant 0 : i32
    %c0_i32_1 = arith.constant 0 : i32
    return %c0_i32, %c0_i32_0 : i32, i32
  }
  func.func @transform_3(%arg0: i32) -> (i32, i32) {
    %c0_i32 = arith.constant 0 : i32
    %c0_i32_0 = arith.constant 0 : i32
    return %arg0, %c0_i32 : i32, i32
  }
}

module attributes {stable_mosaic.version = 11 : i64} {
  func.func @_conv_mm_kernel(%arg0: i32, %arg1: memref<128x1664xbf16, #tpu.memory_space<vmem>>, %arg2: memref<1664x128xbf16, #tpu.memory_space<vmem>>, %arg3: memref<1x128xf32, #tpu.memory_space<vmem>>, %arg4: memref<128x128xbf16, #tpu.memory_space<vmem>>) attributes {dimension_semantics = [#tpu.dimension_semantics<parallel>], iteration_bounds = array<i64: 1>, scalar_prefetch = 0 : i64, scratch_operands = 0 : i64, tpu.core_type = #tpu.core_type<tc>, window_params = [{transform_indices = @transform_0, window_bounds = array<i64: 128, 1664>}, {pipeline_mode = #tpu.pipeline_mode<synchronous>, transform_indices = @transform_1, window_bounds = array<i64: 1664, 128>}, {pipeline_mode = #tpu.pipeline_mode<synchronous>, transform_indices = @transform_2, window_bounds = array<i64: 1, 128>}, {transform_indices = @transform_3, window_bounds = array<i64: 128, 128>}]} {
    %c0 = arith.constant 0 : index
    %c0_0 = arith.constant 0 : index
    %0 = vector.load %arg1[%c0, %c0_0] : memref<128x1664xbf16, #tpu.memory_space<vmem>>, vector<128x1664xbf16>
    %c0_1 = arith.constant 0 : index
    %c0_2 = arith.constant 0 : index
    %1 = vector.load %arg2[%c0_1, %c0_2] : memref<1664x128xbf16, #tpu.memory_space<vmem>>, vector<1664x128xbf16>
    %cst = arith.constant dense<0.000000e+00> : vector<128x128xf32>
    %2 = tpu.matmul %0, %1, %cst {dimension_numbers = #tpu.dot_dimension_numbers<[1], [0], [0], [1], [0, 0, 1, 1], [], []>} : vector<128x1664xbf16>, vector<1664x128xbf16>, vector<128x128xf32> -> vector<128x128xf32>
    %c0_3 = arith.constant 0 : index
    %c0_4 = arith.constant 0 : index
    %3 = vector.load %arg3[%c0_3, %c0_4] : memref<1x128xf32, #tpu.memory_space<vmem>>, vector<1x128xf32>
    %4 = vector.broadcast %3 : vector<1x128xf32> to vector<128x128xf32>
    %5 = arith.addf %2, %4 : vector<128x128xf32>
    %cst_5 = arith.constant 0.000000e+00 : f32
    %6 = vector.broadcast %cst_5 : f32 to vector<128x128xf32>
    %7 = arith.cmpf ogt, %5, %6 : vector<128x128xf32>
    %cst_6 = arith.constant 2.000000e-01 : f32
    %8 = vector.broadcast %cst_6 : f32 to vector<128x128xf32>
    %9 = arith.mulf %8, %5 : vector<128x128xf32>
    %10 = arith.select %7, %5, %9 : vector<128x128xi1>, vector<128x128xf32>
    %11 = arith.truncf %10 : vector<128x128xf32> to vector<128x128xbf16>
    %c0_7 = arith.constant 0 : index
    %c0_8 = arith.constant 0 : index
    %12 = vector.load %arg4[%c0_7, %c0_8] : memref<128x128xbf16, #tpu.memory_space<vmem>>, vector<128x128xbf16>
    tpu.vector_store %arg4[%c0_7, %c0_8], %11 {strides = array<i32>} : memref<128x128xbf16, #tpu.memory_space<vmem>>, vector<128x128xbf16>,
    return
  }
  func.func @transform_0(%arg0: i32) -> (i32, i32) {
    %c0_i32 = arith.constant 0 : i32
    %c0_i32_0 = arith.constant 0 : i32
    return %arg0, %c0_i32 : i32, i32
  }
  func.func @transform_1(%arg0: i32) -> (i32, i32) {
    %c0_i32 = arith.constant 0 : i32
    %c0_i32_0 = arith.constant 0 : i32
    %c0_i32_1 = arith.constant 0 : i32
    return %c0_i32, %c0_i32_0 : i32, i32
  }
  func.func @transform_2(%arg0: i32) -> (i32, i32) {
    %c0_i32 = arith.constant 0 : i32
    %c0_i32_0 = arith.constant 0 : i32
    %c0_i32_1 = arith.constant 0 : i32
    return %c0_i32, %c0_i32_0 : i32, i32
  }
  func.func @transform_3(%arg0: i32) -> (i32, i32) {
    %c0_i32 = arith.constant 0 : i32
    %c0_i32_0 = arith.constant 0 : i32
    return %arg0, %c0_i32 : i32, i32
  }
}

module attributes {stable_mosaic.version = 11 : i64} {
  func.func @_tail_kernel(%arg0: i32, %arg1: memref<4x8x3200xbf16, #tpu.memory_space<vmem>>, %arg2: memref<3200x128xbf16, #tpu.memory_space<vmem>>, %arg3: memref<1x128xf32, #tpu.memory_space<vmem>>, %arg4: memref<4x128x1024xbf16, #tpu.memory_space<vmem>>, %arg5: memref<1x1024xf32, #tpu.memory_space<vmem>>, %arg6: memref<1024x256xbf16, #tpu.memory_space<vmem>>, %arg7: memref<1x256xf32, #tpu.memory_space<vmem>>, %arg8: memref<256x512xbf16, #tpu.memory_space<vmem>>, %arg9: memref<1x512xf32, #tpu.memory_space<vmem>>, %arg10: memref<512x512xbf16, #tpu.memory_space<vmem>>, %arg11: memref<1x512xf32, #tpu.memory_space<vmem>>, %arg12: memref<512x128xbf16, #tpu.memory_space<vmem>>, %arg13: memref<1x128xf32, #tpu.memory_space<vmem>>, %arg14: memref<8x128xf32, #tpu.memory_space<vmem>>) attributes {dimension_semantics = [#tpu.dimension_semantics<arbitrary>], iteration_bounds = array<i64: 1>, scalar_prefetch = 0 : i64, scratch_operands = 0 : i64, tpu.core_type = #tpu.core_type<tc>, window_params = [{pipeline_mode = #tpu.pipeline_mode<synchronous>, transform_indices = @transform_0, window_bounds = array<i64: 4, 8, 3200>}, {pipeline_mode = #tpu.pipeline_mode<synchronous>, transform_indices = @transform_1, window_bounds = array<i64: 3200, 128>}, {pipeline_mode = #tpu.pipeline_mode<synchronous>, transform_indices = @transform_2, window_bounds = array<i64: 1, 128>}, {pipeline_mode = #tpu.pipeline_mode<synchronous>, transform_indices = @transform_3, window_bounds = array<i64: 4, 128, 1024>}, {pipeline_mode = #tpu.pipeline_mode<synchronous>, transform_indices = @transform_4, window_bounds = array<i64: 1, 1024>}, {pipeline_mode = #tpu.pipeline_mode<synchronous>, transform_indices = @transform_5, window_bounds = array<i64: 1024, 256>}, {pipeline_mode = #tpu.pipeline_mode<synchronous>, transform_indices = @transform_6, window_bounds = array<i64: 1, 256>}, {pipeline_mode = #tpu.pipeline_mode<synchronous>, transform_indices = @transform_7, window_bounds = array<i64: 256, 512>}, {pipeline_mode = #tpu.pipeline_mode<synchronous>, transform_indices = @transform_8, window_bounds = array<i64: 1, 512>}, {pipeline_mode = #tpu.pipeline_mode<synchronous>, transform_indices = @transform_9, window_bounds = array<i64: 512, 512>}, {pipeline_mode = #tpu.pipeline_mode<synchronous>, transform_indices = @transform_10, window_bounds = array<i64: 1, 512>}, {pipeline_mode = #tpu.pipeline_mode<synchronous>, transform_indices = @transform_11, window_bounds = array<i64: 512, 128>}, {pipeline_mode = #tpu.pipeline_mode<synchronous>, transform_indices = @transform_12, window_bounds = array<i64: 1, 128>}, {pipeline_mode = #tpu.pipeline_mode<synchronous>, transform_indices = @transform_13, window_bounds = array<i64: 8, 128>}]} {
    %c0 = arith.constant 0 : index
    %c0_0 = arith.constant 0 : index
    %0 = vector.load %arg2[%c0, %c0_0] : memref<3200x128xbf16, #tpu.memory_space<vmem>>, vector<3200x128xbf16>
    %c0_1 = arith.constant 0 : index
    %c0_2 = arith.constant 0 : index
    %c0_3 = arith.constant 0 : index
    %1 = vector.load %arg1[%c0_1, %c0_2, %c0_3] : memref<4x8x3200xbf16, #tpu.memory_space<vmem>>, vector<1x8x3200xbf16>
    %2 = vector.shape_cast %1 : vector<1x8x3200xbf16> to vector<8x3200xbf16>
    %cst = arith.constant dense<0.000000e+00> : vector<8x128xf32>
    %3 = tpu.matmul %2, %0, %cst {dimension_numbers = #tpu.dot_dimension_numbers<[1], [0], [0], [1], [0, 0, 1, 1], [], []>} : vector<8x3200xbf16>, vector<3200x128xbf16>, vector<8x128xf32> -> vector<8x128xf32>
    %c0_4 = arith.constant 0 : index
    %c0_5 = arith.constant 0 : index
    %4 = vector.load %arg3[%c0_4, %c0_5] : memref<1x128xf32, #tpu.memory_space<vmem>>, vector<1x128xf32>
    %5 = vector.broadcast %4 : vector<1x128xf32> to vector<8x128xf32>
    %6 = arith.addf %3, %5 : vector<8x128xf32>
    %cst_6 = arith.constant 0.000000e+00 : f32
    %7 = vector.broadcast %cst_6 : f32 to vector<8x128xf32>
    %8 = arith.cmpf ogt, %6, %7 : vector<8x128xf32>
    %cst_7 = arith.constant 2.000000e-01 : f32
    %9 = vector.broadcast %cst_7 : f32 to vector<8x128xf32>
    %10 = arith.mulf %9, %6 : vector<8x128xf32>
    %11 = arith.select %8, %6, %10 : vector<8x128xi1>, vector<8x128xf32>
    %12 = arith.truncf %11 : vector<8x128xf32> to vector<8x128xbf16>
    %c0_8 = arith.constant 0 : index
    %c0_9 = arith.constant 0 : index
    %c0_10 = arith.constant 0 : index
    %13 = vector.load %arg4[%c0_8, %c0_9, %c0_10] : memref<4x128x1024xbf16, #tpu.memory_space<vmem>>, vector<1x128x1024xbf16>
    %14 = vector.shape_cast %13 : vector<1x128x1024xbf16> to vector<128x1024xbf16>
    %cst_11 = arith.constant dense<0.000000e+00> : vector<8x1024xf32>
    %15 = tpu.matmul %12, %14, %cst_11 {dimension_numbers = #tpu.dot_dimension_numbers<[1], [0], [0], [1], [0, 0, 1, 1], [], []>} : vector<8x128xbf16>, vector<128x1024xbf16>, vector<8x1024xf32> -> vector<8x1024xf32>
    %c1 = arith.constant 1 : index
    %c0_12 = arith.constant 0 : index
    %c0_13 = arith.constant 0 : index
    %16 = vector.load %arg1[%c1, %c0_12, %c0_13] : memref<4x8x3200xbf16, #tpu.memory_space<vmem>>, vector<1x8x3200xbf16>
    %17 = vector.shape_cast %16 : vector<1x8x3200xbf16> to vector<8x3200xbf16>
    %cst_14 = arith.constant dense<0.000000e+00> : vector<8x128xf32>
    %18 = tpu.matmul %17, %0, %cst_14 {dimension_numbers = #tpu.dot_dimension_numbers<[1], [0], [0], [1], [0, 0, 1, 1], [], []>} : vector<8x3200xbf16>, vector<3200x128xbf16>, vector<8x128xf32> -> vector<8x128xf32>
    %c0_15 = arith.constant 0 : index
    %c0_16 = arith.constant 0 : index
    %19 = vector.load %arg3[%c0_15, %c0_16] : memref<1x128xf32, #tpu.memory_space<vmem>>, vector<1x128xf32>
    %20 = vector.broadcast %19 : vector<1x128xf32> to vector<8x128xf32>
    %21 = arith.addf %18, %20 : vector<8x128xf32>
    %cst_17 = arith.constant 0.000000e+00 : f32
    %22 = vector.broadcast %cst_17 : f32 to vector<8x128xf32>
    %23 = arith.cmpf ogt, %21, %22 : vector<8x128xf32>
    %cst_18 = arith.constant 2.000000e-01 : f32
    %24 = vector.broadcast %cst_18 : f32 to vector<8x128xf32>
    %25 = arith.mulf %24, %21 : vector<8x128xf32>
    %26 = arith.select %23, %21, %25 : vector<8x128xi1>, vector<8x128xf32>
    %27 = arith.truncf %26 : vector<8x128xf32> to vector<8x128xbf16>
    %c1_19 = arith.constant 1 : index
    %c0_20 = arith.constant 0 : index
    %c0_21 = arith.constant 0 : index
    %28 = vector.load %arg4[%c1_19, %c0_20, %c0_21] : memref<4x128x1024xbf16, #tpu.memory_space<vmem>>, vector<1x128x1024xbf16>
    %29 = vector.shape_cast %28 : vector<1x128x1024xbf16> to vector<128x1024xbf16>
    %cst_22 = arith.constant dense<0.000000e+00> : vector<8x1024xf32>
    %30 = tpu.matmul %27, %29, %cst_22 {dimension_numbers = #tpu.dot_dimension_numbers<[1], [0], [0], [1], [0, 0, 1, 1], [], []>} : vector<8x128xbf16>, vector<128x1024xbf16>, vector<8x1024xf32> -> vector<8x1024xf32>
    %31 = arith.addf %15, %30 : vector<8x1024xf32>
    %c2 = arith.constant 2 : index
    %c0_23 = arith.constant 0 : index
    %c0_24 = arith.constant 0 : index
    %32 = vector.load %arg1[%c2, %c0_23, %c0_24] : memref<4x8x3200xbf16, #tpu.memory_space<vmem>>, vector<1x8x3200xbf16>
    %33 = vector.shape_cast %32 : vector<1x8x3200xbf16> to vector<8x3200xbf16>
    %cst_25 = arith.constant dense<0.000000e+00> : vector<8x128xf32>
    %34 = tpu.matmul %33, %0, %cst_25 {dimension_numbers = #tpu.dot_dimension_numbers<[1], [0], [0], [1], [0, 0, 1, 1], [], []>} : vector<8x3200xbf16>, vector<3200x128xbf16>, vector<8x128xf32> -> vector<8x128xf32>
    %c0_26 = arith.constant 0 : index
    %c0_27 = arith.constant 0 : index
    %35 = vector.load %arg3[%c0_26, %c0_27] : memref<1x128xf32, #tpu.memory_space<vmem>>, vector<1x128xf32>
    %36 = vector.broadcast %35 : vector<1x128xf32> to vector<8x128xf32>
    %37 = arith.addf %34, %36 : vector<8x128xf32>
    %cst_28 = arith.constant 0.000000e+00 : f32
    %38 = vector.broadcast %cst_28 : f32 to vector<8x128xf32>
    %39 = arith.cmpf ogt, %37, %38 : vector<8x128xf32>
    %cst_29 = arith.constant 2.000000e-01 : f32
    %40 = vector.broadcast %cst_29 : f32 to vector<8x128xf32>
    %41 = arith.mulf %40, %37 : vector<8x128xf32>
    %42 = arith.select %39, %37, %41 : vector<8x128xi1>, vector<8x128xf32>
    %43 = arith.truncf %42 : vector<8x128xf32> to vector<8x128xbf16>
    %c2_30 = arith.constant 2 : index
    %c0_31 = arith.constant 0 : index
    %c0_32 = arith.constant 0 : index
    %44 = vector.load %arg4[%c2_30, %c0_31, %c0_32] : memref<4x128x1024xbf16, #tpu.memory_space<vmem>>, vector<1x128x1024xbf16>
    %45 = vector.shape_cast %44 : vector<1x128x1024xbf16> to vector<128x1024xbf16>
    %cst_33 = arith.constant dense<0.000000e+00> : vector<8x1024xf32>
    %46 = tpu.matmul %43, %45, %cst_33 {dimension_numbers = #tpu.dot_dimension_numbers<[1], [0], [0], [1], [0, 0, 1, 1], [], []>} : vector<8x128xbf16>, vector<128x1024xbf16>, vector<8x1024xf32> -> vector<8x1024xf32>
    %47 = arith.addf %31, %46 : vector<8x1024xf32>
    %c3 = arith.constant 3 : index
    %c0_34 = arith.constant 0 : index
    %c0_35 = arith.constant 0 : index
    %48 = vector.load %arg1[%c3, %c0_34, %c0_35] : memref<4x8x3200xbf16, #tpu.memory_space<vmem>>, vector<1x8x3200xbf16>
    %49 = vector.shape_cast %48 : vector<1x8x3200xbf16> to vector<8x3200xbf16>
    %cst_36 = arith.constant dense<0.000000e+00> : vector<8x128xf32>
    %50 = tpu.matmul %49, %0, %cst_36 {dimension_numbers = #tpu.dot_dimension_numbers<[1], [0], [0], [1], [0, 0, 1, 1], [], []>} : vector<8x3200xbf16>, vector<3200x128xbf16>, vector<8x128xf32> -> vector<8x128xf32>
    %c0_37 = arith.constant 0 : index
    %c0_38 = arith.constant 0 : index
    %51 = vector.load %arg3[%c0_37, %c0_38] : memref<1x128xf32, #tpu.memory_space<vmem>>, vector<1x128xf32>
    %52 = vector.broadcast %51 : vector<1x128xf32> to vector<8x128xf32>
    %53 = arith.addf %50, %52 : vector<8x128xf32>
    %cst_39 = arith.constant 0.000000e+00 : f32
    %54 = vector.broadcast %cst_39 : f32 to vector<8x128xf32>
    %55 = arith.cmpf ogt, %53, %54 : vector<8x128xf32>
    %cst_40 = arith.constant 2.000000e-01 : f32
    %56 = vector.broadcast %cst_40 : f32 to vector<8x128xf32>
    %57 = arith.mulf %56, %53 : vector<8x128xf32>
    %58 = arith.select %55, %53, %57 : vector<8x128xi1>, vector<8x128xf32>
    %59 = arith.truncf %58 : vector<8x128xf32> to vector<8x128xbf16>
    %c3_41 = arith.constant 3 : index
    %c0_42 = arith.constant 0 : index
    %c0_43 = arith.constant 0 : index
    %60 = vector.load %arg4[%c3_41, %c0_42, %c0_43] : memref<4x128x1024xbf16, #tpu.memory_space<vmem>>, vector<1x128x1024xbf16>
    %61 = vector.shape_cast %60 : vector<1x128x1024xbf16> to vector<128x1024xbf16>
    %cst_44 = arith.constant dense<0.000000e+00> : vector<8x1024xf32>
    %62 = tpu.matmul %59, %61, %cst_44 {dimension_numbers = #tpu.dot_dimension_numbers<[1], [0], [0], [1], [0, 0, 1, 1], [], []>} : vector<8x128xbf16>, vector<128x1024xbf16>, vector<8x1024xf32> -> vector<8x1024xf32>
    %63 = arith.addf %47, %62 : vector<8x1024xf32>
    %c0_45 = arith.constant 0 : index
    %c0_46 = arith.constant 0 : index
    %64 = vector.load %arg5[%c0_45, %c0_46] : memref<1x1024xf32, #tpu.memory_space<vmem>>, vector<1x1024xf32>
    %65 = vector.broadcast %64 : vector<1x1024xf32> to vector<8x1024xf32>
    %66 = arith.addf %63, %65 : vector<8x1024xf32>
    %cst_47 = arith.constant 0.000000e+00 : f32
    %67 = vector.broadcast %cst_47 : f32 to vector<8x1024xf32>
    %68 = arith.cmpf ogt, %66, %67 : vector<8x1024xf32>
    %cst_48 = arith.constant 2.000000e-01 : f32
    %69 = vector.broadcast %cst_48 : f32 to vector<8x1024xf32>
    %70 = arith.mulf %69, %66 : vector<8x1024xf32>
    %71 = arith.select %68, %66, %70 : vector<8x1024xi1>, vector<8x1024xf32>
    %72 = arith.truncf %71 : vector<8x1024xf32> to vector<8x1024xbf16>
    %c0_49 = arith.constant 0 : index
    %c0_50 = arith.constant 0 : index
    %73 = vector.load %arg6[%c0_49, %c0_50] : memref<1024x256xbf16, #tpu.memory_space<vmem>>, vector<1024x256xbf16>
    %cst_51 = arith.constant dense<0.000000e+00> : vector<8x256xf32>
    %74 = tpu.matmul %72, %73, %cst_51 {dimension_numbers = #tpu.dot_dimension_numbers<[1], [0], [0], [1], [0, 0, 1, 1], [], []>} : vector<8x1024xbf16>, vector<1024x256xbf16>, vector<8x256xf32> -> vector<8x256xf32>
    %c0_52 = arith.constant 0 : index
    %c0_53 = arith.constant 0 : index
    %75 = vector.load %arg7[%c0_52, %c0_53] : memref<1x256xf32, #tpu.memory_space<vmem>>, vector<1x256xf32>
    %76 = vector.broadcast %75 : vector<1x256xf32> to vector<8x256xf32>
    %77 = arith.addf %74, %76 : vector<8x256xf32>
    %cst_54 = arith.constant 0.000000e+00 : f32
    %78 = vector.broadcast %cst_54 : f32 to vector<8x256xf32>
    %79 = arith.cmpf ogt, %77, %78 : vector<8x256xf32>
    %cst_55 = arith.constant 2.000000e-01 : f32
    %80 = vector.broadcast %cst_55 : f32 to vector<8x256xf32>
    %81 = arith.mulf %80, %77 : vector<8x256xf32>
    %82 = arith.select %79, %77, %81 : vector<8x256xi1>, vector<8x256xf32>
    %83 = arith.truncf %82 : vector<8x256xf32> to vector<8x256xbf16>
    %c0_56 = arith.constant 0 : index
    %c0_57 = arith.constant 0 : index
    %84 = vector.load %arg8[%c0_56, %c0_57] : memref<256x512xbf16, #tpu.memory_space<vmem>>, vector<256x512xbf16>
    %cst_58 = arith.constant dense<0.000000e+00> : vector<8x512xf32>
    %85 = tpu.matmul %83, %84, %cst_58 {dimension_numbers = #tpu.dot_dimension_numbers<[1], [0], [0], [1], [0, 0, 1, 1], [], []>} : vector<8x256xbf16>, vector<256x512xbf16>, vector<8x512xf32> -> vector<8x512xf32>
    %c0_59 = arith.constant 0 : index
    %c0_60 = arith.constant 0 : index
    %86 = vector.load %arg9[%c0_59, %c0_60] : memref<1x512xf32, #tpu.memory_space<vmem>>, vector<1x512xf32>
    %87 = vector.broadcast %86 : vector<1x512xf32> to vector<8x512xf32>
    %88 = arith.addf %85, %87 : vector<8x512xf32>
    %cst_61 = arith.constant 0.000000e+00 : f32
    %89 = vector.broadcast %cst_61 : f32 to vector<8x512xf32>
    %90 = arith.cmpf ogt, %88, %89 : vector<8x512xf32>
    %cst_62 = arith.constant 2.000000e-01 : f32
    %91 = vector.broadcast %cst_62 : f32 to vector<8x512xf32>
    %92 = arith.mulf %91, %88 : vector<8x512xf32>
    %93 = arith.select %90, %88, %92 : vector<8x512xi1>, vector<8x512xf32>
    %94 = arith.truncf %93 : vector<8x512xf32> to vector<8x512xbf16>
    %c0_63 = arith.constant 0 : index
    %c0_64 = arith.constant 0 : index
    %95 = vector.load %arg10[%c0_63, %c0_64] : memref<512x512xbf16, #tpu.memory_space<vmem>>, vector<512x512xbf16>
    %cst_65 = arith.constant dense<0.000000e+00> : vector<8x512xf32>
    %96 = tpu.matmul %94, %95, %cst_65 {dimension_numbers = #tpu.dot_dimension_numbers<[1], [0], [0], [1], [0, 0, 1, 1], [], []>} : vector<8x512xbf16>, vector<512x512xbf16>, vector<8x512xf32> -> vector<8x512xf32>
    %c0_66 = arith.constant 0 : index
    %c0_67 = arith.constant 0 : index
    %97 = vector.load %arg11[%c0_66, %c0_67] : memref<1x512xf32, #tpu.memory_space<vmem>>, vector<1x512xf32>
    %98 = vector.broadcast %97 : vector<1x512xf32> to vector<8x512xf32>
    %99 = arith.addf %96, %98 : vector<8x512xf32>
    %cst_68 = arith.constant 0.000000e+00 : f32
    %100 = vector.broadcast %cst_68 : f32 to vector<8x512xf32>
    %101 = arith.cmpf ogt, %99, %100 : vector<8x512xf32>
    %cst_69 = arith.constant 2.000000e-01 : f32
    %102 = vector.broadcast %cst_69 : f32 to vector<8x512xf32>
    %103 = arith.mulf %102, %99 : vector<8x512xf32>
    %104 = arith.select %101, %99, %103 : vector<8x512xi1>, vector<8x512xf32>
    %105 = arith.truncf %104 : vector<8x512xf32> to vector<8x512xbf16>
    %c0_70 = arith.constant 0 : index
    %c0_71 = arith.constant 0 : index
    %106 = vector.load %arg12[%c0_70, %c0_71] : memref<512x128xbf16, #tpu.memory_space<vmem>>, vector<512x128xbf16>
    %cst_72 = arith.constant dense<0.000000e+00> : vector<8x128xf32>
    %107 = tpu.matmul %105, %106, %cst_72 {dimension_numbers = #tpu.dot_dimension_numbers<[1], [0], [0], [1], [0, 0, 1, 1], [], []>} : vector<8x512xbf16>, vector<512x128xbf16>, vector<8x128xf32> -> vector<8x128xf32>
    %c0_73 = arith.constant 0 : index
    %c0_74 = arith.constant 0 : index
    %108 = vector.load %arg13[%c0_73, %c0_74] : memref<1x128xf32, #tpu.memory_space<vmem>>, vector<1x128xf32>
    %109 = vector.broadcast %108 : vector<1x128xf32> to vector<8x128xf32>
    %110 = arith.addf %107, %109 : vector<8x128xf32>
    %111 = arith.negf %110 : vector<8x128xf32>
    %112 = math.exp %111 : vector<8x128xf32>
    %cst_75 = arith.constant 1.000000e+00 : f32
    %113 = vector.broadcast %cst_75 : f32 to vector<8x128xf32>
    %114 = arith.addf %113, %112 : vector<8x128xf32>
    %115 = arith.divf %113, %114 : vector<8x128xf32>
    %c0_76 = arith.constant 0 : index
    %c0_77 = arith.constant 0 : index
    %116 = vector.load %arg14[%c0_76, %c0_77] : memref<8x128xf32, #tpu.memory_space<vmem>>, vector<8x128xf32>
    tpu.vector_store %arg14[%c0_76, %c0_77], %115 {strides = array<i32>} : memref<8x128xf32, #tpu.memory_space<vmem>>, vector<8x128xf32>,
    return
  }
  func.func @transform_0(%arg0: i32) -> (i32, i32, i32) {
    %c0_i32 = arith.constant 0 : i32
    %c0_i32_0 = arith.constant 0 : i32
    %c0_i32_1 = arith.constant 0 : i32
    %c0_i32_2 = arith.constant 0 : i32
    return %c0_i32, %c0_i32_0, %c0_i32_1 : i32, i32, i32
  }
  func.func @transform_1(%arg0: i32) -> (i32, i32) {
    %c0_i32 = arith.constant 0 : i32
    %c0_i32_0 = arith.constant 0 : i32
    %c0_i32_1 = arith.constant 0 : i32
    return %c0_i32, %c0_i32_0 : i32, i32
  }
  func.func @transform_2(%arg0: i32) -> (i32, i32) {
    %c0_i32 = arith.constant 0 : i32
    %c0_i32_0 = arith.constant 0 : i32
    %c0_i32_1 = arith.constant 0 : i32
    return %c0_i32, %c0_i32_0 : i32, i32
  }
  func.func @transform_3(%arg0: i32) -> (i32, i32, i32) {
    %c0_i32 = arith.constant 0 : i32
    %c0_i32_0 = arith.constant 0 : i32
    %c0_i32_1 = arith.constant 0 : i32
    %c0_i32_2 = arith.constant 0 : i32
    return %c0_i32, %c0_i32_0, %c0_i32_1 : i32, i32, i32
  }
  func.func @transform_4(%arg0: i32) -> (i32, i32) {
    %c0_i32 = arith.constant 0 : i32
    %c0_i32_0 = arith.constant 0 : i32
    %c0_i32_1 = arith.constant 0 : i32
    return %c0_i32, %c0_i32_0 : i32, i32
  }
  func.func @transform_5(%arg0: i32) -> (i32, i32) {
    %c0_i32 = arith.constant 0 : i32
    %c0_i32_0 = arith.constant 0 : i32
    %c0_i32_1 = arith.constant 0 : i32
    return %c0_i32, %c0_i32_0 : i32, i32
  }
  func.func @transform_6(%arg0: i32) -> (i32, i32) {
    %c0_i32 = arith.constant 0 : i32
    %c0_i32_0 = arith.constant 0 : i32
    %c0_i32_1 = arith.constant 0 : i32
    return %c0_i32, %c0_i32_0 : i32, i32
  }
  func.func @transform_7(%arg0: i32) -> (i32, i32) {
    %c0_i32 = arith.constant 0 : i32
    %c0_i32_0 = arith.constant 0 : i32
    %c0_i32_1 = arith.constant 0 : i32
    return %c0_i32, %c0_i32_0 : i32, i32
  }
  func.func @transform_8(%arg0: i32) -> (i32, i32) {
    %c0_i32 = arith.constant 0 : i32
    %c0_i32_0 = arith.constant 0 : i32
    %c0_i32_1 = arith.constant 0 : i32
    return %c0_i32, %c0_i32_0 : i32, i32
  }
  func.func @transform_9(%arg0: i32) -> (i32, i32) {
    %c0_i32 = arith.constant 0 : i32
    %c0_i32_0 = arith.constant 0 : i32
    %c0_i32_1 = arith.constant 0 : i32
    return %c0_i32, %c0_i32_0 : i32, i32
  }
  func.func @transform_10(%arg0: i32) -> (i32, i32) {
    %c0_i32 = arith.constant 0 : i32
    %c0_i32_0 = arith.constant 0 : i32
    %c0_i32_1 = arith.constant 0 : i32
    return %c0_i32, %c0_i32_0 : i32, i32
  }
  func.func @transform_11(%arg0: i32) -> (i32, i32) {
    %c0_i32 = arith.constant 0 : i32
    %c0_i32_0 = arith.constant 0 : i32
    %c0_i32_1 = arith.constant 0 : i32
    return %c0_i32, %c0_i32_0 : i32, i32
  }
  func.func @transform_12(%arg0: i32) -> (i32, i32) {
    %c0_i32 = arith.constant 0 : i32
    %c0_i32_0 = arith.constant 0 : i32
    %c0_i32_1 = arith.constant 0 : i32
    return %c0_i32, %c0_i32_0 : i32, i32
  }
  func.func @transform_13(%arg0: i32) -> (i32, i32) {
    %c0_i32 = arith.constant 0 : i32
    %c0_i32_0 = arith.constant 0 : i32
    %c0_i32_1 = arith.constant 0 : i32
    return %c0_i32, %c0_i32_0 : i32, i32
  }
}

</mosaic_0001>

<bundles_post_ra>
// kernel: forward.5
= control target key start
LH: loop header
LB: loop body
LE: loop exit
PB: predicated region body
PF: predicated region fallthrough
CT: control target
= control target key end

     0   :  { %s1190_s12 = smov 0   ;;  %s1315_s0 = inlined_call_operand.vmem [shape: bf16[512,128], index: 0, kind: input, shape index: {}]   ;;  %s1316_s1 = inlined_call_operand.vmem [shape: bf16[128,128], index: 1, kind: input, shape index: {}]   ;;  %s1317_s2 = inlined_call_operand.vmem [shape: f32[1,128], index: 2, kind: input, shape index: {}]   ;;  %s1318_s3 = inlined_call_operand.vmem [shape: bf16[512,128], index: 3, kind: output, shape index: {}]  }
   0x1 LB: > { %s847_s13 = sadd.s32 4294967295, %s1168_s12   ;;  %p851_p0 = scmp.ge.s32.totalorder %s1168_s12, 1  ;;  %s1168_s12 = sphi %s1190_s12, %s13_s12  }
   0x2   : > { %p138_p1 = scmp.lt.s32.totalorder %s1168_s12, 3 }
   0x4   : > { %p139_p2 = pnand %p851_p0, %p138_p1 }
   0x5   : > { %s852_s16 = sshll.u32 (!%p139_p2), %s847_s13, 5 }
   0x6   : > { %142 = sbr.rel (%p139_p2) target bundleno = 279 (0x117), region = 32  ;;  %p163_p3 = scmp.lt.s32.totalorder (!%p139_p2), %s852_s16, 63 }
   0xb   : > { %v1138_v0 = vld [vmem:[%s1316_s1 + $0x38] sm:$0xff]   ;;  %v1139_v1 = vld [vmem:[%s1316_s1 + $0x30] sm:$0xff]   ;;  %s1320_s16 = smov (!%p163_p3, %s852_s16), 63  ;;  %v1140_v2 = vld [vmem:[%s1316_s1 + $0x28] sm:$0xff]  }
   0xc   : > { %1066 = vmatprep.subr.bf16.mxu0 %v1138_v0  ;;  %1114 = vmatprep.subr.bf16.mxu1 %v1138_v0  ;;  %s853_s21 = sshll.u32 %s1320_s16, 2  ;;  %v1141_v3 = vld [vmem:[%s1316_s1 + $0x20] sm:$0xff]   ;;  %v1142_v6 = vld [vmem:[%s1316_s1 + $0x18] sm:$0xff]   ;;  %v1143_v7 = vld [vmem:[%s1316_s1 + $0x10] sm:$0xff]  }
   0xd   : > { %1067 = vmatpush3.bf16.msra.mxu0 %v1138_v0  ;;  %1122 = vmatpush3.bf16.msra.mxu1 %v1138_v0  ;;  %s1215_s24 = scalar_lea.vmem %s1315_s0, %s853_s21  ;;  %v1144_v8 = vld [vmem:[%s1316_s1 + $0x8] sm:$0xff]   ;;  %v1145_v9 = vld [vmem:[%s1316_s1] sm:$0xff]   ;;  %s1266_s13 = scalar_lea.vmem %s1318_s3, %s853_s21 }
   0xe   : > { %1068 = vmatprep.subr.bf16.mxu0 %v1139_v1  ;;  %1115 = vmatprep.subr.bf16.mxu1 %v1139_v1  ;;  %v1146_v4 = vld [vmem:[%s1215_s24] sm:$0xff]   ;;  %v1148_v10 = vld [vmem:[%s1215_s24 + $0x8] sm:$0xff]   ;;  %v1150_v12 = vld [vmem:[%s1215_s24 + $0x10] sm:$0xff]  }
   0xf   : > { %v1147_v5 = vld [vmem:[%s1215_s24 + $0x40] sm:$0xff]   ;;  %1082 = vmatprep.mubr.bf16.mxu0 %v1146_v4  ;;  %v1149_v11 = vld [vmem:[%s1215_s24 + $0x48] sm:$0xff]   ;;  %v1151_v13 = vld [vmem:[%s1215_s24 + $0x50] sm:$0xff]  }
  0x10   : > { %1098 = vmatprep.mubr.bf16.mxu1 %v1147_v5  ;;  %v1152_v14 = vld [vmem:[%s1215_s24 + $0x18] sm:$0xff]   ;;  %v1154_v16 = vld [vmem:[%s1215_s24 + $0x20] sm:$0xff]   ;;  %v1156_v18 = vld [vmem:[%s1215_s24 + $0x28] sm:$0xff]  }
  0x11   : > { %1069 = vmatpush3.bf16.msra.mxu0 %v1139_v1  ;;  %1123 = vmatpush3.bf16.msra.mxu1 %v1139_v1  ;;  %v1153_v15 = vld [vmem:[%s1215_s24 + $0x58] sm:$0xff]   ;;  %v1155_v17 = vld [vmem:[%s1215_s24 + $0x60] sm:$0xff]   ;;  %v1157_v19 = vld [vmem:[%s1215_s24 + $0x68] sm:$0xff]  }
  0x12   : > { %1070 = vmatprep.subr.bf16.mxu0 %v1140_v2  ;;  %1116 = vmatprep.subr.bf16.mxu1 %v1140_v2  ;;  %v1158_v20 = vld [vmem:[%s1215_s24 + $0x30] sm:$0xff]   ;;  %v1160_v22 = vld [vmem:[%s1215_s24 + $0x38] sm:$0xff]   ;;  %v1251_v24 = vld [vmem:[%s1317_s2] ss:$0 sm:$0xff] }
  0x13   : > { %v1159_v21 = vld [vmem:[%s1215_s24 + $0x70] sm:$0xff]   ;;  %v1161_v23 = vld [vmem:[%s1215_s24 + $0x78] sm:$0xff]  }
  0x15   : > { %1071 = vmatpush3.bf16.msra.mxu0 %v1140_v2  ;;  %1124 = vmatpush3.bf16.msra.mxu1 %v1140_v2 }
  0x16   : > { %1072 = vmatprep.subr.bf16.mxu0 %v1141_v3  ;;  %1117 = vmatprep.subr.bf16.mxu1 %v1141_v3 }
  0x19   : > { %1073 = vmatpush3.bf16.msra.mxu0 %v1141_v3  ;;  %1125 = vmatpush3.bf16.msra.mxu1 %v1141_v3 }
  0x1a   : > { %1074 = vmatprep.subr.bf16.mxu0 %v1142_v6  ;;  %1118 = vmatprep.subr.bf16.mxu1 %v1142_v6 }
  0x1d   : > { %1075 = vmatpush3.bf16.msra.mxu0 %v1142_v6  ;;  %1126 = vmatpush3.bf16.msra.mxu1 %v1142_v6 }
  0x1e   : > { %1076 = vmatprep.subr.bf16.mxu0 %v1143_v7  ;;  %1119 = vmatprep.subr.bf16.mxu1 %v1143_v7 }
  0x21   : > { %1077 = vmatpush3.bf16.msra.mxu0 %v1143_v7  ;;  %1127 = vmatpush3.bf16.msra.mxu1 %v1143_v7 }
  0x22   : > { %1078 = vmatprep.subr.bf16.mxu0 %v1144_v8  ;;  %1120 = vmatprep.subr.bf16.mxu1 %v1144_v8 }
  0x25   : > { %1079 = vmatpush3.bf16.msra.mxu0 %v1144_v8  ;;  %1128 = vmatpush3.bf16.msra.mxu1 %v1144_v8 }
  0x26   : > { %1080 = vmatprep.subr.bf16.mxu0 %v1145_v9  ;;  %1121 = vmatprep.subr.bf16.mxu1 %v1145_v9 }
  0x29   : > { %1081 = vmatpush3.bf16.msra.mxu0 %v1145_v9  ;;  %1129 = vmatpush3.bf16.msra.mxu1 %v1145_v9 }
  0x2c   : > { %1083 = vmatmul.mubr.bf16.vlgmr.msra.gmra.mxu0 %v1148_v10  ;;  %1099 = vmatmul.mubr.bf16.vlgmr.msra.gmra.mxu1 %v1149_v11 }
  0x2d   : > { %1086 = vmatprep.mubr.bf16.mxu0 %v1150_v12  ;;  %1102 = vmatprep.mubr.bf16.mxu1 %v1151_v13 }
  0x34   : > { %1087 = vmatmul.mubr.bf16.gmra.mxu0 %v1152_v14  ;;  %1103 = vmatmul.mubr.bf16.gmra.mxu1 %v1153_v15 }
  0x35   : > { %1090 = vmatprep.mubr.bf16.mxu0 %v1154_v16  ;;  %1106 = vmatprep.mubr.bf16.mxu1 %v1155_v17 }
  0x3c   : > { %1091 = vmatmul.mubr.bf16.gmra.mxu0 %v1156_v18  ;;  %1107 = vmatmul.mubr.bf16.gmra.mxu1 %v1157_v19 }
  0x3d   : > { %1094 = vmatprep.mubr.bf16.mxu0 %v1158_v20  ;;  %1110 = vmatprep.mubr.bf16.mxu1 %v1159_v21 }
  0x44   : > { %1095 = vmatmul.mubr.bf16.gmra.mxu0 %v1160_v22  ;;  %1111 = vmatmul.mubr.bf16.gmra.mxu1 %v1161_v23 }
  0xec   : > { %v1084_v25 = vpop.f32.mrf.mxu0  ;;  %v1100_v26 = vpop.f32.mrf.mxu1 }
  0xed   : > { %v417_v27 = vadd.f32 %v1084_v25, %v1251_v24  ;;  %v481_v28 = vadd.f32 %v1100_v26, %v1251_v24 }
  0xee   : > { %v408_v29 = vpop.f32.mrf.mxu0  ;;  %v472_v30 = vpop.f32.mrf.mxu1 }
  0xef   : > { %vm537_vm0 = vcmp.gt.f32.partialorder %v417_v27, 0.0  ;;  %v569_v31 = vmul.f32 0.2, %v417_v27  ;;  %vm553_vm1 = vcmp.gt.f32.partialorder %v481_v28, 0.0  ;;  %v585_v32 = vmul.f32 0.2, %v481_v28 }
  0xf0   : > { %v409_v33 = vadd.f32 %v1251_v24, %v408_v29  ;;  %v473_v34 = vadd.f32 %v1251_v24, %v472_v30  ;;  %v1085_v35 = vpop.f32.mrf.mxu0  ;;  %v1101_v36 = vpop.f32.mrf.mxu1 }
  0xf1   : > { %v601_v37 = vsel %vm537_vm0, %v417_v27, %v569_v31  ;;  %v420_v38 = vadd.f32 %v1085_v35, %v1251_v24  ;;  %v484_v39 = vadd.f32 %v1101_v36, %v1251_v24  ;;  %v617_v40 = vsel %vm553_vm1, %v481_v28, %v585_v32 }
  0xf2   : > { %vm535_vm2 = vcmp.gt.f32.partialorder %v409_v33, 0.0  ;;  %v567_v41 = vmul.f32 0.2, %v409_v33  ;;  %vm551_vm3 = vcmp.gt.f32.partialorder %v473_v34, 0.0  ;;  %v411_v42 = vpop.f32.mrf.mxu0  ;;  %v475_v43 = vpop.f32.mrf.mxu1  ;;  %v583_v47 = vmul.f32 0.2, %v473_v34 }
  0xf3   : > { %vm538_vm4 = vcmp.gt.f32.partialorder %v420_v38, 0.0  ;;  %v570_v44 = vmul.f32 0.2, %v420_v38  ;;  %vm554_vm5 = vcmp.gt.f32.partialorder %v484_v39, 0.0  ;;  %v586_v45 = vmul.f32 0.2, %v484_v39 }
  0xf4   : > { %v599_v46 = vsel %vm535_vm2, %v409_v33, %v567_v41  ;;  %v412_v48 = vadd.f32 %v1251_v24, %v411_v42  ;;  %v476_v49 = vadd.f32 %v1251_v24, %v475_v43  ;;  %v1088_v50 = vpop.f32.mrf.mxu0  ;;  %v1104_v51 = vpop.f32.mrf.mxu1  ;;  %v615_v63 = vsel %vm551_vm3, %v473_v34, %v583_v47 }
  0xf5   : > { %v602_v52 = vsel %vm538_vm4, %v420_v38, %v570_v44  ;;  %v618_v53 = vsel %vm554_vm5, %v484_v39, %v586_v45  ;;  %v433_v54 = vadd.f32 %v1088_v50, %v1251_v24  ;;  %v497_v55 = vadd.f32 %v1104_v51, %v1251_v24 }
  0xf6   : > { %v955_v56 = vpack.c.bf16 %v602_v52, %v601_v37  ;;  %v995_v57 = vpack.c.bf16 %v618_v53, %v617_v40  ;;  %vm536_vm6 = vcmp.gt.f32.partialorder %v412_v48, 0.0  ;;  %v568_v58 = vmul.f32 0.2, %v412_v48  ;;  %v424_v59 = vpop.f32.mrf.mxu0  ;;  %v488_v60 = vpop.f32.mrf.mxu1 }
  0xf7   : > { %vm552_vm7 = vcmp.gt.f32.partialorder %v476_v49, 0.0  ;;  %v584_v61 = vmul.f32 0.2, %v476_v49  ;;  %vm541_vm8 = vcmp.gt.f32.partialorder %v433_v54, 0.0  ;;  %v573_v62 = vmul.f32 0.2, %v433_v54 }
  0xf8   : > { %1027 = vst [vmem:[%s1266_s13 + $0x8] sm:$0xff] %v955_v56   ;;  %1035 = vst [vmem:[%s1266_s13 + $0x48] sm:$0xff] %v995_v57   ;;  %v600_v0 = vsel %vm536_vm6, %v412_v48, %v568_v58  ;;  %v589_v1 = vmul.f32 0.2, %v497_v55  ;;  %v425_v2 = vadd.f32 %v1251_v24, %v424_v59  ;;  %v1089_v3 = vpop.f32.mrf.mxu0  ;;  %v1105_v4 = vpop.f32.mrf.mxu1  ;;  %vm557_vm9 = vcmp.gt.f32.partialorder %v497_v55, 0.0 }
  0xf9   : > { %v950_v5 = vpack.c.bf16 %v600_v0, %v599_v46  ;;  %v616_v6 = vsel %vm552_vm7, %v476_v49, %v584_v61  ;;  %v489_v7 = vadd.f32 %v1251_v24, %v488_v60  ;;  %v605_v9 = vsel %vm541_vm8, %v433_v54, %v573_v62 }
  0xfa   : > { %v990_v8 = vpack.c.bf16 %v616_v6, %v615_v63  ;;  %vm539_vm10 = vcmp.gt.f32.partialorder %v425_v2, 0.0  ;;  %v571_v10 = vmul.f32 0.2, %v425_v2  ;;  %v427_v11 = vpop.f32.mrf.mxu0  ;;  %v491_v12 = vpop.f32.mrf.mxu1  ;;  %v436_v14 = vadd.f32 %v1089_v3, %v1251_v24 }
  0xfb   : > { %951 = vst [vmem:[%s1266_s13] sm:$0xff] %v950_v5   ;;  %vm555_vm11 = vcmp.gt.f32.partialorder %v489_v7, 0.0  ;;  %v587_v13 = vmul.f32 0.2, %v489_v7  ;;  %v500_v15 = vadd.f32 %v1105_v4, %v1251_v24  ;;  %v621_v16 = vsel %vm557_vm9, %v497_v55, %v589_v1 }
  0xfc   : > { %1034 = vst [vmem:[%s1266_s13 + $0x40] sm:$0xff] %v990_v8   ;;  %v603_v17 = vsel %vm539_vm10, %v425_v2, %v571_v10  ;;  %v428_v18 = vadd.f32 %v1251_v24, %v427_v11  ;;  %v492_v19 = vadd.f32 %v1251_v24, %v491_v12  ;;  %v1092_v20 = vpop.f32.mrf.mxu0  ;;  %v1108_v21 = vpop.f32.mrf.mxu1  ;;  %vm542_vm12 = vcmp.gt.f32.partialorder %v436_v14, 0.0 }
  0xfd   : > { %v619_v22 = vsel %vm555_vm11, %v489_v7, %v587_v13  ;;  %v574_v23 = vmul.f32 0.2, %v436_v14  ;;  %vm558_vm13 = vcmp.gt.f32.partialorder %v500_v15, 0.0  ;;  %v590_v25 = vmul.f32 0.2, %v500_v15 }
  0xfe   : > { %vm540_vm14 = vcmp.gt.f32.partialorder %v428_v18, 0.0  ;;  %v572_v26 = vmul.f32 0.2, %v428_v18  ;;  %vm556_vm15 = vcmp.gt.f32.partialorder %v492_v19, 0.0  ;;  %v440_v27 = vpop.f32.mrf.mxu0  ;;  %v504_v28 = vpop.f32.mrf.mxu1  ;;  %v588_v30 = vmul.f32 0.2, %v492_v19 }
  0xff   : > { %v606_v29 = vsel %vm542_vm12, %v436_v14, %v574_v23  ;;  %v449_v31 = vadd.f32 %v1092_v20, %v1251_v24  ;;  %v513_v32 = vadd.f32 %v1108_v21, %v1251_v24  ;;  %v622_v34 = vsel %vm558_vm13, %v500_v15, %v590_v25 }
 0x100   : > { %v965_v33 = vpack.c.bf16 %v606_v29, %v605_v9  ;;  %v604_v35 = vsel %vm540_vm14, %v428_v18, %v572_v26  ;;  %v441_v36 = vadd.f32 %v1251_v24, %v440_v27  ;;  %v1093_v37 = vpop.f32.mrf.mxu0  ;;  %v1109_v38 = vpop.f32.mrf.mxu1  ;;  %v1005_v39 = vpack.c.bf16 %v622_v34, %v621_v16 }
 0x101   : > { %v960_v40 = vpack.c.bf16 %v604_v35, %v603_v17  ;;  %v620_v41 = vsel %vm556_vm15, %v492_v19, %v588_v30  ;;  %vm545_vm0 = vcmp.gt.f32.partialorder %v449_v31, 0.0  ;;  %v577_v43 = vmul.f32 0.2, %v449_v31 }
 0x102   : > { %1029 = vst [vmem:[%s1266_s13 + $0x18] sm:$0xff] %v965_v33   ;;  %v1000_v42 = vpack.c.bf16 %v620_v41, %v619_v22  ;;  %vm561_vm1 = vcmp.gt.f32.partialorder %v513_v32, 0.0  ;;  %v593_v44 = vmul.f32 0.2, %v513_v32  ;;  %v443_v45 = vpop.f32.mrf.mxu0  ;;  %v507_v46 = vpop.f32.mrf.mxu1  ;;  %1037 = vst [vmem:[%s1266_s13 + $0x58] sm:$0xff] %v1005_v39   ;;  %vm543_vm2 = vcmp.gt.f32.partialorder %v441_v36, 0.0 }
 0x103   : > { %1028 = vst [vmem:[%s1266_s13 + $0x10] sm:$0xff] %v960_v40   ;;  %v575_v47 = vmul.f32 0.2, %v441_v36  ;;  %v505_v48 = vadd.f32 %v1251_v24, %v504_v28  ;;  %v452_v49 = vadd.f32 %v1093_v37, %v1251_v24  ;;  %v609_v50 = vsel %vm545_vm0, %v449_v31, %v577_v43 }
 0x104   : > { %1036 = vst [vmem:[%s1266_s13 + $0x50] sm:$0xff] %v1000_v42   ;;  %v516_v51 = vadd.f32 %v1109_v38, %v1251_v24  ;;  %v444_v52 = vadd.f32 %v1251_v24, %v443_v45  ;;  %v1096_v53 = vpop.f32.mrf.mxu0  ;;  %v1112_v54 = vpop.f32.mrf.mxu1  ;;  %v625_v55 = vsel %vm561_vm1, %v513_v32, %v593_v44  ;;  %v508_v63 = vadd.f32 %v1251_v24, %v507_v46 }
 0x105   : > { %v607_v56 = vsel %vm543_vm2, %v441_v36, %v575_v47  ;;  %vm559_vm3 = vcmp.gt.f32.partialorder %v505_v48, 0.0  ;;  %vm546_vm4 = vcmp.gt.f32.partialorder %v452_v49, 0.0  ;;  %v578_v57 = vmul.f32 0.2, %v452_v49 }
 0x106   : > { %vm562_vm5 = vcmp.gt.f32.partialorder %v516_v51, 0.0  ;;  %v594_v58 = vmul.f32 0.2, %v516_v51  ;;  %vm544_vm6 = vcmp.gt.f32.partialorder %v444_v52, 0.0  ;;  %v456_v59 = vpop.f32.mrf.mxu0  ;;  %v520_v60 = vpop.f32.mrf.mxu1  ;;  %v591_v61 = vmul.f32 0.2, %v505_v48 }
 0x107   : > { %v576_v62 = vmul.f32 0.2, %v444_v52  ;;  %v465_v0 = vadd.f32 %v1096_v53, %v1251_v24  ;;  %v610_v1 = vsel %vm546_vm4, %v452_v49, %v578_v57  ;;  %v529_v3 = vadd.f32 %v1112_v54, %v1251_v24 }
 0x108   : > { %v626_v2 = vsel %vm562_vm5, %v516_v51, %v594_v58  ;;  %v457_v4 = vadd.f32 %v1251_v24, %v456_v59  ;;  %v1097_v5 = vpop.f32.mrf.mxu0  ;;  %v1113_v6 = vpop.f32.mrf.mxu1  ;;  %v975_v7 = vpack.c.bf16 %v610_v1, %v609_v50  ;;  %vm560_vm7 = vcmp.gt.f32.partialorder %v508_v63, 0.0 }
 0x109   : > { %v1015_v8 = vpack.c.bf16 %v626_v2, %v625_v55  ;;  %v608_v9 = vsel %vm544_vm6, %v444_v52, %v576_v62  ;;  %v592_v11 = vmul.f32 0.2, %v508_v63  ;;  %v581_v12 = vmul.f32 0.2, %v465_v0 }
 0x10a   : > { %v970_v10 = vpack.c.bf16 %v608_v9, %v607_v56  ;;  %v623_v13 = vsel %vm559_vm3, %v505_v48, %v591_v61  ;;  %1031 = vst [vmem:[%s1266_s13 + $0x28] sm:$0xff] %v975_v7   ;;  %vm549_vm8 = vcmp.gt.f32.partialorder %v465_v0, 0.0  ;;  %v597_v15 = vmul.f32 0.2, %v529_v3  ;;  %v459_v18 = vpop.f32.mrf.mxu0  ;;  %v523_v19 = vpop.f32.mrf.mxu1 }
 0x10b   : > { %1039 = vst [vmem:[%s1266_s13 + $0x68] sm:$0xff] %v1015_v8   ;;  %v624_v14 = vsel %vm560_vm7, %v508_v63, %v592_v11  ;;  %v521_v16 = vadd.f32 %v1251_v24, %v520_v60  ;;  %v468_v17 = vadd.f32 %v1097_v5, %v1251_v24  ;;  %vm565_vm9 = vcmp.gt.f32.partialorder %v529_v3, 0.0 }
 0x10c   : > { %1030 = vst [vmem:[%s1266_s13 + $0x20] sm:$0xff] %v970_v10   ;;  %v1010_v20 = vpack.c.bf16 %v624_v14, %v623_v13  ;;  %vm547_vm10 = vcmp.gt.f32.partialorder %v457_v4, 0.0  ;;  %v532_v21 = vadd.f32 %v1113_v6, %v1251_v24  ;;  %v613_v22 = vsel %vm549_vm8, %v465_v0, %v581_v12 }
 0x10d   : > { %v579_v23 = vmul.f32 0.2, %v457_v4  ;;  %vm550_vm11 = vcmp.gt.f32.partialorder %v468_v17, 0.0  ;;  %v582_v25 = vmul.f32 0.2, %v468_v17  ;;  %v460_v27 = vadd.f32 %v1251_v24, %v459_v18 }
 0x10e   : > { %1038 = vst [vmem:[%s1266_s13 + $0x60] sm:$0xff] %v1010_v20   ;;  %vm566_vm12 = vcmp.gt.f32.partialorder %v532_v21, 0.0  ;;  %v598_v26 = vmul.f32 0.2, %v532_v21  ;;  %v524_v28 = vadd.f32 %v1251_v24, %v523_v19  ;;  %v629_v29 = vsel %vm565_vm9, %v529_v3, %v597_v15 }
 0x10f   : > { %vm563_vm13 = vcmp.gt.f32.partialorder %v521_v16, 0.0  ;;  %v595_v30 = vmul.f32 0.2, %v521_v16  ;;  %v614_v31 = vsel %vm550_vm11, %v468_v17, %v582_v25  ;;  %vm548_vm14 = vcmp.gt.f32.partialorder %v460_v27, 0.0 }
 0x110   : > { %v985_v32 = vpack.c.bf16 %v614_v31, %v613_v22  ;;  %v630_v33 = vsel %vm566_vm12, %v532_v21, %v598_v26  ;;  %v580_v34 = vmul.f32 0.2, %v460_v27  ;;  %vm564_vm15 = vcmp.gt.f32.partialorder %v524_v28, 0.0 }
 0x111   : > { %v1025_v35 = vpack.c.bf16 %v630_v33, %v629_v29  ;;  %v596_v36 = vmul.f32 0.2, %v524_v28  ;;  %v611_v37 = vsel %vm547_vm10, %v457_v4, %v579_v23  ;;  %v627_v39 = vsel %vm563_vm13, %v521_v16, %v595_v30 }
 0x112   : > { %1033 = vst [vmem:[%s1266_s13 + $0x38] sm:$0xff] %v985_v32   ;;  %v612_v38 = vsel %vm548_vm14, %v460_v27, %v580_v34 }
 0x113   : > { %1041 = vst [vmem:[%s1266_s13 + $0x78] sm:$0xff] %v1025_v35   ;;  %v980_v24 = vpack.c.bf16 %v612_v38, %v611_v37  ;;  %v628_v40 = vsel %vm564_vm15, %v524_v28, %v596_v36 }
 0x114   : > { %v1020_v41 = vpack.c.bf16 %v628_v40, %v627_v39 }
 0x115   : > { %1032 = vst [vmem:[%s1266_s13 + $0x30] sm:$0xff] %v980_v24  }
 0x116   : > { %1040 = vst [vmem:[%s1266_s13 + $0x70] sm:$0xff] %v1020_v41  }
 0x117 PF: > { %s13_s12 = sadd.s32 1, %s1168_s12  }
 0x118   : > { %p10_p4 = scmp.ge.s32.totalorder %s13_s12, 4  }
 0x11a   :  { %12 = sbr.rel (!%p10_p4) target bundleno = 1 (0x1), region = 62 }

// kernel: forward.6
= control target key start
LH: loop header
LB: loop body
LE: loop exit
PB: predicated region body
PF: predicated region fallthrough
CT: control target
= control target key end

     0   :  { %s3309_s12 = smov 0   ;;  %s3965_s0 = inlined_call_operand.vmem [shape: bf16[512,896], index: 0, kind: input, shape index: {}]   ;;  %s3966_s1 = inlined_call_operand.vmem [shape: bf16[896,128], index: 1, kind: input, shape index: {}]   ;;  %s3967_s2 = inlined_call_operand.vmem [shape: f32[1,128], index: 2, kind: input, shape index: {}]   ;;  %s3968_s3 = inlined_call_operand.vmem [shape: bf16[512,128], index: 3, kind: output, shape index: {}]  }
   0x1 LB: > { %s2293_s13 = sadd.s32 4294967295, %s3287_s12   ;;  %p2297_p0 = scmp.ge.s32.totalorder %s3287_s12, 1  ;;  %s3287_s12 = sphi %s3309_s12, %s13_s12  }
   0x2   : > { %p139_p1 = scmp.lt.s32.totalorder %s3287_s12, 3 }
   0x4   : > { %p140_p2 = pnand %p2297_p0, %p139_p1 }
   0x6   : > { %143 = sbr.rel (%p140_p2) target bundleno = 471 (0x1d7), region = 32 }
   0xb   : > { %v3065_v0 = vld [vmem:[%s3966_s1 + $0x78] sm:$0xff]   ;;  %s2298_s16 = sshll.u32 %s2293_s13, 5  ;;  %v3067_v2 = vld [vmem:[%s3966_s1 + $0x70] sm:$0xff]   ;;  %v3069_v4 = vld [vmem:[%s3966_s1 + $0x68] sm:$0xff]  }
   0xc   : > { %v3066_v1 = vld [vmem:[%s3966_s1 + $0x38] sm:$0xff]   ;;  %2632 = vmatprep.subr.bf16.mxu0 %v3065_v0  ;;  %3040 = vmatprep.subr.bf16.mxu1 %v3065_v0  ;;  %p165_p3 = scmp.lt.s32.totalorder %s2298_s16, 63  ;;  %v3068_v3 = vld [vmem:[%s3966_s1 + $0x30] sm:$0xff]   ;;  %v3070_v5 = vld [vmem:[%s3966_s1 + $0x28] sm:$0xff]  }
   0xd   : > { %2633 = vmatpush3.bf16.msra.mxu0 %v3066_v1  ;;  %3048 = vmatpush3.bf16.msra.mxu1 %v3066_v1  ;;  %v3071_v6 = vld [vmem:[%s3966_s1 + $0x60] sm:$0xff]   ;;  %v3073_v8 = vld [vmem:[%s3966_s1 + $0x58] sm:$0xff]   ;;  %v3075_v10 = vld [vmem:[%s3966_s1 + $0x50] sm:$0xff]  }
   0xe   : > { %2634 = vmatprep.subr.bf16.mxu0 %v3067_v2  ;;  %3041 = vmatprep.subr.bf16.mxu1 %v3067_v2  ;;  %s3992_s16 = smov (!%p165_p3, %s2298_s16), 63  ;;  %v3072_v7 = vld [vmem:[%s3966_s1 + $0x20] sm:$0xff]   ;;  %v3074_v9 = vld [vmem:[%s3966_s1 + $0x18] sm:$0xff]   ;;  %v3076_v13 = vld [vmem:[%s3966_s1 + $0x10] sm:$0xff]  }
   0xf   : > { %s3056_s29 = smul.u32 28, %s3992_s16  ;;  %v3077_v14 = vld [vmem:[%s3966_s1 + $0x48] sm:$0xff]   ;;  %v3079_v16 = vld [vmem:[%s3966_s1 + $0x40] sm:$0xff]   ;;  %v3087_v18 = vld [vmem:[%s3966_s1 + $0xf8] sm:$0xff]   ;;  %s2301_s8 = sshll.u32 %s3992_s16, 2 }
  0x10   : > { %v3078_v15 = vld [vmem:[%s3966_s1 + $0x8] sm:$0xff]   ;;  %v3080_v17 = vld [vmem:[%s3966_s1] sm:$0xff]   ;;  %v3088_v21 = vld [vmem:[%s3966_s1 + $0x178] sm:$0xff]   ;;  %s3878_s11 = scalar_lea.vmem %s3968_s3, %s2301_s8 }
  0x11   : > { %2635 = vmatpush3.bf16.msra.mxu0 %v3068_v3  ;;  %3049 = vmatpush3.bf16.msra.mxu1 %v3068_v3  ;;  %s3350_s9 = scalar_lea.vmem %s3965_s0, %s3056_s29  ;;  %v3089_v22 = vld [vmem:[%s3966_s1 + $0xb8] sm:$0xff]   ;;  %v3091_v24 = vld [vmem:[%s3966_s1 + $0xf0] sm:$0xff]   ;;  %v3099_v32 = vld [vmem:[%s3966_s1 + $0xe8] sm:$0xff]  }
  0x12   : > { %2636 = vmatprep.subr.bf16.mxu0 %v3069_v4  ;;  %3042 = vmatprep.subr.bf16.mxu1 %v3069_v4  ;;  %v3083_v11 = vld [vmem:[%s3350_s9 + $0x4] ss:$28 sps:$4 sm:$0xff]   ;;  %v3090_v23 = vld [vmem:[%s3966_s1 + $0x138] sm:$0xff]   ;;  %v3102_v27 = vld [vmem:[%s3966_s1 + $0x170] sm:$0xff]  }
  0x13   : > { %v3086_v12 = vld [vmem:[%s3350_s9 + $0x2a4] ss:$28 sps:$4 sm:$0xff]   ;;  %1369 = vmatprep.mubr.bf16.mxu0 %v3083_v11  ;;  %v3093_v25 = vld [vmem:[%s3350_s9 + $0x3c] ss:$28 sps:$4 sm:$0xff]   ;;  %v3092_v28 = vld [vmem:[%s3966_s1 + $0xb0] sm:$0xff]  }
  0x14   : > { %1465 = vmatprep.mubr.bf16.mxu1 %v3086_v12  ;;  %v3081_v19 = vld [vmem:[%s3350_s9] ss:$28 sps:$4 sm:$0xff]   ;;  %v3104_v29 = vld [vmem:[%s3966_s1 + $0x130] sm:$0xff]   ;;  %v3100_v33 = vld [vmem:[%s3966_s1 + $0xa8] sm:$0xff]  }
  0x15   : > { %2637 = vmatpush3.bf16.msra.mxu0 %v3070_v5  ;;  %3050 = vmatpush3.bf16.msra.mxu1 %v3070_v5  ;;  %v3084_v20 = vld [vmem:[%s3350_s9 + $0x2a0] ss:$28 sps:$4 sm:$0xff]   ;;  %v3097_v30 = vld [vmem:[%s3350_s9 + $0x38] ss:$28 sps:$4 sm:$0xff]   ;;  %v3109_v39 = vld [vmem:[%s3350_s9 + $0x70] ss:$28 sps:$4 sm:$0xff]  }
  0x16   : > { %2638 = vmatprep.subr.bf16.mxu0 %v3071_v6  ;;  %3043 = vmatprep.subr.bf16.mxu1 %v3071_v6  ;;  %v3095_v26 = vld [vmem:[%s3350_s9 + $0x2dc] ss:$28 sps:$4 sm:$0xff]   ;;  %v3101_v34 = vld [vmem:[%s3966_s1 + $0xe0] sm:$0xff]   ;;  %v3105_v35 = vld [vmem:[%s3350_s9 + $0x74] ss:$28 sps:$4 sm:$0xff]  }
  0x17   : > { %v3098_v31 = vld [vmem:[%s3350_s9 + $0x2d8] ss:$28 sps:$4 sm:$0xff]   ;;  %v3103_v37 = vld [vmem:[%s3966_s1 + $0xa0] sm:$0xff]   ;;  %v3110_v40 = vld [vmem:[%s3350_s9 + $0x310] ss:$28 sps:$4 sm:$0xff]  }
  0x18   : > { %v3107_v36 = vld [vmem:[%s3350_s9 + $0x314] ss:$28 sps:$4 sm:$0xff]   ;;  %v3111_v38 = vld [vmem:[%s3966_s1 + $0xd8] sm:$0xff]   ;;  %v3122_v41 = vld [vmem:[%s3966_s1 + $0x168] sm:$0xff]  }
  0x19   : > { %2639 = vmatpush3.bf16.msra.mxu0 %v3072_v7  ;;  %3051 = vmatpush3.bf16.msra.mxu1 %v3072_v7  ;;  %v3112_v42 = vld [vmem:[%s3966_s1 + $0x98] sm:$0xff]   ;;  %v3113_v43 = vld [vmem:[%s3966_s1 + $0xd0] sm:$0xff]   ;;  %v3124_v44 = vld [vmem:[%s3966_s1 + $0x128] sm:$0xff]  }
  0x1a   : > { %2640 = vmatprep.subr.bf16.mxu0 %v3073_v8  ;;  %3044 = vmatprep.subr.bf16.mxu1 %v3073_v8  ;;  %v3115_v45 = vld [vmem:[%s3350_s9 + $0xac] ss:$28 sps:$4 sm:$0xff]   ;;  %v3114_v47 = vld [vmem:[%s3966_s1 + $0x90] sm:$0xff]   ;;  %v3133_v51 = vld [vmem:[%s3966_s1 + $0x160] sm:$0xff]  }
  0x1b   : > { %v3117_v46 = vld [vmem:[%s3350_s9 + $0x34c] ss:$28 sps:$4 sm:$0xff]   ;;  %v3135_v53 = vld [vmem:[%s3966_s1 + $0x120] sm:$0xff]   ;;  %v3134_v58 = vld [vmem:[%s3966_s1 + $0x1b8] sm:$0xff]  }
  0x1c   : > { %v3121_v48 = vld [vmem:[%s3966_s1 + $0xc8] sm:$0xff]   ;;  %v3127_v54 = vld [vmem:[%s3350_s9 + $0xe4] ss:$28 sps:$4 sm:$0xff]   ;;  %v3148_v60 = vld [vmem:[%s3966_s1 + $0x158] sm:$0xff]  }
  0x1d   : > { %2641 = vmatpush3.bf16.msra.mxu0 %v3074_v9  ;;  %3052 = vmatpush3.bf16.msra.mxu1 %v3074_v9  ;;  %v3119_v49 = vld [vmem:[%s3350_s9 + $0xa8] ss:$28 sps:$4 sm:$0xff]   ;;  %v3149_v61 = vld [vmem:[%s3966_s1 + $0x118] sm:$0xff]   ;;  %v3150_v1 = vld [vmem:[%s3966_s1 + $0x1b0] sm:$0xff]  }
  0x1e   : > { %2642 = vmatprep.subr.bf16.mxu0 %v3075_v10  ;;  %3045 = vmatprep.subr.bf16.mxu1 %v3075_v10  ;;  %v3120_v50 = vld [vmem:[%s3350_s9 + $0x348] ss:$28 sps:$4 sm:$0xff]   ;;  %v3132_v62 = vld [vmem:[%s3350_s9 + $0xe0] ss:$28 sps:$4 sm:$0xff]   ;;  %v3157_v2 = vld [vmem:[%s3966_s1 + $0x150] sm:$0xff]  }
  0x1f   : > { %v3123_v52 = vld [vmem:[%s3966_s1 + $0x88] sm:$0xff]   ;;  %v3125_v55 = vld [vmem:[%s3966_s1 + $0xc0] sm:$0xff]   ;;  %v3136_v63 = vld [vmem:[%s3350_s9 + $0x11c] ss:$28 sps:$4 sm:$0xff]  }
  0x20   : > { %v3131_v56 = vld [vmem:[%s3350_s9 + $0xc] ss:$28 sps:$4 sm:$0xff]   ;;  %v3126_v57 = vld [vmem:[%s3966_s1 + $0x80] sm:$0xff]   ;;  %v3158_v3 = vld [vmem:[%s3966_s1 + $0x110] sm:$0xff]  }
  0x21   : > { %2643 = vmatpush3.bf16.msra.mxu0 %v3076_v13  ;;  %3053 = vmatpush3.bf16.msra.mxu1 %v3076_v13  ;;  %v3129_v59 = vld [vmem:[%s3350_s9 + $0x8] ss:$28 sps:$4 sm:$0xff]   ;;  %v3140_v4 = vld [vmem:[%s3350_s9 + $0x118] ss:$28 sps:$4 sm:$0xff]   ;;  %v3141_v5 = vld [vmem:[%s3350_s9 + $0x40] ss:$28 sps:$4 sm:$0xff]  }
  0x22   : > { %2644 = vmatprep.subr.bf16.mxu0 %v3077_v14  ;;  %3046 = vmatprep.subr.bf16.mxu1 %v3077_v14  ;;  %v3138_v0 = vld [vmem:[%s3350_s9 + $0x44] ss:$28 sps:$4 sm:$0xff]   ;;  %v3142_v6 = vld [vmem:[%s3350_s9 + $0x154] ss:$28 sps:$4 sm:$0xff]   ;;  %v3165_v7 = vld [vmem:[%s3966_s1 + $0x1a8] sm:$0xff]  }
  0x23   : > { %v3144_v8 = vld [vmem:[%s3350_s9 + $0x7c] ss:$28 sps:$4 sm:$0xff]   ;;  %v3172_v9 = vld [vmem:[%s3966_s1 + $0x148] sm:$0xff]   ;;  %v3153_v14 = vld [vmem:[%s3350_s9 + $0xb4] ss:$28 sps:$4 sm:$0xff]  }
  0x24   : > { %v3173_v10 = vld [vmem:[%s3966_s1 + $0x108] sm:$0xff]   ;;  %v3147_v12 = vld [vmem:[%s3350_s9 + $0x78] ss:$28 sps:$4 sm:$0xff]  }
  0x25   : > { %2645 = vmatpush3.bf16.msra.mxu0 %v3078_v15  ;;  %3054 = vmatpush3.bf16.msra.mxu1 %v3078_v15  ;;  %v3146_v11 = vld [vmem:[%s3350_s9 + $0x150] ss:$28 sps:$4 sm:$0xff]   ;;  %v3180_v15 = vld [vmem:[%s3966_s1 + $0x140] sm:$0xff]  }
  0x26   : > { %2646 = vmatprep.subr.bf16.mxu0 %v3079_v16  ;;  %3047 = vmatprep.subr.bf16.mxu1 %v3079_v16  ;;  %v3151_v13 = vld [vmem:[%s3350_s9 + $0x18c] ss:$28 sps:$4 sm:$0xff]   ;;  %v3181_v16 = vld [vmem:[%s3966_s1 + $0x1a0] sm:$0xff]  }
  0x29   : > { %2647 = vmatpush3.bf16.msra.mxu0 %v3080_v17  ;;  %3055 = vmatpush3.bf16.msra.mxu1 %v3080_v17  ;;  %v3182_v17 = vld [vmem:[%s3966_s1 + $0x100] sm:$0xff]  }
  0x2a   : > { %2744 = vmatprep.subr.bf16.mxu1 %v3087_v18  ;;  %2856 = vmatprep.subr.bf16.mxu0 %v3088_v21  ;;  %v3155_v18 = vld [vmem:[%s3350_s9 + $0x188] ss:$28 sps:$4 sm:$0xff]  }
  0x2b   : > { %v3161_v21 = vld [vmem:[%s3350_s9 + $0xec] ss:$28 sps:$4 sm:$0xff]  }
  0x2c   : > { %1370 = vmatmul.mubr.bf16.vlgmr.msra.gmra.mxu0 %v3081_v19  ;;  %1466 = vmatmul.mubr.bf16.vlgmr.msra.gmra.mxu1 %v3084_v20  ;;  %v3156_v19 = vld [vmem:[%s3350_s9 + $0xb0] ss:$28 sps:$4 sm:$0xff]   ;;  %v3159_v20 = vld [vmem:[%s3350_s9 + $0x1c4] ss:$28 sps:$4 sm:$0xff]  }
  0x2d   : > { %2745 = vmatpush3.bf16.msra.mxu1 %v3089_v22  ;;  %2857 = vmatpush3.bf16.msra.mxu0 %v3090_v23  ;;  %v3195_v22 = vld [vmem:[%s3966_s1 + $0x198] sm:$0xff]  }
  0x2e   : > { %2746 = vmatprep.subr.bf16.mxu1 %v3091_v24  ;;  %1377 = vmatprep.mubr.bf16.mxu0 %v3093_v25  ;;  %v3163_v23 = vld [vmem:[%s3350_s9 + $0x1c0] ss:$28 sps:$4 sm:$0xff]   ;;  %v3164_v24 = vld [vmem:[%s3350_s9 + $0xe8] ss:$28 sps:$4 sm:$0xff]   ;;  %v3208_v25 = vld [vmem:[%s3966_s1 + $0x190] sm:$0xff]  }
  0x2f   : > { %1473 = vmatprep.mubr.bf16.mxu1 %v3095_v26  ;;  %2858 = vmatprep.subr.bf16.mxu0 %v3102_v27  ;;  %v3166_v26 = vld [vmem:[%s3350_s9 + $0x1fc] ss:$28 sps:$4 sm:$0xff]   ;;  %v3168_v27 = vld [vmem:[%s3350_s9 + $0x124] ss:$28 sps:$4 sm:$0xff]  }
  0x31   : > { %2747 = vmatpush3.bf16.msra.mxu1 %v3092_v28  ;;  %2859 = vmatpush3.bf16.msra.mxu0 %v3104_v29  ;;  %v3221_v28 = vld [vmem:[%s3966_s1 + $0x188] sm:$0xff]   ;;  %v3170_v29 = vld [vmem:[%s3350_s9 + $0x1f8] ss:$28 sps:$4 sm:$0xff]  }
  0x32   : > { %2748 = vmatprep.subr.bf16.mxu1 %v3099_v32  ;;  %2860 = vmatprep.subr.bf16.mxu0 %v3122_v41  ;;  %v3176_v32 = vld [vmem:[%s3350_s9 + $0x15c] ss:$28 sps:$4 sm:$0xff]   ;;  %v3193_v41 = vld [vmem:[%s3350_s9 + $0x14] ss:$28 sps:$4 sm:$0xff]  }
  0x34   : > { %1378 = vmatmul.mubr.bf16.gmra.mxu0 %v3097_v30  ;;  %1474 = vmatmul.mubr.bf16.gmra.mxu1 %v3098_v31  ;;  %v3171_v30 = vld [vmem:[%s3350_s9 + $0x120] ss:$28 sps:$4 sm:$0xff]   ;;  %v3174_v31 = vld [vmem:[%s3350_s9 + $0x234] ss:$28 sps:$4 sm:$0xff]  }
  0x35   : > { %2749 = vmatpush3.bf16.msra.mxu1 %v3100_v33  ;;  %1385 = vmatprep.mubr.bf16.mxu0 %v3105_v35  ;;  %v3234_v33 = vld [vmem:[%s3966_s1 + $0x180] sm:$0xff]   ;;  %v3179_v35 = vld [vmem:[%s3350_s9 + $0x158] ss:$28 sps:$4 sm:$0xff]  }
  0x36   : > { %2750 = vmatprep.subr.bf16.mxu1 %v3101_v34  ;;  %1481 = vmatprep.mubr.bf16.mxu1 %v3107_v36  ;;  %v3178_v34 = vld [vmem:[%s3350_s9 + $0x230] ss:$28 sps:$4 sm:$0xff]  }
  0x37   : > { %2861 = vmatpush3.bf16.msra.mxu0 %v3124_v44  ;;  %v3183_v36 = vld [vmem:[%s3350_s9 + $0x26c] ss:$28 sps:$4 sm:$0xff]   ;;  %v3196_v44 = vld [vmem:[%s3350_s9 + $0x204] ss:$28 sps:$4 sm:$0xff]  }
  0x38   : > { %2862 = vmatprep.subr.bf16.mxu0 %v3133_v51  ;;  %v3207_v51 = vld [vmem:[%s3350_s9 + $0x80] ss:$28 sps:$4 sm:$0xff]  }
  0x39   : > { %2751 = vmatpush3.bf16.msra.mxu1 %v3103_v37  ;;  %v3185_v37 = vld [vmem:[%s3350_s9 + $0x194] ss:$28 sps:$4 sm:$0xff]  }
  0x3a   : > { %2752 = vmatprep.subr.bf16.mxu1 %v3111_v38  ;;  %v3187_v38 = vld [vmem:[%s3350_s9 + $0x268] ss:$28 sps:$4 sm:$0xff]  }
  0x3b   : > { %2863 = vmatpush3.bf16.msra.mxu0 %v3135_v53  ;;  %v3211_v53 = vld [vmem:[%s3350_s9 + $0xbc] ss:$28 sps:$4 sm:$0xff]  }
  0x3c   : > { %1386 = vmatmul.mubr.bf16.gmra.mxu0 %v3109_v39  ;;  %1482 = vmatmul.mubr.bf16.gmra.mxu1 %v3110_v40  ;;  %v3188_v39 = vld [vmem:[%s3350_s9 + $0x190] ss:$28 sps:$4 sm:$0xff]  }
  0x3d   : > { %2753 = vmatpush3.bf16.msra.mxu1 %v3112_v42  ;;  %1393 = vmatprep.mubr.bf16.mxu0 %v3115_v45  ;;  %v3189_v40 = vld [vmem:[%s3350_s9 + $0x1cc] ss:$28 sps:$4 sm:$0xff]  }
  0x3e   : > { %2754 = vmatprep.subr.bf16.mxu1 %v3113_v43  ;;  %1489 = vmatprep.mubr.bf16.mxu1 %v3117_v46  ;;  %v3191_v42 = vld [vmem:[%s3350_s9 + $0x10] ss:$28 sps:$4 sm:$0xff]   ;;  %v3194_v43 = vld [vmem:[%s3350_s9 + $0x1c8] ss:$28 sps:$4 sm:$0xff]   ;;  %v3200_v46 = vld [vmem:[%s3350_s9 + $0x200] ss:$28 sps:$4 sm:$0xff]  }
  0x3f   : > { %2864 = vmatprep.subr.bf16.mxu0 %v3148_v60  ;;  %v3198_v45 = vld [vmem:[%s3350_s9 + $0x4c] ss:$28 sps:$4 sm:$0xff]   ;;  %v3222_v60 = vld [vmem:[%s3350_s9 + $0x2e4] ss:$28 sps:$4 sm:$0xff]  }
  0x40   : > { %2865 = vmatpush3.bf16.msra.mxu0 %v3149_v61  ;;  %v3224_v61 = vld [vmem:[%s3350_s9 + $0x12c] ss:$28 sps:$4 sm:$0xff]  }
  0x41   : > { %2755 = vmatpush3.bf16.msra.mxu1 %v3114_v47  ;;  %2866 = vmatprep.subr.bf16.mxu0 %v3157_v2  ;;  %v3201_v47 = vld [vmem:[%s3350_s9 + $0x48] ss:$28 sps:$4 sm:$0xff]   ;;  %v3232_v2 = vld [vmem:[%s3350_s9 + $0x318] ss:$28 sps:$4 sm:$0xff]  }
  0x42   : > { %2756 = vmatprep.subr.bf16.mxu1 %v3121_v48  ;;  %v3202_v48 = vld [vmem:[%s3350_s9 + $0x23c] ss:$28 sps:$4 sm:$0xff]  }
  0x44   : > { %1394 = vmatmul.mubr.bf16.gmra.mxu0 %v3119_v49  ;;  %1490 = vmatmul.mubr.bf16.gmra.mxu1 %v3120_v50  ;;  %v3204_v49 = vld [vmem:[%s3350_s9 + $0x84] ss:$28 sps:$4 sm:$0xff]   ;;  %v3206_v50 = vld [vmem:[%s3350_s9 + $0x238] ss:$28 sps:$4 sm:$0xff]  }
  0x45   : > { %2757 = vmatpush3.bf16.msra.mxu1 %v3123_v52  ;;  %1401 = vmatprep.mubr.bf16.mxu0 %v3127_v54  ;;  %v3209_v52 = vld [vmem:[%s3350_s9 + $0x274] ss:$28 sps:$4 sm:$0xff]  }
  0x46   : > { %2758 = vmatprep.subr.bf16.mxu1 %v3125_v55  ;;  %1530 = vmatprep.mubr.bf16.mxu1 %v3131_v56  ;;  %v3213_v54 = vld [vmem:[%s3350_s9 + $0x270] ss:$28 sps:$4 sm:$0xff]   ;;  %v3214_v55 = vld [vmem:[%s3350_s9 + $0xb8] ss:$28 sps:$4 sm:$0xff]  }
  0x47   : > { %2867 = vmatpush3.bf16.msra.mxu0 %v3158_v3  ;;  %v3215_v56 = vld [vmem:[%s3350_s9 + $0x2ac] ss:$28 sps:$4 sm:$0xff]   ;;  %v3233_v3 = vld [vmem:[%s3350_s9 + $0x160] ss:$28 sps:$4 sm:$0xff]  }
  0x48   : > { %2868 = vmatprep.subr.bf16.mxu0 %v3172_v9  ;;  %v3243_v9 = vld [vmem:[%s3350_s9 + $0x18] ss:$28 sps:$4 sm:$0xff]  }
  0x49   : > { %2759 = vmatpush3.bf16.msra.mxu1 %v3126_v57  ;;  %v3217_v57 = vld [vmem:[%s3350_s9 + $0xf4] ss:$28 sps:$4 sm:$0xff]  }
  0x4a   : > { %2992 = vmatprep.subr.bf16.mxu1 %v3134_v58 }
  0x4b   : > { %2869 = vmatpush3.bf16.msra.mxu0 %v3173_v10  ;;  %v3244_v10 = vld [vmem:[%s3350_s9 + $0x1d0] ss:$28 sps:$4 sm:$0xff]  }
  0x4c   : > { %1402 = vmatmul.mubr.bf16.gmra.mxu0 %v3132_v62  ;;  %1531 = vmatmul.mubr.bf16.vlgmr.msra.gmra.mxu1 %v3129_v59  ;;  %v3220_v59 = vld [vmem:[%s3350_s9 + $0xf0] ss:$28 sps:$4 sm:$0xff]   ;;  %v3226_v62 = vld [vmem:[%s3350_s9 + $0x2e0] ss:$28 sps:$4 sm:$0xff]  }
  0x4d   : > { %2993 = vmatpush3.bf16.msra.mxu1 %v3134_v58  ;;  %1409 = vmatprep.mubr.bf16.mxu0 %v3136_v63  ;;  %v3219_v58 = vld [vmem:[%s3350_s9 + $0x2a8] ss:$28 sps:$4 sm:$0xff]  }
  0x4e   : > { %1538 = vmatprep.mubr.bf16.mxu1 %v3138_v0  ;;  %2994 = vmatprep.subr.bf16.mxu1 %v3150_v1  ;;  %v3227_v63 = vld [vmem:[%s3350_s9 + $0x128] ss:$28 sps:$4 sm:$0xff]   ;;  %v3228_v0 = vld [vmem:[%s3350_s9 + $0x31c] ss:$28 sps:$4 sm:$0xff]  }
  0x4f   : > { %2870 = vmatprep.subr.bf16.mxu0 %v3180_v15  ;;  %v3250_v15 = vld [vmem:[%s3350_s9 + $0xc0] ss:$28 sps:$4 sm:$0xff]  }
  0x50   : > { %2871 = vmatpush3.bf16.msra.mxu0 %v3182_v17  ;;  %v3253_v17 = vld [vmem:[%s3350_s9 + $0xf8] ss:$28 sps:$4 sm:$0xff]  }
  0x51   : > { %2995 = vmatpush3.bf16.msra.mxu1 %v3150_v1  ;;  %v3230_v1 = vld [vmem:[%s3350_s9 + $0x164] ss:$28 sps:$4 sm:$0xff]  }
  0x52   : > { %2996 = vmatprep.subr.bf16.mxu1 %v3165_v7 }
  0x54   : > { %1410 = vmatmul.mubr.bf16.gmra.mxu0 %v3140_v4  ;;  %1539 = vmatmul.mubr.bf16.gmra.mxu1 %v3141_v5  ;;  %v3235_v4 = vld [vmem:[%s3350_s9 + $0x354] ss:$28 sps:$4 sm:$0xff]   ;;  %v3237_v5 = vld [vmem:[%s3350_s9 + $0x19c] ss:$28 sps:$4 sm:$0xff]  }
  0x55   : > { %1417 = vmatprep.mubr.bf16.mxu0 %v3142_v6  ;;  %1546 = vmatprep.mubr.bf16.mxu1 %v3144_v8  ;;  %v3239_v6 = vld [vmem:[%s3350_s9 + $0x350] ss:$28 sps:$4 sm:$0xff]  }
  0x56   : > { %2997 = vmatpush3.bf16.msra.mxu1 %v3165_v7  ;;  %v3240_v7 = vld [vmem:[%s3350_s9 + $0x198] ss:$28 sps:$4 sm:$0xff]  }
  0x57   : > { %2998 = vmatprep.subr.bf16.mxu1 %v3181_v16  ;;  %v3241_v8 = vld [vmem:[%s3350_s9 + $0x1d4] ss:$28 sps:$4 sm:$0xff]  }
  0x5a   : > { %2999 = vmatpush3.bf16.msra.mxu1 %v3181_v16  ;;  %v3251_v16 = vld [vmem:[%s3350_s9 + $0x244] ss:$28 sps:$4 sm:$0xff]  }
  0x5b   : > { %3000 = vmatprep.subr.bf16.mxu1 %v3195_v22 }
  0x5c   : > { %1418 = vmatmul.mubr.bf16.gmra.mxu0 %v3146_v11  ;;  %1547 = vmatmul.mubr.bf16.gmra.mxu1 %v3147_v12  ;;  %v3245_v11 = vld [vmem:[%s3350_s9 + $0x50] ss:$28 sps:$4 sm:$0xff]  }
  0x5d   : > { %1425 = vmatprep.mubr.bf16.mxu0 %v3151_v13  ;;  %1554 = vmatprep.mubr.bf16.mxu1 %v3153_v14  ;;  %v3246_v12 = vld [vmem:[%s3350_s9 + $0x20c] ss:$28 sps:$4 sm:$0xff]  }
  0x5e   : > { %3001 = vmatpush3.bf16.msra.mxu1 %v3195_v22  ;;  %v3248_v13 = vld [vmem:[%s3350_s9 + $0x88] ss:$28 sps:$4 sm:$0xff]   ;;  %v3259_v22 = vld [vmem:[%s3350_s9 + $0x278] ss:$28 sps:$4 sm:$0xff]  }
  0x5f   : > { %3002 = vmatprep.subr.bf16.mxu1 %v3208_v25  ;;  %v3249_v14 = vld [vmem:[%s3350_s9 + $0x208] ss:$28 sps:$4 sm:$0xff]  }
  0x62   : > { %3003 = vmatpush3.bf16.msra.mxu1 %v3208_v25  ;;  %v3263_v25 = vld [vmem:[%s3350_s9 + $0x1d8] ss:$28 sps:$4 sm:$0xff]  }
  0x63   : > { %3004 = vmatprep.subr.bf16.mxu1 %v3221_v28 }
  0x64   : > { %1426 = vmatmul.mubr.bf16.gmra.mxu0 %v3155_v18  ;;  %1555 = vmatmul.mubr.bf16.gmra.mxu1 %v3156_v19  ;;  %v3254_v18 = vld [vmem:[%s3350_s9 + $0x240] ss:$28 sps:$4 sm:$0xff]   ;;  %v3255_v19 = vld [vmem:[%s3350_s9 + $0x130] ss:$28 sps:$4 sm:$0xff]  }
  0x65   : > { %1433 = vmatprep.mubr.bf16.mxu0 %v3159_v20  ;;  %1562 = vmatprep.mubr.bf16.mxu1 %v3161_v21  ;;  %v3256_v20 = vld [vmem:[%s3350_s9 + $0x27c] ss:$28 sps:$4 sm:$0xff]   ;;  %v3258_v21 = vld [vmem:[%s3350_s9 + $0x168] ss:$28 sps:$4 sm:$0xff]  }
  0x66   : > { %3005 = vmatpush3.bf16.msra.mxu1 %v3221_v28  ;;  %v3266_v28 = vld [vmem:[%s3350_s9 + $0x2ec] ss:$28 sps:$4 sm:$0xff]  }
  0x67   : > { %3006 = vmatprep.subr.bf16.mxu1 %v3234_v33 }
  0x6a   : > { %3007 = vmatpush3.bf16.msra.mxu1 %v3234_v33 }
  0x6c   : > { %1434 = vmatmul.mubr.bf16.gmra.mxu0 %v3163_v23  ;;  %1563 = vmatmul.mubr.bf16.gmra.mxu1 %v3164_v24  ;;  %v3260_v23 = vld [vmem:[%s3350_s9 + $0x1a0] ss:$28 sps:$4 sm:$0xff]   ;;  %v3261_v24 = vld [vmem:[%s3350_s9 + $0x2b4] ss:$28 sps:$4 sm:$0xff]  }
  0x6d   : > { %1441 = vmatprep.mubr.bf16.mxu0 %v3166_v26  ;;  %1570 = vmatprep.mubr.bf16.mxu1 %v3168_v27  ;;  %v3264_v26 = vld [vmem:[%s3350_s9 + $0x2b0] ss:$28 sps:$4 sm:$0xff]  }
  0x6e   : > { %v3265_v27 = vld [vmem:[%s3350_s9 + $0x210] ss:$28 sps:$4 sm:$0xff]  }
  0x74   : > { %1442 = vmatmul.mubr.bf16.gmra.mxu0 %v3170_v29  ;;  %1571 = vmatmul.mubr.bf16.gmra.mxu1 %v3171_v30  ;;  %v3268_v29 = vld [vmem:[%s3350_s9 + $0x248] ss:$28 sps:$4 sm:$0xff]  }
  0x75   : > { %1449 = vmatprep.mubr.bf16.mxu0 %v3174_v31  ;;  %1578 = vmatprep.mubr.bf16.mxu1 %v3176_v32 }
  0x7c   : > { %1450 = vmatmul.mubr.bf16.gmra.mxu0 %v3178_v34  ;;  %1579 = vmatmul.mubr.bf16.gmra.mxu1 %v3179_v35 }
  0x7d   : > { %1457 = vmatprep.mubr.bf16.mxu0 %v3183_v36  ;;  %1586 = vmatprep.mubr.bf16.mxu1 %v3185_v37 }
  0x84   : > { %1458 = vmatmul.mubr.bf16.gmra.mxu0 %v3187_v38  ;;  %1587 = vmatmul.mubr.bf16.gmra.mxu1 %v3188_v39  ;;  %v3269_v38 = vld [vmem:[%s3350_s9 + $0x2e8] ss:$28 sps:$4 sm:$0xff]   ;;  %v3270_v39 = vld [vmem:[%s3350_s9 + $0x280] ss:$28 sps:$4 sm:$0xff]  }
  0x85   : > { %1594 = vmatprep.mubr.bf16.mxu1 %v3189_v40  ;;  %1691 = vmatprep.mubr.bf16.mxu0 %v3193_v41  ;;  %v3271_v40 = vld [vmem:[%s3350_s9 + $0x324] ss:$28 sps:$4 sm:$0xff]   ;;  %v3273_v41 = vld [vmem:[%s3350_s9 + $0x2b8] ss:$28 sps:$4 sm:$0xff]  }
  0x8c   : > { %1595 = vmatmul.mubr.bf16.gmra.mxu1 %v3194_v43  ;;  %1692 = vmatmul.mubr.bf16.vlgmr.msra.gmra.mxu0 %v3191_v42 }
  0x8d   : > { %1602 = vmatprep.mubr.bf16.mxu1 %v3196_v44  ;;  %1699 = vmatprep.mubr.bf16.mxu0 %v3198_v45 }
  0x94   : > { %1603 = vmatmul.mubr.bf16.gmra.mxu1 %v3200_v46  ;;  %1700 = vmatmul.mubr.bf16.gmra.mxu0 %v3201_v47 }
  0x95   : > { %1610 = vmatprep.mubr.bf16.mxu1 %v3202_v48  ;;  %1707 = vmatprep.mubr.bf16.mxu0 %v3204_v49 }
  0x9c   : > { %1611 = vmatmul.mubr.bf16.gmra.mxu1 %v3206_v50  ;;  %1708 = vmatmul.mubr.bf16.gmra.mxu0 %v3207_v51 }
  0x9d   : > { %1618 = vmatprep.mubr.bf16.mxu1 %v3209_v52  ;;  %1715 = vmatprep.mubr.bf16.mxu0 %v3211_v53 }
  0xa4   : > { %1619 = vmatmul.mubr.bf16.gmra.mxu1 %v3213_v54  ;;  %1716 = vmatmul.mubr.bf16.gmra.mxu0 %v3214_v55  ;;  %v3274_v54 = vld [vmem:[%s3350_s9 + $0x320] ss:$28 sps:$4 sm:$0xff]   ;;  %v3275_v55 = vld [vmem:[%s3350_s9 + $0x2f0] ss:$28 sps:$4 sm:$0xff]  }
  0xa5   : > { %1626 = vmatprep.mubr.bf16.mxu1 %v3215_v56  ;;  %1723 = vmatprep.mubr.bf16.mxu0 %v3217_v57  ;;  %v3276_v56 = vld [vmem:[%s3350_s9 + $0x35c] ss:$28 sps:$4 sm:$0xff]   ;;  %v3278_v57 = vld [vmem:[%s3350_s9 + $0x328] ss:$28 sps:$4 sm:$0xff]  }
  0xac   : > { %1627 = vmatmul.mubr.bf16.gmra.mxu1 %v3219_v58  ;;  %1724 = vmatmul.mubr.bf16.gmra.mxu0 %v3220_v59 }
  0xad   : > { %1634 = vmatprep.mubr.bf16.mxu1 %v3222_v60  ;;  %1731 = vmatprep.mubr.bf16.mxu0 %v3224_v61 }
  0xb4   : > { %1635 = vmatmul.mubr.bf16.gmra.mxu1 %v3226_v62  ;;  %1732 = vmatmul.mubr.bf16.gmra.mxu0 %v3227_v63 }
  0xb5   : > { %1642 = vmatprep.mubr.bf16.mxu1 %v3228_v0  ;;  %1739 = vmatprep.mubr.bf16.mxu0 %v3230_v1 }
  0xbc   : > { %1643 = vmatmul.mubr.bf16.gmra.mxu1 %v3232_v2  ;;  %1740 = vmatmul.mubr.bf16.gmra.mxu0 %v3233_v3 }
  0xbd   : > { %1650 = vmatprep.mubr.bf16.mxu1 %v3235_v4  ;;  %1747 = vmatprep.mubr.bf16.mxu0 %v3237_v5 }
  0xc4   : > { %1651 = vmatmul.mubr.bf16.gmra.mxu1 %v3239_v6  ;;  %1748 = vmatmul.mubr.bf16.gmra.mxu0 %v3240_v7  ;;  %v3279_v6 = vld [vmem:[%s3350_s9 + $0x358] ss:$28 sps:$4 sm:$0xff]   ;;  %v3280_v7 = vld [vmem:[%s3350_s9 + $0x360] ss:$28 sps:$4 sm:$0xff]  }
  0xc5   : > { %1755 = vmatprep.mubr.bf16.mxu0 %v3241_v8  ;;  %3008 = vmatprep.mubr.bf16.mxu1 %v3243_v9 }
  0xcc   : > { %1756 = vmatmul.mubr.bf16.gmra.mxu0 %v3244_v10  ;;  %3009 = vmatmul.mubr.bf16.vlgmr.msra.gmra.mxu1 %v3245_v11 }
  0xcd   : > { %1763 = vmatprep.mubr.bf16.mxu0 %v3246_v12  ;;  %3012 = vmatprep.mubr.bf16.mxu1 %v3248_v13 }
  0xd4   : > { %1764 = vmatmul.mubr.bf16.gmra.mxu0 %v3249_v14  ;;  %3013 = vmatmul.mubr.bf16.gmra.mxu1 %v3250_v15 }
  0xd5   : > { %1771 = vmatprep.mubr.bf16.mxu0 %v3251_v16  ;;  %3016 = vmatprep.mubr.bf16.mxu1 %v3253_v17 }
  0xdc   : > { %1772 = vmatmul.mubr.bf16.gmra.mxu0 %v3254_v18  ;;  %3017 = vmatmul.mubr.bf16.gmra.mxu1 %v3255_v19 }
  0xdd   : > { %1779 = vmatprep.mubr.bf16.mxu0 %v3256_v20  ;;  %3020 = vmatprep.mubr.bf16.mxu1 %v3258_v21 }
  0xe4   : > { %1780 = vmatmul.mubr.bf16.gmra.mxu0 %v3259_v22  ;;  %3021 = vmatmul.mubr.bf16.gmra.mxu1 %v3260_v23 }
  0xe5   : > { %1787 = vmatprep.mubr.bf16.mxu0 %v3261_v24  ;;  %3024 = vmatprep.mubr.bf16.mxu1 %v3263_v25  ;;  %v3634_v24 = vld [vmem:[%s3967_s2] ss:$0 sm:$0xff] }
  0xec   : > { %v2648_v30 = vpop.f32.mrf.mxu0  ;;  %v2720_v31 = vpop.f32.mrf.mxu1  ;;  %1788 = vmatmul.mubr.bf16.gmra.mxu0 %v3264_v26  ;;  %3025 = vmatmul.mubr.bf16.gmra.mxu1 %v3265_v27 }
  0xed   : > { %1795 = vmatprep.mubr.bf16.mxu0 %v3266_v28  ;;  %3028 = vmatprep.mubr.bf16.mxu1 %v3268_v29 }
  0xee   : > { %v2649_v32 = vpop.f32.mrf.mxu0  ;;  %v2721_v33 = vpop.f32.mrf.mxu1 }
  0xef   : > { %v3595_v34 = vadd.f32 %v2649_v32, %v2648_v30  ;;  %v3597_v35 = vadd.f32 %v2721_v33, %v2720_v31 }
  0xf0   : > { %v2651_v36 = vpop.f32.mrf.mxu0  ;;  %v2723_v37 = vpop.f32.mrf.mxu1 }
  0xf1   : > { %v1372_v29 = vadd.f32 %v3595_v34, %v3634_v24 }
  0xf2   : > { %v2652_v42 = vpop.f32.mrf.mxu0  ;;  %v2724_v43 = vpop.f32.mrf.mxu1 }
  0xf3   : > { %v3603_v44 = vadd.f32 %v2652_v42, %v2651_v36  ;;  %v3605_v45 = vadd.f32 %v2724_v43, %v2723_v37 }
  0xf4   : > { %v2654_v46 = vpop.f32.mrf.mxu0  ;;  %v2726_v47 = vpop.f32.mrf.mxu1  ;;  %1796 = vmatmul.mubr.bf16.gmra.mxu0 %v3269_v38  ;;  %3029 = vmatmul.mubr.bf16.gmra.mxu1 %v3270_v39 }
  0xf5   : > { %1803 = vmatprep.mubr.bf16.mxu0 %v3271_v40  ;;  %3032 = vmatprep.mubr.bf16.mxu1 %v3273_v41  ;;  %v1375_v39 = vadd.f32 %v3603_v44, %v3634_v24 }
  0xf6   : > { %v2655_v48 = vpop.f32.mrf.mxu0  ;;  %v2727_v49 = vpop.f32.mrf.mxu1 }
  0xf7   : > { %v3607_v50 = vadd.f32 %v2655_v48, %v2654_v46  ;;  %v3609_v51 = vadd.f32 %v2727_v49, %v2726_v47 }
  0xf8   : > { %v2657_v52 = vpop.f32.mrf.mxu0  ;;  %v2729_v53 = vpop.f32.mrf.mxu1 }
  0xf9   : > { %v1380_v48 = vadd.f32 %v3607_v50, %v3634_v24 }
  0xfa   : > { %v2658_v58 = vpop.f32.mrf.mxu0  ;;  %v2730_v59 = vpop.f32.mrf.mxu1 }
  0xfb   : > { %v3615_v60 = vadd.f32 %v2658_v58, %v2657_v52  ;;  %v3617_v61 = vadd.f32 %v2730_v59, %v2729_v53 }
  0xfc   : > { %v2660_v62 = vpop.f32.mrf.mxu0  ;;  %v2732_v63 = vpop.f32.mrf.mxu1  ;;  %1804 = vmatmul.mubr.bf16.gmra.mxu0 %v3274_v54  ;;  %3033 = vmatmul.mubr.bf16.gmra.mxu1 %v3275_v55 }
  0xfd   : > { %1811 = vmatprep.mubr.bf16.mxu0 %v3276_v56  ;;  %3036 = vmatprep.mubr.bf16.mxu1 %v3278_v57  ;;  %v1383_v57 = vadd.f32 %v3615_v60, %v3634_v24 }
  0xfe   : > { %v2661_v0 = vpop.f32.mrf.mxu0  ;;  %v2733_v1 = vpop.f32.mrf.mxu1 }
  0xff   : > { %v2662_v2 = vadd.f32 %v2661_v0, %v2660_v62  ;;  %v3619_v3 = vadd.f32 %v2733_v1, %v2732_v63 }
 0x100   : > { %v2663_v4 = vpop.f32.mrf.mxu0  ;;  %v2735_v5 = vpop.f32.mrf.mxu1 }
 0x102   : > { %v2664_v8 = vpop.f32.mrf.mxu0  ;;  %v2736_v9 = vpop.f32.mrf.mxu1 }
 0x103   : > { %v2665_v10 = vadd.f32 %v2664_v8, %v2663_v4  ;;  %v3623_v11 = vadd.f32 %v2736_v9, %v2735_v5  ;;  %v1388_v4 = vadd.f32 %v2662_v2, %v3634_v24 }
 0x104   : > { %v2666_v12 = vpop.f32.mrf.mxu0  ;;  %v2738_v13 = vpop.f32.mrf.mxu1  ;;  %1812 = vmatmul.mubr.bf16.gmra.mxu0 %v3279_v6  ;;  %3037 = vmatmul.mubr.bf16.gmra.mxu1 %v3280_v7 }
 0x106   : > { %v2667_v14 = vpop.f32.mrf.mxu0  ;;  %v2739_v15 = vpop.f32.mrf.mxu1 }
 0x107   : > { %v2668_v16 = vadd.f32 %v2667_v14, %v2666_v12  ;;  %v3625_v17 = vadd.f32 %v2739_v15, %v2738_v13  ;;  %v1391_v13 = vadd.f32 %v2665_v10, %v3634_v24 }
 0x108   : > { %v2669_v18 = vpop.f32.mrf.mxu0  ;;  %v2741_v19 = vpop.f32.mrf.mxu1 }
 0x10a   : > { %v2670_v20 = vpop.f32.mrf.mxu0  ;;  %v2742_v21 = vpop.f32.mrf.mxu1 }
 0x10b   : > { %v3627_v22 = vadd.f32 %v2670_v20, %v2669_v18  ;;  %v3629_v23 = vadd.f32 %v2742_v21, %v2741_v19 }
 0x10c   : > { %v2672_v25 = vpop.f32.mrf.mxu0  ;;  %v2760_v26 = vpop.f32.mrf.mxu1 }
 0x10e   : > { %v2673_v27 = vpop.f32.mrf.mxu0  ;;  %v2761_v28 = vpop.f32.mrf.mxu1 }
 0x10f   : > { %v3638_v30 = vadd.f32 %v2673_v27, %v2672_v25  ;;  %v2762_v31 = vadd.f32 %v2761_v28, %v2760_v26  ;;  %v1396_v25 = vadd.f32 %v2668_v16, %v3634_v24 }
 0x110   : > { %v2675_v32 = vpop.f32.mrf.mxu0  ;;  %v2763_v33 = vpop.f32.mrf.mxu1 }
 0x111   : > { %v3640_v36 = vadd.f32 %v2762_v31, %v1372_v29 }
 0x112   : > { %v2676_v37 = vpop.f32.mrf.mxu0  ;;  %v2764_v38 = vpop.f32.mrf.mxu1 }
 0x113   : > { %v3644_v40 = vadd.f32 %v2676_v37, %v2675_v32  ;;  %v2765_v41 = vadd.f32 %v2764_v38, %v2763_v33  ;;  %v1399_v33 = vadd.f32 %v3627_v22, %v3634_v24 }
 0x114   : > { %v2678_v42 = vpop.f32.mrf.mxu0  ;;  %v2766_v43 = vpop.f32.mrf.mxu1 }
 0x115   : > { %v3646_v46 = vadd.f32 %v2765_v41, %v1375_v39 }
 0x116   : > { %v2679_v34 = vpop.f32.mrf.mxu0  ;;  %v2767_v47 = vpop.f32.mrf.mxu1 }
 0x117   : > { %v3650_v49 = vadd.f32 %v2679_v34, %v2678_v42  ;;  %v2768_v52 = vadd.f32 %v2767_v47, %v2766_v43  ;;  %v1404_v34 = vadd.f32 %v3638_v30, %v3634_v24 }
 0x118   : > { %v2681_v53 = vpop.f32.mrf.mxu0  ;;  %v2769_v54 = vpop.f32.mrf.mxu1 }
 0x119   : > { %v3652_v55 = vadd.f32 %v2768_v52, %v1380_v48 }
 0x11a   : > { %v2682_v44 = vpop.f32.mrf.mxu0  ;;  %v2770_v56 = vpop.f32.mrf.mxu1 }
 0x11b   : > { %v3656_v58 = vadd.f32 %v2682_v44, %v2681_v53  ;;  %v2771_v59 = vadd.f32 %v2770_v56, %v2769_v54  ;;  %v1407_v56 = vadd.f32 %v3644_v40, %v3634_v24 }
 0x11c   : > { %v2684_v62 = vpop.f32.mrf.mxu0  ;;  %v2772_v63 = vpop.f32.mrf.mxu1 }
 0x11d   : > { %v3658_v0 = vadd.f32 %v2771_v59, %v1383_v57 }
 0x11e   : > { %v2685_v50 = vpop.f32.mrf.mxu0  ;;  %v2773_v1 = vpop.f32.mrf.mxu1 }
 0x11f   : > { %v3661_v5 = vadd.f32 %v2685_v50, %v2684_v62  ;;  %v2774_v6 = vadd.f32 %v2773_v1, %v2772_v63 }
 0x120   : > { %v2687_v7 = vpop.f32.mrf.mxu0  ;;  %v2775_v8 = vpop.f32.mrf.mxu1 }
 0x121   : > { %v3663_v9 = vadd.f32 %v2774_v6, %v1388_v4  ;;  %v1412_v4 = vadd.f32 %v3650_v49, %v3634_v24 }
 0x122   : > { %v2688_v12 = vpop.f32.mrf.mxu0  ;;  %v2776_v60 = vpop.f32.mrf.mxu1 }
 0x123   : > { %v3666_v14 = vadd.f32 %v2688_v12, %v2687_v7  ;;  %v2777_v15 = vadd.f32 %v2776_v60, %v2775_v8 }
 0x124   : > { %v2690_v18 = vpop.f32.mrf.mxu0  ;;  %v2778_v19 = vpop.f32.mrf.mxu1 }
 0x125   : > { %v3668_v20 = vadd.f32 %v2777_v15, %v1391_v13  ;;  %v1415_v15 = vadd.f32 %v3656_v58, %v3634_v24  ;;  %v1423_v58 = vadd.f32 %v3666_v14, %v3634_v24 }
 0x126   : > { %v2691_v21 = vpop.f32.mrf.mxu0  ;;  %v2779_v2 = vpop.f32.mrf.mxu1 }
 0x127   : > { %v3671_v26 = vadd.f32 %v2691_v21, %v2690_v18  ;;  %v2780_v27 = vadd.f32 %v2779_v2, %v2778_v19 }
 0x128   : > { %v2693_v28 = vpop.f32.mrf.mxu0  ;;  %v2781_v29 = vpop.f32.mrf.mxu1 }
 0x129   : > { %v3673_v31 = vadd.f32 %v2780_v27, %v1396_v25 }
 0x12a   : > { %v2694_v32 = vpop.f32.mrf.mxu0  ;;  %v2782_v10 = vpop.f32.mrf.mxu1 }
 0x12b   : > { %v3677_v37 = vadd.f32 %v2694_v32, %v2693_v28  ;;  %v2783_v38 = vadd.f32 %v2782_v10, %v2781_v29  ;;  %v1420_v28 = vadd.f32 %v3661_v5, %v3634_v24  ;;  %v1428_v5 = vadd.f32 %v3671_v26, %v3634_v24 }
 0x12c   : > { %v2696_v39 = vpop.f32.mrf.mxu0  ;;  %v2784_v41 = vpop.f32.mrf.mxu1 }
 0x12d   : > { %v3679_v42 = vadd.f32 %v2783_v38, %v1399_v33  ;;  %v1431_v14 = vadd.f32 %v3677_v37, %v3634_v24 }
 0x12e   : > { %v2697_v16 = vpop.f32.mrf.mxu0  ;;  %v2785_v43 = vpop.f32.mrf.mxu1 }
 0x12f   : > { %v3683_v47 = vadd.f32 %v2697_v16, %v2696_v39  ;;  %v2786_v48 = vadd.f32 %v2785_v43, %v2784_v41 }
 0x130   : > { %v2699_v52 = vpop.f32.mrf.mxu0  ;;  %v2787_v53 = vpop.f32.mrf.mxu1 }
 0x131   : > { %v3685_v54 = vadd.f32 %v2786_v48, %v1404_v34  ;;  %v1436_v26 = vadd.f32 %v3683_v47, %v3634_v24 }
 0x132   : > { %v2700_v22 = vpop.f32.mrf.mxu0  ;;  %v2788_v44 = vpop.f32.mrf.mxu1 }
 0x133   : > { %v3689_v57 = vadd.f32 %v2700_v22, %v2699_v52  ;;  %v2789_v59 = vadd.f32 %v2788_v44, %v2787_v53 }
 0x134   : > { %v2702_v62 = vpop.f32.mrf.mxu0  ;;  %v2790_v63 = vpop.f32.mrf.mxu1 }
 0x135   : > { %v3691_v50 = vadd.f32 %v2789_v59, %v1407_v56 }
 0x136   : > { %v2703_v30 = vpop.f32.mrf.mxu0  ;;  %v2791_v1 = vpop.f32.mrf.mxu1 }
 0x137   : > { %v3695_v6 = vadd.f32 %v2703_v30, %v2702_v62  ;;  %v2792_v7 = vadd.f32 %v2791_v1, %v2790_v63 }
 0x138   : > { %v2705_v8 = vpop.f32.mrf.mxu0  ;;  %v2793_v12 = vpop.f32.mrf.mxu1 }
 0x139   : > { %v3697_v60 = vadd.f32 %v2792_v7, %v1412_v4 }
 0x13a   : > { %v2706_v40 = vpop.f32.mrf.mxu0  ;;  %v2794_v13 = vpop.f32.mrf.mxu1 }
 0x13b   : > { %v2707_v18 = vadd.f32 %v2706_v40, %v2705_v8  ;;  %v2795_v19 = vadd.f32 %v2794_v13, %v2793_v12 }
 0x13c   : > { %v2708_v21 = vpop.f32.mrf.mxu0  ;;  %v2796_v2 = vpop.f32.mrf.mxu1 }
 0x13d   : > { %v3701_v25 = vadd.f32 %v2795_v19, %v1415_v15 }
 0x13e   : > { %v2709_v27 = vpop.f32.mrf.mxu0  ;;  %v2797_v49 = vpop.f32.mrf.mxu1 }
 0x13f   : > { %v2710_v29 = vadd.f32 %v2709_v27, %v2708_v21  ;;  %v2798_v32 = vadd.f32 %v2797_v49, %v2796_v2 }
 0x140   : > { %v2711_v10 = vpop.f32.mrf.mxu0  ;;  %v2799_v33 = vpop.f32.mrf.mxu1 }
 0x141   : > { %v3705_v38 = vadd.f32 %v2798_v32, %v1420_v28 }
 0x142   : > { %v2712_v39 = vpop.f32.mrf.mxu0  ;;  %v2800_v41 = vpop.f32.mrf.mxu1 }
 0x143   : > { %v2713_v16 = vadd.f32 %v2712_v39, %v2711_v10  ;;  %v2801_v43 = vadd.f32 %v2800_v41, %v2799_v33  ;;  %v1439_v10 = vadd.f32 %v3689_v57, %v3634_v24 }
 0x144   : > { %v2714_v34 = vpop.f32.mrf.mxu0  ;;  %v2802_v48 = vpop.f32.mrf.mxu1 }
 0x145   : > { %v3709_v52 = vadd.f32 %v2801_v43, %v1423_v58 }
 0x146   : > { %v2715_v53 = vpop.f32.mrf.mxu0  ;;  %v2803_v22 = vpop.f32.mrf.mxu1 }
 0x147   : > { %v2716_v44 = vadd.f32 %v2715_v53, %v2714_v34  ;;  %v2804_v56 = vadd.f32 %v2803_v22, %v2802_v48  ;;  %v1444_v34 = vadd.f32 %v3695_v6, %v3634_v24  ;;  %v1452_v6 = vadd.f32 %v2710_v29, %v3634_v24 }
 0x148   : > { %v2717_v59 = vpop.f32.mrf.mxu0  ;;  %v2805_v62 = vpop.f32.mrf.mxu1 }
 0x149   : > { %v3713_v63 = vadd.f32 %v2804_v56, %v1428_v5  ;;  %v1447_v56 = vadd.f32 %v2707_v18, %v3634_v24  ;;  %v1455_v18 = vadd.f32 %v2713_v16, %v3634_v24  ;;  %v1460_v29 = vadd.f32 %v2716_v44, %v3634_v24 }
 0x14a   : > { %v2718_v30 = vpop.f32.mrf.mxu0  ;;  %v2806_v1 = vpop.f32.mrf.mxu1  ;;  %v1468_v44 = vadd.f32 %v3597_v35, %v3634_v24 }
 0x14b   : > { %v2719_v4 = vadd.f32 %v2718_v30, %v2717_v59  ;;  %v2807_v7 = vadd.f32 %v2806_v1, %v2805_v62 }
 0x14c   : > { %v2808_v8 = vpop.f32.mrf.mxu1  ;;  %v2872_v12 = vpop.f32.mrf.mxu0 }
 0x14d   : > { %v3717_v40 = vadd.f32 %v2807_v7, %v1431_v14  ;;  %v1463_v16 = vadd.f32 %v2719_v4, %v3634_v24 }
 0x14e   : > { %v2809_v13 = vpop.f32.mrf.mxu1  ;;  %v2873_v15 = vpop.f32.mrf.mxu0 }
 0x14f   : > { %v2810_v19 = vadd.f32 %v2809_v13, %v2808_v8  ;;  %v2874_v21 = vadd.f32 %v2873_v15, %v2872_v12 }
 0x150   : > { %v2811_v2 = vpop.f32.mrf.mxu1  ;;  %v3721_v27 = vpop.f32.mrf.mxu0 }
 0x151   : > { %v3723_v49 = vadd.f32 %v2810_v19, %v1436_v26  ;;  %v3726_v37 = vadd.f32 %v2874_v21, %v3640_v36 }
 0x152   : > { %v2812_v28 = vpop.f32.mrf.mxu1  ;;  %v3728_v32 = vpop.f32.mrf.mxu0 }
 0x153   : > { %v2813_v33 = vadd.f32 %v2812_v28, %v2811_v2 }
 0x154   : > { %v2814_v39 = vpop.f32.mrf.mxu1  ;;  %v3732_v41 = vpop.f32.mrf.mxu0 }
 0x155   : > { %v3734_v47 = vadd.f32 %v2813_v33, %v1439_v10 }
 0x156   : > { %v2815_v58 = vpop.f32.mrf.mxu1  ;;  %v3736_v43 = vpop.f32.mrf.mxu0 }
 0x157   : > { %3969 = vst [vmem:[#allocation2_spill] sm:$0xff] %v3734_v47  ;;  %v2816_v36 = vadd.f32 %v2815_v58, %v2814_v39 }
 0x158   : > { %v2817_v48 = vpop.f32.mrf.mxu1  ;;  %v3740_v53 = vpop.f32.mrf.mxu0 }
 0x159   : > { %v3742_v22 = vadd.f32 %v2816_v36, %v1444_v34 }
 0x15a   : > { %v2818_v5 = vpop.f32.mrf.mxu1  ;;  %v3744_v57 = vpop.f32.mrf.mxu0 }
 0x15b   : > { %v2819_v59 = vadd.f32 %v2818_v5, %v2817_v48 }
 0x15c   : > { %v2820_v62 = vpop.f32.mrf.mxu1  ;;  %v3747_v30 = vpop.f32.mrf.mxu0 }
 0x15d   : > { %v3749_v1 = vadd.f32 %v2819_v59, %v1447_v56 }
 0x15e   : > { %v2821_v14 = vpop.f32.mrf.mxu1  ;;  %v3751_v7 = vpop.f32.mrf.mxu0 }
 0x15f   : > { %v2822_v8 = vadd.f32 %v2821_v14, %v2820_v62 }
 0x160   : > { %v2823_v12 = vpop.f32.mrf.mxu1  ;;  %v3754_v13 = vpop.f32.mrf.mxu0 }
 0x161   : > { %v3756_v15 = vadd.f32 %v2822_v8, %v1452_v6 }
 0x162   : > { %v2824_v26 = vpop.f32.mrf.mxu1  ;;  %v3758_v19 = vpop.f32.mrf.mxu0 }
 0x163   : > { %3970 = vst [vmem:[#allocation3_spill] sm:$0xff] %v3756_v15  ;;  %v2825_v21 = vadd.f32 %v2824_v26, %v2823_v12 }
 0x164   : > { %v2826_v2 = vpop.f32.mrf.mxu1  ;;  %v3761_v28 = vpop.f32.mrf.mxu0 }
 0x165   : > { %v3763_v10 = vadd.f32 %v2825_v21, %v1455_v18 }
 0x166   : > { %v2827_v33 = vpop.f32.mrf.mxu1  ;;  %v3765_v39 = vpop.f32.mrf.mxu0 }
 0x167   : > { %3971 = vst [vmem:[#allocation4_spill] sm:$0xff] %v3763_v10  ;;  %v2828_v58 = vadd.f32 %v2827_v33, %v2826_v2 }
 0x168   : > { %v2829_v34 = vpop.f32.mrf.mxu1  ;;  %v3768_v36 = vpop.f32.mrf.mxu0 }
 0x169   : > { %v3770_v48 = vadd.f32 %v2828_v58, %v1460_v29  ;;  %v1471_v29 = vadd.f32 %v3605_v45, %v3634_v24 }
 0x16a   : > { %v2830_v5 = vpop.f32.mrf.mxu1  ;;  %v3772_v56 = vpop.f32.mrf.mxu0 }
 0x16b   : > { %3972 = vst [vmem:[#allocation5_spill] sm:$0xff] %v3770_v48  ;;  %v2831_v59 = vadd.f32 %v2830_v5, %v2829_v34 }
 0x16c   : > { %v2832_v62 = vpop.f32.mrf.mxu1  ;;  %v3775_v14 = vpop.f32.mrf.mxu0 }
 0x16d   : > { %v3777_v6 = vadd.f32 %v2831_v59, %v1463_v16 }
 0x16e   : > { %v2833_v8 = vpop.f32.mrf.mxu1  ;;  %v3779_v12 = vpop.f32.mrf.mxu0 }
 0x16f   : > { %3973 = vst [vmem:[#allocation6_spill] sm:$0xff] %v3777_v6  ;;  %v2834_v26 = vadd.f32 %v2833_v8, %v2832_v62  ;;  %v1476_v62 = vadd.f32 %v3609_v51, %v3634_v24 }
 0x170   : > { %v2835_v18 = vpop.f32.mrf.mxu1  ;;  %v3783_v21 = vpop.f32.mrf.mxu0 }
 0x171   : > { %v3785_v2 = vadd.f32 %v2834_v26, %v1468_v44 }
 0x172   : > { %v2836_v33 = vpop.f32.mrf.mxu1  ;;  %v3787_v4 = vpop.f32.mrf.mxu0 }
 0x173   : > { %3974 = vst [vmem:[#allocation7_spill] sm:$0xff] %v3785_v2  ;;  %v2837_v58 = vadd.f32 %v2836_v33, %v2835_v18  ;;  %v1479_v18 = vadd.f32 %v3617_v61, %v3634_v24 }
 0x174   : > { %v2838_v34 = vpop.f32.mrf.mxu1  ;;  %v3791_v5 = vpop.f32.mrf.mxu0 }
 0x175   : > { %v3793_v16 = vadd.f32 %v2837_v58, %v1471_v29 }
 0x176   : > { %v2839_v59 = vpop.f32.mrf.mxu1  ;;  %v3795_v35 = vpop.f32.mrf.mxu0 }
 0x177   : > { %3975 = vst [vmem:[#allocation8_spill] sm:$0xff] %v3793_v16  ;;  %v2840_v8 = vadd.f32 %v2839_v59, %v2838_v34  ;;  %v1484_v34 = vadd.f32 %v3619_v3, %v3634_v24 }
 0x178   : > { %v2841_v44 = vpop.f32.mrf.mxu1  ;;  %v3799_v26 = vpop.f32.mrf.mxu0 }
 0x179   : > { %v3801_v2 = vadd.f32 %v2840_v8, %v1476_v62 }
 0x17a   : > { %v2842_v10 = vpop.f32.mrf.mxu1  ;;  %v3803_v45 = vpop.f32.mrf.mxu0 }
 0x17b   : > { %3976 = vst [vmem:[#allocation9_spill] sm:$0xff] %v3801_v2  ;;  %v2843_v33 = vadd.f32 %v2842_v10, %v2841_v44  ;;  %v1487_v10 = vadd.f32 %v3623_v11, %v3634_v24 }
 0x17c   : > { %v2844_v29 = vpop.f32.mrf.mxu1  ;;  %v3807_v58 = vpop.f32.mrf.mxu0 }
 0x17d   : > { %v3809_v16 = vadd.f32 %v2843_v33, %v1479_v18 }
 0x17e   : > { %v2845_v6 = vpop.f32.mrf.mxu1  ;;  %v3811_v51 = vpop.f32.mrf.mxu0 }
 0x17f   : > { %3977 = vst [vmem:[#allocation10_spill] sm:$0xff] %v3809_v16  ;;  %v2846_v59 = vadd.f32 %v2845_v6, %v2844_v29  ;;  %v1492_v6 = vadd.f32 %v3625_v17, %v3634_v24  ;;  %v2880_v29 = vadd.f32 %v3736_v43, %v3732_v41 }
 0x180   : > { %v2847_v62 = vpop.f32.mrf.mxu1  ;;  %v3815_v8 = vpop.f32.mrf.mxu0 }
 0x181   : > { %v3817_v2 = vadd.f32 %v2846_v59, %v1484_v34  ;;  %v1702_v17 = vadd.f32 %v2880_v29, %v3652_v55  ;;  %v2892_v55 = vadd.f32 %v3765_v39, %v3761_v28 }
 0x182   : > { %v2848_v15 = vpop.f32.mrf.mxu1  ;;  %v3819_v61 = vpop.f32.mrf.mxu0 }
 0x183   : > { %3978 = vst [vmem:[#allocation11_spill] sm:$0xff] %v3817_v2  ;;  %v2849_v44 = vadd.f32 %v2848_v15, %v2847_v62 }
 0x184   : > { %v2850_v18 = vpop.f32.mrf.mxu1  ;;  %v3823_v33 = vpop.f32.mrf.mxu0 }
 0x185   : > { %v3825_v16 = vadd.f32 %v2849_v44, %v1487_v10  ;;  %v1495_v10 = vadd.f32 %v3629_v23, %v3634_v24  ;;  %v2883_v44 = vadd.f32 %v3744_v57, %v3740_v53  ;;  %v2886_v23 = vadd.f32 %v3751_v7, %v3747_v30 }
 0x186   : > { %v2851_v48 = vpop.f32.mrf.mxu1  ;;  %v3827_v3 = vpop.f32.mrf.mxu0 }
 0x187   : > { %3979 = vst [vmem:[#allocation12_spill] sm:$0xff] %v3825_v16  ;;  %v2852_v34 = vadd.f32 %v2851_v48, %v2850_v18  ;;  %v2877_v18 = vadd.f32 %v3728_v32, %v3721_v27  ;;  %v1705_v24 = vadd.f32 %v2883_v44, %v3658_v0  ;;  %v2889_v0 = vadd.f32 %v3758_v19, %v3754_v13 }
 0x188   : > { %v2853_v59 = vpop.f32.mrf.mxu1  ;;  %v3833_v2 = vpop.f32.mrf.mxu0  ;;  %v1710_v7 = vadd.f32 %v2886_v23, %v3663_v9  ;;  %v1718_v44 = vadd.f32 %v2892_v55, %v3673_v31 }
 0x189   : > { %v3835_v11 = vadd.f32 %v2852_v34, %v1492_v6  ;;  %v1697_v32 = vadd.f32 %v2877_v18, %v3646_v46  ;;  %v2904_v46 = vadd.f32 %v3795_v35, %v3791_v5  ;;  %v1713_v55 = vadd.f32 %v2889_v0, %v3668_v20 }
 0x18a   : > { %v2854_v15 = vpop.f32.mrf.mxu1  ;;  %v3837_v62 = vpop.f32.mrf.mxu0 }
 0x18b   : > { %v2855_v16 = vadd.f32 %v2854_v15, %v2853_v59 }
 0x18c   : > { %v3844_v47 = vpop.f32.mrf.mxu0  ;;  %v3010_v41 = vpop.f32.mrf.mxu1 }
 0x18d   : > { %v3846_v43 = vadd.f32 %v2855_v16, %v1495_v10  ;;  %v1863_v48 = vadd.f32 %v3010_v41, %v1702_v17 }
 0x18e   : > { %v3850_v6 = vpop.f32.mrf.mxu0  ;;  %v1854_v34 = vpop.f32.mrf.mxu1 }
 0x18f   : > { %v1855_v53 = vadd.f32 %v1854_v34, %v3726_v37  ;;  %v2015_v29 = vmul.f32 0.2, %v1863_v48  ;;  %vm1983_vm0 = vcmp.gt.f32.partialorder %v1863_v48, 0.0  ;;  %v2895_v37 = vadd.f32 %v3772_v56, %v3768_v36 }
 0x190   : > { %v3858_v57 = vpop.f32.mrf.mxu0  ;;  %v3011_v16 = vpop.f32.mrf.mxu1 }
 0x191   : > { %v1866_v59 = vadd.f32 %v3011_v16, %v1705_v24  ;;  %v2013_v28 = vmul.f32 0.2, %v1855_v53  ;;  %v2047_v41 = vsel %vm1983_vm0, %v1863_v48, %v2015_v29  ;;  %vm1981_vm2 = vcmp.gt.f32.partialorder %v1855_v53, 0.0 }
 0x192   : > { %v3861_v27 = vpop.f32.mrf.mxu0  ;;  %v1857_v15 = vpop.f32.mrf.mxu1  ;;  %v1721_v34 = vadd.f32 %v2895_v37, %v3679_v42  ;;  %v2898_v16 = vadd.f32 %v3779_v12, %v3775_v14  ;;  %v2901_v12 = vadd.f32 %v3787_v4, %v3783_v21 }
 0x193   : > { %vm1984_vm1 = vcmp.gt.f32.partialorder %v1866_v59, 0.0  ;;  %v2016_v30 = vmul.f32 0.2, %v1866_v59  ;;  %v1858_v39 = vadd.f32 %v1857_v15, %v1697_v32  ;;  %v2045_v5 = vsel %vm1981_vm2, %v1855_v53, %v2013_v28 }
 0x194   : > { %v3869_v10 = vpop.f32.mrf.mxu0  ;;  %v3014_v17 = vpop.f32.mrf.mxu1  ;;  %v1734_v53 = vadd.f32 %v2904_v46, %v3697_v60  ;;  %v2916_v60 = vadd.f32 %v3827_v3, %v3823_v33  ;;  %v1729_v3 = vadd.f32 %v2901_v12, %v3691_v50 }
 0x195   : > { %v2048_v9 = vsel %vm1984_vm1, %v1866_v59, %v2016_v30  ;;  %vm1982_vm3 = vcmp.gt.f32.partialorder %v1858_v39, 0.0  ;;  %v2014_v19 = vmul.f32 0.2, %v1858_v39  ;;  %v1879_v36 = vadd.f32 %v3014_v17, %v1718_v44 }
 0x196   : > { %v2545_v13 = vpack.c.bf16 %v2048_v9, %v2047_v41  ;;  %v3880_v56 = vpop.f32.mrf.mxu0  ;;  %v1870_v31 = vpop.f32.mrf.mxu1  ;;  %v2907_v30 = vadd.f32 %v3803_v45, %v3799_v26  ;;  %v1726_v44 = vadd.f32 %v2898_v16, %v3685_v54  ;;  %v2910_v54 = vadd.f32 %v3811_v51, %v3807_v58 }
 0x197   : > { %v1871_v18 = vadd.f32 %v1870_v31, %v1710_v7  ;;  %v2046_v35 = vsel %vm1982_vm3, %v1858_v39, %v2014_v19  ;;  %v2019_v29 = vmul.f32 0.2, %v1879_v36  ;;  %vm1987_vm4 = vcmp.gt.f32.partialorder %v1879_v36, 0.0 }
 0x198   : > { %2617 = vst [vmem:[%s3878_s11 + $0x8] sm:$0xff] %v2545_v13   ;;  %v3883_v48 = vpop.f32.mrf.mxu0  ;;  %v3015_v23 = vpop.f32.mrf.mxu1  ;;  %v2540_v24 = vpack.c.bf16 %v2046_v35, %v2045_v5  ;;  %v1737_v21 = vadd.f32 %v2907_v30, %v3701_v25  ;;  %v1750_v35 = vadd.f32 %v2916_v60, %v3713_v63 }
 0x199   : > { %v1882_v59 = vadd.f32 %v3015_v23, %v1721_v34  ;;  %v2017_v42 = vmul.f32 0.2, %v1871_v18  ;;  %vm1985_vm5 = vcmp.gt.f32.partialorder %v1871_v18, 0.0  ;;  %v2051_v26 = vsel %vm1987_vm4, %v1879_v36, %v2019_v29 }
 0x19a   : > { %v3889_v32 = vpop.f32.mrf.mxu0  ;;  %v1873_v15 = vpop.f32.mrf.mxu1  ;;  %2541 = vst [vmem:[%s3878_s11] sm:$0xff] %v2540_v24   ;;  %v2919_v36 = vadd.f32 %v3837_v62, %v3833_v2  ;;  %v2928_v29 = vadd.f32 %v3880_v56, %v3869_v10  ;;  %v2922_v56 = vadd.f32 %v3850_v6, %v3844_v47 }
 0x19b   : > { %v1874_v7 = vadd.f32 %v1873_v15, %v1713_v55  ;;  %vm1988_vm6 = vcmp.gt.f32.partialorder %v1882_v59, 0.0  ;;  %v2020_v20 = vmul.f32 0.2, %v1882_v59  ;;  %v2049_v46 = vsel %vm1985_vm5, %v1871_v18, %v2017_v42 }
 0x19c   : > { %v3895_v0 = vpop.f32.mrf.mxu0  ;;  %v3018_v14 = vpop.f32.mrf.mxu1  ;;  %v2913_v55 = vadd.f32 %v3819_v61, %v3815_v8  ;;  %v1742_v15 = vadd.f32 %v2910_v54, %v3705_v38  ;;  %v1753_v61 = vadd.f32 %v2919_v36, %v3717_v40  ;;  %v2931_v38 = vadd.f32 %v3889_v32, %v3883_v48 }
 0x19d   : > { %vm1986_vm7 = vcmp.gt.f32.partialorder %v1874_v7, 0.0  ;;  %v2018_v37 = vmul.f32 0.2, %v1874_v7  ;;  %v1895_v28 = vadd.f32 %v3018_v14, %v1734_v53  ;;  %v2052_v45 = vsel %vm1988_vm6, %v1882_v59, %v2020_v20 }
 0x19e   : > { %v3901_v39 = vpop.f32.mrf.mxu0  ;;  %v1886_v17 = vpop.f32.mrf.mxu1  ;;  %v2555_v41 = vpack.c.bf16 %v2052_v45, %v2051_v26  ;;  %v1745_v10 = vadd.f32 %v2913_v55, %v3709_v52  ;;  %v1766_v40 = vadd.f32 %v2928_v29, %v3742_v22  ;;  %v1758_v22 = vadd.f32 %v2922_v56, %v3723_v49  ;;  %v3981_v55 = vld [vmem:[#allocation5_spill] sm:$0xff] }
 0x19f   : > { %v2050_v9 = vsel %vm1986_vm7, %v1874_v7, %v2018_v37  ;;  %v2023_v13 = vmul.f32 0.2, %v1895_v28  ;;  %v1887_v19 = vadd.f32 %v1886_v17, %v1726_v44  ;;  %vm1991_vm8 = vcmp.gt.f32.partialorder %v1895_v28, 0.0 }
 0x1a0   : > { %v2550_v4 = vpack.c.bf16 %v2050_v9, %v2049_v46  ;;  %v3905_v31 = vpop.f32.mrf.mxu0  ;;  %v3019_v5 = vpop.f32.mrf.mxu1  ;;  %2619 = vst [vmem:[%s3878_s11 + $0x18] sm:$0xff] %v2555_v41   ;;  %v2925_v17 = vadd.f32 %v3861_v27, %v3858_v57  ;;  %v1769_v57 = vadd.f32 %v2931_v38, %v3749_v1  ;;  %v3984_v38 = vld [vmem:[#allocation4_spill] sm:$0xff] }
 0x1a1   : > { %v1898_v33 = vadd.f32 %v3019_v5, %v1737_v21  ;;  %v2021_v34 = vmul.f32 0.2, %v1887_v19  ;;  %v2055_v50 = vsel %vm1991_vm8, %v1895_v28, %v2023_v13  ;;  %vm1989_vm10 = vcmp.gt.f32.partialorder %v1887_v19, 0.0 }
 0x1a2   : > { %2618 = vst [vmem:[%s3878_s11 + $0x10] sm:$0xff] %v2550_v4   ;;  %v3914_v18 = vpop.f32.mrf.mxu0  ;;  %v1889_v25 = vpop.f32.mrf.mxu1 }
 0x1a3   : > { %vm1992_vm9 = vcmp.gt.f32.partialorder %v1898_v33, 0.0  ;;  %v2024_v23 = vmul.f32 0.2, %v1898_v33  ;;  %v1890_v24 = vadd.f32 %v1889_v25, %v1729_v3  ;;  %v2053_v30 = vsel %vm1989_vm10, %v1887_v19, %v2021_v34  ;;  %v3980_v25 = vld [vmem:[#allocation2_spill] sm:$0xff] }
 0x1a4   : > { %v2938_v58 = vpop.f32.mrf.mxu0  ;;  %v3022_v51 = vpop.f32.mrf.mxu1  ;;  %v2934_v34 = vadd.f32 %v3901_v39, %v3895_v0 }
 0x1a5   : > { %v2056_v16 = vsel %vm1992_vm9, %v1898_v33, %v2024_v23  ;;  %vm1990_vm11 = vcmp.gt.f32.partialorder %v1890_v24, 0.0  ;;  %v2022_v2 = vmul.f32 0.2, %v1890_v24  ;;  %v1911_v62 = vadd.f32 %v3022_v51, %v1750_v35 }
 0x1a6   : > { %v2565_v63 = vpack.c.bf16 %v2056_v16, %v2055_v50  ;;  %v2939_v59 = vpop.f32.mrf.mxu0  ;;  %v1902_v53 = vpop.f32.mrf.mxu1  ;;  %v1761_v35 = vadd.f32 %v2925_v17, %v3980_v25  ;;  %v2937_v16 = vadd.f32 %v3914_v18, %v3905_v31 }
 0x1a7   : > { %v2054_v8 = vsel %vm1990_vm11, %v1890_v24, %v2022_v2  ;;  %v2027_v7 = vmul.f32 0.2, %v1911_v62  ;;  %v1903_v20 = vadd.f32 %v1902_v53, %v1742_v15  ;;  %vm1995_vm12 = vcmp.gt.f32.partialorder %v1911_v62, 0.0  ;;  %v3982_v53 = vld [vmem:[#allocation3_spill] sm:$0xff] }
 0x1a8   : > { %2621 = vst [vmem:[%s3878_s11 + $0x28] sm:$0xff] %v2565_v63   ;;  %v2560_v42 = vpack.c.bf16 %v2054_v8, %v2053_v30  ;;  %v2941_v14 = vpop.f32.mrf.mxu0  ;;  %v3023_v12 = vpop.f32.mrf.mxu1  ;;  %v2940_v41 = vadd.f32 %v2939_v59, %v2938_v58  ;;  %v1774_v30 = vadd.f32 %v2934_v34, %v3982_v53 }
 0x1a9   : > { %v1914_v37 = vadd.f32 %v3023_v12, %v1753_v61  ;;  %v2025_v26 = vmul.f32 0.2, %v1903_v20  ;;  %v2059_v46 = vsel %vm1995_vm12, %v1911_v62, %v2027_v7  ;;  %vm1993_vm14 = vcmp.gt.f32.partialorder %v1903_v20, 0.0 }
 0x1aa   : > { %2620 = vst [vmem:[%s3878_s11 + $0x20] sm:$0xff] %v2560_v42   ;;  %v2942_v28 = vpop.f32.mrf.mxu0  ;;  %v1905_v60 = vpop.f32.mrf.mxu1  ;;  %v1782_v50 = vadd.f32 %v2940_v41, %v3981_v55 }
 0x1ab   : > { %vm1996_vm13 = vcmp.gt.f32.partialorder %v1914_v37, 0.0  ;;  %v2028_v45 = vmul.f32 0.2, %v1914_v37  ;;  %v1906_v44 = vadd.f32 %v1905_v60, %v1745_v10  ;;  %v2057_v13 = vsel %vm1993_vm14, %v1903_v20, %v2025_v26  ;;  %v3983_v20 = vld [vmem:[#allocation6_spill] sm:$0xff] }
 0x1ac   : > { %v2944_v52 = vpop.f32.mrf.mxu0  ;;  %v3026_v47 = vpop.f32.mrf.mxu1  ;;  %v2943_v49 = vadd.f32 %v2942_v28, %v2941_v14  ;;  %v1777_v28 = vadd.f32 %v2937_v16, %v3984_v38 }
 0x1ad   : > { %v2060_v6 = vsel %vm1996_vm13, %v1914_v37, %v2028_v45  ;;  %vm1994_vm15 = vcmp.gt.f32.partialorder %v1906_v44, 0.0  ;;  %v2026_v48 = vmul.f32 0.2, %v1906_v44  ;;  %v1927_v32 = vadd.f32 %v3026_v47, %v1766_v40 }
 0x1ae   : > { %v2575_v9 = vpack.c.bf16 %v2060_v6, %v2059_v46  ;;  %v2945_v21 = vpop.f32.mrf.mxu0  ;;  %v1918_v4 = vpop.f32.mrf.mxu1  ;;  %v1785_v31 = vadd.f32 %v2943_v49, %v3983_v20 }
 0x1af   : > { %v2058_v19 = vsel %vm1994_vm15, %v1906_v44, %v2026_v48  ;;  %v2031_v5 = vmul.f32 0.2, %v1927_v32  ;;  %v1919_v33 = vadd.f32 %v1918_v4, %v1758_v22  ;;  %vm1999_vm0 = vcmp.gt.f32.partialorder %v1927_v32, 0.0  ;;  %v3985_v44 = vld [vmem:[#allocation9_spill] sm:$0xff] }
 0x1b0   : > { %2623 = vst [vmem:[%s3878_s11 + $0x38] sm:$0xff] %v2575_v9   ;;  %v2570_v27 = vpack.c.bf16 %v2058_v19, %v2057_v13  ;;  %v2947_v3 = vpop.f32.mrf.mxu0  ;;  %v3027_v54 = vpop.f32.mrf.mxu1  ;;  %v2946_v60 = vadd.f32 %v2945_v21, %v2944_v52  ;;  %v3986_v19 = vld [vmem:[#allocation7_spill] sm:$0xff] }
 0x1b1   : > { %v1930_v36 = vadd.f32 %v3027_v54, %v1769_v57  ;;  %v2029_v1 = vmul.f32 0.2, %v1919_v33  ;;  %v2063_v2 = vsel %vm1999_vm0, %v1927_v32, %v2031_v5  ;;  %vm1997_vm2 = vcmp.gt.f32.partialorder %v1919_v33, 0.0  ;;  %v3987_v54 = vld [vmem:[#allocation10_spill] sm:$0xff] }
 0x1b2   : > { %2622 = vst [vmem:[%s3878_s11 + $0x30] sm:$0xff] %v2570_v27   ;;  %v2948_v23 = vpop.f32.mrf.mxu0  ;;  %v1921_v24 = vpop.f32.mrf.mxu1  ;;  %v1790_v57 = vadd.f32 %v2946_v60, %v3986_v19 }
 0x1b3   : > { %vm2000_vm1 = vcmp.gt.f32.partialorder %v1930_v36, 0.0  ;;  %v2032_v58 = vmul.f32 0.2, %v1930_v36  ;;  %v1922_v51 = vadd.f32 %v1921_v24, %v1761_v35  ;;  %v2061_v61 = vsel %vm1997_vm2, %v1919_v33, %v2029_v1  ;;  %v3988_v24 = vld [vmem:[#allocation8_spill] sm:$0xff] }
 0x1b4   : > { %v2950_v62 = vpop.f32.mrf.mxu0  ;;  %v3030_v29 = vpop.f32.mrf.mxu1  ;;  %v2949_v48 = vadd.f32 %v2948_v23, %v2947_v3 }
 0x1b5   : > { %v2064_v63 = vsel %vm2000_vm1, %v1930_v36, %v2032_v58  ;;  %vm1998_vm3 = vcmp.gt.f32.partialorder %v1922_v51, 0.0  ;;  %v2030_v0 = vmul.f32 0.2, %v1922_v51  ;;  %v1943_v39 = vadd.f32 %v3030_v29, %v1782_v50 }
 0x1b6   : > { %v2585_v59 = vpack.c.bf16 %v2064_v63, %v2063_v2  ;;  %v2951_v15 = vpop.f32.mrf.mxu0  ;;  %v1934_v8 = vpop.f32.mrf.mxu1  ;;  %v1793_v55 = vadd.f32 %v2949_v48, %v3988_v24 }
 0x1b7   : > { %v2062_v42 = vsel %vm1998_vm3, %v1922_v51, %v2030_v0  ;;  %v2952_v7 = vadd.f32 %v2951_v15, %v2950_v62  ;;  %v2035_v14 = vmul.f32 0.2, %v1943_v39  ;;  %v1935_v12 = vadd.f32 %v1934_v8, %v1774_v30  ;;  %v3989_v30 = vld [vmem:[#allocation11_spill] sm:$0xff] }
 0x1b8   : > { %2625 = vst [vmem:[%s3878_s11 + $0x48] sm:$0xff] %v2585_v59   ;;  %v2580_v18 = vpack.c.bf16 %v2062_v42, %v2061_v61  ;;  %v2953_v37 = vpop.f32.mrf.mxu0  ;;  %v3031_v10 = vpop.f32.mrf.mxu1  ;;  %vm2003_vm4 = vcmp.gt.f32.partialorder %v1943_v39, 0.0 }
 0x1b9   : > { %v1946_v56 = vadd.f32 %v3031_v10, %v1785_v31  ;;  %v2033_v40 = vmul.f32 0.2, %v1935_v12  ;;  %v1798_v17 = vadd.f32 %v2952_v7, %v3985_v44  ;;  %v2067_v32 = vsel %vm2003_vm4, %v1943_v39, %v2035_v14  ;;  %v3990_v10 = vld [vmem:[#allocation12_spill] sm:$0xff] }
 0x1ba   : > { %2624 = vst [vmem:[%s3878_s11 + $0x40] sm:$0xff] %v2580_v18   ;;  %v2954_v26 = vpop.f32.mrf.mxu0  ;;  %v1937_v45 = vpop.f32.mrf.mxu1  ;;  %vm2001_vm6 = vcmp.gt.f32.partialorder %v1935_v12, 0.0 }
 0x1bb   : > { %vm2004_vm5 = vcmp.gt.f32.partialorder %v1946_v56, 0.0  ;;  %v2036_v46 = vmul.f32 0.2, %v1946_v56  ;;  %v2955_v47 = vadd.f32 %v2954_v26, %v2953_v37  ;;  %v1938_v6 = vadd.f32 %v1937_v45, %v1777_v28 }
 0x1bc   : > { %v2956_v41 = vpop.f32.mrf.mxu0  ;;  %v3034_v9 = vpop.f32.mrf.mxu1  ;;  %v2065_v5 = vsel %vm2001_vm6, %v1935_v12, %v2033_v40 }
 0x1bd   : > { %v2068_v22 = vsel %vm2004_vm5, %v1946_v56, %v2036_v46  ;;  %vm2002_vm7 = vcmp.gt.f32.partialorder %v1938_v6, 0.0  ;;  %v2034_v4 = vmul.f32 0.2, %v1938_v6  ;;  %v1959_v52 = vadd.f32 %v3034_v9, %v1798_v17 }
 0x1be   : > { %v2595_v21 = vpack.c.bf16 %v2068_v22, %v2067_v32  ;;  %v2957_v13 = vpop.f32.mrf.mxu0  ;;  %v1950_v27 = vpop.f32.mrf.mxu1  ;;  %v1801_v36 = vadd.f32 %v2955_v47, %v3987_v54 }
 0x1bf   : > { %v2066_v33 = vsel %vm2002_vm7, %v1938_v6, %v2034_v4  ;;  %v2039_v25 = vmul.f32 0.2, %v1959_v52  ;;  %v1951_v35 = vadd.f32 %v1950_v27, %v1790_v57  ;;  %vm2007_vm8 = vcmp.gt.f32.partialorder %v1959_v52, 0.0 }
 0x1c0   : > { %2627 = vst [vmem:[%s3878_s11 + $0x58] sm:$0xff] %v2595_v21   ;;  %v2590_v3 = vpack.c.bf16 %v2066_v33, %v2065_v5  ;;  %v2959_v34 = vpop.f32.mrf.mxu0  ;;  %v3035_v49 = vpop.f32.mrf.mxu1  ;;  %v2958_v50 = vadd.f32 %v2957_v13, %v2956_v41 }
 0x1c1   : > { %v1962_v23 = vadd.f32 %v3035_v49, %v1801_v36  ;;  %v2037_v51 = vmul.f32 0.2, %v1951_v35  ;;  %v2071_v62 = vsel %vm2007_vm8, %v1959_v52, %v2039_v25  ;;  %vm2005_vm10 = vcmp.gt.f32.partialorder %v1951_v35, 0.0 }
 0x1c2   : > { %2626 = vst [vmem:[%s3878_s11 + $0x50] sm:$0xff] %v2590_v3   ;;  %v2960_v1 = vpop.f32.mrf.mxu0  ;;  %v1953_v58 = vpop.f32.mrf.mxu1  ;;  %v1806_v8 = vadd.f32 %v2958_v50, %v3989_v30 }
 0x1c3   : > { %vm2008_vm9 = vcmp.gt.f32.partialorder %v1962_v23, 0.0  ;;  %v2040_v16 = vmul.f32 0.2, %v1962_v23  ;;  %v1954_v2 = vadd.f32 %v1953_v58, %v1793_v55  ;;  %v2961_v39 = vadd.f32 %v2960_v1, %v2959_v34 }
 0x1c4   : > { %v2962_v29 = vpop.f32.mrf.mxu0  ;;  %v3038_v63 = vpop.f32.mrf.mxu1  ;;  %v2069_v42 = vsel %vm2005_vm10, %v1951_v35, %v2037_v51 }
 0x1c5   : > { %v2072_v0 = vsel %vm2008_vm9, %v1962_v23, %v2040_v16  ;;  %vm2006_vm11 = vcmp.gt.f32.partialorder %v1954_v2, 0.0  ;;  %v2038_v59 = vmul.f32 0.2, %v1954_v2  ;;  %v1809_v56 = vadd.f32 %v2961_v39, %v3990_v10 }
 0x1c6   : > { %v2605_v15 = vpack.c.bf16 %v2072_v0, %v2071_v62  ;;  %v2963_v53 = vpop.f32.mrf.mxu0  ;;  %v1966_v61 = vpop.f32.mrf.mxu1 }
 0x1c7   : > { %v2070_v7 = vsel %vm2006_vm11, %v1954_v2, %v2038_v59  ;;  %v2964_v20 = vadd.f32 %v2963_v53, %v2962_v29  ;;  %v1967_v18 = vadd.f32 %v1966_v61, %v1806_v8 }
 0x1c8   : > { %2629 = vst [vmem:[%s3878_s11 + $0x68] sm:$0xff] %v2605_v15   ;;  %v2600_v31 = vpack.c.bf16 %v2070_v7, %v2069_v42  ;;  %v2965_v14 = vpop.f32.mrf.mxu0  ;;  %v3039_v12 = vpop.f32.mrf.mxu1 }
 0x1c9   : > { %v1814_v37 = vadd.f32 %v2964_v20, %v3835_v11  ;;  %v2041_v45 = vmul.f32 0.2, %v1967_v18  ;;  %vm2009_vm12 = vcmp.gt.f32.partialorder %v1967_v18, 0.0 }
 0x1ca   : > { %2628 = vst [vmem:[%s3878_s11 + $0x60] sm:$0xff] %v2600_v31   ;;  %v2966_v38 = vpop.f32.mrf.mxu0  ;;  %v1969_v28 = vpop.f32.mrf.mxu1 }
 0x1cb   : > { %v1975_v60 = vadd.f32 %v3038_v63, %v1814_v37  ;;  %v2967_v40 = vadd.f32 %v2966_v38, %v2965_v14  ;;  %v1970_v26 = vadd.f32 %v1969_v28, %v1809_v56  ;;  %v2073_v11 = vsel %vm2009_vm12, %v1967_v18, %v2041_v45 }
 0x1cd   : > { %v1817_v44 = vadd.f32 %v2967_v40, %v3846_v43  ;;  %vm2010_vm13 = vcmp.gt.f32.partialorder %v1970_v26, 0.0  ;;  %v2042_v17 = vmul.f32 0.2, %v1970_v26  ;;  %v2043_v46 = vmul.f32 0.2, %v1975_v60 }
 0x1ce   : > { %vm2011_vm14 = vcmp.gt.f32.partialorder %v1975_v60, 0.0 }
 0x1cf   : > { %v1978_v47 = vadd.f32 %v3039_v12, %v1817_v44  ;;  %v2074_v6 = vsel %vm2010_vm13, %v1970_v26, %v2042_v17  ;;  %v2075_v41 = vsel %vm2011_vm14, %v1975_v60, %v2043_v46 }
 0x1d0   : > { %v2610_v32 = vpack.c.bf16 %v2074_v6, %v2073_v11 }
 0x1d1   : > { %vm2012_vm15 = vcmp.gt.f32.partialorder %v1978_v47, 0.0  ;;  %v2044_v48 = vmul.f32 0.2, %v1978_v47 }
 0x1d2   : > { %2630 = vst [vmem:[%s3878_s11 + $0x70] sm:$0xff] %v2610_v32  }
 0x1d3   : > { %v2076_v9 = vsel %vm2012_vm15, %v1978_v47, %v2044_v48 }
 0x1d4   : > { %v2615_v22 = vpack.c.bf16 %v2076_v9, %v2075_v41 }
 0x1d6   : > { %2631 = vst [vmem:[%s3878_s11 + $0x78] sm:$0xff] %v2615_v22  }
 0x1d7 PF: > { %s13_s12 = sadd.s32 1, %s3287_s12  }
 0x1d8   : > { %p10_p4 = scmp.ge.s32.totalorder %s13_s12, 4  }
 0x1da   :  { %12 = sbr.rel (!%p10_p4) target bundleno = 1 (0x1), region = 62 }

// kernel: forward.7
= control target key start
LH: loop header
LB: loop body
LE: loop exit
PB: predicated region body
PF: predicated region fallthrough
CT: control target
= control target key end

     0   :  { %s4132_s1 = inlined_call_operand.vmem [shape: bf16[1664,128], index: 1, kind: input, shape index: {}]   ;;  %s4133_s0 = inlined_call_operand.vmem [shape: bf16[128,1664], index: 0, kind: input, shape index: {}]   ;;  %s4134_s2 = inlined_call_operand.vmem [shape: f32[1,128], index: 2, kind: input, shape index: {}]   ;;  %s4135_s3 = inlined_call_operand.vmem [shape: bf16[128,128], index: 3, kind: output, shape index: {}]  }
   0x1   :  { %v3041_v0 = vld [vmem:[%s4132_s1 + $0x78] sm:$0xff]   ;;  %v3045_v4 = vld [vmem:[%s4132_s1 + $0x70] sm:$0xff]   ;;  %v3049_v8 = vld [vmem:[%s4132_s1 + $0x68] sm:$0xff]  }
   0x2   :  { %v3042_v1 = vld [vmem:[%s4132_s1 + $0xf8] sm:$0xff]   ;;  %2593 = vmatprep.subr.bf16.mxu0 %v3041_v0  ;;  %v3046_v5 = vld [vmem:[%s4132_s1 + $0xf0] sm:$0xff]   ;;  %v3050_v9 = vld [vmem:[%s4132_s1 + $0xe8] sm:$0xff]  }
   0x3   :  { %v3043_v2 = vld [vmem:[%s4132_s1 + $0x38] sm:$0xff]   ;;  %2657 = vmatprep.subr.bf16.mxu1 %v3042_v1  ;;  %v3047_v6 = vld [vmem:[%s4132_s1 + $0x30] sm:$0xff]   ;;  %v3051_v10 = vld [vmem:[%s4132_s1 + $0x28] sm:$0xff]  }
   0x4   :  { %v3044_v3 = vld [vmem:[%s4132_s1 + $0xb8] sm:$0xff]   ;;  %2594 = vmatpush3.bf16.msra.mxu0 %v3043_v2  ;;  %v3048_v7 = vld [vmem:[%s4132_s1 + $0xb0] sm:$0xff]   ;;  %v3052_v11 = vld [vmem:[%s4132_s1 + $0xa8] sm:$0xff]  }
   0x5   :  { %2658 = vmatpush3.bf16.msra.mxu1 %v3044_v3  ;;  %2595 = vmatprep.subr.bf16.mxu0 %v3045_v4  ;;  %v3053_v12 = vld [vmem:[%s4132_s1 + $0x60] sm:$0xff]   ;;  %v3057_v16 = vld [vmem:[%s4132_s1 + $0x58] sm:$0xff]   ;;  %v3061_v20 = vld [vmem:[%s4132_s1 + $0x50] sm:$0xff]  }
   0x6   :  { %2659 = vmatprep.subr.bf16.mxu1 %v3046_v5  ;;  %v3054_v13 = vld [vmem:[%s4132_s1 + $0xe0] sm:$0xff]   ;;  %v3058_v17 = vld [vmem:[%s4132_s1 + $0xd8] sm:$0xff]   ;;  %v3062_v21 = vld [vmem:[%s4132_s1 + $0xd0] sm:$0xff]  }
   0x7   :  { %v3055_v14 = vld [vmem:[%s4132_s1 + $0x20] sm:$0xff]   ;;  %v3059_v18 = vld [vmem:[%s4132_s1 + $0x18] sm:$0xff]   ;;  %v3063_v22 = vld [vmem:[%s4132_s1 + $0x10] sm:$0xff]  }
   0x8   :  { %2596 = vmatpush3.bf16.msra.mxu0 %v3047_v6  ;;  %v3056_v15 = vld [vmem:[%s4132_s1 + $0xa0] sm:$0xff]   ;;  %v3060_v19 = vld [vmem:[%s4132_s1 + $0x98] sm:$0xff]   ;;  %v3064_v23 = vld [vmem:[%s4132_s1 + $0x90] sm:$0xff]  }
   0x9   :  { %2660 = vmatpush3.bf16.msra.mxu1 %v3048_v7  ;;  %2597 = vmatprep.subr.bf16.mxu0 %v3049_v8  ;;  %v3065_v24 = vld [vmem:[%s4132_s1 + $0x48] sm:$0xff]   ;;  %v3069_v28 = vld [vmem:[%s4132_s1 + $0x40] sm:$0xff]   ;;  %v3079_v36 = vld [vmem:[%s4132_s1 + $0x178] sm:$0xff]  }
   0xa   :  { %2661 = vmatprep.subr.bf16.mxu1 %v3050_v9  ;;  %v3066_v25 = vld [vmem:[%s4132_s1 + $0xc8] sm:$0xff]   ;;  %v3070_v29 = vld [vmem:[%s4132_s1 + $0xc0] sm:$0xff]   ;;  %v3080_v37 = vld [vmem:[%s4132_s1 + $0x1f8] sm:$0xff]  }
   0xb   :  { %v3067_v26 = vld [vmem:[%s4132_s1 + $0x8] sm:$0xff]   ;;  %v3071_v30 = vld [vmem:[%s4132_s1] sm:$0xff]   ;;  %v3081_v38 = vld [vmem:[%s4132_s1 + $0x138] sm:$0xff]  }
   0xc   :  { %2598 = vmatpush3.bf16.msra.mxu0 %v3051_v10  ;;  %v3068_v27 = vld [vmem:[%s4132_s1 + $0x88] sm:$0xff]   ;;  %v3072_v31 = vld [vmem:[%s4132_s1 + $0x80] sm:$0xff]   ;;  %v3082_v39 = vld [vmem:[%s4132_s1 + $0x1b8] sm:$0xff]  }
   0xd   :  { %2662 = vmatpush3.bf16.msra.mxu1 %v3052_v11  ;;  %2599 = vmatprep.subr.bf16.mxu0 %v3053_v12  ;;  %v3073_v32 = vld [vmem:[%s4133_s0] ss:$52 sps:$4 sm:$0xff]   ;;  %v3075_v33 = vld [vmem:[%s4133_s0 + $0x4] ss:$52 sps:$4 sm:$0xff]   ;;  %v3076_v34 = vld [vmem:[%s4133_s0 + $0x8] ss:$52 sps:$4 sm:$0xff]  }
   0xe   :  { %2663 = vmatprep.subr.bf16.mxu1 %v3054_v13  ;;  %v3078_v35 = vld [vmem:[%s4133_s0 + $0xc] ss:$52 sps:$4 sm:$0xff]   ;;  %1526 = vmatprep.mubr.bf16.mxu0 %v3075_v33  ;;  %v3085_v41 = vld [vmem:[%s4133_s0 + $0x74] ss:$52 sps:$4 sm:$0xff]   ;;  %v3088_v43 = vld [vmem:[%s4133_s0 + $0x70] ss:$52 sps:$4 sm:$0xff]  }
   0xf   :  { %1623 = vmatprep.mubr.bf16.mxu1 %v3078_v35  ;;  %v3083_v40 = vld [vmem:[%s4133_s0 + $0x6c] ss:$52 sps:$4 sm:$0xff]   ;;  %v3087_v42 = vld [vmem:[%s4133_s0 + $0x68] ss:$52 sps:$4 sm:$0xff]   ;;  %v3089_v44 = vld [vmem:[%s4132_s1 + $0x170] sm:$0xff]  }
  0x10   :  { %2600 = vmatpush3.bf16.msra.mxu0 %v3055_v14  ;;  %v3090_v45 = vld [vmem:[%s4132_s1 + $0x1f0] sm:$0xff]   ;;  %v3098_v51 = vld [vmem:[%s4133_s0 + $0xd8] ss:$52 sps:$4 sm:$0xff]   ;;  %v3109_v60 = vld [vmem:[%s4132_s1 + $0x160] sm:$0xff]  }
  0x11   :  { %2664 = vmatpush3.bf16.msra.mxu1 %v3056_v15  ;;  %2601 = vmatprep.subr.bf16.mxu0 %v3057_v16  ;;  %v3091_v46 = vld [vmem:[%s4132_s1 + $0x130] sm:$0xff]   ;;  %v3099_v52 = vld [vmem:[%s4132_s1 + $0x168] sm:$0xff]   ;;  %v3105_v57 = vld [vmem:[%s4133_s0 + $0x144] ss:$52 sps:$4 sm:$0xff]  }
  0x12   :  { %2665 = vmatprep.subr.bf16.mxu1 %v3058_v17  ;;  %v3092_v47 = vld [vmem:[%s4132_s1 + $0x1b0] sm:$0xff]   ;;  %v3100_v53 = vld [vmem:[%s4132_s1 + $0x1e8] sm:$0xff]   ;;  %v3110_v61 = vld [vmem:[%s4132_s1 + $0x1e0] sm:$0xff]  }
  0x13   :  { %v3093_v48 = vld [vmem:[%s4133_s0 + $0xd4] ss:$52 sps:$4 sm:$0xff]   ;;  %v3095_v49 = vld [vmem:[%s4133_s0 + $0xdc] ss:$52 sps:$4 sm:$0xff]   ;;  %v3107_v58 = vld [vmem:[%s4133_s0 + $0x138] ss:$52 sps:$4 sm:$0xff]  }
  0x14   :  { %2602 = vmatpush3.bf16.msra.mxu0 %v3059_v18  ;;  %v3097_v50 = vld [vmem:[%s4133_s0 + $0xd0] ss:$52 sps:$4 sm:$0xff]   ;;  %v3101_v54 = vld [vmem:[%s4132_s1 + $0x128] sm:$0xff]   ;;  %v3108_v59 = vld [vmem:[%s4133_s0 + $0x140] ss:$52 sps:$4 sm:$0xff]  }
  0x15   :  { %2666 = vmatpush3.bf16.msra.mxu1 %v3060_v19  ;;  %2603 = vmatprep.subr.bf16.mxu0 %v3061_v20  ;;  %v3102_v55 = vld [vmem:[%s4132_s1 + $0x1a8] sm:$0xff]   ;;  %v3103_v56 = vld [vmem:[%s4133_s0 + $0x13c] ss:$52 sps:$4 sm:$0xff]   ;;  %v3111_v62 = vld [vmem:[%s4132_s1 + $0x120] sm:$0xff]  }
  0x16   :  { %2667 = vmatprep.subr.bf16.mxu1 %v3062_v21  ;;  %v3112_v63 = vld [vmem:[%s4132_s1 + $0x1a0] sm:$0xff]   ;;  %v3119_v3 = vld [vmem:[%s4132_s1 + $0x158] sm:$0xff]   ;;  %v3125_v9 = vld [vmem:[%s4133_s0 + $0x214] ss:$52 sps:$4 sm:$0xff]  }
  0x17   :  { %v3113_v0 = vld [vmem:[%s4133_s0 + $0x1a4] ss:$52 sps:$4 sm:$0xff]   ;;  %v3115_v1 = vld [vmem:[%s4133_s0 + $0x1ac] ss:$52 sps:$4 sm:$0xff]   ;;  %v3118_v4 = vld [vmem:[%s4133_s0 + $0x1a8] ss:$52 sps:$4 sm:$0xff]  }
  0x18   :  { %2604 = vmatpush3.bf16.msra.mxu0 %v3063_v22  ;;  %v3117_v2 = vld [vmem:[%s4133_s0 + $0x1a0] ss:$52 sps:$4 sm:$0xff]   ;;  %v3120_v5 = vld [vmem:[%s4132_s1 + $0x1d8] sm:$0xff]   ;;  %v3128_v15 = vld [vmem:[%s4133_s0 + $0x210] ss:$52 sps:$4 sm:$0xff]  }
  0x19   :  { %2668 = vmatpush3.bf16.msra.mxu1 %v3064_v23  ;;  %2605 = vmatprep.subr.bf16.mxu0 %v3065_v24  ;;  %v3121_v6 = vld [vmem:[%s4132_s1 + $0x118] sm:$0xff]   ;;  %v3123_v8 = vld [vmem:[%s4133_s0 + $0x20c] ss:$52 sps:$4 sm:$0xff]   ;;  %v3129_v10 = vld [vmem:[%s4132_s1 + $0x150] sm:$0xff]  }
  0x1a   :  { %2669 = vmatprep.subr.bf16.mxu1 %v3066_v25  ;;  %v3122_v7 = vld [vmem:[%s4132_s1 + $0x198] sm:$0xff]   ;;  %v3130_v11 = vld [vmem:[%s4132_s1 + $0x1d0] sm:$0xff]   ;;  %v3139_v18 = vld [vmem:[%s4132_s1 + $0x148] sm:$0xff]  }
  0x1b   :  { %v3127_v12 = vld [vmem:[%s4133_s0 + $0x208] ss:$52 sps:$4 sm:$0xff]   ;;  %v3131_v13 = vld [vmem:[%s4132_s1 + $0x110] sm:$0xff]   ;;  %v3138_v23 = vld [vmem:[%s4133_s0 + $0x278] ss:$52 sps:$4 sm:$0xff]  }
  0x1c   :  { %2606 = vmatpush3.bf16.msra.mxu0 %v3067_v26  ;;  %v3132_v14 = vld [vmem:[%s4132_s1 + $0x190] sm:$0xff]   ;;  %v3140_v19 = vld [vmem:[%s4132_s1 + $0x1c8] sm:$0xff]   ;;  %v3145_v25 = vld [vmem:[%s4133_s0 + $0x2e4] ss:$52 sps:$4 sm:$0xff]  }
  0x1d   :  { %2670 = vmatpush3.bf16.msra.mxu1 %v3068_v27  ;;  %2607 = vmatprep.subr.bf16.mxu0 %v3069_v28  ;;  %v3133_v16 = vld [vmem:[%s4133_s0 + $0x274] ss:$52 sps:$4 sm:$0xff]   ;;  %v3135_v17 = vld [vmem:[%s4133_s0 + $0x27c] ss:$52 sps:$4 sm:$0xff]   ;;  %v3149_v26 = vld [vmem:[%s4132_s1 + $0x140] sm:$0xff]  }
  0x1e   :  { %2671 = vmatprep.subr.bf16.mxu1 %v3070_v29  ;;  %v3141_v20 = vld [vmem:[%s4132_s1 + $0x108] sm:$0xff]   ;;  %v3137_v22 = vld [vmem:[%s4133_s0 + $0x270] ss:$52 sps:$4 sm:$0xff]   ;;  %v3159_v33 = vld [vmem:[%s4132_s1 + $0x278] sm:$0xff]  }
  0x1f   :  { %v3142_v21 = vld [vmem:[%s4132_s1 + $0x188] sm:$0xff]   ;;  %v3143_v24 = vld [vmem:[%s4133_s0 + $0x2dc] ss:$52 sps:$4 sm:$0xff]   ;;  %v3150_v27 = vld [vmem:[%s4132_s1 + $0x1c0] sm:$0xff]  }
  0x20   :  { %2608 = vmatpush3.bf16.msra.mxu0 %v3071_v30  ;;  %v3151_v28 = vld [vmem:[%s4132_s1 + $0x100] sm:$0xff]   ;;  %v3147_v30 = vld [vmem:[%s4133_s0 + $0x2d8] ss:$52 sps:$4 sm:$0xff]   ;;  %v3158_v35 = vld [vmem:[%s4133_s0 + $0x1c] ss:$52 sps:$4 sm:$0xff]  }
  0x21   :  { %2672 = vmatpush3.bf16.msra.mxu1 %v3072_v31  ;;  %2721 = vmatprep.subr.bf16.mxu0 %v3079_v36  ;;  %v3152_v29 = vld [vmem:[%s4132_s1 + $0x180] sm:$0xff]  }
  0x22   :  { %2785 = vmatprep.subr.bf16.mxu1 %v3080_v37  ;;  %v3148_v31 = vld [vmem:[%s4133_s0 + $0x2e0] ss:$52 sps:$4 sm:$0xff]   ;;  %v3153_v36 = vld [vmem:[%s4133_s0 + $0x10] ss:$52 sps:$4 sm:$0xff]   ;;  %v3156_v37 = vld [vmem:[%s4133_s0 + $0x18] ss:$52 sps:$4 sm:$0xff]  }
  0x23   :  { %1527 = vmatmul.mubr.bf16.vlgmr.msra.gmra.mxu0 %v3073_v32  ;;  %v3155_v32 = vld [vmem:[%s4133_s0 + $0x14] ss:$52 sps:$4 sm:$0xff]  }
  0x24   :  { %1624 = vmatmul.mubr.bf16.vlgmr.msra.gmra.mxu1 %v3076_v34  ;;  %2722 = vmatpush3.bf16.msra.mxu0 %v3081_v38  ;;  %v3160_v34 = vld [vmem:[%s4132_s1 + $0x2f8] sm:$0xff]  }
  0x25   :  { %2786 = vmatpush3.bf16.msra.mxu1 %v3082_v39  ;;  %1534 = vmatprep.mubr.bf16.mxu0 %v3083_v40  ;;  %v3161_v38 = vld [vmem:[%s4132_s1 + $0x238] sm:$0xff]  }
  0x26   :  { %1631 = vmatprep.mubr.bf16.mxu1 %v3085_v41  ;;  %2723 = vmatprep.subr.bf16.mxu0 %v3089_v44  ;;  %v3162_v39 = vld [vmem:[%s4132_s1 + $0x2b8] sm:$0xff]   ;;  %v3171_v44 = vld [vmem:[%s4132_s1 + $0x230] sm:$0xff]  }
  0x27   :  { %2787 = vmatprep.subr.bf16.mxu1 %v3090_v45  ;;  %v3163_v40 = vld [vmem:[%s4133_s0 + $0x7c] ss:$52 sps:$4 sm:$0xff]   ;;  %v3165_v41 = vld [vmem:[%s4133_s0 + $0x84] ss:$52 sps:$4 sm:$0xff]  }
  0x28   :  { %2724 = vmatpush3.bf16.msra.mxu0 %v3091_v46  ;;  %v3172_v45 = vld [vmem:[%s4132_s1 + $0x2b0] sm:$0xff]   ;;  %v3167_v46 = vld [vmem:[%s4133_s0 + $0x78] ss:$52 sps:$4 sm:$0xff]  }
  0x29   :  { %2788 = vmatpush3.bf16.msra.mxu1 %v3092_v47  ;;  %2725 = vmatprep.subr.bf16.mxu0 %v3099_v52  ;;  %v3179_v47 = vld [vmem:[%s4132_s1 + $0x268] sm:$0xff]  }
  0x2a   :  { %2789 = vmatprep.subr.bf16.mxu1 %v3100_v53  ;;  %v3181_v52 = vld [vmem:[%s4132_s1 + $0x228] sm:$0xff]  }
  0x2b   :  { %1535 = vmatmul.mubr.bf16.gmra.mxu0 %v3087_v42  ;;  %v3169_v42 = vld [vmem:[%s4132_s1 + $0x270] sm:$0xff]   ;;  %v3182_v53 = vld [vmem:[%s4132_s1 + $0x2a8] sm:$0xff]  }
  0x2c   :  { %1632 = vmatmul.mubr.bf16.gmra.mxu1 %v3088_v43  ;;  %1542 = vmatprep.mubr.bf16.mxu0 %v3093_v48  ;;  %v3170_v43 = vld [vmem:[%s4132_s1 + $0x2f0] sm:$0xff]  }
  0x2d   :  { %1639 = vmatprep.mubr.bf16.mxu1 %v3095_v49  ;;  %2726 = vmatpush3.bf16.msra.mxu0 %v3101_v54  ;;  %v3168_v48 = vld [vmem:[%s4133_s0 + $0x80] ss:$52 sps:$4 sm:$0xff]   ;;  %v3180_v49 = vld [vmem:[%s4132_s1 + $0x2e8] sm:$0xff]  }
  0x2e   :  { %2790 = vmatpush3.bf16.msra.mxu1 %v3102_v55  ;;  %2727 = vmatprep.subr.bf16.mxu0 %v3109_v60  ;;  %v3189_v54 = vld [vmem:[%s4132_s1 + $0x260] sm:$0xff]  }
  0x2f   :  { %2791 = vmatprep.subr.bf16.mxu1 %v3110_v61  ;;  %v3190_v55 = vld [vmem:[%s4132_s1 + $0x2e0] sm:$0xff]   ;;  %v3185_v61 = vld [vmem:[%s4133_s0 + $0x154] ss:$52 sps:$4 sm:$0xff]  }
  0x30   :  { %v3183_v60 = vld [vmem:[%s4133_s0 + $0x14c] ss:$52 sps:$4 sm:$0xff]  }
  0x31   :  { %2728 = vmatpush3.bf16.msra.mxu0 %v3111_v62  ;;  %v3199_v62 = vld [vmem:[%s4132_s1 + $0x258] sm:$0xff]  }
  0x32   :  { %2792 = vmatpush3.bf16.msra.mxu1 %v3112_v63  ;;  %2729 = vmatprep.subr.bf16.mxu0 %v3119_v3  ;;  %v3200_v63 = vld [vmem:[%s4132_s1 + $0x2d8] sm:$0xff]   ;;  %v3188_v3 = vld [vmem:[%s4133_s0 + $0x150] ss:$52 sps:$4 sm:$0xff]  }
  0x33   :  { %1543 = vmatmul.mubr.bf16.gmra.mxu0 %v3097_v50  ;;  %2793 = vmatprep.subr.bf16.mxu1 %v3120_v5  ;;  %v3173_v50 = vld [vmem:[%s4133_s0 + $0xe4] ss:$52 sps:$4 sm:$0xff]   ;;  %v3195_v5 = vld [vmem:[%s4133_s0 + $0x1bc] ss:$52 sps:$4 sm:$0xff]  }
  0x34   :  { %1640 = vmatmul.mubr.bf16.gmra.mxu1 %v3098_v51  ;;  %1550 = vmatprep.mubr.bf16.mxu0 %v3103_v56  ;;  %v3175_v51 = vld [vmem:[%s4133_s0 + $0xec] ss:$52 sps:$4 sm:$0xff]  }
  0x35   :  { %1647 = vmatprep.mubr.bf16.mxu1 %v3105_v57  ;;  %2730 = vmatpush3.bf16.msra.mxu0 %v3121_v6  ;;  %v3177_v56 = vld [vmem:[%s4133_s0 + $0xe0] ss:$52 sps:$4 sm:$0xff]  }
  0x36   :  { %2794 = vmatpush3.bf16.msra.mxu1 %v3122_v7  ;;  %2731 = vmatprep.subr.bf16.mxu0 %v3129_v10  ;;  %v3191_v57 = vld [vmem:[%s4132_s1 + $0x220] sm:$0xff]   ;;  %v3209_v6 = vld [vmem:[%s4132_s1 + $0x250] sm:$0xff]  }
  0x37   :  { %2795 = vmatprep.subr.bf16.mxu1 %v3130_v11  ;;  %v3210_v7 = vld [vmem:[%s4132_s1 + $0x2d0] sm:$0xff]   ;;  %v3198_v11 = vld [vmem:[%s4133_s0 + $0x1b8] ss:$52 sps:$4 sm:$0xff]  }
  0x38   :  { %v3197_v10 = vld [vmem:[%s4133_s0 + $0x1b0] ss:$52 sps:$4 sm:$0xff]  }
  0x39   :  { %2732 = vmatpush3.bf16.msra.mxu0 %v3131_v13  ;;  %v3205_v13 = vld [vmem:[%s4133_s0 + $0x224] ss:$52 sps:$4 sm:$0xff]  }
  0x3a   :  { %2796 = vmatpush3.bf16.msra.mxu1 %v3132_v14  ;;  %2733 = vmatprep.subr.bf16.mxu0 %v3139_v18  ;;  %v3219_v14 = vld [vmem:[%s4132_s1 + $0x248] sm:$0xff]  }
  0x3b   :  { %1551 = vmatmul.mubr.bf16.gmra.mxu0 %v3107_v58  ;;  %2797 = vmatprep.subr.bf16.mxu1 %v3140_v19  ;;  %v3192_v58 = vld [vmem:[%s4132_s1 + $0x2a0] sm:$0xff]   ;;  %v3207_v18 = vld [vmem:[%s4133_s0 + $0x218] ss:$52 sps:$4 sm:$0xff]  }
  0x3c   :  { %1648 = vmatmul.mubr.bf16.gmra.mxu1 %v3108_v59  ;;  %1558 = vmatprep.mubr.bf16.mxu0 %v3113_v0  ;;  %v3178_v59 = vld [vmem:[%s4133_s0 + $0xe8] ss:$52 sps:$4 sm:$0xff]   ;;  %v3208_v19 = vld [vmem:[%s4133_s0 + $0x220] ss:$52 sps:$4 sm:$0xff]  }
  0x3d   :  { %1655 = vmatprep.mubr.bf16.mxu1 %v3115_v1  ;;  %2734 = vmatpush3.bf16.msra.mxu0 %v3141_v20  ;;  %v3201_v0 = vld [vmem:[%s4132_s1 + $0x218] sm:$0xff]  }
  0x3e   :  { %2798 = vmatpush3.bf16.msra.mxu1 %v3142_v21  ;;  %2735 = vmatprep.subr.bf16.mxu0 %v3149_v26  ;;  %v3202_v1 = vld [vmem:[%s4132_s1 + $0x298] sm:$0xff]   ;;  %v3229_v21 = vld [vmem:[%s4132_s1 + $0x240] sm:$0xff]  }
  0x3f   :  { %2799 = vmatprep.subr.bf16.mxu1 %v3150_v27  ;;  %v3213_v20 = vld [vmem:[%s4133_s0 + $0x284] ss:$52 sps:$4 sm:$0xff]   ;;  %v3217_v27 = vld [vmem:[%s4133_s0 + $0x280] ss:$52 sps:$4 sm:$0xff]  }
  0x40   :  { %v3239_v26 = vld [vmem:[%s4132_s1 + $0x338] sm:$0xff]  }
  0x41   :  { %2736 = vmatpush3.bf16.msra.mxu0 %v3151_v28  ;;  %v3218_v28 = vld [vmem:[%s4133_s0 + $0x288] ss:$52 sps:$4 sm:$0xff]  }
  0x42   :  { %2800 = vmatpush3.bf16.msra.mxu1 %v3152_v29  ;;  %2849 = vmatprep.subr.bf16.mxu0 %v3159_v33  ;;  %v3223_v29 = vld [vmem:[%s4133_s0 + $0x2ec] ss:$52 sps:$4 sm:$0xff]   ;;  %v3235_v33 = vld [vmem:[%s4133_s0 + $0x24] ss:$52 sps:$4 sm:$0xff]  }
  0x43   :  { %1559 = vmatmul.mubr.bf16.gmra.mxu0 %v3117_v2  ;;  %2913 = vmatprep.subr.bf16.mxu1 %v3160_v34  ;;  %v3187_v2 = vld [vmem:[%s4133_s0 + $0x148] ss:$52 sps:$4 sm:$0xff]   ;;  %v3238_v34 = vld [vmem:[%s4133_s0 + $0x2c] ss:$52 sps:$4 sm:$0xff]  }
  0x44   :  { %1656 = vmatmul.mubr.bf16.gmra.mxu1 %v3118_v4  ;;  %1566 = vmatprep.mubr.bf16.mxu0 %v3123_v8  ;;  %v3193_v4 = vld [vmem:[%s4133_s0 + $0x1b4] ss:$52 sps:$4 sm:$0xff]  }
  0x45   :  { %1663 = vmatprep.mubr.bf16.mxu1 %v3125_v9  ;;  %v3211_v8 = vld [vmem:[%s4132_s1 + $0x210] sm:$0xff]  }
  0x46   :  { %v3212_v9 = vld [vmem:[%s4132_s1 + $0x290] sm:$0xff]  }
  0x4b   :  { %1567 = vmatmul.mubr.bf16.gmra.mxu0 %v3127_v12  ;;  %v3203_v12 = vld [vmem:[%s4133_s0 + $0x21c] ss:$52 sps:$4 sm:$0xff]  }
  0x4c   :  { %1664 = vmatmul.mubr.bf16.gmra.mxu1 %v3128_v15  ;;  %1574 = vmatprep.mubr.bf16.mxu0 %v3133_v16  ;;  %v3220_v15 = vld [vmem:[%s4132_s1 + $0x2c8] sm:$0xff]  }
  0x4d   :  { %1671 = vmatprep.mubr.bf16.mxu1 %v3135_v17  ;;  %v3221_v16 = vld [vmem:[%s4132_s1 + $0x208] sm:$0xff]  }
  0x4e   :  { %v3222_v17 = vld [vmem:[%s4132_s1 + $0x288] sm:$0xff]  }
  0x53   :  { %1575 = vmatmul.mubr.bf16.gmra.mxu0 %v3137_v22  ;;  %v3215_v22 = vld [vmem:[%s4133_s0 + $0x28c] ss:$52 sps:$4 sm:$0xff]  }
  0x54   :  { %1672 = vmatmul.mubr.bf16.gmra.mxu1 %v3138_v23  ;;  %1582 = vmatprep.mubr.bf16.mxu0 %v3143_v24  ;;  %v3230_v23 = vld [vmem:[%s4132_s1 + $0x2c0] sm:$0xff]  }
  0x55   :  { %1679 = vmatprep.mubr.bf16.mxu1 %v3145_v25  ;;  %v3231_v24 = vld [vmem:[%s4132_s1 + $0x200] sm:$0xff]  }
  0x56   :  { %v3232_v25 = vld [vmem:[%s4132_s1 + $0x280] sm:$0xff]  }
  0x5b   :  { %1583 = vmatmul.mubr.bf16.gmra.mxu0 %v3147_v30  ;;  %v3225_v30 = vld [vmem:[%s4133_s0 + $0x2f4] ss:$52 sps:$4 sm:$0xff]  }
  0x5c   :  { %1680 = vmatmul.mubr.bf16.gmra.mxu1 %v3148_v31  ;;  %1720 = vmatprep.mubr.bf16.mxu0 %v3155_v32  ;;  %v3227_v31 = vld [vmem:[%s4133_s0 + $0x2e8] ss:$52 sps:$4 sm:$0xff]   ;;  %v3228_v32 = vld [vmem:[%s4133_s0 + $0x2f0] ss:$52 sps:$4 sm:$0xff]  }
  0x5d   :  { %1817 = vmatprep.mubr.bf16.mxu1 %v3158_v35  ;;  %v3233_v35 = vld [vmem:[%s4133_s0 + $0x20] ss:$52 sps:$4 sm:$0xff]  }
  0x63   :  { %1721 = vmatmul.mubr.bf16.vlgmr.msra.gmra.mxu0 %v3153_v36  ;;  %v3236_v36 = vld [vmem:[%s4133_s0 + $0x28] ss:$52 sps:$4 sm:$0xff]  }
  0x64   :  { %1818 = vmatmul.mubr.bf16.vlgmr.msra.gmra.mxu1 %v3156_v37  ;;  %2850 = vmatpush3.bf16.msra.mxu0 %v3161_v38  ;;  %v3240_v37 = vld [vmem:[%s4133_s0 + $0x8c] ss:$52 sps:$4 sm:$0xff]   ;;  %v3242_v38 = vld [vmem:[%s4133_s0 + $0x94] ss:$52 sps:$4 sm:$0xff]  }
  0x65   :  { %2914 = vmatpush3.bf16.msra.mxu1 %v3162_v39  ;;  %1728 = vmatprep.mubr.bf16.mxu0 %v3163_v40  ;;  %v3246_v39 = vld [vmem:[%s4132_s1 + $0x330] sm:$0xff]   ;;  %v3253_v40 = vld [vmem:[%s4132_s1 + $0x328] sm:$0xff]  }
  0x66   :  { %1825 = vmatprep.mubr.bf16.mxu1 %v3165_v41  ;;  %2851 = vmatprep.subr.bf16.mxu0 %v3169_v42  ;;  %v3244_v41 = vld [vmem:[%s4133_s0 + $0x88] ss:$52 sps:$4 sm:$0xff]   ;;  %v3245_v42 = vld [vmem:[%s4133_s0 + $0x90] ss:$52 sps:$4 sm:$0xff]  }
  0x67   :  { %2915 = vmatprep.subr.bf16.mxu1 %v3170_v43  ;;  %v3247_v43 = vld [vmem:[%s4133_s0 + $0xf4] ss:$52 sps:$4 sm:$0xff]  }
  0x68   :  { %2852 = vmatpush3.bf16.msra.mxu0 %v3171_v44  ;;  %v3249_v44 = vld [vmem:[%s4133_s0 + $0xfc] ss:$52 sps:$4 sm:$0xff]  }
  0x69   :  { %2916 = vmatpush3.bf16.msra.mxu1 %v3172_v45  ;;  %2853 = vmatprep.subr.bf16.mxu0 %v3179_v47  ;;  %v3260_v45 = vld [vmem:[%s4132_s1 + $0x320] sm:$0xff]  }
  0x6a   :  { %2917 = vmatprep.subr.bf16.mxu1 %v3180_v49  ;;  %v3251_v47 = vld [vmem:[%s4133_s0 + $0xf0] ss:$52 sps:$4 sm:$0xff]  }
  0x6b   :  { %1729 = vmatmul.mubr.bf16.gmra.mxu0 %v3167_v46  ;;  %v3267_v46 = vld [vmem:[%s4132_s1 + $0x318] sm:$0xff]  }
  0x6c   :  { %1826 = vmatmul.mubr.bf16.gmra.mxu1 %v3168_v48  ;;  %1736 = vmatprep.mubr.bf16.mxu0 %v3173_v50  ;;  %v3252_v48 = vld [vmem:[%s4133_s0 + $0xf8] ss:$52 sps:$4 sm:$0xff]   ;;  %v3254_v49 = vld [vmem:[%s4133_s0 + $0x15c] ss:$52 sps:$4 sm:$0xff]  }
  0x6d   :  { %1833 = vmatprep.mubr.bf16.mxu1 %v3175_v51  ;;  %2854 = vmatpush3.bf16.msra.mxu0 %v3181_v52  ;;  %v3256_v50 = vld [vmem:[%s4133_s0 + $0x164] ss:$52 sps:$4 sm:$0xff]   ;;  %v3274_v51 = vld [vmem:[%s4132_s1 + $0x310] sm:$0xff]   ;;  %v3281_v52 = vld [vmem:[%s4132_s1 + $0x308] sm:$0xff]  }
  0x6e   :  { %2918 = vmatpush3.bf16.msra.mxu1 %v3182_v53  ;;  %2855 = vmatprep.subr.bf16.mxu0 %v3189_v54  ;;  %v3258_v53 = vld [vmem:[%s4133_s0 + $0x158] ss:$52 sps:$4 sm:$0xff]   ;;  %v3259_v54 = vld [vmem:[%s4133_s0 + $0x160] ss:$52 sps:$4 sm:$0xff]  }
  0x6f   :  { %2919 = vmatprep.subr.bf16.mxu1 %v3190_v55  ;;  %v3261_v55 = vld [vmem:[%s4133_s0 + $0x1c4] ss:$52 sps:$4 sm:$0xff]  }
  0x71   :  { %2856 = vmatpush3.bf16.msra.mxu0 %v3191_v57  ;;  %v3288_v57 = vld [vmem:[%s4132_s1 + $0x300] sm:$0xff]  }
  0x72   :  { %2920 = vmatpush3.bf16.msra.mxu1 %v3192_v58  ;;  %2857 = vmatprep.subr.bf16.mxu0 %v3199_v62  ;;  %v3265_v58 = vld [vmem:[%s4133_s0 + $0x1c0] ss:$52 sps:$4 sm:$0xff]   ;;  %v3272_v62 = vld [vmem:[%s4133_s0 + $0x228] ss:$52 sps:$4 sm:$0xff]  }
  0x73   :  { %1737 = vmatmul.mubr.bf16.gmra.mxu0 %v3177_v56  ;;  %2921 = vmatprep.subr.bf16.mxu1 %v3200_v63  ;;  %v3263_v56 = vld [vmem:[%s4133_s0 + $0x1cc] ss:$52 sps:$4 sm:$0xff]   ;;  %v3273_v63 = vld [vmem:[%s4133_s0 + $0x230] ss:$52 sps:$4 sm:$0xff]  }
  0x74   :  { %1834 = vmatmul.mubr.bf16.gmra.mxu1 %v3178_v59  ;;  %1744 = vmatprep.mubr.bf16.mxu0 %v3183_v60  ;;  %v3266_v59 = vld [vmem:[%s4133_s0 + $0x1c8] ss:$52 sps:$4 sm:$0xff]   ;;  %v3268_v60 = vld [vmem:[%s4133_s0 + $0x22c] ss:$52 sps:$4 sm:$0xff]  }
  0x75   :  { %1841 = vmatprep.mubr.bf16.mxu1 %v3185_v61  ;;  %2858 = vmatpush3.bf16.msra.mxu0 %v3201_v0  ;;  %v3270_v61 = vld [vmem:[%s4133_s0 + $0x234] ss:$52 sps:$4 sm:$0xff]  }
  0x76   :  { %2922 = vmatpush3.bf16.msra.mxu1 %v3202_v1  ;;  %2859 = vmatprep.subr.bf16.mxu0 %v3209_v6  ;;  %v3275_v0 = vld [vmem:[%s4133_s0 + $0x294] ss:$52 sps:$4 sm:$0xff]   ;;  %v3277_v1 = vld [vmem:[%s4133_s0 + $0x29c] ss:$52 sps:$4 sm:$0xff]   ;;  %v3286_v6 = vld [vmem:[%s4133_s0 + $0x2f8] ss:$52 sps:$4 sm:$0xff]  }
  0x77   :  { %2923 = vmatprep.subr.bf16.mxu1 %v3210_v7  ;;  %v3287_v7 = vld [vmem:[%s4133_s0 + $0x300] ss:$52 sps:$4 sm:$0xff]  }
  0x79   :  { %2860 = vmatpush3.bf16.msra.mxu0 %v3211_v8  ;;  %v3289_v8 = vld [vmem:[%s4133_s0 + $0x30] ss:$52 sps:$4 sm:$0xff]  }
  0x7a   :  { %2924 = vmatpush3.bf16.msra.mxu1 %v3212_v9  ;;  %2861 = vmatprep.subr.bf16.mxu0 %v3219_v14  ;;  %v3290_v9 = vld [vmem:[%s4133_s0 + $0x1d0] ss:$52 sps:$4 sm:$0xff]  }
  0x7b   :  { %1745 = vmatmul.mubr.bf16.gmra.mxu0 %v3187_v2  ;;  %2925 = vmatprep.subr.bf16.mxu1 %v3220_v15  ;;  %v3279_v2 = vld [vmem:[%s4133_s0 + $0x290] ss:$52 sps:$4 sm:$0xff]  }
  0x7c   :  { %1842 = vmatmul.mubr.bf16.gmra.mxu1 %v3188_v3  ;;  %1752 = vmatprep.mubr.bf16.mxu0 %v3193_v4  ;;  %v3280_v3 = vld [vmem:[%s4133_s0 + $0x298] ss:$52 sps:$4 sm:$0xff]   ;;  %v3282_v4 = vld [vmem:[%s4133_s0 + $0x2fc] ss:$52 sps:$4 sm:$0xff]  }
  0x7d   :  { %1849 = vmatprep.mubr.bf16.mxu1 %v3195_v5  ;;  %2862 = vmatpush3.bf16.msra.mxu0 %v3221_v16  ;;  %v3284_v5 = vld [vmem:[%s4133_s0 + $0x304] ss:$52 sps:$4 sm:$0xff]   ;;  %v3938_v16 = vld [vmem:[%s4134_s2] ss:$0 sm:$0xff] }
  0x7e   :  { %2926 = vmatpush3.bf16.msra.mxu1 %v3222_v17  ;;  %2863 = vmatprep.subr.bf16.mxu0 %v3229_v21 }
  0x7f   :  { %2927 = vmatprep.subr.bf16.mxu1 %v3230_v23 }
  0x81   :  { %2864 = vmatpush3.bf16.msra.mxu0 %v3231_v24 }
  0x82   :  { %2928 = vmatpush3.bf16.msra.mxu1 %v3232_v25  ;;  %2993 = vmatprep.subr.bf16.mxu0 %v3239_v26  ;;  %v3296_v25 = vld [vmem:[%s4133_s0 + $0x308] ss:$52 sps:$4 sm:$0xff]  }
  0x83   :  { %1753 = vmatmul.mubr.bf16.gmra.mxu0 %v3197_v10  ;;  %3025 = vmatprep.subr.bf16.mxu1 %v3239_v26  ;;  %v3291_v10 = vld [vmem:[%s4133_s0 + $0x98] ss:$52 sps:$4 sm:$0xff]  }
  0x84   :  { %1850 = vmatmul.mubr.bf16.gmra.mxu1 %v3198_v11  ;;  %1760 = vmatprep.mubr.bf16.mxu0 %v3203_v12  ;;  %v3292_v11 = vld [vmem:[%s4133_s0 + $0x238] ss:$52 sps:$4 sm:$0xff]   ;;  %v3293_v12 = vld [vmem:[%s4133_s0 + $0x100] ss:$52 sps:$4 sm:$0xff]  }
  0x85   :  { %1857 = vmatprep.mubr.bf16.mxu1 %v3205_v13  ;;  %v3294_v13 = vld [vmem:[%s4133_s0 + $0x2a0] ss:$52 sps:$4 sm:$0xff]  }
  0x8b   :  { %1761 = vmatmul.mubr.bf16.gmra.mxu0 %v3207_v18 }
  0x8c   :  { %1858 = vmatmul.mubr.bf16.gmra.mxu1 %v3208_v19  ;;  %1768 = vmatprep.mubr.bf16.mxu0 %v3213_v20 }
  0x8d   :  { %1865 = vmatprep.mubr.bf16.mxu1 %v3215_v22  ;;  %v3295_v22 = vld [vmem:[%s4133_s0 + $0x168] ss:$52 sps:$4 sm:$0xff]  }
  0x93   :  { %1769 = vmatmul.mubr.bf16.gmra.mxu0 %v3217_v27 }
  0x94   :  { %1866 = vmatmul.mubr.bf16.gmra.mxu1 %v3218_v28  ;;  %1776 = vmatprep.mubr.bf16.mxu0 %v3223_v29 }
  0x95   :  { %1873 = vmatprep.mubr.bf16.mxu1 %v3225_v30 }
  0x9b   :  { %1777 = vmatmul.mubr.bf16.gmra.mxu0 %v3227_v31 }
  0x9c   :  { %1874 = vmatmul.mubr.bf16.gmra.mxu1 %v3228_v32  ;;  %1914 = vmatprep.mubr.bf16.mxu0 %v3235_v33 }
  0x9d   :  { %2011 = vmatprep.mubr.bf16.mxu1 %v3238_v34 }
  0xa3   :  { %1915 = vmatmul.mubr.bf16.vlgmr.msra.gmra.mxu0 %v3233_v35 }
  0xa4   :  { %2012 = vmatmul.mubr.bf16.vlgmr.msra.gmra.mxu1 %v3236_v36  ;;  %2994 = vmatpush3.bf16.msra.mxu0 %v3239_v26 }
  0xa5   :  { %3033 = vmatpush3.bf16.msra.mxu1 %v3239_v26  ;;  %1922 = vmatprep.mubr.bf16.mxu0 %v3240_v37 }
  0xa6   :  { %2019 = vmatprep.mubr.bf16.mxu1 %v3242_v38  ;;  %2995 = vmatprep.subr.bf16.mxu0 %v3246_v39 }
  0xa7   :  { %3026 = vmatprep.subr.bf16.mxu1 %v3246_v39 }
  0xa8   :  { %2996 = vmatpush3.bf16.msra.mxu0 %v3246_v39 }
  0xa9   :  { %3034 = vmatpush3.bf16.msra.mxu1 %v3246_v39  ;;  %2997 = vmatprep.subr.bf16.mxu0 %v3253_v40 }
  0xaa   :  { %3027 = vmatprep.subr.bf16.mxu1 %v3253_v40 }
  0xab   :  { %1923 = vmatmul.mubr.bf16.gmra.mxu0 %v3244_v41 }
  0xac   :  { %2020 = vmatmul.mubr.bf16.gmra.mxu1 %v3245_v42  ;;  %1930 = vmatprep.mubr.bf16.mxu0 %v3247_v43 }
  0xad   :  { %2027 = vmatprep.mubr.bf16.mxu1 %v3249_v44  ;;  %2998 = vmatpush3.bf16.msra.mxu0 %v3253_v40 }
  0xae   :  { %3035 = vmatpush3.bf16.msra.mxu1 %v3253_v40  ;;  %2999 = vmatprep.subr.bf16.mxu0 %v3260_v45 }
  0xaf   :  { %3028 = vmatprep.subr.bf16.mxu1 %v3260_v45 }
  0xb1   :  { %3000 = vmatpush3.bf16.msra.mxu0 %v3260_v45 }
  0xb2   :  { %3036 = vmatpush3.bf16.msra.mxu1 %v3260_v45  ;;  %3001 = vmatprep.subr.bf16.mxu0 %v3267_v46 }
  0xb3   :  { %1931 = vmatmul.mubr.bf16.gmra.mxu0 %v3251_v47  ;;  %3029 = vmatprep.subr.bf16.mxu1 %v3267_v46 }
  0xb4   :  { %2028 = vmatmul.mubr.bf16.gmra.mxu1 %v3252_v48  ;;  %1938 = vmatprep.mubr.bf16.mxu0 %v3254_v49 }
  0xb5   :  { %2035 = vmatprep.mubr.bf16.mxu1 %v3256_v50  ;;  %3002 = vmatpush3.bf16.msra.mxu0 %v3267_v46 }
  0xb6   :  { %3037 = vmatpush3.bf16.msra.mxu1 %v3267_v46  ;;  %3003 = vmatprep.subr.bf16.mxu0 %v3274_v51 }
  0xb7   :  { %3030 = vmatprep.subr.bf16.mxu1 %v3274_v51 }
  0xb9   :  { %3004 = vmatpush3.bf16.msra.mxu0 %v3274_v51 }
  0xba   :  { %3038 = vmatpush3.bf16.msra.mxu1 %v3274_v51  ;;  %3005 = vmatprep.subr.bf16.mxu0 %v3281_v52 }
  0xbb   :  { %1939 = vmatmul.mubr.bf16.gmra.mxu0 %v3258_v53  ;;  %3031 = vmatprep.subr.bf16.mxu1 %v3281_v52 }
  0xbc   :  { %2036 = vmatmul.mubr.bf16.gmra.mxu1 %v3259_v54  ;;  %1946 = vmatprep.mubr.bf16.mxu0 %v3261_v55 }
  0xbd   :  { %2043 = vmatprep.mubr.bf16.mxu1 %v3263_v56  ;;  %3006 = vmatpush3.bf16.msra.mxu0 %v3281_v52 }
  0xbe   :  { %3039 = vmatpush3.bf16.msra.mxu1 %v3281_v52  ;;  %3007 = vmatprep.subr.bf16.mxu0 %v3288_v57 }
  0xbf   :  { %3032 = vmatprep.subr.bf16.mxu1 %v3288_v57 }
  0xc1   :  { %3008 = vmatpush3.bf16.msra.mxu0 %v3288_v57 }
  0xc2   :  { %3040 = vmatpush3.bf16.msra.mxu1 %v3288_v57 }
  0xc3   :  { %1947 = vmatmul.mubr.bf16.gmra.mxu0 %v3265_v58 }
  0xc4   :  { %2044 = vmatmul.mubr.bf16.gmra.mxu1 %v3266_v59  ;;  %1954 = vmatprep.mubr.bf16.mxu0 %v3268_v60 }
  0xc5   :  { %2051 = vmatprep.mubr.bf16.mxu1 %v3270_v61 }
  0xcb   :  { %1955 = vmatmul.mubr.bf16.gmra.mxu0 %v3272_v62 }
  0xcc   :  { %2052 = vmatmul.mubr.bf16.gmra.mxu1 %v3273_v63  ;;  %1962 = vmatprep.mubr.bf16.mxu0 %v3275_v0 }
  0xcd   :  { %2059 = vmatprep.mubr.bf16.mxu1 %v3277_v1 }
  0xd3   :  { %1963 = vmatmul.mubr.bf16.gmra.mxu0 %v3279_v2 }
  0xd4   :  { %2060 = vmatmul.mubr.bf16.gmra.mxu1 %v3280_v3  ;;  %1970 = vmatprep.mubr.bf16.mxu0 %v3282_v4 }
  0xd5   :  { %2067 = vmatprep.mubr.bf16.mxu1 %v3284_v5 }
  0xdb   :  { %1971 = vmatmul.mubr.bf16.gmra.mxu0 %v3286_v6 }
  0xdc   :  { %2068 = vmatmul.mubr.bf16.gmra.mxu1 %v3287_v7  ;;  %3009 = vmatprep.mubr.bf16.mxu0 %v3289_v8 }
  0xdd   :  { %3017 = vmatprep.mubr.bf16.mxu1 %v3290_v9 }
  0xe3   :  { %v2609_v14 = vpop.f32.mrf.mxu0  ;;  %3010 = vmatmul.mubr.bf16.vlgmr.msra.gmra.mxu0 %v3291_v10 }
  0xe4   :  { %v2673_v15 = vpop.f32.mrf.mxu1  ;;  %3018 = vmatmul.mubr.bf16.vlgmr.msra.gmra.mxu1 %v3292_v11  ;;  %3013 = vmatprep.mubr.bf16.mxu0 %v3293_v12 }
  0xe5   :  { %v2610_v17 = vpop.f32.mrf.mxu0  ;;  %3021 = vmatprep.mubr.bf16.mxu1 %v3294_v13 }
  0xe6   :  { %v2611_v18 = vadd.f32 %v2610_v17, %v2609_v14  ;;  %v2674_v19 = vpop.f32.mrf.mxu1 }
  0xe7   :  { %v2675_v20 = vadd.f32 %v2674_v19, %v2673_v15  ;;  %v2612_v21 = vpop.f32.mrf.mxu0 }
  0xe8   :  { %v1529_v23 = vadd.f32 %v2611_v18, %v3938_v16  ;;  %v2676_v24 = vpop.f32.mrf.mxu1 }
  0xe9   :  { %v2613_v26 = vpop.f32.mrf.mxu0 }
  0xea   :  { %v3947_v27 = vadd.f32 %v2675_v20, %v1529_v23  ;;  %v2614_v28 = vadd.f32 %v2613_v26, %v2612_v21  ;;  %v2677_v29 = vpop.f32.mrf.mxu1 }
  0xeb   :  { %v2678_v30 = vadd.f32 %v2677_v29, %v2676_v24  ;;  %v2615_v31 = vpop.f32.mrf.mxu0  ;;  %3014 = vmatmul.mubr.bf16.gmra.mxu0 %v3295_v22 }
  0xec   :  { %v1532_v32 = vadd.f32 %v2614_v28, %v3938_v16  ;;  %v2679_v33 = vpop.f32.mrf.mxu1  ;;  %3022 = vmatmul.mubr.bf16.gmra.mxu1 %v3296_v25 }
  0xed   :  { %v2616_v34 = vpop.f32.mrf.mxu0 }
  0xee   :  { %v3950_v35 = vadd.f32 %v2678_v30, %v1532_v32  ;;  %v2617_v36 = vadd.f32 %v2616_v34, %v2615_v31  ;;  %v2680_v37 = vpop.f32.mrf.mxu1 }
  0xef   :  { %v2681_v38 = vadd.f32 %v2680_v37, %v2679_v33  ;;  %v2618_v39 = vpop.f32.mrf.mxu0 }
  0xf0   :  { %v1537_v40 = vadd.f32 %v2617_v36, %v3938_v16  ;;  %v2682_v41 = vpop.f32.mrf.mxu1 }
  0xf1   :  { %v2619_v42 = vpop.f32.mrf.mxu0 }
  0xf2   :  { %v3953_v43 = vadd.f32 %v2681_v38, %v1537_v40  ;;  %v2620_v44 = vadd.f32 %v2619_v42, %v2618_v39  ;;  %v2683_v45 = vpop.f32.mrf.mxu1 }
  0xf3   :  { %v2684_v46 = vadd.f32 %v2683_v45, %v2682_v41  ;;  %v2621_v47 = vpop.f32.mrf.mxu0 }
  0xf4   :  { %v1540_v48 = vadd.f32 %v2620_v44, %v3938_v16  ;;  %v2685_v49 = vpop.f32.mrf.mxu1 }
  0xf5   :  { %v2622_v50 = vpop.f32.mrf.mxu0 }
  0xf6   :  { %v3956_v51 = vadd.f32 %v2684_v46, %v1540_v48  ;;  %v2623_v52 = vadd.f32 %v2622_v50, %v2621_v47  ;;  %v2686_v53 = vpop.f32.mrf.mxu1 }
  0xf7   :  { %v2687_v54 = vadd.f32 %v2686_v53, %v2685_v49  ;;  %v2624_v55 = vpop.f32.mrf.mxu0 }
  0xf8   :  { %v1545_v56 = vadd.f32 %v2623_v52, %v3938_v16  ;;  %v2688_v57 = vpop.f32.mrf.mxu1 }
  0xf9   :  { %v2625_v58 = vpop.f32.mrf.mxu0 }
  0xfa   :  { %v3959_v59 = vadd.f32 %v2687_v54, %v1545_v56  ;;  %v2626_v60 = vadd.f32 %v2625_v58, %v2624_v55  ;;  %v2689_v61 = vpop.f32.mrf.mxu1 }
  0xfb   :  { %v2690_v62 = vadd.f32 %v2689_v61, %v2688_v57  ;;  %v2627_v63 = vpop.f32.mrf.mxu0 }
  0xfc   :  { %v1548_v0 = vadd.f32 %v2626_v60, %v3938_v16  ;;  %v2691_v1 = vpop.f32.mrf.mxu1 }
  0xfd   :  { %v2628_v2 = vpop.f32.mrf.mxu0 }
  0xfe   :  { %v3962_v3 = vadd.f32 %v2690_v62, %v1548_v0  ;;  %v2629_v4 = vadd.f32 %v2628_v2, %v2627_v63  ;;  %v2692_v5 = vpop.f32.mrf.mxu1 }
  0xff   :  { %v2693_v6 = vadd.f32 %v2692_v5, %v2691_v1  ;;  %v2630_v7 = vpop.f32.mrf.mxu0 }
 0x100   :  { %v1553_v8 = vadd.f32 %v2629_v4, %v3938_v16  ;;  %v2694_v9 = vpop.f32.mrf.mxu1 }
 0x101   :  { %v2631_v10 = vpop.f32.mrf.mxu0 }
 0x102   :  { %v3965_v11 = vadd.f32 %v2693_v6, %v1553_v8  ;;  %v2632_v12 = vadd.f32 %v2631_v10, %v2630_v7  ;;  %v2695_v13 = vpop.f32.mrf.mxu1 }
 0x103   :  { %v2696_v14 = vadd.f32 %v2695_v13, %v2694_v9  ;;  %v2633_v15 = vpop.f32.mrf.mxu0 }
 0x104   :  { %v1556_v17 = vadd.f32 %v2632_v12, %v3938_v16  ;;  %v2697_v18 = vpop.f32.mrf.mxu1 }
 0x105   :  { %v2634_v19 = vpop.f32.mrf.mxu0 }
 0x106   :  { %v3968_v20 = vadd.f32 %v2696_v14, %v1556_v17  ;;  %v2635_v21 = vadd.f32 %v2634_v19, %v2633_v15  ;;  %v2698_v22 = vpop.f32.mrf.mxu1 }
 0x107   :  { %v2699_v23 = vadd.f32 %v2698_v22, %v2697_v18  ;;  %v2636_v24 = vpop.f32.mrf.mxu0 }
 0x108   :  { %v1561_v25 = vadd.f32 %v2635_v21, %v3938_v16  ;;  %v2700_v26 = vpop.f32.mrf.mxu1 }
 0x109   :  { %v2637_v28 = vpop.f32.mrf.mxu0 }
 0x10a   :  { %v3971_v29 = vadd.f32 %v2699_v23, %v1561_v25  ;;  %v2638_v30 = vadd.f32 %v2637_v28, %v2636_v24  ;;  %v2701_v31 = vpop.f32.mrf.mxu1 }
 0x10b   :  { %v2702_v32 = vadd.f32 %v2701_v31, %v2700_v26  ;;  %v2639_v33 = vpop.f32.mrf.mxu0 }
 0x10c   :  { %v1564_v34 = vadd.f32 %v2638_v30, %v3938_v16  ;;  %v2703_v36 = vpop.f32.mrf.mxu1 }
 0x10d   :  { %v2640_v37 = vpop.f32.mrf.mxu0 }
 0x10e   :  { %v3974_v38 = vadd.f32 %v2702_v32, %v1564_v34  ;;  %v2641_v39 = vadd.f32 %v2640_v37, %v2639_v33  ;;  %v2704_v40 = vpop.f32.mrf.mxu1 }
 0x10f   :  { %v2705_v41 = vadd.f32 %v2704_v40, %v2703_v36  ;;  %v2642_v42 = vpop.f32.mrf.mxu0 }
 0x110   :  { %v1569_v44 = vadd.f32 %v2641_v39, %v3938_v16  ;;  %v2706_v45 = vpop.f32.mrf.mxu1 }
 0x111   :  { %v2643_v46 = vpop.f32.mrf.mxu0 }
 0x112   :  { %v3977_v47 = vadd.f32 %v2705_v41, %v1569_v44  ;;  %v2644_v48 = vadd.f32 %v2643_v46, %v2642_v42  ;;  %v2707_v49 = vpop.f32.mrf.mxu1 }
 0x113   :  { %v2708_v50 = vadd.f32 %v2707_v49, %v2706_v45  ;;  %v2645_v52 = vpop.f32.mrf.mxu0 }
 0x114   :  { %v1572_v53 = vadd.f32 %v2644_v48, %v3938_v16  ;;  %v2709_v54 = vpop.f32.mrf.mxu1 }
 0x115   :  { %v2646_v55 = vpop.f32.mrf.mxu0 }
 0x116   :  { %v3980_v56 = vadd.f32 %v2708_v50, %v1572_v53  ;;  %v2647_v57 = vadd.f32 %v2646_v55, %v2645_v52  ;;  %v2710_v58 = vpop.f32.mrf.mxu1 }
 0x117   :  { %v2711_v60 = vadd.f32 %v2710_v58, %v2709_v54  ;;  %v2648_v61 = vpop.f32.mrf.mxu0 }
 0x118   :  { %v1577_v62 = vadd.f32 %v2647_v57, %v3938_v16  ;;  %v2712_v63 = vpop.f32.mrf.mxu1 }
 0x119   :  { %v2649_v0 = vpop.f32.mrf.mxu0 }
 0x11a   :  { %v3983_v1 = vadd.f32 %v2711_v60, %v1577_v62  ;;  %v2650_v2 = vadd.f32 %v2649_v0, %v2648_v61  ;;  %v2713_v4 = vpop.f32.mrf.mxu1 }
 0x11b   :  { %v2714_v5 = vadd.f32 %v2713_v4, %v2712_v63  ;;  %v2651_v6 = vpop.f32.mrf.mxu0 }
 0x11c   :  { %v1580_v7 = vadd.f32 %v2650_v2, %v3938_v16  ;;  %v2715_v8 = vpop.f32.mrf.mxu1 }
 0x11d   :  { %v2652_v9 = vpop.f32.mrf.mxu0 }
 0x11e   :  { %v3986_v10 = vadd.f32 %v2714_v5, %v1580_v7  ;;  %v2653_v12 = vadd.f32 %v2652_v9, %v2651_v6  ;;  %v2716_v13 = vpop.f32.mrf.mxu1 }
 0x11f   :  { %v2717_v14 = vadd.f32 %v2716_v13, %v2715_v8  ;;  %v2654_v15 = vpop.f32.mrf.mxu0 }
 0x120   :  { %v1585_v17 = vadd.f32 %v2653_v12, %v3938_v16  ;;  %v2718_v18 = vpop.f32.mrf.mxu1 }
 0x121   :  { %v2655_v19 = vpop.f32.mrf.mxu0 }
 0x122   :  { %v3989_v21 = vadd.f32 %v2717_v14, %v1585_v17  ;;  %v2656_v22 = vadd.f32 %v2655_v19, %v2654_v15  ;;  %v2719_v23 = vpop.f32.mrf.mxu1 }
 0x123   :  { %v2720_v24 = vadd.f32 %v2719_v23, %v2718_v18  ;;  %v2737_v25 = vpop.f32.mrf.mxu0 }
 0x124   :  { %v1588_v26 = vadd.f32 %v2656_v22, %v3938_v16  ;;  %v2801_v28 = vpop.f32.mrf.mxu1 }
 0x125   :  { %v2738_v30 = vpop.f32.mrf.mxu0 }
 0x126   :  { %v3992_v31 = vadd.f32 %v2720_v24, %v1588_v26  ;;  %v2739_v32 = vadd.f32 %v2738_v30, %v2737_v25  ;;  %v2802_v33 = vpop.f32.mrf.mxu1 }
 0x127   :  { %v2803_v34 = vadd.f32 %v2802_v33, %v2801_v28  ;;  %v2740_v36 = vpop.f32.mrf.mxu0 }
 0x128   :  { %v1723_v37 = vadd.f32 %v2739_v32, %v3947_v27  ;;  %v2804_v39 = vpop.f32.mrf.mxu1 }
 0x129   :  { %v2741_v40 = vpop.f32.mrf.mxu0 }
 0x12a   :  { %v3995_v41 = vadd.f32 %v2803_v34, %v1723_v37  ;;  %v2742_v42 = vadd.f32 %v2741_v40, %v2740_v36  ;;  %v2805_v44 = vpop.f32.mrf.mxu1 }
 0x12b   :  { %v2806_v45 = vadd.f32 %v2805_v44, %v2804_v39  ;;  %v2743_v46 = vpop.f32.mrf.mxu0 }
 0x12c   :  { %v1726_v16 = vadd.f32 %v2742_v42, %v3950_v35  ;;  %v2807_v48 = vpop.f32.mrf.mxu1 }
 0x12d   :  { %v2744_v49 = vpop.f32.mrf.mxu0 }
 0x12e   :  { %v3998_v50 = vadd.f32 %v2806_v45, %v1726_v16  ;;  %v2745_v52 = vadd.f32 %v2744_v49, %v2743_v46  ;;  %v2808_v53 = vpop.f32.mrf.mxu1 }
 0x12f   :  { %v2809_v54 = vadd.f32 %v2808_v53, %v2807_v48  ;;  %v2746_v55 = vpop.f32.mrf.mxu0 }
 0x130   :  { %v1731_v27 = vadd.f32 %v2745_v52, %v3953_v43  ;;  %v2810_v57 = vpop.f32.mrf.mxu1 }
 0x131   :  { %v2747_v58 = vpop.f32.mrf.mxu0 }
 0x132   :  { %v4001_v60 = vadd.f32 %v2809_v54, %v1731_v27  ;;  %v2748_v61 = vadd.f32 %v2747_v58, %v2746_v55  ;;  %v2811_v62 = vpop.f32.mrf.mxu1 }
 0x133   :  { %v2812_v63 = vadd.f32 %v2811_v62, %v2810_v57  ;;  %v2749_v0 = vpop.f32.mrf.mxu0 }
 0x134   :  { %v1734_v35 = vadd.f32 %v2748_v61, %v3956_v51  ;;  %v2813_v2 = vpop.f32.mrf.mxu1 }
 0x135   :  { %v2750_v4 = vpop.f32.mrf.mxu0 }
 0x136   :  { %v4004_v5 = vadd.f32 %v2812_v63, %v1734_v35  ;;  %v2751_v6 = vadd.f32 %v2750_v4, %v2749_v0  ;;  %v2814_v7 = vpop.f32.mrf.mxu1 }
 0x137   :  { %v2815_v8 = vadd.f32 %v2814_v7, %v2813_v2  ;;  %v2752_v9 = vpop.f32.mrf.mxu0 }
 0x138   :  { %v1739_v43 = vadd.f32 %v2751_v6, %v3959_v59  ;;  %v2816_v12 = vpop.f32.mrf.mxu1 }
 0x139   :  { %v2753_v13 = vpop.f32.mrf.mxu0 }
 0x13a   :  { %v4007_v14 = vadd.f32 %v2815_v8, %v1739_v43  ;;  %v2754_v15 = vadd.f32 %v2753_v13, %v2752_v9  ;;  %v2817_v17 = vpop.f32.mrf.mxu1 }
 0x13b   :  { %v2818_v18 = vadd.f32 %v2817_v17, %v2816_v12  ;;  %v2755_v19 = vpop.f32.mrf.mxu0 }
 0x13c   :  { %v1742_v51 = vadd.f32 %v2754_v15, %v3962_v3  ;;  %v2819_v22 = vpop.f32.mrf.mxu1 }
 0x13d   :  { %v2756_v23 = vpop.f32.mrf.mxu0 }
 0x13e   :  { %v4010_v24 = vadd.f32 %v2818_v18, %v1742_v51  ;;  %v2757_v25 = vadd.f32 %v2756_v23, %v2755_v19  ;;  %v2820_v26 = vpop.f32.mrf.mxu1 }
 0x13f   :  { %v2821_v28 = vadd.f32 %v2820_v26, %v2819_v22  ;;  %v2758_v30 = vpop.f32.mrf.mxu0 }
 0x140   :  { %v1747_v59 = vadd.f32 %v2757_v25, %v3965_v11  ;;  %v2822_v32 = vpop.f32.mrf.mxu1 }
 0x141   :  { %v2759_v33 = vpop.f32.mrf.mxu0 }
 0x142   :  { %v4013_v34 = vadd.f32 %v2821_v28, %v1747_v59  ;;  %v2760_v36 = vadd.f32 %v2759_v33, %v2758_v30  ;;  %v2823_v37 = vpop.f32.mrf.mxu1 }
 0x143   :  { %v2824_v39 = vadd.f32 %v2823_v37, %v2822_v32  ;;  %v2761_v40 = vpop.f32.mrf.mxu0 }
 0x144   :  { %v1750_v3 = vadd.f32 %v2760_v36, %v3968_v20  ;;  %v2825_v42 = vpop.f32.mrf.mxu1 }
 0x145   :  { %v2762_v44 = vpop.f32.mrf.mxu0 }
 0x146   :  { %v4016_v45 = vadd.f32 %v2824_v39, %v1750_v3  ;;  %v2763_v46 = vadd.f32 %v2762_v44, %v2761_v40  ;;  %v2826_v16 = vpop.f32.mrf.mxu1 }
 0x147   :  { %v2827_v48 = vadd.f32 %v2826_v16, %v2825_v42  ;;  %v2764_v49 = vpop.f32.mrf.mxu0 }
 0x148   :  { %v1755_v11 = vadd.f32 %v2763_v46, %v3971_v29  ;;  %v2828_v52 = vpop.f32.mrf.mxu1 }
 0x149   :  { %v2765_v53 = vpop.f32.mrf.mxu0 }
 0x14a   :  { %v4019_v54 = vadd.f32 %v2827_v48, %v1755_v11  ;;  %v2766_v55 = vadd.f32 %v2765_v53, %v2764_v49  ;;  %v2829_v27 = vpop.f32.mrf.mxu1 }
 0x14b   :  { %v2830_v57 = vadd.f32 %v2829_v27, %v2828_v52  ;;  %v2767_v58 = vpop.f32.mrf.mxu0 }
 0x14c   :  { %v1758_v20 = vadd.f32 %v2766_v55, %v3974_v38  ;;  %v2831_v61 = vpop.f32.mrf.mxu1 }
 0x14d   :  { %v2768_v62 = vpop.f32.mrf.mxu0 }
 0x14e   :  { %v4022_v63 = vadd.f32 %v2830_v57, %v1758_v20  ;;  %v2769_v0 = vadd.f32 %v2768_v62, %v2767_v58  ;;  %v2832_v35 = vpop.f32.mrf.mxu1 }
 0x14f   :  { %v2833_v2 = vadd.f32 %v2832_v35, %v2831_v61  ;;  %v2770_v4 = vpop.f32.mrf.mxu0 }
 0x150   :  { %4136 = vst [vmem:[#allocation2_spill] sm:$0xff] %v4022_v63  ;;  %v1763_v29 = vadd.f32 %v2769_v0, %v3977_v47  ;;  %v2834_v6 = vpop.f32.mrf.mxu1 }
 0x151   :  { %v2771_v7 = vpop.f32.mrf.mxu0 }
 0x152   :  { %v4025_v8 = vadd.f32 %v2833_v2, %v1763_v29  ;;  %v2772_v9 = vadd.f32 %v2771_v7, %v2770_v4  ;;  %v2835_v43 = vpop.f32.mrf.mxu1 }
 0x153   :  { %v2836_v12 = vadd.f32 %v2835_v43, %v2834_v6  ;;  %v2773_v13 = vpop.f32.mrf.mxu0 }
 0x154   :  { %4137 = vst [vmem:[#allocation3_spill] sm:$0xff] %v4025_v8  ;;  %v1766_v38 = vadd.f32 %v2772_v9, %v3980_v56  ;;  %v2837_v15 = vpop.f32.mrf.mxu1 }
 0x155   :  { %v2774_v17 = vpop.f32.mrf.mxu0 }
 0x156   :  { %v4028_v18 = vadd.f32 %v2836_v12, %v1766_v38  ;;  %v2775_v19 = vadd.f32 %v2774_v17, %v2773_v13  ;;  %v2838_v51 = vpop.f32.mrf.mxu1 }
 0x157   :  { %v2839_v22 = vadd.f32 %v2838_v51, %v2837_v15  ;;  %v2776_v23 = vpop.f32.mrf.mxu0 }
 0x158   :  { %4138 = vst [vmem:[#allocation4_spill] sm:$0xff] %v4028_v18  ;;  %v1771_v47 = vadd.f32 %v2775_v19, %v3983_v1  ;;  %v2840_v25 = vpop.f32.mrf.mxu1 }
 0x159   :  { %v2777_v26 = vpop.f32.mrf.mxu0 }
 0x15a   :  { %v4031_v28 = vadd.f32 %v2839_v22, %v1771_v47  ;;  %v2778_v30 = vadd.f32 %v2777_v26, %v2776_v23  ;;  %v2841_v59 = vpop.f32.mrf.mxu1 }
 0x15b   :  { %v2842_v32 = vadd.f32 %v2841_v59, %v2840_v25  ;;  %v2779_v33 = vpop.f32.mrf.mxu0 }
 0x15c   :  { %4139 = vst [vmem:[#allocation5_spill] sm:$0xff] %v4031_v28  ;;  %v1774_v56 = vadd.f32 %v2778_v30, %v3986_v10  ;;  %v2843_v36 = vpop.f32.mrf.mxu1 }
 0x15d   :  { %v2780_v37 = vpop.f32.mrf.mxu0 }
 0x15e   :  { %v4034_v39 = vadd.f32 %v2842_v32, %v1774_v56  ;;  %v2781_v40 = vadd.f32 %v2780_v37, %v2779_v33  ;;  %v2844_v3 = vpop.f32.mrf.mxu1 }
 0x15f   :  { %v2845_v42 = vadd.f32 %v2844_v3, %v2843_v36  ;;  %v2782_v44 = vpop.f32.mrf.mxu0 }
 0x160   :  { %4140 = vst [vmem:[#allocation6_spill] sm:$0xff] %v4034_v39  ;;  %v1779_v1 = vadd.f32 %v2781_v40, %v3989_v21  ;;  %v2846_v46 = vpop.f32.mrf.mxu1 }
 0x161   :  { %v2783_v16 = vpop.f32.mrf.mxu0 }
 0x162   :  { %v4037_v48 = vadd.f32 %v2845_v42, %v1779_v1  ;;  %v2784_v49 = vadd.f32 %v2783_v16, %v2782_v44  ;;  %v2847_v11 = vpop.f32.mrf.mxu1 }
 0x163   :  { %v2848_v52 = vadd.f32 %v2847_v11, %v2846_v46  ;;  %v2865_v53 = vpop.f32.mrf.mxu0 }
 0x164   :  { %4141 = vst [vmem:[#allocation7_spill] sm:$0xff] %v4037_v48  ;;  %v1782_v10 = vadd.f32 %v2784_v49, %v3992_v31  ;;  %v2929_v55 = vpop.f32.mrf.mxu1 }
 0x165   :  { %v2866_v27 = vpop.f32.mrf.mxu0 }
 0x166   :  { %v4040_v57 = vadd.f32 %v2848_v52, %v1782_v10  ;;  %v2867_v58 = vadd.f32 %v2866_v27, %v2865_v53  ;;  %v2930_v20 = vpop.f32.mrf.mxu1 }
 0x167   :  { %v2868_v61 = vpop.f32.mrf.mxu0  ;;  %v2931_v21 = vadd.f32 %v2930_v20, %v2929_v55 }
 0x168   :  { %4142 = vst [vmem:[#allocation8_spill] sm:$0xff] %v4040_v57  ;;  %v1917_v62 = vadd.f32 %v2867_v58, %v3995_v41  ;;  %v2932_v0 = vpop.f32.mrf.mxu1 }
 0x169   :  { %v2869_v35 = vpop.f32.mrf.mxu0 }
 0x16a   :  { %v2933_v2 = vpop.f32.mrf.mxu1  ;;  %v4043_v4 = vadd.f32 %v2931_v21, %v1917_v62  ;;  %v2870_v62 = vadd.f32 %v2869_v35, %v2868_v61 }
 0x16b   :  { %v2871_v29 = vpop.f32.mrf.mxu0  ;;  %v2934_v28 = vadd.f32 %v2933_v2, %v2932_v0 }
 0x16c   :  { %4143 = vst [vmem:[#allocation9_spill] sm:$0xff] %v4043_v4  ;;  %v2935_v6 = vpop.f32.mrf.mxu1 }
 0x16d   :  { %v2872_v7 = vpop.f32.mrf.mxu0 }
 0x16e   :  { %v2936_v9 = vpop.f32.mrf.mxu1  ;;  %v2873_v21 = vadd.f32 %v2872_v7, %v2871_v29 }
 0x16f   :  { %v2874_v31 = vpop.f32.mrf.mxu0 }
 0x170   :  { %v2938_v43 = vpop.f32.mrf.mxu1  ;;  %v1925_v18 = vadd.f32 %v2873_v21, %v4001_v60 }
 0x171   :  { %v2875_v12 = vpop.f32.mrf.mxu0 }
 0x172   :  { %v2939_v13 = vpop.f32.mrf.mxu1  ;;  %v2876_v57 = vadd.f32 %v2875_v12, %v2874_v31 }
 0x173   :  { %v2877_v38 = vpop.f32.mrf.mxu0  ;;  %v2940_v8 = vadd.f32 %v2939_v13, %v2938_v43 }
 0x174   :  { %v2941_v15 = vpop.f32.mrf.mxu1  ;;  %v1928_v63 = vadd.f32 %v2876_v57, %v4004_v5 }
 0x175   :  { %v2878_v17 = vpop.f32.mrf.mxu0 }
 0x176   :  { %v2942_v19 = vpop.f32.mrf.mxu1  ;;  %v2879_v39 = vadd.f32 %v2878_v17, %v2877_v38 }
 0x177   :  { %v2880_v51 = vpop.f32.mrf.mxu0 }
 0x178   :  { %v4045_v41 = vpop.f32.mrf.mxu1  ;;  %v1933_v61 = vadd.f32 %v2879_v39, %v4007_v14 }
 0x179   :  { %v2881_v22 = vpop.f32.mrf.mxu0 }
 0x17a   :  { %v2945_v23 = vpop.f32.mrf.mxu1  ;;  %v2882_v7 = vadd.f32 %v2881_v22, %v2880_v51  ;;  %v4153_v22 = vld [vmem:[#allocation2_spill] sm:$0xff] }
 0x17b   :  { %v2883_v47 = vpop.f32.mrf.mxu0  ;;  %v4067_v14 = vadd.f32 %v2945_v23, %v4045_v41 }
 0x17c   :  { %v2947_v25 = vpop.f32.mrf.mxu1 }
 0x17d   :  { %v2884_v26 = vpop.f32.mrf.mxu0 }
 0x17e   :  { %v2948_v30 = vpop.f32.mrf.mxu1 }
 0x17f   :  { %v2886_v59 = vpop.f32.mrf.mxu0 }
 0x180   :  { %v4047_v32 = vpop.f32.mrf.mxu1 }
 0x181   :  { %4144 = vst [vmem:[#allocation10_spill] sm:$0xff] %v4047_v32  ;;  %v2887_v33 = vpop.f32.mrf.mxu0  ;;  %v2937_v32 = vadd.f32 %v2936_v9, %v2935_v6  ;;  %v2025_v6 = vadd.f32 %v2940_v8, %v1928_v63 }
 0x182   :  { %v4049_v56 = vpop.f32.mrf.mxu1  ;;  %v2888_v35 = vadd.f32 %v2887_v33, %v2886_v59 }
 0x183   :  { %4145 = vst [vmem:[#allocation11_spill] sm:$0xff] %v4049_v56  ;;  %v2889_v36 = vpop.f32.mrf.mxu0  ;;  %v2022_v57 = vadd.f32 %v2937_v32, %v1925_v18 }
 0x184   :  { %v4051_v37 = vpop.f32.mrf.mxu1  ;;  %v1944_v39 = vadd.f32 %v2888_v35, %v4016_v45  ;;  %v4154_v45 = vld [vmem:[#allocation4_spill] sm:$0xff] }
 0x185   :  { %4146 = vst [vmem:[#allocation12_spill] sm:$0xff] %v4051_v37  ;;  %v2890_v40 = vpop.f32.mrf.mxu0 }
 0x186   :  { %v4053_v3 = vpop.f32.mrf.mxu1  ;;  %v2891_v12 = vadd.f32 %v2890_v40, %v2889_v36 }
 0x187   :  { %4147 = vst [vmem:[#allocation13_spill] sm:$0xff] %v4053_v3  ;;  %v2892_v42 = vpop.f32.mrf.mxu0 }
 0x188   :  { %v4055_v44 = vpop.f32.mrf.mxu1  ;;  %v4151_v8 = vld [vmem:[#allocation10_spill] sm:$0xff] }
 0x189   :  { %4148 = vst [vmem:[#allocation14_spill] sm:$0xff] %v4055_v44  ;;  %v2893_v1 = vpop.f32.mrf.mxu0  ;;  %v2885_v44 = vadd.f32 %v2884_v26, %v2883_v47  ;;  %v2943_v47 = vadd.f32 %v2942_v19, %v2941_v15  ;;  %v2949_v26 = vadd.f32 %v2948_v30, %v2947_v25  ;;  %v4073_v15 = vadd.f32 %v2882_v7, %v4010_v24  ;;  %v4150_v19 = vld [vmem:[#allocation3_spill] sm:$0xff]  ;;  %v4155_v30 = vld [vmem:[#allocation5_spill] sm:$0xff] }
 0x18a   :  { %v4057_v46 = vpop.f32.mrf.mxu1 }
 0x18b   :  { %4149 = vst [vmem:[#allocation15_spill] sm:$0xff] %v4057_v46  ;;  %v2895_v16 = vpop.f32.mrf.mxu0  ;;  %v1920_v46 = vadd.f32 %v2870_v62, %v3998_v50  ;;  %v1941_v31 = vadd.f32 %v2885_v44, %v4013_v34  ;;  %v2894_v50 = vadd.f32 %v2893_v1, %v2892_v42  ;;  %v4070_v13 = vadd.f32 %v2943_v47, %v1933_v61  ;;  %v4158_v42 = vld [vmem:[#allocation7_spill] sm:$0xff] }
 0x18c   :  { %v2959_v49 = vpop.f32.mrf.mxu1  ;;  %v4156_v33 = vld [vmem:[#allocation12_spill] sm:$0xff] }
 0x18d   :  { %v2896_v11 = vpop.f32.mrf.mxu0  ;;  %v4064_v9 = vadd.f32 %v2934_v28, %v1920_v46  ;;  %v4077_v63 = vadd.f32 %v2949_v26, %v1941_v31  ;;  %v4152_v28 = vld [vmem:[#allocation11_spill] sm:$0xff]  ;;  %v1952_v23 = vadd.f32 %v2894_v50, %v4153_v22  ;;  %v4163_v26 = vld [vmem:[#allocation8_spill] sm:$0xff] }
 0x18e   :  { %v2960_v52 = vpop.f32.mrf.mxu1  ;;  %v2897_v38 = vadd.f32 %v2896_v11, %v2895_v16  ;;  %v2952_v41 = vadd.f32 %v4152_v28, %v4151_v8  ;;  %v4157_v24 = vld [vmem:[#allocation13_spill] sm:$0xff] }
 0x18f   :  { %v2898_v53 = vpop.f32.mrf.mxu0  ;;  %v2955_v36 = vadd.f32 %v4157_v24, %v4156_v33  ;;  %v2961_v40 = vadd.f32 %v2960_v52, %v2959_v49  ;;  %v4161_v52 = vld [vmem:[#allocation6_spill] sm:$0xff] }
 0x190   :  { %v2962_v10 = vpop.f32.mrf.mxu1  ;;  %v1957_v51 = vadd.f32 %v2897_v38, %v4150_v19  ;;  %v4159_v46 = vld [vmem:[#allocation14_spill] sm:$0xff]  ;;  %v4089_v62 = vadd.f32 %v2952_v41, %v1944_v39 }
 0x191   :  { %v2899_v55 = vpop.f32.mrf.mxu0 }
 0x192   :  { %v2963_v27 = vpop.f32.mrf.mxu1  ;;  %v2900_v0 = vadd.f32 %v2899_v55, %v2898_v53  ;;  %v4160_v16 = vld [vmem:[#allocation15_spill] sm:$0xff]  ;;  %v2054_v7 = vadd.f32 %v2961_v40, %v1957_v51 }
 0x193   :  { %v2901_v58 = vpop.f32.mrf.mxu0  ;;  %v2958_v11 = vadd.f32 %v4160_v16, %v4159_v46  ;;  %v2964_v53 = vadd.f32 %v2963_v27, %v2962_v10 }
 0x194   :  { %v2965_v20 = vpop.f32.mrf.mxu1  ;;  %v1960_v25 = vadd.f32 %v2900_v0, %v4154_v45  ;;  %v4162_v0 = vld [vmem:[#allocation9_spill] sm:$0xff] }
 0x195   :  { %v2902_v4 = vpop.f32.mrf.mxu0 }
 0x196   :  { %v2966_v48 = vpop.f32.mrf.mxu1  ;;  %v2903_v2 = vadd.f32 %v2902_v4, %v2901_v58  ;;  %v1949_v4 = vadd.f32 %v2891_v12, %v4019_v54  ;;  %v2057_v49 = vadd.f32 %v2964_v53, %v1960_v25 }
 0x197   :  { %v2904_v3 = vpop.f32.mrf.mxu0  ;;  %v2967_v55 = vadd.f32 %v2966_v48, %v2965_v20 }
 0x198   :  { %v2968_v37 = vpop.f32.mrf.mxu1  ;;  %v1965_v59 = vadd.f32 %v2903_v2, %v4155_v30  ;;  %v2046_v31 = vadd.f32 %v2955_v36, %v1949_v4 }
 0x199   :  { %v2905_v56 = vpop.f32.mrf.mxu0 }
 0x19a   :  { %v2969_v29 = vpop.f32.mrf.mxu1  ;;  %v2906_v54 = vadd.f32 %v2905_v56, %v2904_v3  ;;  %v2049_v56 = vadd.f32 %v2958_v11, %v1952_v23  ;;  %v2062_v3 = vadd.f32 %v2967_v55, %v1965_v59 }
 0x19b   :  { %v2907_v17 = vpop.f32.mrf.mxu0  ;;  %v4094_v47 = vadd.f32 %v2969_v29, %v2968_v37 }
 0x19c   :  { %v2971_v60 = vpop.f32.mrf.mxu1 }
 0x19d   :  { %v2908_v5 = vpop.f32.mrf.mxu0 }
 0x19e   :  { %v2909_v34 = vadd.f32 %v2908_v5, %v2907_v17  ;;  %v2972_v43 = vpop.f32.mrf.mxu1  ;;  %v4092_v17 = vadd.f32 %v2906_v54, %v4161_v52 }
 0x19f   :  { %v2910_v18 = vpop.f32.mrf.mxu0  ;;  %v2973_v21 = vadd.f32 %v2972_v43, %v2971_v60 }
 0x1a0   :  { %v2974_v32 = vpop.f32.mrf.mxu1  ;;  %v1973_v44 = vadd.f32 %v2909_v34, %v4158_v42 }
 0x1a1   :  { %v2911_v1 = vpop.f32.mrf.mxu0 }
 0x1a2   :  { %v2975_v58 = vpop.f32.mrf.mxu1  ;;  %v2912_v61 = vadd.f32 %v2911_v1, %v2910_v18  ;;  %v2070_v27 = vadd.f32 %v2973_v21, %v1973_v44 }
 0x1a3   :  { %v3011_v35 = vpop.f32.mrf.mxu0  ;;  %v2976_v20 = vadd.f32 %v2975_v58, %v2974_v32 }
 0x1a4   :  { %v2119_v12 = vadd.f32 %v3011_v35, %v2022_v57  ;;  %v3019_v38 = vpop.f32.mrf.mxu1  ;;  %v1976_v5 = vadd.f32 %v2912_v61, %v4163_v26 }
 0x1a5   :  { %v2151_v10 = vadd.f32 %v3019_v38, %v2054_v7  ;;  %v2110_v48 = vpop.f32.mrf.mxu0  ;;  %v2065_v38 = vadd.f32 %v4094_v47, %v4092_v17 }
 0x1a6   :  { %vm2175_vm0 = vcmp.gt.f32.partialorder %v2119_v12, 0.0  ;;  %v2191_v50 = vmul.f32 0.2, %v2119_v12  ;;  %v2111_v2 = vadd.f32 %v2110_v48, %v4162_v0  ;;  %v2142_v60 = vpop.f32.mrf.mxu1 }
 0x1a7   :  { %vm2183_vm1 = vcmp.gt.f32.partialorder %v2151_v10, 0.0  ;;  %v2199_v57 = vmul.f32 0.2, %v2151_v10  ;;  %v2143_v39 = vadd.f32 %v2142_v60, %v2046_v31  ;;  %v3012_v34 = vpop.f32.mrf.mxu0  ;;  %v2073_v31 = vadd.f32 %v2976_v20, %v1976_v5 }
 0x1a8   :  { %v2207_v43 = vsel %vm2175_vm0, %v2119_v12, %v2191_v50  ;;  %vm2173_vm2 = vcmp.gt.f32.partialorder %v2111_v2, 0.0  ;;  %v2189_v4 = vmul.f32 0.2, %v2111_v2  ;;  %v2122_v37 = vadd.f32 %v3012_v34, %v2025_v6  ;;  %v3020_v29 = vpop.f32.mrf.mxu1 }
 0x1a9   :  { %v2215_v19 = vsel %vm2183_vm1, %v2151_v10, %v2199_v57  ;;  %vm2181_vm3 = vcmp.gt.f32.partialorder %v2143_v39, 0.0  ;;  %v2197_v51 = vmul.f32 0.2, %v2143_v39  ;;  %v2154_v18 = vadd.f32 %v3020_v29, %v2057_v49  ;;  %v2113_v8 = vpop.f32.mrf.mxu0 }
 0x1aa   :  { %v2205_v28 = vsel %vm2173_vm2, %v2111_v2, %v2189_v4  ;;  %vm2176_vm4 = vcmp.gt.f32.partialorder %v2122_v37, 0.0  ;;  %v2192_v41 = vmul.f32 0.2, %v2122_v37  ;;  %v2114_v22 = vadd.f32 %v2113_v8, %v4064_v9  ;;  %v2145_v23 = vpop.f32.mrf.mxu1 }
 0x1ab   :  { %v2213_v45 = vsel %vm2181_vm3, %v2143_v39, %v2197_v51  ;;  %vm2184_vm5 = vcmp.gt.f32.partialorder %v2154_v18, 0.0  ;;  %v2200_v25 = vmul.f32 0.2, %v2154_v18  ;;  %v2146_v30 = vadd.f32 %v2145_v23, %v2049_v56  ;;  %v3015_v59 = vpop.f32.mrf.mxu0 }
 0x1ac   :  { %v2208_v32 = vsel %vm2176_vm4, %v2122_v37, %v2192_v41  ;;  %vm2174_vm6 = vcmp.gt.f32.partialorder %v2114_v22, 0.0  ;;  %v2190_v6 = vmul.f32 0.2, %v2114_v22  ;;  %v2135_v33 = vadd.f32 %v3015_v59, %v4077_v63  ;;  %v3023_v24 = vpop.f32.mrf.mxu1 }
 0x1ad   :  { %v2554_v36 = vpack.c.bf16 %v2208_v32, %v2207_v43  ;;  %v2216_v40 = vsel %vm2184_vm5, %v2154_v18, %v2200_v25  ;;  %vm2182_vm7 = vcmp.gt.f32.partialorder %v2146_v30, 0.0  ;;  %v2198_v54 = vmul.f32 0.2, %v2146_v30  ;;  %v2126_v42 = vpop.f32.mrf.mxu0 }
 0x1ae   :  { %v2574_v44 = vpack.c.bf16 %v2216_v40, %v2215_v19  ;;  %v2206_v1 = vsel %vm2174_vm6, %v2114_v22, %v2190_v6  ;;  %vm2179_vm8 = vcmp.gt.f32.partialorder %v2135_v33, 0.0  ;;  %v2195_v9 = vmul.f32 0.2, %v2135_v33  ;;  %v2158_v46 = vpop.f32.mrf.mxu1 }
 0x1af   :  { %2586 = vst [vmem:[%s4135_s3 + $0x8] sm:$0xff] %v2554_v36   ;;  %v2549_v16 = vpack.c.bf16 %v2206_v1, %v2205_v28  ;;  %v2214_v11 = vsel %vm2182_vm7, %v2146_v30, %v2198_v54  ;;  %v2167_v53 = vadd.f32 %v3023_v24, %v2070_v27  ;;  %v2127_v63 = vadd.f32 %v2126_v42, %v4070_v13  ;;  %v3016_v55 = vpop.f32.mrf.mxu0 }
 0x1b0   :  { %2590 = vst [vmem:[%s4135_s3 + $0x28] sm:$0xff] %v2574_v44   ;;  %v2569_v58 = vpack.c.bf16 %v2214_v11, %v2213_v45  ;;  %v2159_v21 = vadd.f32 %v2158_v46, %v2062_v3  ;;  %v2138_v61 = vadd.f32 %v3016_v55, %v4089_v62  ;;  %v3024_v35 = vpop.f32.mrf.mxu1  ;;  %v2211_v7 = vsel %vm2179_vm8, %v2135_v33, %v2195_v9 }
 0x1b1   :  { %2550 = vst [vmem:[%s4135_s3] sm:$0xff] %v2549_v16   ;;  %v2033_v12 = vadd.f32 %v4067_v14, %v4073_v15  ;;  %v2129_v13 = vpop.f32.mrf.mxu0  ;;  %vm2187_vm9 = vcmp.gt.f32.partialorder %v2167_v53, 0.0  ;;  %v2203_v62 = vmul.f32 0.2, %v2167_v53  ;;  %vm2177_vm11 = vcmp.gt.f32.partialorder %v2127_v63, 0.0 }
 0x1b2   :  { %2589 = vst [vmem:[%s4135_s3 + $0x20] sm:$0xff] %v2569_v58   ;;  %vm2180_vm10 = vcmp.gt.f32.partialorder %v2138_v61, 0.0  ;;  %v2196_v49 = vmul.f32 0.2, %v2138_v61  ;;  %v2161_v56 = vpop.f32.mrf.mxu1  ;;  %v2193_v3 = vmul.f32 0.2, %v2127_v63  ;;  %v2170_v52 = vadd.f32 %v3024_v35, %v2073_v31 }
 0x1b3   :  { %v2130_v10 = vadd.f32 %v2129_v13, %v2033_v12  ;;  %vm2185_vm12 = vcmp.gt.f32.partialorder %v2159_v21, 0.0  ;;  %v2201_v48 = vmul.f32 0.2, %v2159_v21  ;;  %v2162_v15 = vadd.f32 %v2161_v56, %v2065_v38 }
 0x1b4   :  { %v2212_v14 = vsel %vm2180_vm10, %v2138_v61, %v2196_v49  ;;  %vm2188_vm13 = vcmp.gt.f32.partialorder %v2170_v52, 0.0  ;;  %v2204_v17 = vmul.f32 0.2, %v2170_v52  ;;  %v2219_v50 = vsel %vm2187_vm9, %v2167_v53, %v2203_v62 }
 0x1b5   :  { %v2564_v27 = vpack.c.bf16 %v2212_v14, %v2211_v7  ;;  %vm2178_vm14 = vcmp.gt.f32.partialorder %v2130_v10, 0.0  ;;  %v2194_v47 = vmul.f32 0.2, %v2130_v10  ;;  %vm2186_vm15 = vcmp.gt.f32.partialorder %v2162_v15, 0.0 }
 0x1b6   :  { %v2202_v20 = vmul.f32 0.2, %v2162_v15  ;;  %v2209_v0 = vsel %vm2177_vm11, %v2127_v63, %v2193_v3  ;;  %v2220_v2 = vsel %vm2188_vm13, %v2170_v52, %v2204_v17  ;;  %v2217_v60 = vsel %vm2185_vm12, %v2159_v21, %v2201_v48 }
 0x1b7   :  { %2588 = vst [vmem:[%s4135_s3 + $0x18] sm:$0xff] %v2564_v27   ;;  %v2584_v26 = vpack.c.bf16 %v2220_v2, %v2219_v50  ;;  %v2210_v5 = vsel %vm2178_vm14, %v2130_v10, %v2194_v47 }
 0x1b8   :  { %v2218_v57 = vsel %vm2186_vm15, %v2162_v15, %v2202_v20  ;;  %v2559_v39 = vpack.c.bf16 %v2210_v5, %v2209_v0 }
 0x1b9   :  { %v2579_v34 = vpack.c.bf16 %v2218_v57, %v2217_v60  ;;  %2592 = vst [vmem:[%s4135_s3 + $0x38] sm:$0xff] %v2584_v26  }
 0x1ba   :  { %2587 = vst [vmem:[%s4135_s3 + $0x10] sm:$0xff] %v2559_v39  }
 0x1bb   :  { %2591 = vst [vmem:[%s4135_s3 + $0x30] sm:$0xff] %v2579_v34  }

// kernel: forward.9
= control target key start
LH: loop header
LB: loop body
LE: loop exit
PB: predicated region body
PF: predicated region fallthrough
CT: control target
= control target key end

     0   :  { %vm12949_vm0 = vmmov 0   ;;  %s18005_s1 = inlined_call_operand.vmem [shape: bf16[3200,128], index: 1, kind: input, shape index: {}]   ;;  %s18006_s0 = inlined_call_operand.vmem [shape: bf16[4,8,3200], index: 0, kind: input, shape index: {}]   ;;  %s18007_s2 = inlined_call_operand.vmem [shape: f32[1,128], index: 2, kind: input, shape index: {}]   ;;  %s18008_s3 = inlined_call_operand.vmem [shape: bf16[4,128,1024], index: 3, kind: input, shape index: {}]   ;;  %s18009_s5 = inlined_call_operand.vmem [shape: bf16[1024,256], index: 5, kind: input, shape index: {}]   ;;  %s18010_s4 = inlined_call_operand.vmem [shape: f32[1,1024], index: 4, kind: input, shape index: {}]   ;;  %s18011_s7 = inlined_call_operand.vmem [shape: bf16[256,512], index: 7, kind: input, shape index: {}]   ;;  %s18012_s9 = inlined_call_operand.vmem [shape: bf16[512,512], index: 9, kind: input, shape index: {}]   ;;  %s18013_s6 = inlined_call_operand.vmem [shape: f32[1,256], index: 6, kind: input, shape index: {}]   ;;  %s18014_s11 = inlined_call_operand.vmem [shape: bf16[512,128], index: 11, kind: input, shape index: {}]   ;;  %s18015_s8 = inlined_call_operand.vmem [shape: f32[1,512], index: 8, kind: input, shape index: {}]   ;;  %s18016_s10 = inlined_call_operand.vmem [shape: f32[1,512], index: 10, kind: input, shape index: {}]   ;;  %s18017_s12 = inlined_call_operand.vmem [shape: f32[1,128], index: 12, kind: input, shape index: {}]   ;;  %s18018_s13 = inlined_call_operand.vmem [shape: f32[8,128], index: 13, kind: output, shape index: {}]  }
   0x1   :  { %v11589_v0 = vld [vmem:[%s18005_s1 + $0x78] sm:$0xff]   ;;  %v11593_v4 = vld [vmem:[%s18005_s1 + $0x70] sm:$0xff]   ;;  %v11597_v8 = vld [vmem:[%s18005_s1 + $0x68] sm:$0xff]  }
   0x2   :  { %v11590_v1 = vld [vmem:[%s18005_s1 + $0xf8] sm:$0xff]   ;;  %10370 = vmatprep.subr.bf16.mxu0 %v11589_v0  ;;  %v11594_v5 = vld [vmem:[%s18005_s1 + $0xf0] sm:$0xff]   ;;  %v11598_v9 = vld [vmem:[%s18005_s1 + $0xe8] sm:$0xff]  }
   0x3   :  { %v11591_v2 = vld [vmem:[%s18005_s1 + $0x38] sm:$0xff]   ;;  %10392 = vmatprep.subr.bf16.mxu1 %v11590_v1  ;;  %v11595_v6 = vld [vmem:[%s18005_s1 + $0x30] sm:$0xff]   ;;  %v11599_v10 = vld [vmem:[%s18005_s1 + $0x28] sm:$0xff]  }
   0x4   :  { %v11592_v3 = vld [vmem:[%s18005_s1 + $0xb8] sm:$0xff]   ;;  %10371 = vmatpush3.bf16.msra.mxu0 %v11591_v2  ;;  %v11596_v7 = vld [vmem:[%s18005_s1 + $0xb0] sm:$0xff]   ;;  %v11600_v11 = vld [vmem:[%s18005_s1 + $0xa8] sm:$0xff]  }
   0x5   :  { %10393 = vmatpush3.bf16.msra.mxu1 %v11592_v3  ;;  %10372 = vmatprep.subr.bf16.mxu0 %v11593_v4  ;;  %v11601_v12 = vld [vmem:[%s18005_s1 + $0x60] sm:$0xff]   ;;  %v11605_v16 = vld [vmem:[%s18005_s1 + $0x58] sm:$0xff]   ;;  %v11609_v20 = vld [vmem:[%s18005_s1 + $0x50] sm:$0xff]  }
   0x6   :  { %10394 = vmatprep.subr.bf16.mxu1 %v11594_v5  ;;  %v11602_v13 = vld [vmem:[%s18005_s1 + $0xe0] sm:$0xff]   ;;  %v11606_v17 = vld [vmem:[%s18005_s1 + $0xd8] sm:$0xff]   ;;  %v11610_v21 = vld [vmem:[%s18005_s1 + $0xd0] sm:$0xff]  }
   0x7   :  { %v11603_v14 = vld [vmem:[%s18005_s1 + $0x20] sm:$0xff]   ;;  %v11607_v18 = vld [vmem:[%s18005_s1 + $0x18] sm:$0xff]   ;;  %v11611_v22 = vld [vmem:[%s18005_s1 + $0x10] sm:$0xff]  }
   0x8   :  { %10373 = vmatpush3.bf16.msra.mxu0 %v11595_v6  ;;  %v11604_v15 = vld [vmem:[%s18005_s1 + $0xa0] sm:$0xff]   ;;  %v11608_v19 = vld [vmem:[%s18005_s1 + $0x98] sm:$0xff]   ;;  %v11612_v23 = vld [vmem:[%s18005_s1 + $0x90] sm:$0xff]  }
   0x9   :  { %10395 = vmatpush3.bf16.msra.mxu1 %v11596_v7  ;;  %10374 = vmatprep.subr.bf16.mxu0 %v11597_v8  ;;  %v11613_v24 = vld [vmem:[%s18005_s1 + $0x48] sm:$0xff]   ;;  %v11617_v28 = vld [vmem:[%s18005_s1 + $0x40] sm:$0xff]   ;;  %v11625_v38 = vld [vmem:[%s18005_s1 + $0x178] sm:$0xff]  }
   0xa   :  { %10396 = vmatprep.subr.bf16.mxu1 %v11598_v9  ;;  %v11614_v25 = vld [vmem:[%s18005_s1 + $0xc8] sm:$0xff]   ;;  %v11618_v29 = vld [vmem:[%s18005_s1 + $0xc0] sm:$0xff]   ;;  %v11626_v39 = vld [vmem:[%s18005_s1 + $0x1f8] sm:$0xff]  }
   0xb   :  { %v11615_v26 = vld [vmem:[%s18005_s1 + $0x8] sm:$0xff]   ;;  %v11619_v30 = vld [vmem:[%s18005_s1] sm:$0xff]   ;;  %v11627_v40 = vld [vmem:[%s18005_s1 + $0x138] sm:$0xff]  }
   0xc   :  { %10375 = vmatpush3.bf16.msra.mxu0 %v11599_v10  ;;  %v11616_v27 = vld [vmem:[%s18005_s1 + $0x88] sm:$0xff]   ;;  %v11620_v31 = vld [vmem:[%s18005_s1 + $0x80] sm:$0xff]   ;;  %v11628_v41 = vld [vmem:[%s18005_s1 + $0x1b8] sm:$0xff]  }
   0xd   :  { %10397 = vmatpush3.bf16.msra.mxu1 %v11600_v11  ;;  %10376 = vmatprep.subr.bf16.mxu0 %v11601_v12  ;;  %v445_v32 = vld [vmem:[%s18006_s0] sm:$0xff]  ;;  %v446_v33 = vld [vmem:[%s18006_s0 + $0x8] sm:$0xff]  ;;  %v11629_v42 = vld [vmem:[%s18005_s1 + $0x170] sm:$0xff]  }
   0xe   :  { %10398 = vmatprep.subr.bf16.mxu1 %v11602_v13  ;;  %v9229_v34 = vcombine.low %v445_v32, %v445_v32  ;;  %v9230_v35 = vcombine.high %v445_v32, %v445_v32  ;;  %v9231_v36 = vcombine.low %v446_v33, %v446_v33  ;;  %v9232_v37 = vcombine.high %v446_v33, %v446_v33  ;;  %v11630_v43 = vld [vmem:[%s18005_s1 + $0x1f0] sm:$0xff]   ;;  %v11633_v46 = vld [vmem:[%s18005_s1 + $0x168] sm:$0xff]   ;;  %v11637_v50 = vld [vmem:[%s18005_s1 + $0x160] sm:$0xff]  }
   0xf   :  { %v11631_v44 = vld [vmem:[%s18005_s1 + $0x130] sm:$0xff]   ;;  %v11634_v47 = vld [vmem:[%s18005_s1 + $0x1e8] sm:$0xff]   ;;  %v11638_v51 = vld [vmem:[%s18005_s1 + $0x1e0] sm:$0xff]  }
  0x10   :  { %10377 = vmatpush3.bf16.msra.mxu0 %v11603_v14  ;;  %1785 = vmatprep.mubr.bf16.mxu0 %v9230_v35  ;;  %v11632_v45 = vld [vmem:[%s18005_s1 + $0x1b0] sm:$0xff]   ;;  %v11635_v48 = vld [vmem:[%s18005_s1 + $0x128] sm:$0xff]   ;;  %v11639_v52 = vld [vmem:[%s18005_s1 + $0x120] sm:$0xff]  }
  0x11   :  { %10399 = vmatpush3.bf16.msra.mxu1 %v11604_v15  ;;  %10378 = vmatprep.subr.bf16.mxu0 %v11605_v16  ;;  %v11636_v49 = vld [vmem:[%s18005_s1 + $0x1a8] sm:$0xff]   ;;  %v11640_v53 = vld [vmem:[%s18005_s1 + $0x1a0] sm:$0xff]   ;;  %v11641_v54 = vld [vmem:[%s18005_s1 + $0x158] sm:$0xff]  }
  0x12   :  { %10400 = vmatprep.subr.bf16.mxu1 %v11606_v17  ;;  %1825 = vmatprep.mubr.bf16.mxu1 %v9232_v37  ;;  %v11642_v55 = vld [vmem:[%s18005_s1 + $0x1d8] sm:$0xff]   ;;  %v11645_v58 = vld [vmem:[%s18005_s1 + $0x150] sm:$0xff]   ;;  %v11649_v62 = vld [vmem:[%s18005_s1 + $0x148] sm:$0xff]  }
  0x13   :  { %v11643_v56 = vld [vmem:[%s18005_s1 + $0x118] sm:$0xff]   ;;  %v11646_v59 = vld [vmem:[%s18005_s1 + $0x1d0] sm:$0xff]   ;;  %v11650_v63 = vld [vmem:[%s18005_s1 + $0x1c8] sm:$0xff]  }
  0x14   :  { %10379 = vmatpush3.bf16.msra.mxu0 %v11607_v18  ;;  %v11644_v57 = vld [vmem:[%s18005_s1 + $0x198] sm:$0xff]   ;;  %v11647_v60 = vld [vmem:[%s18005_s1 + $0x110] sm:$0xff]   ;;  %v11651_v0 = vld [vmem:[%s18005_s1 + $0x108] sm:$0xff]  }
  0x15   :  { %10401 = vmatpush3.bf16.msra.mxu1 %v11608_v19  ;;  %10380 = vmatprep.subr.bf16.mxu0 %v11609_v20  ;;  %v11648_v61 = vld [vmem:[%s18005_s1 + $0x190] sm:$0xff]   ;;  %v11652_v1 = vld [vmem:[%s18005_s1 + $0x188] sm:$0xff]   ;;  %v11653_v2 = vld [vmem:[%s18005_s1 + $0x140] sm:$0xff]  }
  0x16   :  { %10402 = vmatprep.subr.bf16.mxu1 %v11610_v21  ;;  %v11654_v3 = vld [vmem:[%s18005_s1 + $0x1c0] sm:$0xff]   ;;  %v447_v6 = vld [vmem:[%s18006_s0 + $0x10] sm:$0xff]  ;;  %v448_v9 = vld [vmem:[%s18006_s0 + $0x18] sm:$0xff] }
  0x17   :  { %v11655_v4 = vld [vmem:[%s18005_s1 + $0x100] sm:$0xff]   ;;  %v9233_v7 = vcombine.low %v447_v6, %v447_v6  ;;  %v9234_v8 = vcombine.high %v447_v6, %v447_v6  ;;  %v9235_v10 = vcombine.low %v448_v9, %v448_v9  ;;  %v9236_v11 = vcombine.high %v448_v9, %v448_v9  ;;  %v11661_v12 = vld [vmem:[%s18005_s1 + $0x278] sm:$0xff]   ;;  %v11665_v16 = vld [vmem:[%s18005_s1 + $0x270] sm:$0xff]  }
  0x18   :  { %10381 = vmatpush3.bf16.msra.mxu0 %v11611_v22  ;;  %v11656_v5 = vld [vmem:[%s18005_s1 + $0x180] sm:$0xff]   ;;  %v11662_v13 = vld [vmem:[%s18005_s1 + $0x2f8] sm:$0xff]   ;;  %v11666_v17 = vld [vmem:[%s18005_s1 + $0x2f0] sm:$0xff]  }
  0x19   :  { %10403 = vmatpush3.bf16.msra.mxu1 %v11612_v23  ;;  %10382 = vmatprep.subr.bf16.mxu0 %v11613_v24  ;;  %v11663_v14 = vld [vmem:[%s18005_s1 + $0x238] sm:$0xff]   ;;  %v11667_v18 = vld [vmem:[%s18005_s1 + $0x230] sm:$0xff]   ;;  %v11669_v20 = vld [vmem:[%s18005_s1 + $0x268] sm:$0xff]  }
  0x1a   :  { %10404 = vmatprep.subr.bf16.mxu1 %v11614_v25  ;;  %v11664_v15 = vld [vmem:[%s18005_s1 + $0x2b8] sm:$0xff]   ;;  %v11668_v19 = vld [vmem:[%s18005_s1 + $0x2b0] sm:$0xff]   ;;  %v11670_v21 = vld [vmem:[%s18005_s1 + $0x2e8] sm:$0xff]  }
  0x1b   :  { %v11671_v22 = vld [vmem:[%s18005_s1 + $0x228] sm:$0xff]   ;;  %v11673_v24 = vld [vmem:[%s18005_s1 + $0x260] sm:$0xff]   ;;  %v11681_v32 = vld [vmem:[%s18005_s1 + $0x250] sm:$0xff]  }
  0x1c   :  { %10383 = vmatpush3.bf16.msra.mxu0 %v11615_v26  ;;  %v11672_v23 = vld [vmem:[%s18005_s1 + $0x2a8] sm:$0xff]   ;;  %v11674_v25 = vld [vmem:[%s18005_s1 + $0x2e0] sm:$0xff]   ;;  %v11682_v33 = vld [vmem:[%s18005_s1 + $0x2d0] sm:$0xff]  }
  0x1d   :  { %10405 = vmatpush3.bf16.msra.mxu1 %v11616_v27  ;;  %10384 = vmatprep.subr.bf16.mxu0 %v11617_v28  ;;  %v11675_v26 = vld [vmem:[%s18005_s1 + $0x220] sm:$0xff]   ;;  %v11677_v28 = vld [vmem:[%s18005_s1 + $0x258] sm:$0xff]   ;;  %v11684_v35 = vld [vmem:[%s18005_s1 + $0x290] sm:$0xff]  }
  0x1e   :  { %10406 = vmatprep.subr.bf16.mxu1 %v11618_v29  ;;  %v11676_v27 = vld [vmem:[%s18005_s1 + $0x2a0] sm:$0xff]   ;;  %v11678_v29 = vld [vmem:[%s18005_s1 + $0x2d8] sm:$0xff]   ;;  %v11686_v37 = vld [vmem:[%s18005_s1 + $0x2c8] sm:$0xff]  }
  0x1f   :  { %v11717_v6 = vld [vmem:[%s18005_s1 + $0x350] sm:$0xff]  }
  0x20   :  { %10385 = vmatpush3.bf16.msra.mxu0 %v11619_v30  ;;  %v11679_v30 = vld [vmem:[%s18005_s1 + $0x218] sm:$0xff]   ;;  %v11720_v9 = vld [vmem:[%s18005_s1 + $0x390] sm:$0xff]  }
  0x21   :  { %10407 = vmatpush3.bf16.msra.mxu1 %v11620_v31  ;;  %10414 = vmatprep.subr.bf16.mxu0 %v11625_v38  ;;  %v11680_v31 = vld [vmem:[%s18005_s1 + $0x298] sm:$0xff]   ;;  %v11687_v38 = vld [vmem:[%s18005_s1 + $0x208] sm:$0xff]  }
  0x22   :  { %10436 = vmatprep.subr.bf16.mxu1 %v11626_v39  ;;  %v11688_v39 = vld [vmem:[%s18005_s1 + $0x288] sm:$0xff]  }
  0x23   :  { %1786 = vmatmul.mubr.bf16.vlgmr.msra.gmra.mxu0 %v9229_v34  ;;  %v11683_v34 = vld [vmem:[%s18005_s1 + $0x210] sm:$0xff]  }
  0x24   :  { %1826 = vmatmul.mubr.bf16.vlgmr.msra.gmra.mxu1 %v9231_v36  ;;  %10415 = vmatpush3.bf16.msra.mxu0 %v11627_v40  ;;  %v11685_v36 = vld [vmem:[%s18005_s1 + $0x248] sm:$0xff]   ;;  %v11689_v40 = vld [vmem:[%s18005_s1 + $0x240] sm:$0xff]  }
  0x25   :  { %10437 = vmatpush3.bf16.msra.mxu1 %v11628_v41  ;;  %10416 = vmatprep.subr.bf16.mxu0 %v11629_v42  ;;  %v11690_v41 = vld [vmem:[%s18005_s1 + $0x2c0] sm:$0xff]  }
  0x26   :  { %10438 = vmatprep.subr.bf16.mxu1 %v11630_v43  ;;  %1865 = vmatprep.mubr.bf16.mxu0 %v9234_v8  ;;  %v11691_v42 = vld [vmem:[%s18005_s1 + $0x200] sm:$0xff]   ;;  %v11719_v8 = vld [vmem:[%s18005_s1 + $0x310] sm:$0xff]  }
  0x27   :  { %1905 = vmatprep.mubr.bf16.mxu1 %v9236_v11  ;;  %v11692_v43 = vld [vmem:[%s18005_s1 + $0x280] sm:$0xff]   ;;  %v11722_v11 = vld [vmem:[%s18005_s1 + $0x3c8] sm:$0xff]  }
  0x28   :  { %10417 = vmatpush3.bf16.msra.mxu0 %v11631_v44  ;;  %v449_v44 = vld [vmem:[%s18006_s0 + $0x20] sm:$0xff] }
  0x29   :  { %10439 = vmatpush3.bf16.msra.mxu1 %v11632_v45  ;;  %10418 = vmatprep.subr.bf16.mxu0 %v11633_v46  ;;  %v450_v45 = vld [vmem:[%s18006_s0 + $0x28] sm:$0xff]  ;;  %v9237_v46 = vcombine.low %v449_v44, %v449_v44 }
  0x2a   :  { %10440 = vmatprep.subr.bf16.mxu1 %v11634_v47  ;;  %v9238_v47 = vcombine.high %v449_v44, %v449_v44  ;;  %v13515_v44 = vld [vmem:[%s18005_s1 + $0x450] sm:$0xff]  }
  0x2c   :  { %10419 = vmatpush3.bf16.msra.mxu0 %v11635_v48  ;;  %v9239_v48 = vcombine.low %v450_v45, %v450_v45 }
  0x2d   :  { %10441 = vmatpush3.bf16.msra.mxu1 %v11636_v49  ;;  %10420 = vmatprep.subr.bf16.mxu0 %v11637_v50  ;;  %v9240_v49 = vcombine.high %v450_v45, %v450_v45  ;;  %v11697_v50 = vld [vmem:[%s18005_s1 + $0x378] sm:$0xff]   ;;  %v11754_v45 = vld [vmem:[%s18005_s1 + $0x4d0] sm:$0xff]  }
  0x2e   :  { %10442 = vmatprep.subr.bf16.mxu1 %v11638_v51  ;;  %v11698_v51 = vld [vmem:[%s18005_s1 + $0x3f8] sm:$0xff]  }
  0x30   :  { %10421 = vmatpush3.bf16.msra.mxu0 %v11639_v52  ;;  %v11699_v52 = vld [vmem:[%s18005_s1 + $0x338] sm:$0xff]  }
  0x31   :  { %10443 = vmatpush3.bf16.msra.mxu1 %v11640_v53  ;;  %10422 = vmatprep.subr.bf16.mxu0 %v11641_v54  ;;  %v11700_v53 = vld [vmem:[%s18005_s1 + $0x3b8] sm:$0xff]   ;;  %v11701_v54 = vld [vmem:[%s18005_s1 + $0x370] sm:$0xff]  }
  0x32   :  { %10444 = vmatprep.subr.bf16.mxu1 %v11642_v55  ;;  %v11702_v55 = vld [vmem:[%s18005_s1 + $0x3f0] sm:$0xff]  }
  0x34   :  { %10423 = vmatpush3.bf16.msra.mxu0 %v11643_v56  ;;  %v11703_v56 = vld [vmem:[%s18005_s1 + $0x330] sm:$0xff]  }
  0x35   :  { %10445 = vmatpush3.bf16.msra.mxu1 %v11644_v57  ;;  %10424 = vmatprep.subr.bf16.mxu0 %v11645_v58  ;;  %v11704_v57 = vld [vmem:[%s18005_s1 + $0x3b0] sm:$0xff]   ;;  %v11705_v58 = vld [vmem:[%s18005_s1 + $0x368] sm:$0xff]  }
  0x36   :  { %10446 = vmatprep.subr.bf16.mxu1 %v11646_v59  ;;  %v11706_v59 = vld [vmem:[%s18005_s1 + $0x3e8] sm:$0xff]  }
  0x38   :  { %10425 = vmatpush3.bf16.msra.mxu0 %v11647_v60  ;;  %v11707_v60 = vld [vmem:[%s18005_s1 + $0x328] sm:$0xff]  }
  0x39   :  { %10447 = vmatpush3.bf16.msra.mxu1 %v11648_v61  ;;  %10426 = vmatprep.subr.bf16.mxu0 %v11649_v62  ;;  %v11708_v61 = vld [vmem:[%s18005_s1 + $0x3a8] sm:$0xff]   ;;  %v11709_v62 = vld [vmem:[%s18005_s1 + $0x360] sm:$0xff]  }
  0x3a   :  { %10448 = vmatprep.subr.bf16.mxu1 %v11650_v63  ;;  %v11710_v63 = vld [vmem:[%s18005_s1 + $0x3e0] sm:$0xff]  }
  0x3c   :  { %10427 = vmatpush3.bf16.msra.mxu0 %v11651_v0  ;;  %v11711_v0 = vld [vmem:[%s18005_s1 + $0x320] sm:$0xff]  }
  0x3d   :  { %10449 = vmatpush3.bf16.msra.mxu1 %v11652_v1  ;;  %10428 = vmatprep.subr.bf16.mxu0 %v11653_v2  ;;  %v11712_v1 = vld [vmem:[%s18005_s1 + $0x3a0] sm:$0xff]   ;;  %v11713_v2 = vld [vmem:[%s18005_s1 + $0x358] sm:$0xff]  }
  0x3e   :  { %10450 = vmatprep.subr.bf16.mxu1 %v11654_v3  ;;  %v11714_v3 = vld [vmem:[%s18005_s1 + $0x3d8] sm:$0xff]  }
  0x40   :  { %10429 = vmatpush3.bf16.msra.mxu0 %v11655_v4  ;;  %v11715_v4 = vld [vmem:[%s18005_s1 + $0x318] sm:$0xff]  }
  0x41   :  { %10451 = vmatpush3.bf16.msra.mxu1 %v11656_v5  ;;  %10458 = vmatprep.subr.bf16.mxu0 %v11661_v12  ;;  %v11716_v5 = vld [vmem:[%s18005_s1 + $0x398] sm:$0xff]   ;;  %v11723_v12 = vld [vmem:[%s18005_s1 + $0x308] sm:$0xff]  }
  0x42   :  { %10480 = vmatprep.subr.bf16.mxu1 %v11662_v13  ;;  %v11724_v13 = vld [vmem:[%s18005_s1 + $0x388] sm:$0xff]  }
  0x43   :  { %1866 = vmatmul.mubr.bf16.vlgmr.msra.gmra.mxu0 %v9233_v7  ;;  %v11718_v7 = vld [vmem:[%s18005_s1 + $0x3d0] sm:$0xff]  }
  0x44   :  { %1906 = vmatmul.mubr.bf16.vlgmr.msra.gmra.mxu1 %v9235_v10  ;;  %10459 = vmatpush3.bf16.msra.mxu0 %v11663_v14  ;;  %v11721_v10 = vld [vmem:[%s18005_s1 + $0x348] sm:$0xff]   ;;  %v11725_v14 = vld [vmem:[%s18005_s1 + $0x340] sm:$0xff]  }
  0x45   :  { %10481 = vmatpush3.bf16.msra.mxu1 %v11664_v15  ;;  %10460 = vmatprep.subr.bf16.mxu0 %v11665_v16  ;;  %v11726_v15 = vld [vmem:[%s18005_s1 + $0x3c0] sm:$0xff]  }
  0x46   :  { %10482 = vmatprep.subr.bf16.mxu1 %v11666_v17  ;;  %1945 = vmatprep.mubr.bf16.mxu0 %v9238_v47  ;;  %v11727_v16 = vld [vmem:[%s18005_s1 + $0x300] sm:$0xff]   ;;  %v13530_v47 = vld [vmem:[%s18005_s1 + $0x490] sm:$0xff]  }
  0x47   :  { %1985 = vmatprep.mubr.bf16.mxu1 %v9240_v49  ;;  %v11728_v17 = vld [vmem:[%s18005_s1 + $0x380] sm:$0xff]   ;;  %v13542_v49 = vld [vmem:[%s18005_s1 + $0x4c8] sm:$0xff]  }
  0x48   :  { %10461 = vmatpush3.bf16.msra.mxu0 %v11667_v18  ;;  %v451_v18 = vld [vmem:[%s18006_s0 + $0x30] sm:$0xff] }
  0x49   :  { %10483 = vmatpush3.bf16.msra.mxu1 %v11668_v19  ;;  %10462 = vmatprep.subr.bf16.mxu0 %v11669_v20  ;;  %v452_v19 = vld [vmem:[%s18006_s0 + $0x38] sm:$0xff]  ;;  %v9241_v20 = vcombine.low %v451_v18, %v451_v18 }
  0x4a   :  { %10484 = vmatprep.subr.bf16.mxu1 %v11670_v21  ;;  %v9242_v21 = vcombine.high %v451_v18, %v451_v18  ;;  %v13710_v18 = vld [vmem:[%s18005_s1 + $0x550] sm:$0xff]  }
  0x4c   :  { %10463 = vmatpush3.bf16.msra.mxu0 %v11671_v22  ;;  %v9243_v22 = vcombine.low %v452_v19, %v452_v19 }
  0x4d   :  { %10485 = vmatpush3.bf16.msra.mxu1 %v11672_v23  ;;  %10464 = vmatprep.subr.bf16.mxu0 %v11673_v24  ;;  %v11733_v23 = vld [vmem:[%s18005_s1 + $0x478] sm:$0xff]   ;;  %v9244_v24 = vcombine.high %v452_v19, %v452_v19  ;;  %v13716_v19 = vld [vmem:[%s18005_s1 + $0x5d0] sm:$0xff]  }
  0x4e   :  { %10486 = vmatprep.subr.bf16.mxu1 %v11674_v25  ;;  %v11734_v25 = vld [vmem:[%s18005_s1 + $0x4f8] sm:$0xff]   ;;  %18036 = vst [vmem:[#allocation4_spill] sm:$0xff] %v13716_v19 }
  0x50   :  { %10465 = vmatpush3.bf16.msra.mxu0 %v11675_v26  ;;  %v11735_v26 = vld [vmem:[%s18005_s1 + $0x438] sm:$0xff]  }
  0x51   :  { %10487 = vmatpush3.bf16.msra.mxu1 %v11676_v27  ;;  %10466 = vmatprep.subr.bf16.mxu0 %v11677_v28  ;;  %v11736_v27 = vld [vmem:[%s18005_s1 + $0x4b8] sm:$0xff]   ;;  %v13444_v28 = vld [vmem:[%s18005_s1 + $0x470] sm:$0xff]  }
  0x52   :  { %10488 = vmatprep.subr.bf16.mxu1 %v11678_v29  ;;  %v11738_v29 = vld [vmem:[%s18005_s1 + $0x4f0] sm:$0xff]  }
  0x54   :  { %10467 = vmatpush3.bf16.msra.mxu0 %v11679_v30  ;;  %v13453_v30 = vld [vmem:[%s18005_s1 + $0x430] sm:$0xff]  }
  0x55   :  { %10489 = vmatpush3.bf16.msra.mxu1 %v11680_v31  ;;  %10468 = vmatprep.subr.bf16.mxu0 %v11681_v32  ;;  %v11740_v31 = vld [vmem:[%s18005_s1 + $0x4b0] sm:$0xff]   ;;  %v13461_v32 = vld [vmem:[%s18005_s1 + $0x468] sm:$0xff]  }
  0x56   :  { %10490 = vmatprep.subr.bf16.mxu1 %v11682_v33  ;;  %v11742_v33 = vld [vmem:[%s18005_s1 + $0x4e8] sm:$0xff]  }
  0x58   :  { %10469 = vmatpush3.bf16.msra.mxu0 %v11683_v34  ;;  %v13471_v34 = vld [vmem:[%s18005_s1 + $0x428] sm:$0xff]  }
  0x59   :  { %10491 = vmatpush3.bf16.msra.mxu1 %v11684_v35  ;;  %10470 = vmatprep.subr.bf16.mxu0 %v11685_v36  ;;  %v11744_v35 = vld [vmem:[%s18005_s1 + $0x4a8] sm:$0xff]   ;;  %v13479_v36 = vld [vmem:[%s18005_s1 + $0x460] sm:$0xff]  }
  0x5a   :  { %10492 = vmatprep.subr.bf16.mxu1 %v11686_v37  ;;  %v11746_v37 = vld [vmem:[%s18005_s1 + $0x4e0] sm:$0xff]  }
  0x5c   :  { %10471 = vmatpush3.bf16.msra.mxu0 %v11687_v38  ;;  %v13489_v38 = vld [vmem:[%s18005_s1 + $0x420] sm:$0xff]  }
  0x5d   :  { %10493 = vmatpush3.bf16.msra.mxu1 %v11688_v39  ;;  %10472 = vmatprep.subr.bf16.mxu0 %v11689_v40  ;;  %v11748_v39 = vld [vmem:[%s18005_s1 + $0x4a0] sm:$0xff]   ;;  %v13497_v40 = vld [vmem:[%s18005_s1 + $0x458] sm:$0xff]  }
  0x5e   :  { %10494 = vmatprep.subr.bf16.mxu1 %v11690_v41  ;;  %v11750_v41 = vld [vmem:[%s18005_s1 + $0x4d8] sm:$0xff]  }
  0x60   :  { %10473 = vmatpush3.bf16.msra.mxu0 %v11691_v42  ;;  %v13507_v42 = vld [vmem:[%s18005_s1 + $0x418] sm:$0xff]  }
  0x61   :  { %10495 = vmatpush3.bf16.msra.mxu1 %v11692_v43  ;;  %10502 = vmatprep.subr.bf16.mxu0 %v11697_v50  ;;  %v11752_v43 = vld [vmem:[%s18005_s1 + $0x498] sm:$0xff]   ;;  %v13548_v50 = vld [vmem:[%s18005_s1 + $0x408] sm:$0xff]  }
  0x62   :  { %10524 = vmatprep.subr.bf16.mxu1 %v11698_v51  ;;  %v13554_v51 = vld [vmem:[%s18005_s1 + $0x488] sm:$0xff]  }
  0x63   :  { %1946 = vmatmul.mubr.bf16.vlgmr.msra.gmra.mxu0 %v9237_v46  ;;  %v13525_v46 = vld [vmem:[%s18005_s1 + $0x410] sm:$0xff]  }
  0x64   :  { %1986 = vmatmul.mubr.bf16.vlgmr.msra.gmra.mxu1 %v9239_v48  ;;  %10503 = vmatpush3.bf16.msra.mxu0 %v11699_v52  ;;  %v13535_v48 = vld [vmem:[%s18005_s1 + $0x448] sm:$0xff]   ;;  %v13559_v52 = vld [vmem:[%s18005_s1 + $0x440] sm:$0xff]  }
  0x65   :  { %10525 = vmatpush3.bf16.msra.mxu1 %v11700_v53  ;;  %10504 = vmatprep.subr.bf16.mxu0 %v11701_v54  ;;  %v13566_v53 = vld [vmem:[%s18005_s1 + $0x4c0] sm:$0xff]  }
  0x66   :  { %10526 = vmatprep.subr.bf16.mxu1 %v11702_v55  ;;  %2025 = vmatprep.mubr.bf16.mxu0 %v9242_v21  ;;  %v13572_v54 = vld [vmem:[%s18005_s1 + $0x400] sm:$0xff]   ;;  %v13728_v21 = vld [vmem:[%s18005_s1 + $0x590] sm:$0xff]  }
  0x67   :  { %2065 = vmatprep.mubr.bf16.mxu1 %v9244_v24  ;;  %v13578_v55 = vld [vmem:[%s18005_s1 + $0x480] sm:$0xff]   ;;  %18037 = vst [vmem:[#allocation5_spill] sm:$0xff] %v13728_v21  ;;  %v13746_v24 = vld [vmem:[%s18005_s1 + $0x508] sm:$0xff]  }
  0x68   :  { %10505 = vmatpush3.bf16.msra.mxu0 %v11703_v56  ;;  %v453_v56 = vld [vmem:[%s18006_s0 + $0x40] sm:$0xff] }
  0x69   :  { %10527 = vmatpush3.bf16.msra.mxu1 %v11704_v57  ;;  %10506 = vmatprep.subr.bf16.mxu0 %v11705_v58  ;;  %v9245_v57 = vcombine.low %v453_v56, %v453_v56  ;;  %v9246_v58 = vcombine.high %v453_v56, %v453_v56  ;;  %v18021_v56 = vmov 0.0  }
  0x6a   :  { %10528 = vmatprep.subr.bf16.mxu1 %v11706_v59  ;;  %v454_v59 = vld [vmem:[%s18006_s0 + $0x48] sm:$0xff] }
  0x6c   :  { %10507 = vmatpush3.bf16.msra.mxu0 %v11707_v60  ;;  %v9247_v60 = vcombine.low %v454_v59, %v454_v59 }
  0x6d   :  { %10529 = vmatpush3.bf16.msra.mxu1 %v11708_v61  ;;  %10508 = vmatprep.subr.bf16.mxu0 %v11709_v62  ;;  %v9248_v61 = vcombine.high %v454_v59, %v454_v59  ;;  %v13591_v62 = vld [vmem:[%s18005_s1 + $0x578] sm:$0xff]  }
  0x6e   :  { %10530 = vmatprep.subr.bf16.mxu1 %v11710_v63  ;;  %v13596_v63 = vld [vmem:[%s18005_s1 + $0x5f8] sm:$0xff]  }
  0x6f   :  { %v12406_v59 = vld [vmem:[%s18005_s1 + $0x38] sm:$0xff]  }
  0x70   :  { %10509 = vmatpush3.bf16.msra.mxu0 %v11711_v0  ;;  %v13602_v0 = vld [vmem:[%s18005_s1 + $0x538] sm:$0xff]  }
  0x71   :  { %10531 = vmatpush3.bf16.msra.mxu1 %v11712_v1  ;;  %10510 = vmatprep.subr.bf16.mxu0 %v11713_v2  ;;  %v13608_v1 = vld [vmem:[%s18005_s1 + $0x5b8] sm:$0xff]   ;;  %v13614_v2 = vld [vmem:[%s18005_s1 + $0x570] sm:$0xff]  }
  0x72   :  { %10532 = vmatprep.subr.bf16.mxu1 %v11714_v3  ;;  %v13620_v3 = vld [vmem:[%s18005_s1 + $0x5f0] sm:$0xff]  }
  0x74   :  { %10511 = vmatpush3.bf16.msra.mxu0 %v11715_v4  ;;  %v13626_v4 = vld [vmem:[%s18005_s1 + $0x530] sm:$0xff]  }
  0x75   :  { %10533 = vmatpush3.bf16.msra.mxu1 %v11716_v5  ;;  %10512 = vmatprep.subr.bf16.mxu0 %v11717_v6  ;;  %v13632_v5 = vld [vmem:[%s18005_s1 + $0x5b0] sm:$0xff]   ;;  %v13638_v6 = vld [vmem:[%s18005_s1 + $0x568] sm:$0xff]  }
  0x76   :  { %10534 = vmatprep.subr.bf16.mxu1 %v11718_v7  ;;  %v13644_v7 = vld [vmem:[%s18005_s1 + $0x5e8] sm:$0xff]  }
  0x78   :  { %10513 = vmatpush3.bf16.msra.mxu0 %v11719_v8  ;;  %v13650_v8 = vld [vmem:[%s18005_s1 + $0x528] sm:$0xff]  }
  0x79   :  { %10535 = vmatpush3.bf16.msra.mxu1 %v11720_v9  ;;  %10514 = vmatprep.subr.bf16.mxu0 %v11721_v10  ;;  %v13656_v9 = vld [vmem:[%s18005_s1 + $0x5a8] sm:$0xff]   ;;  %v13662_v10 = vld [vmem:[%s18005_s1 + $0x560] sm:$0xff]  }
  0x7a   :  { %10536 = vmatprep.subr.bf16.mxu1 %v11722_v11  ;;  %v13668_v11 = vld [vmem:[%s18005_s1 + $0x5e0] sm:$0xff]  }
  0x7c   :  { %10515 = vmatpush3.bf16.msra.mxu0 %v11723_v12  ;;  %v13674_v12 = vld [vmem:[%s18005_s1 + $0x520] sm:$0xff]  }
  0x7d   :  { %10537 = vmatpush3.bf16.msra.mxu1 %v11724_v13  ;;  %10516 = vmatprep.subr.bf16.mxu0 %v11725_v14  ;;  %v13680_v13 = vld [vmem:[%s18005_s1 + $0x5a0] sm:$0xff]   ;;  %v13686_v14 = vld [vmem:[%s18005_s1 + $0x558] sm:$0xff]  }
  0x7e   :  { %10538 = vmatprep.subr.bf16.mxu1 %v11726_v15  ;;  %v13692_v15 = vld [vmem:[%s18005_s1 + $0x5d8] sm:$0xff]  }
  0x7f   :  { %18034 = vst [vmem:[#allocation2_spill] sm:$0xff] %v13692_v15 }
  0x80   :  { %10517 = vmatpush3.bf16.msra.mxu0 %v11727_v16  ;;  %v13698_v16 = vld [vmem:[%s18005_s1 + $0x518] sm:$0xff]  }
  0x81   :  { %10539 = vmatpush3.bf16.msra.mxu1 %v11728_v17  ;;  %10546 = vmatprep.subr.bf16.mxu0 %v11733_v23  ;;  %v13704_v17 = vld [vmem:[%s18005_s1 + $0x598] sm:$0xff]   ;;  %v13740_v23 = vld [vmem:[%s18005_s1 + $0x5c8] sm:$0xff]  }
  0x82   :  { %10568 = vmatprep.subr.bf16.mxu1 %v11734_v25  ;;  %18035 = vst [vmem:[#allocation3_spill] sm:$0xff] %v13704_v17  ;;  %18038 = vst [vmem:[#allocation6_spill] sm:$0xff] %v13740_v23  ;;  %v13752_v25 = vld [vmem:[%s18005_s1 + $0x588] sm:$0xff]  }
  0x83   :  { %2026 = vmatmul.mubr.bf16.vlgmr.msra.gmra.mxu0 %v9241_v20  ;;  %v13722_v20 = vld [vmem:[%s18005_s1 + $0x510] sm:$0xff]   ;;  %18039 = vst [vmem:[#allocation7_spill] sm:$0xff] %v13752_v25 }
  0x84   :  { %2066 = vmatmul.mubr.bf16.vlgmr.msra.gmra.mxu1 %v9243_v22  ;;  %10547 = vmatpush3.bf16.msra.mxu0 %v11735_v26  ;;  %v13734_v22 = vld [vmem:[%s18005_s1 + $0x548] sm:$0xff]   ;;  %v13758_v26 = vld [vmem:[%s18005_s1 + $0x540] sm:$0xff]  }
  0x85   :  { %10569 = vmatpush3.bf16.msra.mxu1 %v11736_v27  ;;  %10548 = vmatprep.subr.bf16.mxu0 %v13444_v28  ;;  %v13764_v27 = vld [vmem:[%s18005_s1 + $0x5c0] sm:$0xff]  }
  0x86   :  { %10570 = vmatprep.subr.bf16.mxu1 %v11738_v29  ;;  %2105 = vmatprep.mubr.bf16.mxu0 %v9246_v58  ;;  %18040 = vst [vmem:[#allocation8_spill] sm:$0xff] %v13764_v27  ;;  %v13770_v29 = vld [vmem:[%s18005_s1 + $0x500] sm:$0xff]   ;;  %v13799_v58 = vld [vmem:[%s18005_s1 + $0x630] sm:$0xff]  }
  0x87   :  { %2145 = vmatprep.mubr.bf16.mxu1 %v9248_v61  ;;  %v13814_v61 = vld [vmem:[%s18005_s1 + $0x628] sm:$0xff]  }
  0x88   :  { %10549 = vmatpush3.bf16.msra.mxu0 %v13453_v30 }
  0x89   :  { %10571 = vmatpush3.bf16.msra.mxu1 %v11740_v31  ;;  %10550 = vmatprep.subr.bf16.mxu0 %v13461_v32  ;;  %v13776_v31 = vld [vmem:[%s18005_s1 + $0x580] sm:$0xff]  }
  0x8a   :  { %10572 = vmatprep.subr.bf16.mxu1 %v11742_v33  ;;  %18041 = vst [vmem:[#allocation9_spill] sm:$0xff] %v13776_v31  ;;  %v455_v33 = vld [vmem:[%s18006_s0 + $0x50] sm:$0xff] }
  0x8c   :  { %10551 = vmatpush3.bf16.msra.mxu0 %v13471_v34 }
  0x8d   :  { %10573 = vmatpush3.bf16.msra.mxu1 %v11744_v35  ;;  %10552 = vmatprep.subr.bf16.mxu0 %v13479_v36  ;;  %v456_v35 = vld [vmem:[%s18006_s0 + $0x58] sm:$0xff] }
  0x8e   :  { %10574 = vmatprep.subr.bf16.mxu1 %v11746_v37  ;;  %v9249_v37 = vcombine.low %v455_v33, %v455_v33 }
  0x90   :  { %10553 = vmatpush3.bf16.msra.mxu0 %v13489_v38 }
  0x91   :  { %10575 = vmatpush3.bf16.msra.mxu1 %v11748_v39  ;;  %10554 = vmatprep.subr.bf16.mxu0 %v13497_v40  ;;  %v9250_v39 = vcombine.high %v455_v33, %v455_v33  ;;  %v13819_v33 = vld [vmem:[%s18006_s0 + $0x64] sm:$0xff] }
  0x92   :  { %10576 = vmatprep.subr.bf16.mxu1 %v11750_v41  ;;  %v9251_v41 = vcombine.low %v456_v35, %v456_v35 }
  0x94   :  { %10555 = vmatpush3.bf16.msra.mxu0 %v13507_v42 }
  0x95   :  { %10577 = vmatpush3.bf16.msra.mxu1 %v11752_v43  ;;  %10556 = vmatprep.subr.bf16.mxu0 %v13515_v44  ;;  %v9252_v43 = vcombine.high %v456_v35, %v456_v35  ;;  %v12408_v35 = vld [vmem:[%s18005_s1 + $0x30] sm:$0xff]  }
  0x96   :  { %10578 = vmatprep.subr.bf16.mxu1 %v11754_v45  ;;  %v13788_v45 = vld [vmem:[%s18005_s1 + $0x638] sm:$0xff]  }
  0x98   :  { %10557 = vmatpush3.bf16.msra.mxu0 %v13525_v46 }
  0x99   :  { %10579 = vmatpush3.bf16.msra.mxu1 %v13530_v47  ;;  %10558 = vmatprep.subr.bf16.mxu0 %v13535_v48 }
  0x9a   :  { %10580 = vmatprep.subr.bf16.mxu1 %v13542_v49 }
  0x9c   :  { %10559 = vmatpush3.bf16.msra.mxu0 %v13548_v50 }
  0x9d   :  { %10581 = vmatpush3.bf16.msra.mxu1 %v13554_v51  ;;  %10560 = vmatprep.subr.bf16.mxu0 %v13559_v52 }
  0x9e   :  { %10582 = vmatprep.subr.bf16.mxu1 %v13566_v53 }
  0xa0   :  { %10561 = vmatpush3.bf16.msra.mxu0 %v13572_v54 }
  0xa1   :  { %10583 = vmatpush3.bf16.msra.mxu1 %v13578_v55  ;;  %10590 = vmatprep.subr.bf16.mxu0 %v13591_v62 }
  0xa2   :  { %10612 = vmatprep.subr.bf16.mxu1 %v13596_v63 }
  0xa3   :  { %2106 = vmatmul.mubr.bf16.vlgmr.msra.gmra.mxu0 %v9245_v57  ;;  %v12405_v57 = vld [vmem:[%s18005_s1 + $0x78] sm:$0xff]  }
  0xa4   :  { %2146 = vmatmul.mubr.bf16.vlgmr.msra.gmra.mxu1 %v9247_v60  ;;  %10591 = vmatpush3.bf16.msra.mxu0 %v13602_v0  ;;  %v12407_v60 = vld [vmem:[%s18005_s1 + $0x70] sm:$0xff]  }
  0xa5   :  { %10613 = vmatpush3.bf16.msra.mxu1 %v13608_v1  ;;  %10592 = vmatprep.subr.bf16.mxu0 %v13614_v2 }
  0xa6   :  { %10614 = vmatprep.subr.bf16.mxu1 %v13620_v3  ;;  %2185 = vmatprep.mubr.bf16.mxu0 %v9250_v39  ;;  %v12409_v39 = vld [vmem:[%s18005_s1 + $0x68] sm:$0xff]  }
  0xa7   :  { %2225 = vmatprep.mubr.bf16.mxu1 %v9252_v43  ;;  %v12410_v43 = vld [vmem:[%s18005_s1 + $0x28] sm:$0xff]  }
  0xa8   :  { %10593 = vmatpush3.bf16.msra.mxu0 %v13626_v4 }
  0xa9   :  { %10615 = vmatpush3.bf16.msra.mxu1 %v13632_v5  ;;  %10594 = vmatprep.subr.bf16.mxu0 %v13638_v6 }
  0xaa   :  { %10616 = vmatprep.subr.bf16.mxu1 %v13644_v7 }
  0xac   :  { %10595 = vmatpush3.bf16.msra.mxu0 %v13650_v8 }
  0xad   :  { %10617 = vmatpush3.bf16.msra.mxu1 %v13656_v9  ;;  %10596 = vmatprep.subr.bf16.mxu0 %v13662_v10 }
  0xae   :  { %10618 = vmatprep.subr.bf16.mxu1 %v13668_v11 }
  0xb0   :  { %10597 = vmatpush3.bf16.msra.mxu0 %v13674_v12 }
  0xb1   :  { %10619 = vmatpush3.bf16.msra.mxu1 %v13680_v13  ;;  %10598 = vmatprep.subr.bf16.mxu0 %v13686_v14 }
  0xb2   :  { %10620 = vmatprep.subr.bf16.mxu1 %v13692_v15 }
  0xb4   :  { %10599 = vmatpush3.bf16.msra.mxu0 %v13698_v16 }
  0xb5   :  { %10621 = vmatpush3.bf16.msra.mxu1 %v13704_v17  ;;  %10600 = vmatprep.subr.bf16.mxu0 %v13710_v18  ;;  %v12424_v17 = vld [vmem:[%s18005_s1 + $0x138] sm:$0xff]  }
  0xb6   :  { %10622 = vmatprep.subr.bf16.mxu1 %v13716_v19 }
  0xb8   :  { %10601 = vmatpush3.bf16.msra.mxu0 %v13722_v20 }
  0xb9   :  { %10623 = vmatpush3.bf16.msra.mxu1 %v13728_v21  ;;  %10602 = vmatprep.subr.bf16.mxu0 %v13734_v22 }
  0xba   :  { %10624 = vmatprep.subr.bf16.mxu1 %v13740_v23 }
  0xbc   :  { %10603 = vmatpush3.bf16.msra.mxu0 %v13746_v24 }
  0xbd   :  { %10625 = vmatpush3.bf16.msra.mxu1 %v13752_v25  ;;  %10604 = vmatprep.subr.bf16.mxu0 %v13758_v26  ;;  %v13923_v25 = vld [vmem:[%s18007_s2] ss:$0 sm:$0xff] }
  0xbe   :  { %10626 = vmatprep.subr.bf16.mxu1 %v13764_v27  ;;  %18046 = vst [vmem:[#allocation14_spill] sm:$0xff] %v13923_v25 }
  0xc0   :  { %10605 = vmatpush3.bf16.msra.mxu0 %v13770_v29 }
  0xc1   :  { %10627 = vmatpush3.bf16.msra.mxu1 %v13776_v31  ;;  %11506 = vmatprep.subr.bf16.mxu0 %v18021_v56  ;;  %v13901_v31 = vld [vmem:[%s18006_s0 + $0x6c] sm:$0xff] }
  0xc2   :  { %10643 = vmatprep.subr.bf16.mxu1 %v12405_v57  ;;  %v12411_v57 = vld [vmem:[%s18005_s1 + $0x60] sm:$0xff]  }
  0xc3   :  { %2186 = vmatmul.mubr.bf16.vlgmr.msra.gmra.mxu0 %v9249_v37  ;;  %v9468_v37 = vcombine.high %v13819_v33, %v13819_v33 }
  0xc4   :  { %2226 = vmatmul.mubr.bf16.vlgmr.msra.gmra.mxu1 %v9251_v41  ;;  %11507 = vmatpush3.bf16.msra.mxu0 %v13788_v45  ;;  %v13834_v41 = vld [vmem:[%s18005_s1 + $0x620] sm:$0xff]  }
  0xc5   :  { %10644 = vmatpush3.bf16.msra.mxu1 %v12406_v59  ;;  %11508 = vmatprep.subr.bf16.mxu0 %v18021_v56  ;;  %v13847_v59 = vld [vmem:[%s18005_s1 + $0x618] sm:$0xff]  }
  0xc6   :  { %10645 = vmatprep.subr.bf16.mxu1 %v12407_v60  ;;  %11522 = vmatprep.mubr.msk.bf16.mxu0 %vm12949_vm0, %v18021_v56  ;;  %18042 = vst [vmem:[#allocation10_spill] sm:$0xff] %v13847_v59  ;;  %v12412_v60 = vld [vmem:[%s18005_s1 + $0x20] sm:$0xff]  }
  0xc7   :  { %2475 = vmatprep.mubr.bf16.mxu1 %v9468_v37  ;;  %v13860_v37 = vld [vmem:[%s18005_s1 + $0x610] sm:$0xff]  }
  0xc8   :  { %11509 = vmatpush3.bf16.msra.mxu0 %v13799_v58  ;;  %18043 = vst [vmem:[#allocation11_spill] sm:$0xff] %v13860_v37 }
  0xc9   :  { %10646 = vmatpush3.bf16.msra.mxu1 %v12408_v35  ;;  %11510 = vmatprep.subr.bf16.mxu0 %v18021_v56  ;;  %v12413_v35 = vld [vmem:[%s18005_s1 + $0x58] sm:$0xff]  }
  0xca   :  { %10647 = vmatprep.subr.bf16.mxu1 %v12409_v39  ;;  %v12414_v39 = vld [vmem:[%s18005_s1 + $0x18] sm:$0xff]  }
  0xcc   :  { %11511 = vmatpush3.bf16.msra.mxu0 %v13814_v61 }
  0xcd   :  { %10648 = vmatpush3.bf16.msra.mxu1 %v12410_v43  ;;  %11512 = vmatprep.subr.bf16.mxu0 %v18021_v56  ;;  %v12415_v43 = vld [vmem:[%s18005_s1 + $0x50] sm:$0xff]  }
  0xce   :  { %10649 = vmatprep.subr.bf16.mxu1 %v12411_v57  ;;  %v13873_v57 = vld [vmem:[%s18005_s1 + $0x608] sm:$0xff]  }
  0xcf   :  { %18044 = vst [vmem:[#allocation12_spill] sm:$0xff] %v13873_v57 }
  0xd0   :  { %11513 = vmatpush3.bf16.msra.mxu0 %v13834_v41 }
  0xd1   :  { %10650 = vmatpush3.bf16.msra.mxu1 %v12412_v60  ;;  %11514 = vmatprep.subr.bf16.mxu0 %v18021_v56  ;;  %v12416_v60 = vld [vmem:[%s18005_s1 + $0x10] sm:$0xff]  }
  0xd2   :  { %10651 = vmatprep.subr.bf16.mxu1 %v12413_v35  ;;  %v12417_v35 = vld [vmem:[%s18005_s1 + $0x48] sm:$0xff]  }
  0xd4   :  { %11515 = vmatpush3.bf16.msra.mxu0 %v13847_v59 }
  0xd5   :  { %10652 = vmatpush3.bf16.msra.mxu1 %v12414_v39  ;;  %11516 = vmatprep.subr.bf16.mxu0 %v18021_v56  ;;  %v13886_v39 = vld [vmem:[%s18005_s1 + $0x600] sm:$0xff]  }
  0xd6   :  { %10653 = vmatprep.subr.bf16.mxu1 %v12415_v43  ;;  %18045 = vst [vmem:[#allocation13_spill] sm:$0xff] %v13886_v39  ;;  %v12418_v43 = vld [vmem:[%s18005_s1 + $0x8] sm:$0xff]  }
  0xd8   :  { %11517 = vmatpush3.bf16.msra.mxu0 %v13860_v37 }
  0xd9   :  { %10654 = vmatpush3.bf16.msra.mxu1 %v12416_v60  ;;  %11518 = vmatprep.subr.bf16.mxu0 %v18021_v56  ;;  %v12419_v60 = vld [vmem:[%s18005_s1 + $0x40] sm:$0xff]  }
  0xda   :  { %10655 = vmatprep.subr.bf16.mxu1 %v12417_v35  ;;  %v11813_v35 = vld [vmem:[%s18006_s0 + $0x60] ss:$0 sps:$4 sm:$0xff]  }
  0xdc   :  { %11519 = vmatpush3.bf16.msra.mxu0 %v13873_v57  ;;  %v12421_v57 = vld [vmem:[%s18005_s1 + $0xf8] sm:$0xff]  }
  0xdd   :  { %10656 = vmatpush3.bf16.msra.mxu1 %v12418_v43  ;;  %11520 = vmatprep.subr.bf16.mxu0 %v18021_v56  ;;  %v9467_v43 = vcombine.low %v13819_v33, %v13819_v33  ;;  %v13909_v56 = vld [vmem:[%s18006_s0 + $0x74] sm:$0xff] }
  0xde   :  { %10657 = vmatprep.subr.bf16.mxu1 %v12419_v60  ;;  %v12420_v60 = vld [vmem:[%s18005_s1] sm:$0xff]   ;;  %v12422_v33 = vld [vmem:[%s18005_s1 + $0x178] sm:$0xff]  }
  0xe0   :  { %11521 = vmatpush3.bf16.msra.mxu0 %v13886_v39 }
  0xe1   :  { %10658 = vmatpush3.bf16.msra.mxu1 %v12420_v60  ;;  %10665 = vmatprep.subr.bf16.mxu0 %v12421_v57  ;;  %v9470_v60 = vcombine.high %v13901_v31, %v13901_v31  ;;  %v9472_v57 = vcombine.high %v13909_v56, %v13909_v56 }
  0xe2   :  { %10687 = vmatprep.subr.bf16.mxu1 %v12422_v33  ;;  %v12423_v33 = vld [vmem:[%s18005_s1 + $0xb8] sm:$0xff]  }
  0xe3   :  { %v10386_v27 = vpop.f32.mrf.mxu0  ;;  %11523 = vmatmul.mubr.bf16.vlgmr.msra.gmra.mxu0 %v11813_v35 }
  0xe4   :  { %v10408_v39 = vpop.f32.mrf.mxu1  ;;  %2476 = vmatmul.mubr.bf16.vlgmr.msra.gmra.mxu1 %v9467_v43  ;;  %10666 = vmatpush3.bf16.msra.mxu0 %v12423_v33  ;;  %v12426_v43 = vld [vmem:[%s18005_s1 + $0x170] sm:$0xff]   ;;  %v12429_v33 = vld [vmem:[%s18005_s1 + $0xe8] sm:$0xff]  }
  0xe5   :  { %v10387_v23 = vpop.f32.mrf.mxu0  ;;  %10688 = vmatpush3.bf16.msra.mxu1 %v12424_v17  ;;  %2515 = vmatprep.mubr.bf16.mxu0 %v9470_v60  ;;  %v12427_v17 = vld [vmem:[%s18005_s1 + $0xb0] sm:$0xff]   ;;  %v12431_v60 = vld [vmem:[%s18005_s1 + $0xa8] sm:$0xff]  }
  0xe6   :  { %v10388_v37 = vadd.f32 %v10387_v23, %v10386_v27  ;;  %v10409_v21 = vpop.f32.mrf.mxu1  ;;  %v12425_v23 = vld [vmem:[%s18005_s1 + $0xf0] sm:$0xff]   ;;  %10689 = vmatprep.subr.bf16.mxu1 %v12426_v43  ;;  %2555 = vmatprep.mubr.bf16.mxu1 %v9472_v57  ;;  %v12432_v57 = vld [vmem:[%s18005_s1 + $0x128] sm:$0xff]   ;;  %v12436_v43 = vld [vmem:[%s18005_s1 + $0x120] sm:$0xff]  }
  0xe7   :  { %v10410_v19 = vadd.f32 %v10409_v21, %v10408_v39  ;;  %v10389_v59 = vpop.f32.mrf.mxu0  ;;  %10667 = vmatprep.subr.bf16.mxu0 %v12425_v23  ;;  %v12434_v23 = vld [vmem:[%s18005_s1 + $0x160] sm:$0xff]  }
  0xe8   :  { %v1788_v35 = vadd.f32 %v10388_v37, %v13923_v25  ;;  %v10411_v27 = vpop.f32.mrf.mxu1  ;;  %10668 = vmatpush3.bf16.msra.mxu0 %v12427_v17  ;;  %v12428_v37 = vld [vmem:[%s18005_s1 + $0x130] sm:$0xff]   ;;  %v12439_v17 = vld [vmem:[%s18005_s1 + $0x98] sm:$0xff]  }
  0xe9   :  { %v10390_v21 = vpop.f32.mrf.mxu0  ;;  %10690 = vmatpush3.bf16.msra.mxu1 %v12428_v37  ;;  %10669 = vmatprep.subr.bf16.mxu0 %v12429_v33  ;;  %v12435_v27 = vld [vmem:[%s18005_s1 + $0xa0] sm:$0xff]   ;;  %v12440_v37 = vld [vmem:[%s18005_s1 + $0x118] sm:$0xff]   ;;  %v12441_v33 = vld [vmem:[%s18005_s1 + $0xd0] sm:$0xff]  }
  0xea   :  { %v13942_v59 = vadd.f32 %v10410_v19, %v1788_v35  ;;  %v10412_v39 = vpop.f32.mrf.mxu1  ;;  %v12430_v19 = vld [vmem:[%s18005_s1 + $0x168] sm:$0xff]   ;;  %v12433_v35 = vld [vmem:[%s18005_s1 + $0xe0] sm:$0xff]   ;;  %v12437_v21 = vld [vmem:[%s18005_s1 + $0xd8] sm:$0xff]  }
  0xeb   :  { %10691 = vmatprep.subr.bf16.mxu1 %v12430_v19  ;;  %v12438_v39 = vld [vmem:[%s18005_s1 + $0x158] sm:$0xff]   ;;  %v12442_v19 = vld [vmem:[%s18005_s1 + $0x150] sm:$0xff]  }
  0xec   :  { %10670 = vmatpush3.bf16.msra.mxu0 %v12431_v60  ;;  %v12443_v60 = vld [vmem:[%s18005_s1 + $0x90] sm:$0xff]  }
  0xed   :  { %10692 = vmatpush3.bf16.msra.mxu1 %v12432_v57  ;;  %10671 = vmatprep.subr.bf16.mxu0 %v12433_v35  ;;  %v12444_v57 = vld [vmem:[%s18005_s1 + $0x110] sm:$0xff]   ;;  %v12445_v35 = vld [vmem:[%s18005_s1 + $0xc8] sm:$0xff]  }
  0xee   :  { %10693 = vmatprep.subr.bf16.mxu1 %v12434_v23  ;;  %v12446_v23 = vld [vmem:[%s18005_s1 + $0x148] sm:$0xff]  }
  0xf0   :  { %10672 = vmatpush3.bf16.msra.mxu0 %v12435_v27  ;;  %v12447_v27 = vld [vmem:[%s18005_s1 + $0x88] sm:$0xff]  }
  0xf1   :  { %10694 = vmatpush3.bf16.msra.mxu1 %v12436_v43  ;;  %10673 = vmatprep.subr.bf16.mxu0 %v12437_v21  ;;  %v12448_v43 = vld [vmem:[%s18005_s1 + $0x108] sm:$0xff]   ;;  %v12449_v21 = vld [vmem:[%s18005_s1 + $0xc0] sm:$0xff]  }
  0xf2   :  { %10695 = vmatprep.subr.bf16.mxu1 %v12438_v39  ;;  %v12450_v39 = vld [vmem:[%s18005_s1 + $0x140] sm:$0xff]  }
  0xf4   :  { %10674 = vmatpush3.bf16.msra.mxu0 %v12439_v17  ;;  %v9469_v17 = vcombine.low %v13901_v31, %v13901_v31  ;;  %v12452_v31 = vld [vmem:[%s18005_s1 + $0x100] sm:$0xff]  }
  0xf5   :  { %10696 = vmatpush3.bf16.msra.mxu1 %v12440_v37  ;;  %10675 = vmatprep.subr.bf16.mxu0 %v12441_v33  ;;  %v14021_v37 = vld [vmem:[%s18006_s0 + $0x7c] sm:$0xff] }
  0xf6   :  { %10697 = vmatprep.subr.bf16.mxu1 %v12442_v19  ;;  %v12451_v33 = vld [vmem:[%s18005_s1 + $0x80] sm:$0xff]   ;;  %v9471_v19 = vcombine.low %v13909_v56, %v13909_v56  ;;  %v12454_v56 = vld [vmem:[%s18005_s1 + $0x278] sm:$0xff]  }
  0xf8   :  { %10676 = vmatpush3.bf16.msra.mxu0 %v12443_v60  ;;  %v14031_v60 = vld [vmem:[%s18006_s0 + $0x84] sm:$0xff] }
  0xf9   :  { %10698 = vmatpush3.bf16.msra.mxu1 %v12444_v57  ;;  %10677 = vmatprep.subr.bf16.mxu0 %v12445_v35  ;;  %v12453_v35 = vld [vmem:[%s18005_s1 + $0x1f8] sm:$0xff]  }
  0xfa   :  { %10699 = vmatprep.subr.bf16.mxu1 %v12446_v23 }
  0xfc   :  { %10678 = vmatpush3.bf16.msra.mxu0 %v12447_v27  ;;  %v9474_v27 = vcombine.high %v14021_v37, %v14021_v37 }
  0xfd   :  { %10700 = vmatpush3.bf16.msra.mxu1 %v12448_v43  ;;  %10679 = vmatprep.subr.bf16.mxu0 %v12449_v21  ;;  %v9476_v21 = vcombine.high %v14031_v60, %v14031_v60 }
  0xfe   :  { %10701 = vmatprep.subr.bf16.mxu1 %v12450_v39  ;;  %v12455_v39 = vld [vmem:[%s18005_s1 + $0x1b8] sm:$0xff]  }
 0x100   :  { %10680 = vmatpush3.bf16.msra.mxu0 %v12451_v33 }
 0x101   :  { %10702 = vmatpush3.bf16.msra.mxu1 %v12452_v31  ;;  %10709 = vmatprep.subr.bf16.mxu0 %v12453_v35  ;;  %v12456_v35 = vld [vmem:[%s18005_s1 + $0x238] sm:$0xff]  }
 0x102   :  { %10731 = vmatprep.subr.bf16.mxu1 %v12454_v56 }
 0x103   :  { %v10430_v57 = vpop.f32.mrf.mxu0  ;;  %2516 = vmatmul.mubr.bf16.vlgmr.msra.gmra.mxu0 %v9469_v17  ;;  %v12457_v17 = vld [vmem:[%s18005_s1 + $0x1f0] sm:$0xff]  }
 0x104   :  { %v10452_v23 = vpop.f32.mrf.mxu1  ;;  %2556 = vmatmul.mubr.bf16.vlgmr.msra.gmra.mxu1 %v9471_v19  ;;  %10710 = vmatpush3.bf16.msra.mxu0 %v12455_v39  ;;  %v12458_v39 = vld [vmem:[%s18005_s1 + $0x270] sm:$0xff]  }
 0x105   :  { %v10431_v43 = vpop.f32.mrf.mxu0  ;;  %10732 = vmatpush3.bf16.msra.mxu1 %v12456_v35  ;;  %10711 = vmatprep.subr.bf16.mxu0 %v12457_v17  ;;  %v12465_v35 = vld [vmem:[%s18005_s1 + $0x1e0] sm:$0xff]  }
 0x106   :  { %v10432_v33 = vadd.f32 %v10431_v43, %v10430_v57  ;;  %v10453_v31 = vpop.f32.mrf.mxu1  ;;  %10733 = vmatprep.subr.bf16.mxu1 %v12458_v39  ;;  %2595 = vmatprep.mubr.bf16.mxu0 %v9474_v27  ;;  %v12462_v27 = vld [vmem:[%s18005_s1 + $0x268] sm:$0xff]   ;;  %v12467_v17 = vld [vmem:[%s18005_s1 + $0x1a0] sm:$0xff]   ;;  %v12469_v39 = vld [vmem:[%s18005_s1 + $0x1d8] sm:$0xff]  }
 0x107   :  { %v10454_v56 = vadd.f32 %v10453_v31, %v10452_v23  ;;  %v10433_v25 = vpop.f32.mrf.mxu0  ;;  %2635 = vmatprep.mubr.bf16.mxu1 %v9476_v21  ;;  %v12463_v21 = vld [vmem:[%s18005_s1 + $0x1a8] sm:$0xff]  }
 0x108   :  { %v1868_v19 = vadd.f32 %v10432_v33, %v13942_v59  ;;  %v10455_v57 = vpop.f32.mrf.mxu1  ;;  %v12459_v25 = vld [vmem:[%s18005_s1 + $0x1b0] sm:$0xff]   ;;  %v12461_v33 = vld [vmem:[%s18005_s1 + $0x1e8] sm:$0xff]  }
 0x109   :  { %v10434_v43 = vpop.f32.mrf.mxu0  ;;  %10712 = vmatpush3.bf16.msra.mxu0 %v12459_v25  ;;  %v12460_v59 = vld [vmem:[%s18005_s1 + $0x230] sm:$0xff]   ;;  %v12464_v31 = vld [vmem:[%s18005_s1 + $0x228] sm:$0xff]   ;;  %v12470_v57 = vld [vmem:[%s18005_s1 + $0x258] sm:$0xff]  }
 0x10a   :  { %v14059_v15 = vadd.f32 %v10454_v56, %v1868_v19  ;;  %v10456_v23 = vpop.f32.mrf.mxu1  ;;  %10734 = vmatpush3.bf16.msra.mxu1 %v12460_v59  ;;  %10713 = vmatprep.subr.bf16.mxu0 %v12461_v33  ;;  %v12466_v56 = vld [vmem:[%s18005_s1 + $0x260] sm:$0xff]   ;;  %v12471_v43 = vld [vmem:[%s18005_s1 + $0x198] sm:$0xff]   ;;  %v12474_v59 = vld [vmem:[%s18005_s1 + $0x250] sm:$0xff]  }
 0x10b   :  { %10735 = vmatprep.subr.bf16.mxu1 %v12462_v27  ;;  %v12468_v19 = vld [vmem:[%s18005_s1 + $0x220] sm:$0xff]   ;;  %v12472_v25 = vld [vmem:[%s18005_s1 + $0x218] sm:$0xff]   ;;  %v12473_v23 = vld [vmem:[%s18005_s1 + $0x1d0] sm:$0xff]  }
 0x10c   :  { %v12475_v33 = vld [vmem:[%s18005_s1 + $0x190] sm:$0xff]  }
 0x10d   :  { %10714 = vmatpush3.bf16.msra.mxu0 %v12463_v21  ;;  %v12476_v27 = vld [vmem:[%s18005_s1 + $0x210] sm:$0xff]   ;;  %v12477_v21 = vld [vmem:[%s18005_s1 + $0x1c8] sm:$0xff]  }
 0x10e   :  { %10736 = vmatpush3.bf16.msra.mxu1 %v12464_v31  ;;  %10715 = vmatprep.subr.bf16.mxu0 %v12465_v35  ;;  %v12478_v31 = vld [vmem:[%s18005_s1 + $0x248] sm:$0xff]  }
 0x10f   :  { %10737 = vmatprep.subr.bf16.mxu1 %v12466_v56  ;;  %v12479_v35 = vld [vmem:[%s18005_s1 + $0x188] sm:$0xff]  }
 0x110   :  { %v12480_v56 = vld [vmem:[%s18005_s1 + $0x208] sm:$0xff]  }
 0x111   :  { %10716 = vmatpush3.bf16.msra.mxu0 %v12467_v17  ;;  %v12481_v17 = vld [vmem:[%s18005_s1 + $0x1c0] sm:$0xff]  }
 0x112   :  { %10738 = vmatpush3.bf16.msra.mxu1 %v12468_v19  ;;  %10717 = vmatprep.subr.bf16.mxu0 %v12469_v39  ;;  %v12482_v19 = vld [vmem:[%s18005_s1 + $0x240] sm:$0xff]   ;;  %v9473_v39 = vcombine.low %v14021_v37, %v14021_v37 }
 0x113   :  { %10739 = vmatprep.subr.bf16.mxu1 %v12470_v57  ;;  %v14138_v57 = vld [vmem:[%s18006_s0 + $0x8c] sm:$0xff]  ;;  %v12484_v37 = vld [vmem:[%s18005_s1 + $0x200] sm:$0xff]  }
 0x115   :  { %10718 = vmatpush3.bf16.msra.mxu0 %v12471_v43  ;;  %v12483_v43 = vld [vmem:[%s18005_s1 + $0x180] sm:$0xff]  }
 0x116   :  { %10740 = vmatpush3.bf16.msra.mxu1 %v12472_v25  ;;  %10719 = vmatprep.subr.bf16.mxu0 %v12473_v23  ;;  %v9475_v25 = vcombine.low %v14031_v60, %v14031_v60  ;;  %v14148_v23 = vld [vmem:[%s18006_s0 + $0x94] sm:$0xff] }
 0x117   :  { %10741 = vmatprep.subr.bf16.mxu1 %v12474_v59  ;;  %v12486_v60 = vld [vmem:[%s18005_s1 + $0x378] sm:$0xff]  }
 0x119   :  { %10720 = vmatpush3.bf16.msra.mxu0 %v12475_v33  ;;  %v12485_v33 = vld [vmem:[%s18005_s1 + $0x2f8] sm:$0xff]  }
 0x11a   :  { %10742 = vmatpush3.bf16.msra.mxu1 %v12476_v27  ;;  %10721 = vmatprep.subr.bf16.mxu0 %v12477_v21  ;;  %v9478_v21 = vcombine.high %v14138_v57, %v14138_v57 }
 0x11b   :  { %10743 = vmatprep.subr.bf16.mxu1 %v12478_v31 }
 0x11d   :  { %10722 = vmatpush3.bf16.msra.mxu0 %v12479_v35  ;;  %v9480_v35 = vcombine.high %v14148_v23, %v14148_v23 }
 0x11e   :  { %10744 = vmatpush3.bf16.msra.mxu1 %v12480_v56  ;;  %10723 = vmatprep.subr.bf16.mxu0 %v12481_v17  ;;  %v12487_v56 = vld [vmem:[%s18005_s1 + $0x2b8] sm:$0xff]  }
 0x11f   :  { %10745 = vmatprep.subr.bf16.mxu1 %v12482_v19 }
 0x121   :  { %10724 = vmatpush3.bf16.msra.mxu0 %v12483_v43  ;;  %v12488_v43 = vld [vmem:[%s18005_s1 + $0x338] sm:$0xff]  }
 0x122   :  { %10746 = vmatpush3.bf16.msra.mxu1 %v12484_v37  ;;  %10753 = vmatprep.subr.bf16.mxu0 %v12485_v33 }
 0x123   :  { %v10474_v59 = vpop.f32.mrf.mxu0  ;;  %10775 = vmatprep.subr.bf16.mxu1 %v12486_v60  ;;  %v12490_v60 = vld [vmem:[%s18005_s1 + $0x370] sm:$0xff]  }
 0x124   :  { %v10496_v27 = vpop.f32.mrf.mxu1  ;;  %2596 = vmatmul.mubr.bf16.vlgmr.msra.gmra.mxu0 %v9473_v39  ;;  %v12489_v39 = vld [vmem:[%s18005_s1 + $0x2f0] sm:$0xff]  }
 0x125   :  { %v10475_v31 = vpop.f32.mrf.mxu0  ;;  %2636 = vmatmul.mubr.bf16.vlgmr.msra.gmra.mxu1 %v9475_v25  ;;  %10754 = vmatpush3.bf16.msra.mxu0 %v12487_v56 }
 0x126   :  { %v10476_v17 = vadd.f32 %v10475_v31, %v10474_v59  ;;  %v10497_v19 = vpop.f32.mrf.mxu1  ;;  %10776 = vmatpush3.bf16.msra.mxu1 %v12488_v43  ;;  %10755 = vmatprep.subr.bf16.mxu0 %v12489_v39  ;;  %v12496_v43 = vld [vmem:[%s18005_s1 + $0x328] sm:$0xff]   ;;  %v12499_v39 = vld [vmem:[%s18005_s1 + $0x2a0] sm:$0xff]  }
 0x127   :  { %v10498_v37 = vadd.f32 %v10497_v19, %v10496_v27  ;;  %v10477_v33 = vpop.f32.mrf.mxu0  ;;  %10777 = vmatprep.subr.bf16.mxu1 %v12490_v60  ;;  %2675 = vmatprep.mubr.bf16.mxu0 %v9478_v21  ;;  %v12491_v27 = vld [vmem:[%s18005_s1 + $0x2b0] sm:$0xff]   ;;  %v12494_v21 = vld [vmem:[%s18005_s1 + $0x368] sm:$0xff]   ;;  %v12501_v60 = vld [vmem:[%s18005_s1 + $0x2d8] sm:$0xff]  }
 0x128   :  { %v1948_v25 = vadd.f32 %v10476_v17, %v14059_v15  ;;  %v10499_v59 = vpop.f32.mrf.mxu1  ;;  %2715 = vmatprep.mubr.bf16.mxu1 %v9480_v35  ;;  %v12492_v15 = vld [vmem:[%s18005_s1 + $0x330] sm:$0xff]   ;;  %v12493_v17 = vld [vmem:[%s18005_s1 + $0x2e8] sm:$0xff]   ;;  %v12498_v33 = vld [vmem:[%s18005_s1 + $0x360] sm:$0xff]  }
 0x129   :  { %v10478_v31 = vpop.f32.mrf.mxu0  ;;  %10756 = vmatpush3.bf16.msra.mxu0 %v12491_v27  ;;  %v12495_v35 = vld [vmem:[%s18005_s1 + $0x2a8] sm:$0xff]   ;;  %v12502_v59 = vld [vmem:[%s18005_s1 + $0x358] sm:$0xff]  }
 0x12a   :  { %v14176_v56 = vadd.f32 %v10498_v37, %v1948_v25  ;;  %v10500_v19 = vpop.f32.mrf.mxu1  ;;  %10778 = vmatpush3.bf16.msra.mxu1 %v12492_v15  ;;  %10757 = vmatprep.subr.bf16.mxu0 %v12493_v17  ;;  %v12497_v37 = vld [vmem:[%s18005_s1 + $0x2e0] sm:$0xff]   ;;  %v12503_v31 = vld [vmem:[%s18005_s1 + $0x298] sm:$0xff]   ;;  %v12506_v15 = vld [vmem:[%s18005_s1 + $0x350] sm:$0xff]  }
 0x12b   :  { %10779 = vmatprep.subr.bf16.mxu1 %v12494_v21  ;;  %v12500_v25 = vld [vmem:[%s18005_s1 + $0x320] sm:$0xff]   ;;  %v12504_v27 = vld [vmem:[%s18005_s1 + $0x318] sm:$0xff]   ;;  %v12505_v19 = vld [vmem:[%s18005_s1 + $0x2d0] sm:$0xff]  }
 0x12c   :  { %v12507_v17 = vld [vmem:[%s18005_s1 + $0x290] sm:$0xff]  }
 0x12d   :  { %10758 = vmatpush3.bf16.msra.mxu0 %v12495_v35  ;;  %v12508_v21 = vld [vmem:[%s18005_s1 + $0x310] sm:$0xff]   ;;  %v12509_v35 = vld [vmem:[%s18005_s1 + $0x2c8] sm:$0xff]  }
 0x12e   :  { %10780 = vmatpush3.bf16.msra.mxu1 %v12496_v43  ;;  %10759 = vmatprep.subr.bf16.mxu0 %v12497_v37  ;;  %v12510_v43 = vld [vmem:[%s18005_s1 + $0x348] sm:$0xff]  }
 0x12f   :  { %10781 = vmatprep.subr.bf16.mxu1 %v12498_v33  ;;  %v12511_v37 = vld [vmem:[%s18005_s1 + $0x288] sm:$0xff]  }
 0x130   :  { %v12512_v33 = vld [vmem:[%s18005_s1 + $0x308] sm:$0xff]  }
 0x131   :  { %10760 = vmatpush3.bf16.msra.mxu0 %v12499_v39  ;;  %v12513_v39 = vld [vmem:[%s18005_s1 + $0x2c0] sm:$0xff]  }
 0x132   :  { %10782 = vmatpush3.bf16.msra.mxu1 %v12500_v25  ;;  %10761 = vmatprep.subr.bf16.mxu0 %v12501_v60  ;;  %v12514_v25 = vld [vmem:[%s18005_s1 + $0x340] sm:$0xff]   ;;  %v9477_v60 = vcombine.low %v14138_v57, %v14138_v57 }
 0x133   :  { %10783 = vmatprep.subr.bf16.mxu1 %v12502_v59  ;;  %v14255_v59 = vld [vmem:[%s18006_s0 + $0x9c] sm:$0xff] }
 0x134   :  { %v12516_v57 = vld [vmem:[%s18005_s1 + $0x300] sm:$0xff]  }
 0x135   :  { %10762 = vmatpush3.bf16.msra.mxu0 %v12503_v31  ;;  %v12515_v31 = vld [vmem:[%s18005_s1 + $0x280] sm:$0xff]  }
 0x136   :  { %10784 = vmatpush3.bf16.msra.mxu1 %v12504_v27  ;;  %10763 = vmatprep.subr.bf16.mxu0 %v12505_v19  ;;  %v9479_v27 = vcombine.low %v14148_v23, %v14148_v23  ;;  %v14265_v19 = vld [vmem:[%s18006_s0 + $0xa4] sm:$0xff]  ;;  %v12518_v23 = vld [vmem:[%s18005_s1 + $0x478] sm:$0xff]  }
 0x137   :  { %10785 = vmatprep.subr.bf16.mxu1 %v12506_v15  ;;  %v12517_v15 = vld [vmem:[%s18005_s1 + $0x3f8] sm:$0xff]  }
 0x139   :  { %10764 = vmatpush3.bf16.msra.mxu0 %v12507_v17 }
 0x13a   :  { %10786 = vmatpush3.bf16.msra.mxu1 %v12508_v21  ;;  %10765 = vmatprep.subr.bf16.mxu0 %v12509_v35  ;;  %v9482_v21 = vcombine.high %v14255_v59, %v14255_v59 }
 0x13b   :  { %10787 = vmatprep.subr.bf16.mxu1 %v12510_v43  ;;  %v9484_v43 = vcombine.high %v14265_v19, %v14265_v19 }
 0x13d   :  { %10766 = vmatpush3.bf16.msra.mxu0 %v12511_v37  ;;  %v12519_v37 = vld [vmem:[%s18005_s1 + $0x3b8] sm:$0xff]  }
 0x13e   :  { %10788 = vmatpush3.bf16.msra.mxu1 %v12512_v33  ;;  %10767 = vmatprep.subr.bf16.mxu0 %v12513_v39  ;;  %v12520_v39 = vld [vmem:[%s18005_s1 + $0x438] sm:$0xff]  }
 0x13f   :  { %10789 = vmatprep.subr.bf16.mxu1 %v12514_v25 }
 0x141   :  { %10768 = vmatpush3.bf16.msra.mxu0 %v12515_v31 }
 0x142   :  { %10790 = vmatpush3.bf16.msra.mxu1 %v12516_v57  ;;  %10797 = vmatprep.subr.bf16.mxu0 %v12517_v15 }
 0x143   :  { %v10518_v17 = vpop.f32.mrf.mxu0  ;;  %10819 = vmatprep.subr.bf16.mxu1 %v12518_v23 }
 0x144   :  { %2676 = vmatmul.mubr.bf16.vlgmr.msra.gmra.mxu0 %v9477_v60  ;;  %v10540_v35 = vpop.f32.mrf.mxu1  ;;  %v12521_v60 = vld [vmem:[%s18005_s1 + $0x3f0] sm:$0xff]  }
 0x145   :  { %2716 = vmatmul.mubr.bf16.vlgmr.msra.gmra.mxu1 %v9479_v27  ;;  %10798 = vmatpush3.bf16.msra.mxu0 %v12519_v37  ;;  %v10519_v33 = vpop.f32.mrf.mxu0  ;;  %v12522_v37 = vld [vmem:[%s18005_s1 + $0x3b0] sm:$0xff]  }
 0x146   :  { %10820 = vmatpush3.bf16.msra.mxu1 %v12520_v39  ;;  %v10520_v25 = vadd.f32 %v10519_v33, %v10518_v17  ;;  %v10541_v31 = vpop.f32.mrf.mxu1  ;;  %10799 = vmatprep.subr.bf16.mxu0 %v12521_v60 }
 0x147   :  { %v10542_v57 = vadd.f32 %v10541_v31, %v10540_v35  ;;  %v10521_v27 = vpop.f32.mrf.mxu0  ;;  %10821 = vmatprep.subr.bf16.mxu1 %v13444_v28  ;;  %2755 = vmatprep.mubr.bf16.mxu0 %v9482_v21  ;;  %v12523_v28 = vld [vmem:[%s18005_s1 + $0x3e8] sm:$0xff]   ;;  %v12525_v21 = vld [vmem:[%s18005_s1 + $0x3e0] sm:$0xff]  }
 0x148   :  { %v2028_v15 = vadd.f32 %v10520_v25, %v14176_v56  ;;  %v10543_v23 = vpop.f32.mrf.mxu1  ;;  %2795 = vmatprep.mubr.bf16.mxu1 %v9484_v43  ;;  %v12524_v56 = vld [vmem:[%s18005_s1 + $0x3a8] sm:$0xff]   ;;  %v12534_v35 = vld [vmem:[%s18005_s1 + $0x380] sm:$0xff]  }
 0x149   :  { %10800 = vmatpush3.bf16.msra.mxu0 %v12522_v37  ;;  %v10522_v17 = vpop.f32.mrf.mxu0 }
 0x14a   :  { %v14294_v33 = vadd.f32 %v10542_v57, %v2028_v15  ;;  %10822 = vmatpush3.bf16.msra.mxu1 %v13453_v30  ;;  %v10544_v39 = vpop.f32.mrf.mxu1  ;;  %10801 = vmatprep.subr.bf16.mxu0 %v12523_v28  ;;  %v12526_v30 = vld [vmem:[%s18005_s1 + $0x3a0] sm:$0xff]   ;;  %v12539_v28 = vld [vmem:[%s18005_s1 + $0x4e8] sm:$0xff]  }
 0x14b   :  { %10823 = vmatprep.subr.bf16.mxu1 %v13461_v32  ;;  %v12527_v32 = vld [vmem:[%s18005_s1 + $0x3d8] sm:$0xff]  }
 0x14d   :  { %10802 = vmatpush3.bf16.msra.mxu0 %v12524_v56 }
 0x14e   :  { %10824 = vmatpush3.bf16.msra.mxu1 %v13471_v34  ;;  %10803 = vmatprep.subr.bf16.mxu0 %v12525_v21  ;;  %v12528_v34 = vld [vmem:[%s18005_s1 + $0x398] sm:$0xff]   ;;  %v12542_v21 = vld [vmem:[%s18005_s1 + $0x4a0] sm:$0xff]  }
 0x14f   :  { %10825 = vmatprep.subr.bf16.mxu1 %v13479_v36  ;;  %v12529_v36 = vld [vmem:[%s18005_s1 + $0x3d0] sm:$0xff]  }
 0x151   :  { %10804 = vmatpush3.bf16.msra.mxu0 %v12526_v30  ;;  %v18057_v30 = vld [vmem:[#allocation8_spill] sm:$0xff] }
 0x152   :  { %10826 = vmatpush3.bf16.msra.mxu1 %v13489_v38  ;;  %10805 = vmatprep.subr.bf16.mxu0 %v12527_v32  ;;  %v12530_v38 = vld [vmem:[%s18005_s1 + $0x390] sm:$0xff]  }
 0x153   :  { %10827 = vmatprep.subr.bf16.mxu1 %v13497_v40  ;;  %v12531_v40 = vld [vmem:[%s18005_s1 + $0x3c8] sm:$0xff]  }
 0x155   :  { %10806 = vmatpush3.bf16.msra.mxu0 %v12528_v34  ;;  %v18058_v34 = vld [vmem:[#allocation9_spill] sm:$0xff] }
 0x156   :  { %10828 = vmatpush3.bf16.msra.mxu1 %v13507_v42  ;;  %10807 = vmatprep.subr.bf16.mxu0 %v12529_v36  ;;  %v12532_v42 = vld [vmem:[%s18005_s1 + $0x388] sm:$0xff]   ;;  %v11838_v36 = vld [vmem:[%s18006_s0 + $0xc4] ss:$0 sps:$4 sm:$0xff]  }
 0x157   :  { %10829 = vmatprep.subr.bf16.mxu1 %v13515_v44  ;;  %v12533_v44 = vld [vmem:[%s18005_s1 + $0x3c0] sm:$0xff]  }
 0x159   :  { %10808 = vmatpush3.bf16.msra.mxu0 %v12530_v38  ;;  %v18059_v38 = vld [vmem:[#allocation13_spill] sm:$0xff] }
 0x15a   :  { %10830 = vmatpush3.bf16.msra.mxu1 %v13525_v46  ;;  %10809 = vmatprep.subr.bf16.mxu0 %v12531_v40  ;;  %v9481_v46 = vcombine.low %v14255_v59, %v14255_v59  ;;  %v12535_v59 = vld [vmem:[%s18005_s1 + $0x4f8] sm:$0xff]  }
 0x15b   :  { %10831 = vmatprep.subr.bf16.mxu1 %v13535_v48  ;;  %v14346_v48 = vld [vmem:[%s18006_s0 + $0xac] sm:$0xff] }
 0x15c   :  { %v9486_v43 = vcombine.high %v14346_v48, %v14346_v48 }
 0x15d   :  { %10810 = vmatpush3.bf16.msra.mxu0 %v12532_v42 }
 0x15e   :  { %10832 = vmatpush3.bf16.msra.mxu1 %v13548_v50  ;;  %10811 = vmatprep.subr.bf16.mxu0 %v12533_v44  ;;  %v9483_v50 = vcombine.low %v14265_v19, %v14265_v19 }
 0x15f   :  { %10833 = vmatprep.subr.bf16.mxu1 %v13559_v52  ;;  %v14356_v52 = vld [vmem:[%s18006_s0 + $0xb4] sm:$0xff] }
 0x160   :  { %v9488_v19 = vcombine.high %v14356_v52, %v14356_v52 }
 0x161   :  { %10812 = vmatpush3.bf16.msra.mxu0 %v12534_v35 }
 0x162   :  { %10834 = vmatpush3.bf16.msra.mxu1 %v13572_v54  ;;  %10841 = vmatprep.subr.bf16.mxu0 %v12535_v59  ;;  %v12536_v54 = vld [vmem:[%s18005_s1 + $0x4b8] sm:$0xff]  }
 0x163   :  { %10863 = vmatprep.subr.bf16.mxu1 %v13591_v62  ;;  %v10562_v25 = vpop.f32.mrf.mxu0  ;;  %v12537_v62 = vld [vmem:[%s18005_s1 + $0x4f0] sm:$0xff]  }
 0x164   :  { %2756 = vmatmul.mubr.bf16.vlgmr.msra.gmra.mxu0 %v9481_v46  ;;  %v10584_v31 = vpop.f32.mrf.mxu1 }
 0x165   :  { %2796 = vmatmul.mubr.bf16.vlgmr.msra.gmra.mxu1 %v9483_v50  ;;  %10842 = vmatpush3.bf16.msra.mxu0 %v12536_v54  ;;  %v10563_v60 = vpop.f32.mrf.mxu0  ;;  %v18060_v54 = vld [vmem:[#allocation14_spill] sm:$0xff] }
 0x166   :  { %10864 = vmatpush3.bf16.msra.mxu1 %v13602_v0  ;;  %10843 = vmatprep.subr.bf16.mxu0 %v12537_v62  ;;  %v10564_v57 = vadd.f32 %v10563_v60, %v10562_v25  ;;  %v10585_v27 = vpop.f32.mrf.mxu1  ;;  %v12538_v0 = vld [vmem:[%s18005_s1 + $0x4b0] sm:$0xff]  }
 0x167   :  { %10865 = vmatprep.subr.bf16.mxu1 %v13614_v2  ;;  %2835 = vmatprep.mubr.bf16.mxu0 %v9486_v43  ;;  %v10586_v15 = vadd.f32 %v10585_v27, %v10584_v31  ;;  %v10565_v23 = vpop.f32.mrf.mxu0 }
 0x168   :  { %2875 = vmatprep.mubr.bf16.mxu1 %v9488_v19  ;;  %v2108_v37 = vadd.f32 %v10564_v57, %v14294_v33  ;;  %v10587_v17 = vpop.f32.mrf.mxu1  ;;  %v12540_v33 = vld [vmem:[%s18005_s1 + $0x4a8] sm:$0xff]  }
 0x169   :  { %10844 = vmatpush3.bf16.msra.mxu0 %v12538_v0  ;;  %v10566_v39 = vpop.f32.mrf.mxu0 }
 0x16a   :  { %10866 = vmatpush3.bf16.msra.mxu1 %v13626_v4  ;;  %10845 = vmatprep.subr.bf16.mxu0 %v12539_v28  ;;  %v2148_v2 = vadd.f32 %v10586_v15, %v2108_v37  ;;  %v10588_v56 = vpop.f32.mrf.mxu1  ;;  %v12541_v4 = vld [vmem:[%s18005_s1 + $0x4e0] sm:$0xff]  }
 0x16b   :  { %10867 = vmatprep.subr.bf16.mxu1 %v13638_v6  ;;  %v12543_v6 = vld [vmem:[%s18005_s1 + $0x4d8] sm:$0xff]   ;;  %v9548_v28 = vld [vmem:[%s18008_s3 + $0x3c0] sm:$0xff]  ;;  %v9549_v56 = vld [vmem:[%s18008_s3 + $0x3c8] sm:$0xff] }
 0x16d   :  { %10846 = vmatpush3.bf16.msra.mxu0 %v12540_v33 }
 0x16e   :  { %10868 = vmatpush3.bf16.msra.mxu1 %v13650_v8  ;;  %10847 = vmatprep.subr.bf16.mxu0 %v12541_v4  ;;  %v12544_v8 = vld [vmem:[%s18005_s1 + $0x498] sm:$0xff]  }
 0x16f   :  { %10869 = vmatprep.subr.bf16.mxu1 %v13662_v10  ;;  %v12545_v10 = vld [vmem:[%s18005_s1 + $0x4d0] sm:$0xff]  }
 0x171   :  { %10848 = vmatpush3.bf16.msra.mxu0 %v12542_v21  ;;  %v9553_v21 = vld [vmem:[%s18008_s3 + $0x3e8] sm:$0xff] }
 0x172   :  { %10870 = vmatpush3.bf16.msra.mxu1 %v13674_v12  ;;  %10849 = vmatprep.subr.bf16.mxu0 %v12543_v6  ;;  %v9485_v12 = vcombine.low %v14346_v48, %v14346_v48  ;;  %v9540_v6 = vld [vmem:[%s18008_s3 + $0x380] sm:$0xff] }
 0x173   :  { %10871 = vmatprep.subr.bf16.mxu1 %v13686_v14 }
 0x175   :  { %10850 = vmatpush3.bf16.msra.mxu0 %v12544_v8  ;;  %v9544_v8 = vld [vmem:[%s18008_s3 + $0x3a0] sm:$0xff] }
 0x176   :  { %10872 = vmatpush3.bf16.msra.mxu1 %v13698_v16  ;;  %10851 = vmatprep.subr.bf16.mxu0 %v12545_v10  ;;  %v9614_v10 = vcombine.low %v9549_v56, %v9553_v21 }
 0x177   :  { %10873 = vmatprep.subr.bf16.mxu1 %v13710_v18 }
 0x179   :  { %10852 = vmatpush3.bf16.msra.mxu0 %v13530_v47  ;;  %v9465_v47 = vld [vmem:[%s18006_s0 + $0xbc] sm:$0xff] }
 0x17a   :  { %10874 = vmatpush3.bf16.msra.mxu1 %v13722_v20  ;;  %10853 = vmatprep.subr.bf16.mxu0 %v13542_v49  ;;  %v9487_v49 = vcombine.low %v14356_v52, %v14356_v52  ;;  %v9489_v32 = vcombine.low %v9465_v47, %v9465_v47 }
 0x17b   :  { %10875 = vmatprep.subr.bf16.mxu1 %v13734_v22 }
 0x17d   :  { %10854 = vmatpush3.bf16.msra.mxu0 %v13554_v51  ;;  %v18047_v51 = vmov 0.0  }
 0x17e   :  { %10876 = vmatpush3.bf16.msra.mxu1 %v13746_v24  ;;  %10855 = vmatprep.subr.bf16.mxu0 %v13566_v53  ;;  %v9490_v53 = vcombine.high %v9465_v47, %v9465_v47  ;;  %v9605_v47 = vcombine.high %v9540_v6, %v9544_v8 }
 0x17f   :  { %10877 = vmatprep.subr.bf16.mxu1 %v13758_v26 }
 0x181   :  { %10856 = vmatpush3.bf16.msra.mxu0 %v13578_v55 }
 0x182   :  { %10878 = vmatpush3.bf16.msra.mxu1 %v13770_v29  ;;  %10885 = vmatprep.subr.bf16.mxu0 %v13596_v63 }
 0x183   :  { %11526 = vmatprep.subr.bf16.mxu1 %v18047_v51  ;;  %v10606_v14 = vpop.f32.mrf.mxu0 }
 0x184   :  { %2836 = vmatmul.mubr.bf16.vlgmr.msra.gmra.mxu0 %v9485_v12  ;;  %v10628_v16 = vpop.f32.mrf.mxu1  ;;  %v9615_v12 = vcombine.high %v9549_v56, %v9553_v21 }
 0x185   :  { %2876 = vmatmul.mubr.bf16.vlgmr.msra.gmra.mxu1 %v9487_v49  ;;  %10886 = vmatpush3.bf16.msra.mxu0 %v13608_v1  ;;  %v10607_v18 = vpop.f32.mrf.mxu0  ;;  %v9541_v49 = vld [vmem:[%s18008_s3 + $0x388] sm:$0xff] }
 0x186   :  { %11527 = vmatpush3.bf16.msra.mxu1 %v13788_v45  ;;  %10887 = vmatprep.subr.bf16.mxu0 %v13620_v3  ;;  %v10608_v55 = vadd.f32 %v10607_v18, %v10606_v14  ;;  %v10629_v20 = vpop.f32.mrf.mxu1  ;;  %v18050_v45 = vld [vmem:[#allocation10_spill] sm:$0xff] }
 0x187   :  { %11528 = vmatprep.subr.bf16.mxu1 %v18047_v51  ;;  %2915 = vmatprep.mubr.bf16.mxu0 %v9490_v53  ;;  %v10630_v63 = vadd.f32 %v10629_v20, %v10628_v16  ;;  %v10609_v22 = vpop.f32.mrf.mxu0  ;;  %v9545_v53 = vld [vmem:[%s18008_s3 + $0x3a8] sm:$0xff]  ;;  %v9532_v14 = vld [vmem:[%s18008_s3 + $0x340] sm:$0xff] }
 0x188   :  { %11542 = vmatprep.mubr.msk.bf16.mxu1 %vm12949_vm0, %v18047_v51  ;;  %v2188_v24 = vadd.f32 %v10608_v55, %v2148_v2  ;;  %v10631_v26 = vpop.f32.mrf.mxu1  ;;  %v9552_v2 = vld [vmem:[%s18008_s3 + $0x3e0] sm:$0xff]  ;;  %v9607_v16 = vcombine.high %v9541_v49, %v9545_v53  ;;  %v9533_v55 = vld [vmem:[%s18008_s3 + $0x348] sm:$0xff]  ;;  %v9606_v22 = vcombine.low %v9541_v49, %v9545_v53 }
 0x189   :  { %10888 = vmatpush3.bf16.msra.mxu0 %v13632_v5  ;;  %v10610_v1 = vpop.f32.mrf.mxu0  ;;  %v18048_v5 = vld [vmem:[#allocation2_spill] sm:$0xff]  ;;  %v9612_v33 = vcombine.low %v9548_v28, %v9552_v2  ;;  %v9613_v4 = vcombine.high %v9548_v28, %v9552_v2  ;;  %v9537_v20 = vld [vmem:[%s18008_s3 + $0x368] sm:$0xff] }
 0x18a   :  { %11529 = vmatpush3.bf16.msra.mxu1 %v13799_v58  ;;  %10889 = vmatprep.subr.bf16.mxu0 %v13644_v7  ;;  %v10632_v3 = vpop.f32.mrf.mxu1  ;;  %v2228_v29 = vadd.f32 %v10630_v63, %v2188_v24  ;;  %v18049_v7 = vld [vmem:[#allocation3_spill] sm:$0xff]  ;;  %v18051_v58 = vld [vmem:[#allocation4_spill] sm:$0xff]  ;;  %v9536_v18 = vld [vmem:[%s18008_s3 + $0x360] sm:$0xff]  ;;  %v9604_v63 = vcombine.low %v9540_v6, %v9544_v8  ;;  %v9599_v26 = vcombine.high %v9533_v55, %v9537_v20 }
 0x18b   :  { %11530 = vmatprep.subr.bf16.mxu1 %v18047_v51  ;;  %v9597_v24 = vcombine.high %v9532_v14, %v9536_v18  ;;  %v9524_v1 = vld [vmem:[%s18008_s3 + $0x300] sm:$0xff] }
 0x18c   :  { %v9528_v3 = vld [vmem:[%s18008_s3 + $0x320] sm:$0xff] }
 0x18d   :  { %10890 = vmatpush3.bf16.msra.mxu0 %v13656_v9  ;;  %v18052_v9 = vld [vmem:[#allocation5_spill] sm:$0xff]  ;;  %v9492_v8 = vld [vmem:[%s18008_s3 + $0x200] sm:$0xff] }
 0x18e   :  { %11531 = vmatpush3.bf16.msra.mxu1 %v13814_v61  ;;  %10891 = vmatprep.subr.bf16.mxu0 %v13668_v11  ;;  %v18053_v11 = vld [vmem:[#allocation11_spill] sm:$0xff]  ;;  %v18054_v61 = vld [vmem:[#allocation6_spill] sm:$0xff] }
 0x18f   :  { %11532 = vmatprep.subr.bf16.mxu1 %v18047_v51 }
 0x191   :  { %10892 = vmatpush3.bf16.msra.mxu0 %v13680_v13  ;;  %v18055_v13 = vld [vmem:[#allocation7_spill] sm:$0xff] }
 0x192   :  { %11533 = vmatpush3.bf16.msra.mxu1 %v13834_v41  ;;  %10893 = vmatprep.subr.bf16.mxu0 %v18048_v5  ;;  %v18056_v41 = vld [vmem:[#allocation12_spill] sm:$0xff]  ;;  %v9529_v5 = vld [vmem:[%s18008_s3 + $0x328] sm:$0xff] }
 0x193   :  { %11534 = vmatprep.subr.bf16.mxu1 %v18047_v51 }
 0x195   :  { %10894 = vmatpush3.bf16.msra.mxu0 %v18049_v7  ;;  %v9596_v7 = vcombine.low %v9532_v14, %v9536_v18  ;;  %v14572_v18 = vld [vmem:[%s18008_s3 + $0x3f0] sm:$0xff] }
 0x196   :  { %11535 = vmatpush3.bf16.msra.mxu1 %v18050_v45  ;;  %10895 = vmatprep.subr.bf16.mxu0 %v18051_v58  ;;  %v9598_v45 = vcombine.low %v9533_v55, %v9537_v20  ;;  %v9589_v58 = vcombine.high %v9524_v1, %v9528_v3  ;;  %v14577_v55 = vld [vmem:[%s18008_s3 + $0x3d8] sm:$0xff]  ;;  %v12950_v20 = vmov 0  }
 0x197   :  { %11536 = vmatprep.subr.bf16.mxu1 %v18047_v51 }
 0x199   :  { %10896 = vmatpush3.bf16.msra.mxu0 %v18052_v9 }
 0x19a   :  { %11537 = vmatpush3.bf16.msra.mxu1 %v18053_v11  ;;  %10897 = vmatprep.subr.bf16.mxu0 %v18054_v61  ;;  %v9516_v11 = vld [vmem:[%s18008_s3 + $0x2c0] sm:$0xff] }
 0x19b   :  { %11538 = vmatprep.subr.bf16.mxu1 %v18047_v51  ;;  %v9520_v61 = vld [vmem:[%s18008_s3 + $0x2e0] sm:$0xff] }
 0x19d   :  { %10898 = vmatpush3.bf16.msra.mxu0 %v18055_v13  ;;  %v9517_v13 = vld [vmem:[%s18008_s3 + $0x2c8] sm:$0xff] }
 0x19e   :  { %11539 = vmatpush3.bf16.msra.mxu1 %v18056_v41  ;;  %10899 = vmatprep.subr.bf16.mxu0 %v18057_v30  ;;  %v9521_v41 = vld [vmem:[%s18008_s3 + $0x2e8] sm:$0xff]  ;;  %v9588_v30 = vcombine.low %v9524_v1, %v9528_v3 }
 0x19f   :  { %11540 = vmatprep.subr.bf16.mxu1 %v18047_v51 }
 0x1a1   :  { %10900 = vmatpush3.bf16.msra.mxu0 %v18058_v34  ;;  %v9581_v34 = vcombine.high %v9516_v11, %v9520_v61 }
 0x1a2   :  { %11541 = vmatpush3.bf16.msra.mxu1 %v18059_v38  ;;  %3352 = vmatprep.subr.bf16.mxu0 %v9613_v4  ;;  %v9580_v38 = vcombine.low %v9516_v11, %v9520_v61 }
 0x1a3   :  { %v2267_v40 = vpop.f32.mrf.mxu0  ;;  %3393 = vmatprep.subr.bf16.mxu1 %v9615_v12 }
 0x1a4   :  { %2916 = vmatmul.mubr.bf16.vlgmr.msra.gmra.mxu0 %v9489_v32  ;;  %v14462_v42 = vadd.f32 %v2267_v40, %v2228_v29  ;;  %v10659_v44 = vpop.f32.mrf.mxu1  ;;  %v9525_v29 = vld [vmem:[%s18008_s3 + $0x308] sm:$0xff]  ;;  %v9582_v40 = vcombine.low %v9517_v13, %v9521_v41 }
 0x1a5   :  { %11543 = vmatmul.mubr.bf16.vlgmr.msra.gmra.mxu1 %v11838_v36  ;;  %v11524_v46 = vpop.f32.mrf.mxu0  ;;  %3353 = vmatpush1.bf16.msra.mxu0 %v9612_v33  ;;  %v9591_v9 = vcombine.high %v9525_v29, %v9529_v5  ;;  %v9590_v32 = vcombine.low %v9525_v29, %v9529_v5  ;;  %v9583_v36 = vcombine.high %v9517_v13, %v9521_v41 }
 0x1a6   :  { %v10660_v48 = vpop.f32.mrf.mxu1  ;;  %3394 = vmatpush1.bf16.msra.mxu1 %v9614_v10  ;;  %3354 = vmatprep.subr.bf16.mxu0 %v9605_v47  ;;  %v9512_v46 = vld [vmem:[%s18008_s3 + $0x2a0] sm:$0xff]  ;;  %v9497_v47 = vld [vmem:[%s18008_s3 + $0x228] sm:$0xff]  ;;  %vm2273_vm2 = vcmp.gt.f32.partialorder %v14462_v42, 0.0 }
 0x1a7   :  { %v10661_v35 = vadd.f32 %v10660_v48, %v10659_v44  ;;  %v2270_v50 = vpop.f32.mrf.mxu0  ;;  %3395 = vmatprep.subr.bf16.mxu1 %v9607_v16  ;;  %v9508_v44 = vld [vmem:[%s18008_s3 + $0x280] sm:$0xff]  ;;  %v9509_v48 = vld [vmem:[%s18008_s3 + $0x288] sm:$0xff]  ;;  %v14567_v16 = vld [vmem:[%s18008_s3 + $0x3d0] sm:$0xff]  ;;  %3384 = vmatprep.mubr.bf16.mxu0 %v12950_v20 }
 0x1a8   :  { %v10662_v52 = vpop.f32.mrf.mxu1  ;;  %v9573_v50 = vcombine.high %v9508_v44, %v9512_v46  ;;  %v9496_v10 = vld [vmem:[%s18008_s3 + $0x220] sm:$0xff]  ;;  %3425 = vmatprep.mubr.bf16.mxu1 %v12950_v20 }
 0x1a9   :  { %v11525_v59 = vpop.f32.mrf.mxu0  ;;  %v2478_v60 = vadd.f32 %v10661_v35, %v18060_v54  ;;  %3355 = vmatpush1.bf16.msra.mxu0 %v9604_v63  ;;  %v9513_v52 = vld [vmem:[%s18008_s3 + $0x2a8] sm:$0xff]  ;;  %v9557_v12 = vcombine.high %v9492_v8, %v9496_v10  ;;  %v9556_v49 = vcombine.low %v9492_v8, %v9496_v10  ;;  %v9616_v63 = vcombine.low %v14567_v16, %v14572_v18 }
 0x1aa   :  { %v10663_v43 = vpop.f32.mrf.mxu1  ;;  %3396 = vmatpush1.bf16.msra.mxu1 %v9606_v22  ;;  %3356 = vmatprep.subr.bf16.mxu0 %v9597_v24  ;;  %v9617_v22 = vcombine.high %v14567_v16, %v14572_v18  ;;  %v14587_v24 = vld [vmem:[%s18008_s3 + $0x3f8] sm:$0xff] }
 0x1ab   :  { %3397 = vmatprep.subr.bf16.mxu1 %v9599_v26  ;;  %v9572_v43 = vcombine.low %v9508_v44, %v9512_v46  ;;  %v9618_v26 = vcombine.low %v14577_v55, %v14587_v24  ;;  %v9619_v1 = vcombine.high %v14577_v55, %v14587_v24  ;;  %v9527_v16 = vld [vmem:[%s18008_s3 + $0x318] sm:$0xff] }
 0x1ac   :  { %v9531_v18 = vld [vmem:[%s18008_s3 + $0x338] sm:$0xff] }
 0x1ad   :  { %3357 = vmatpush1.bf16.msra.mxu0 %v9596_v7 }
 0x1ae   :  { %3398 = vmatpush1.bf16.msra.mxu1 %v9598_v45  ;;  %3358 = vmatprep.subr.bf16.mxu0 %v9589_v58 }
 0x1af   :  { %3399 = vmatprep.subr.bf16.mxu1 %v9591_v9 }
 0x1b1   :  { %3359 = vmatpush1.bf16.msra.mxu0 %v9588_v30 }
 0x1b2   :  { %3400 = vmatpush1.bf16.msra.mxu1 %v9590_v32  ;;  %3360 = vmatprep.subr.bf16.mxu0 %v9581_v34 }
 0x1b3   :  { %3401 = vmatprep.subr.bf16.mxu1 %v9583_v36 }
 0x1b5   :  { %3361 = vmatpush1.bf16.msra.mxu0 %v9580_v38 }
 0x1b6   :  { %3402 = vmatpush1.bf16.msra.mxu1 %v9582_v40  ;;  %3362 = vmatprep.subr.bf16.mxu0 %v9573_v50 }
 0x1b9   :  { %3363 = vmatpush1.bf16.msra.mxu0 %v9572_v43 }
 0x1c3   :  { %v10681_v25 = vpop.f32.mrf.mxu0 }
 0x1c4   :  { %v10703_v19 = vpop.f32.mrf.mxu1 }
 0x1c5   :  { %v10682_v31 = vpop.f32.mrf.mxu0 }
 0x1c6   :  { %v10683_v62 = vadd.f32 %v10682_v31, %v10681_v25  ;;  %v10704_v57 = vpop.f32.mrf.mxu1  ;;  %v9574_v25 = vcombine.low %v9509_v48, %v9513_v52 }
 0x1c7   :  { %v10705_v27 = vadd.f32 %v10704_v57, %v10703_v19  ;;  %v10684_v15 = vpop.f32.mrf.mxu0  ;;  %v9575_v19 = vcombine.high %v9509_v48, %v9513_v52  ;;  %v9504_v57 = vld [vmem:[%s18008_s3 + $0x260] sm:$0xff] }
 0x1c8   :  { %v2518_v23 = vadd.f32 %v10683_v62, %v2478_v60  ;;  %v10706_v37 = vpop.f32.mrf.mxu1  ;;  %v9500_v62 = vld [vmem:[%s18008_s3 + $0x240] sm:$0xff] }
 0x1c9   :  { %v10685_v17 = vpop.f32.mrf.mxu0  ;;  %3403 = vmatprep.subr.bf16.mxu1 %v9575_v19  ;;  %v9565_v37 = vcombine.high %v9500_v62, %v9504_v57  ;;  %v9564_v2 = vcombine.low %v9500_v62, %v9504_v57 }
 0x1ca   :  { %v14465_v0 = vadd.f32 %v10705_v27, %v2518_v23  ;;  %v10707_v39 = vpop.f32.mrf.mxu1  ;;  %v9501_v27 = vld [vmem:[%s18008_s3 + $0x248] sm:$0xff]  ;;  %3404 = vmatpush1.bf16.msra.mxu1 %v9574_v25 }
 0x1cb   :  { %v9505_v17 = vld [vmem:[%s18008_s3 + $0x268] sm:$0xff]  ;;  %3364 = vmatprep.subr.bf16.mxu0 %v9565_v37 }
 0x1cc   :  { %v9566_v56 = vcombine.low %v9501_v27, %v9505_v17  ;;  %v9567_v33 = vcombine.high %v9501_v27, %v9505_v17  ;;  %3365 = vmatpush1.bf16.msra.mxu0 %v9564_v2 }
 0x1cd   :  { %3366 = vmatprep.subr.bf16.mxu0 %v9557_v12 }
 0x1ce   :  { %3405 = vmatprep.subr.bf16.mxu1 %v9567_v33 }
 0x1cf   :  { %3406 = vmatpush1.bf16.msra.mxu1 %v9566_v56 }
 0x1d0   :  { %3367 = vmatpush1.bf16.msra.mxu0 %v9556_v49  ;;  %v9543_v49 = vld [vmem:[%s18008_s3 + $0x398] sm:$0xff] }
 0x1d1   :  { %3434 = vmatprep.subr.bf16.mxu0 %v9617_v22 }
 0x1e4   :  { %v10725_v35 = vpop.f32.mrf.mxu0 }
 0x1e5   :  { %v10747_v59 = vpop.f32.mrf.mxu1 }
 0x1e6   :  { %v10726_v31 = vpop.f32.mrf.mxu0 }
 0x1e7   :  { %v10727_v54 = vadd.f32 %v10726_v31, %v10725_v35  ;;  %v10748_v60 = vpop.f32.mrf.mxu1 }
 0x1e8   :  { %v10749_v15 = vadd.f32 %v10748_v60, %v10747_v59  ;;  %v10728_v23 = vpop.f32.mrf.mxu0 }
 0x1e9   :  { %v2598_v39 = vadd.f32 %v10727_v54, %v14465_v0  ;;  %v10750_v28 = vpop.f32.mrf.mxu1  ;;  %v9493_v0 = vld [vmem:[%s18008_s3 + $0x208] sm:$0xff] }
 0x1ea   :  { %v10729_v4 = vpop.f32.mrf.mxu0  ;;  %v9558_v53 = vcombine.low %v9493_v0, %v9497_v47  ;;  %v9559_v14 = vcombine.high %v9493_v0, %v9497_v47  ;;  %v9542_v0 = vld [vmem:[%s18008_s3 + $0x390] sm:$0xff] }
 0x1eb   :  { %v2638_v21 = vadd.f32 %v10749_v15, %v2598_v39  ;;  %v10751_v6 = vpop.f32.mrf.mxu1  ;;  %v9546_v47 = vld [vmem:[%s18008_s3 + $0x3b0] sm:$0xff] }
 0x1ec   :  { %3407 = vmatprep.subr.bf16.mxu1 %v9559_v14 }
 0x1ed   :  { %3408 = vmatpush1.bf16.msra.mxu1 %v9558_v53  ;;  %v9547_v53 = vld [vmem:[%s18008_s3 + $0x3b8] sm:$0xff] }
 0x1ee   :  { %3475 = vmatprep.subr.bf16.mxu1 %v9619_v1  ;;  %v9609_v1 = vcombine.high %v9542_v0, %v9546_v47 }
 0x204   :  { %v10769_v3 = vpop.f32.mrf.mxu0 }
 0x205   :  { %v10791_v29 = vpop.f32.mrf.mxu1 }
 0x206   :  { %v10770_v5 = vpop.f32.mrf.mxu0 }
 0x207   :  { %v10771_v7 = vadd.f32 %v10770_v5, %v10769_v3  ;;  %v10792_v45 = vpop.f32.mrf.mxu1  ;;  %v9611_v3 = vcombine.high %v9543_v49, %v9547_v53  ;;  %v9538_v5 = vld [vmem:[%s18008_s3 + $0x370] sm:$0xff] }
 0x208   :  { %v10793_v58 = vadd.f32 %v10792_v45, %v10791_v29  ;;  %v10772_v9 = vpop.f32.mrf.mxu0  ;;  %v9534_v29 = vld [vmem:[%s18008_s3 + $0x350] sm:$0xff]  ;;  %v9539_v45 = vld [vmem:[%s18008_s3 + $0x378] sm:$0xff] }
 0x209   :  { %v2678_v11 = vadd.f32 %v10771_v7, %v2638_v21  ;;  %v10794_v61 = vpop.f32.mrf.mxu1  ;;  %v9535_v7 = vld [vmem:[%s18008_s3 + $0x358] sm:$0xff]  ;;  %v9610_v9 = vcombine.low %v9543_v49, %v9547_v53  ;;  %v9600_v55 = vcombine.low %v9534_v29, %v9538_v5  ;;  %v2325_v53 = vld [vmem:[%s18008_s3 + $0x180] sm:$0xff] }
 0x20a   :  { %v10773_v13 = vpop.f32.mrf.mxu0  ;;  %v9603_v61 = vcombine.high %v9535_v7, %v9539_v45 }
 0x20b   :  { %v2718_v41 = vadd.f32 %v10793_v58, %v2678_v11  ;;  %v10795_v30 = vpop.f32.mrf.mxu1  ;;  %v9608_v58 = vcombine.low %v9542_v0, %v9546_v47  ;;  %v9601_v11 = vcombine.high %v9534_v29, %v9538_v5  ;;  %v9526_v13 = vld [vmem:[%s18008_s3 + $0x310] sm:$0xff] }
 0x20c   :  { %v9518_v30 = vld [vmem:[%s18008_s3 + $0x2d0] sm:$0xff] }
 0x224   :  { %v10813_v32 = vpop.f32.mrf.mxu0 }
 0x225   :  { %v10835_v34 = vpop.f32.mrf.mxu1 }
 0x226   :  { %v10814_v36 = vpop.f32.mrf.mxu0 }
 0x227   :  { %v10836_v38 = vpop.f32.mrf.mxu1  ;;  %v10815_v54 = vadd.f32 %v10814_v36, %v10813_v32  ;;  %v9522_v32 = vld [vmem:[%s18008_s3 + $0x2f0] sm:$0xff]  ;;  %v9523_v36 = vld [vmem:[%s18008_s3 + $0x2f8] sm:$0xff] }
 0x228   :  { %v10816_v40 = vpop.f32.mrf.mxu0  ;;  %v10837_v62 = vadd.f32 %v10836_v38, %v10835_v34  ;;  %v9519_v34 = vld [vmem:[%s18008_s3 + $0x2d8] sm:$0xff] }
 0x229   :  { %v10838_v44 = vpop.f32.mrf.mxu1  ;;  %v2758_v60 = vadd.f32 %v10815_v54, %v2718_v41  ;;  %v9530_v41 = vld [vmem:[%s18008_s3 + $0x330] sm:$0xff]  ;;  %v9594_v40 = vcombine.low %v9527_v16, %v9531_v18 }
 0x22a   :  { %v10817_v46 = vpop.f32.mrf.mxu0  ;;  %v9593_v24 = vcombine.high %v9526_v13, %v9530_v41  ;;  %v9592_v38 = vcombine.low %v9526_v13, %v9530_v41  ;;  %v9585_v44 = vcombine.high %v9518_v30, %v9522_v32  ;;  %v9506_v54 = vld [vmem:[%s18008_s3 + $0x270] sm:$0xff] }
 0x22b   :  { %v10839_v48 = vpop.f32.mrf.mxu1  ;;  %v2798_v27 = vadd.f32 %v10837_v62, %v2758_v60  ;;  %v9587_v46 = vcombine.high %v9519_v34, %v9523_v36  ;;  %v9503_v60 = vld [vmem:[%s18008_s3 + $0x258] sm:$0xff] }
 0x22c   :  { %v9510_v48 = vld [vmem:[%s18008_s3 + $0x290] sm:$0xff]  ;;  %v9507_v62 = vld [vmem:[%s18008_s3 + $0x278] sm:$0xff] }
 0x244   :  { %v10857_v35 = vpop.f32.mrf.mxu0 }
 0x245   :  { %v10879_v50 = vpop.f32.mrf.mxu1 }
 0x246   :  { %v10858_v52 = vpop.f32.mrf.mxu0 }
 0x247   :  { %v10880_v59 = vpop.f32.mrf.mxu1  ;;  %v10859_v57 = vadd.f32 %v10858_v52, %v10857_v35  ;;  %v9514_v35 = vld [vmem:[%s18008_s3 + $0x2b0] sm:$0xff]  ;;  %v9515_v52 = vld [vmem:[%s18008_s3 + $0x2b8] sm:$0xff] }
 0x248   :  { %v10860_v43 = vpop.f32.mrf.mxu0  ;;  %v10881_v23 = vadd.f32 %v10880_v59, %v10879_v50  ;;  %v9511_v50 = vld [vmem:[%s18008_s3 + $0x298] sm:$0xff]  ;;  %v9584_v59 = vcombine.low %v9518_v30, %v9522_v32 }
 0x249   :  { %v10882_v25 = vpop.f32.mrf.mxu1  ;;  %v2838_v15 = vadd.f32 %v10859_v57, %v2798_v27  ;;  %v9586_v43 = vcombine.low %v9519_v34, %v9523_v36  ;;  %v9576_v57 = vcombine.low %v9510_v48, %v9514_v35  ;;  %v9578_v27 = vcombine.low %v9511_v50, %v9515_v52  ;;  %v2301_v36 = vld [vmem:[%s18008_s3 + $0xc0] sm:$0xff] }
 0x24a   :  { %v10861_v19 = vpop.f32.mrf.mxu0  ;;  %v9577_v25 = vcombine.high %v9510_v48, %v9514_v35 }
 0x24b   :  { %v10883_v31 = vpop.f32.mrf.mxu1  ;;  %v2878_v28 = vadd.f32 %v10881_v23, %v2838_v15  ;;  %v9579_v19 = vcombine.high %v9511_v50, %v9515_v52  ;;  %v9571_v23 = vcombine.high %v9503_v60, %v9507_v62  ;;  %v2293_v52 = vld [vmem:[%s18008_s3 + $0x80] sm:$0xff] }
 0x24c   :  { %v9502_v31 = vld [vmem:[%s18008_s3 + $0x250] sm:$0xff] }
 0x24d   :  { %v9569_v15 = vcombine.high %v9502_v31, %v9506_v54 }
 0x264   :  { %v10901_v37 = vpop.f32.mrf.mxu0 }
 0x265   :  { %v2957_v17 = vpop.f32.mrf.mxu1 }
 0x266   :  { %v10902_v39 = vpop.f32.mrf.mxu0 }
 0x267   :  { %v10903_v2 = vadd.f32 %v10902_v39, %v10901_v37  ;;  %v11544_v56 = vpop.f32.mrf.mxu1  ;;  %v9494_v37 = vld [vmem:[%s18008_s3 + $0x210] sm:$0xff]  ;;  %v9495_v39 = vld [vmem:[%s18008_s3 + $0x218] sm:$0xff] }
 0x268   :  { %v10904_v33 = vpop.f32.mrf.mxu0  ;;  %v9570_v56 = vcombine.low %v9503_v60, %v9507_v62  ;;  %v2285_v62 = vld [vmem:[%s18008_s3 + $0x40] sm:$0xff] }
 0x269   :  { %v2918_v4 = vadd.f32 %v10903_v2, %v2878_v28  ;;  %v2960_v21 = vpop.f32.mrf.mxu1  ;;  %v9499_v28 = vld [vmem:[%s18008_s3 + $0x238] sm:$0xff]  ;;  %v9568_v2 = vcombine.low %v9502_v31, %v9506_v54 }
 0x26a   :  { %v10905_v6 = vpop.f32.mrf.mxu0  ;;  %v2333_v21 = vld [vmem:[%s18008_s3 + $0x1c0] sm:$0xff] }
 0x26b   :  { %v2958_v8 = vadd.f32 %v2957_v17, %v2918_v4  ;;  %v11545_v10 = vpop.f32.mrf.mxu1  ;;  %v9498_v17 = vld [vmem:[%s18008_s3 + $0x230] sm:$0xff]  ;;  %v9563_v4 = vcombine.high %v9495_v39, %v9499_v28  ;;  %v2337_v6 = vld [vmem:[%s18008_s3 + $0x1e0] sm:$0xff] }
 0x26c   :  { %v9561_v33 = vcombine.high %v9494_v37, %v9498_v17  ;;  %v2338_v10 = vld [vmem:[%s18008_s3 + $0x1e8] sm:$0xff]  ;;  %v9560_v0 = vcombine.low %v9494_v37, %v9498_v17  ;;  %v9677_v47 = vcombine.high %v2333_v21, %v2337_v6  ;;  %v9676_v29 = vcombine.low %v2333_v21, %v2337_v6 }
 0x26d   :  { %vm2963_vm1 = vcmp.gt.f32.partialorder %v2958_v8, 0.0  ;;  %v2964_v12 = vmul.f32 0.2, %v2958_v8 }
 0x26f   :  { %v2965_v14 = vsel %vm2963_vm1, %v2958_v8, %v2964_v12  ;;  %v2334_v8 = vld [vmem:[%s18008_s3 + $0x1c8] sm:$0xff]  ;;  %v9562_v12 = vcombine.low %v9495_v39, %v9499_v28  ;;  %v2277_v28 = vld [vmem:[%s18008_s3] sm:$0xff] }
 0x270   :  { %v14606_v22 = vpack.c.bf16 %v2965_v14, %v2965_v14  ;;  %v9679_v49 = vcombine.high %v2334_v8, %v2338_v10  ;;  %v2329_v14 = vld [vmem:[%s18008_s3 + $0x1a0] sm:$0xff]  ;;  %v9678_v5 = vcombine.low %v2334_v8, %v2338_v10  ;;  %v2335_v10 = vld [vmem:[%s18008_s3 + $0x1d0] sm:$0xff] }
 0x271   :  { %v9668_v13 = vcombine.low %v2325_v53, %v2329_v14 }
 0x272   :  { %3385 = vmatmul.mubr.bf16.vlgmr.msra.gmra.mxu0 %v14606_v22  ;;  %3426 = vmatmul.mubr.bf16.vlgmr.msra.gmra.mxu1 %v14606_v22 }
 0x273   :  { %3435 = vmatpush1.bf16.msra.mxu0 %v9616_v63  ;;  %3476 = vmatpush1.bf16.msra.mxu1 %v9618_v26  ;;  %v9602_v63 = vcombine.low %v9535_v7, %v9539_v45  ;;  %v9595_v26 = vcombine.high %v9527_v16, %v9531_v18  ;;  %v9669_v7 = vcombine.high %v2325_v53, %v2329_v14 }
 0x274   :  { %3436 = vmatprep.subr.bf16.mxu0 %v9609_v1  ;;  %3477 = vmatprep.subr.bf16.mxu1 %v9611_v3  ;;  %v2326_v1 = vld [vmem:[%s18008_s3 + $0x188] sm:$0xff] }
 0x275   :  { %3466 = vmatprep.mubr.bf16.mxu0 %v12950_v20  ;;  %3507 = vmatprep.mubr.bf16.mxu1 %v12950_v20  ;;  %v2330_v3 = vld [vmem:[%s18008_s3 + $0x1a8] sm:$0xff] }
 0x276   :  { %v9671_v45 = vcombine.high %v2326_v1, %v2330_v3  ;;  %v9670_v41 = vcombine.low %v2326_v1, %v2330_v3 }
 0x277   :  { %3437 = vmatpush1.bf16.msra.mxu0 %v9608_v58  ;;  %3478 = vmatpush1.bf16.msra.mxu1 %v9610_v9  ;;  %v2317_v58 = vld [vmem:[%s18008_s3 + $0x140] sm:$0xff] }
 0x278   :  { %3438 = vmatprep.subr.bf16.mxu0 %v9601_v11  ;;  %3479 = vmatprep.subr.bf16.mxu1 %v9603_v61  ;;  %v2321_v9 = vld [vmem:[%s18008_s3 + $0x160] sm:$0xff]  ;;  %v2318_v11 = vld [vmem:[%s18008_s3 + $0x148] sm:$0xff] }
 0x279   :  { %v2322_v61 = vld [vmem:[%s18008_s3 + $0x168] sm:$0xff]  ;;  %v9661_v16 = vcombine.high %v2317_v58, %v2321_v9 }
 0x27a   :  { %v9663_v18 = vcombine.high %v2318_v11, %v2322_v61  ;;  %v9662_v30 = vcombine.low %v2318_v11, %v2322_v61 }
 0x27b   :  { %3439 = vmatpush1.bf16.msra.mxu0 %v9600_v55  ;;  %3480 = vmatpush1.bf16.msra.mxu1 %v9602_v63  ;;  %v2309_v55 = vld [vmem:[%s18008_s3 + $0x100] sm:$0xff] }
 0x27c   :  { %3440 = vmatprep.subr.bf16.mxu0 %v9593_v24  ;;  %3481 = vmatprep.subr.bf16.mxu1 %v9595_v26  ;;  %v2313_v63 = vld [vmem:[%s18008_s3 + $0x120] sm:$0xff]  ;;  %v2314_v24 = vld [vmem:[%s18008_s3 + $0x128] sm:$0xff]  ;;  %v9660_v26 = vcombine.low %v2317_v58, %v2321_v9  ;;  %v2332_v58 = vld [vmem:[%s18008_s3 + $0x1b8] sm:$0xff] }
 0x27d   :  { %v9653_v32 = vcombine.high %v2309_v55, %v2313_v63 }
 0x27f   :  { %3441 = vmatpush1.bf16.msra.mxu0 %v9592_v38  ;;  %3482 = vmatpush1.bf16.msra.mxu1 %v9594_v40  ;;  %v2305_v38 = vld [vmem:[%s18008_s3 + $0xe0] sm:$0xff]  ;;  %v2302_v40 = vld [vmem:[%s18008_s3 + $0xc8] sm:$0xff] }
 0x280   :  { %3442 = vmatprep.subr.bf16.mxu0 %v9585_v44  ;;  %3483 = vmatprep.subr.bf16.mxu1 %v9587_v46  ;;  %v2306_v44 = vld [vmem:[%s18008_s3 + $0xe8] sm:$0xff]  ;;  %v9652_v46 = vcombine.low %v2309_v55, %v2313_v63  ;;  %v9645_v35 = vcombine.high %v2301_v36, %v2305_v38  ;;  %v2324_v55 = vld [vmem:[%s18008_s3 + $0x178] sm:$0xff] }
 0x281   :  { %v9647_v50 = vcombine.high %v2302_v40, %v2306_v44  ;;  %v9646_v31 = vcombine.low %v2302_v40, %v2306_v44 }
 0x283   :  { %3443 = vmatpush1.bf16.msra.mxu0 %v9584_v59  ;;  %3484 = vmatpush1.bf16.msra.mxu1 %v9586_v43  ;;  %v2297_v59 = vld [vmem:[%s18008_s3 + $0xa0] sm:$0xff]  ;;  %v2294_v43 = vld [vmem:[%s18008_s3 + $0x88] sm:$0xff] }
 0x284   :  { %3444 = vmatprep.subr.bf16.mxu0 %v9577_v25  ;;  %3485 = vmatprep.subr.bf16.mxu1 %v9579_v19  ;;  %v2298_v25 = vld [vmem:[%s18008_s3 + $0xa8] sm:$0xff]  ;;  %v9644_v19 = vcombine.low %v2301_v36, %v2305_v38  ;;  %v9637_v54 = vcombine.high %v2293_v52, %v2297_v59  ;;  %v2316_v36 = vld [vmem:[%s18008_s3 + $0x138] sm:$0xff] }
 0x285   :  { %v9639_v60 = vcombine.high %v2294_v43, %v2298_v25  ;;  %v9638_v37 = vcombine.low %v2294_v43, %v2298_v25 }
 0x287   :  { %3445 = vmatpush1.bf16.msra.mxu0 %v9576_v57  ;;  %3486 = vmatpush1.bf16.msra.mxu1 %v9578_v27  ;;  %v2289_v57 = vld [vmem:[%s18008_s3 + $0x60] sm:$0xff]  ;;  %v2286_v27 = vld [vmem:[%s18008_s3 + $0x48] sm:$0xff] }
 0x288   :  { %3446 = vmatprep.subr.bf16.mxu0 %v9569_v15  ;;  %3487 = vmatprep.subr.bf16.mxu1 %v9571_v23  ;;  %v2290_v15 = vld [vmem:[%s18008_s3 + $0x68] sm:$0xff]  ;;  %v9636_v23 = vcombine.low %v2293_v52, %v2297_v59  ;;  %v9629_v17 = vcombine.high %v2285_v62, %v2289_v57  ;;  %v2308_v52 = vld [vmem:[%s18008_s3 + $0xf8] sm:$0xff] }
 0x289   :  { %v9631_v39 = vcombine.high %v2286_v27, %v2290_v15  ;;  %v9630_v21 = vcombine.low %v2286_v27, %v2290_v15 }
 0x28b   :  { %3447 = vmatpush1.bf16.msra.mxu0 %v9568_v2  ;;  %3488 = vmatpush1.bf16.msra.mxu1 %v9570_v56  ;;  %v2281_v2 = vld [vmem:[%s18008_s3 + $0x20] sm:$0xff]  ;;  %v2278_v56 = vld [vmem:[%s18008_s3 + $0x8] sm:$0xff] }
 0x28c   :  { %3448 = vmatprep.subr.bf16.mxu0 %v9561_v33  ;;  %3489 = vmatprep.subr.bf16.mxu1 %v9563_v4  ;;  %v2282_v33 = vld [vmem:[%s18008_s3 + $0x28] sm:$0xff]  ;;  %v9628_v4 = vcombine.low %v2285_v62, %v2289_v57  ;;  %v9621_v6 = vcombine.high %v2277_v28, %v2281_v2  ;;  %v9620_v53 = vcombine.low %v2277_v28, %v2281_v2  ;;  %v2300_v62 = vld [vmem:[%s18008_s3 + $0xb8] sm:$0xff] }
 0x28d   :  { %v9623_v8 = vcombine.high %v2278_v56, %v2282_v33  ;;  %v9622_v14 = vcombine.low %v2278_v56, %v2282_v33  ;;  %v2292_v28 = vld [vmem:[%s18008_s3 + $0x78] sm:$0xff] }
 0x28f   :  { %3449 = vmatpush1.bf16.msra.mxu0 %v9560_v0  ;;  %3490 = vmatpush1.bf16.msra.mxu1 %v9562_v12  ;;  %v2274_v0 = vmul.f32 0.2, %v14462_v42  ;;  %v2339_v12 = vld [vmem:[%s18008_s3 + $0x1f0] sm:$0xff] }
 0x290   :  { %3836 = vmatprep.subr.bf16.mxu0 %v9677_v47  ;;  %3877 = vmatprep.subr.bf16.mxu1 %v9679_v49  ;;  %v2336_v47 = vld [vmem:[%s18008_s3 + $0x1d8] sm:$0xff]  ;;  %v9681_v1 = vcombine.high %v2335_v10, %v2339_v12  ;;  %v9680_v9 = vcombine.low %v2335_v10, %v2339_v12 }
 0x291   :  { %v2340_v49 = vld [vmem:[%s18008_s3 + $0x1f8] sm:$0xff] }
 0x292   :  { %3467 = vmatmul.mubr.bf16.vlgmr.msra.gmra.mxu0 %v14606_v22  ;;  %3508 = vmatmul.mubr.bf16.vlgmr.msra.gmra.mxu1 %v14606_v22  ;;  %v2310_v22 = vld [vmem:[%s18008_s3 + $0x108] sm:$0xff]  ;;  %v9683_v3 = vcombine.high %v2336_v47, %v2340_v49  ;;  %v9682_v11 = vcombine.low %v2336_v47, %v2340_v49  ;;  %v2284_v10 = vld [vmem:[%s18008_s3 + $0x38] sm:$0xff] }
 0x293   :  { %3837 = vmatpush1.bf16.msra.mxu0 %v9676_v29  ;;  %3878 = vmatpush1.bf16.msra.mxu1 %v9678_v5  ;;  %v9655_v34 = vcombine.high %v2310_v22, %v2314_v24  ;;  %v9654_v48 = vcombine.low %v2310_v22, %v2314_v24  ;;  %v2327_v29 = vld [vmem:[%s18008_s3 + $0x190] sm:$0xff]  ;;  %v2275_v5 = vsel %vm2273_vm2, %v14462_v42, %v2274_v0 }
 0x294   :  { %3838 = vmatprep.subr.bf16.mxu0 %v9669_v7  ;;  %3879 = vmatprep.subr.bf16.mxu1 %v9671_v45  ;;  %v2331_v7 = vld [vmem:[%s18008_s3 + $0x1b0] sm:$0xff]  ;;  %v2328_v45 = vld [vmem:[%s18008_s3 + $0x198] sm:$0xff]  ;;  %v14817_v61 = vpack.c.bf16 %v2275_v5, %v2275_v5 }
 0x295   :  { %3868 = vmatprep.mubr.bf16.mxu0 %v12950_v20  ;;  %3909 = vmatprep.mubr.bf16.mxu1 %v12950_v20  ;;  %v9673_v42 = vcombine.high %v2327_v29, %v2331_v7  ;;  %v9672_v63 = vcombine.low %v2327_v29, %v2331_v7  ;;  %v9674_v22 = vcombine.low %v2328_v45, %v2332_v58  ;;  %v12546_v29 = vld [vmem:[%s18005_s1 + $0x78] sm:$0xff]  }
 0x296   :  { %v12547_v5 = vld [vmem:[%s18005_s1 + $0xf8] sm:$0xff]  }
 0x297   :  { %3839 = vmatpush1.bf16.msra.mxu0 %v9668_v13  ;;  %3880 = vmatpush1.bf16.msra.mxu1 %v9670_v41  ;;  %v9675_v13 = vcombine.high %v2328_v45, %v2332_v58  ;;  %v2319_v41 = vld [vmem:[%s18008_s3 + $0x150] sm:$0xff]  ;;  %v12548_v58 = vld [vmem:[%s18005_s1 + $0x38] sm:$0xff]  }
 0x298   :  { %3840 = vmatprep.subr.bf16.mxu0 %v9661_v16  ;;  %3881 = vmatprep.subr.bf16.mxu1 %v9663_v18  ;;  %v2323_v16 = vld [vmem:[%s18008_s3 + $0x170] sm:$0xff]  ;;  %v2320_v18 = vld [vmem:[%s18008_s3 + $0x158] sm:$0xff] }
 0x299   :  { %v9665_v24 = vcombine.high %v2319_v41, %v2323_v16  ;;  %v9664_v38 = vcombine.low %v2319_v41, %v2323_v16  ;;  %v9666_v40 = vcombine.low %v2320_v18, %v2324_v55  ;;  %v12554_v41 = vld [vmem:[%s18005_s1 + $0x68] sm:$0xff]  }
 0x29a   :  { %v12555_v16 = vld [vmem:[%s18005_s1 + $0xe8] sm:$0xff]  }
 0x29b   :  { %3841 = vmatpush1.bf16.msra.mxu0 %v9660_v26  ;;  %3882 = vmatpush1.bf16.msra.mxu1 %v9662_v30  ;;  %v9667_v26 = vcombine.high %v2320_v18, %v2324_v55  ;;  %v2311_v30 = vld [vmem:[%s18008_s3 + $0x110] sm:$0xff]  ;;  %v12556_v18 = vld [vmem:[%s18005_s1 + $0x28] sm:$0xff]  }
 0x29c   :  { %3842 = vmatprep.subr.bf16.mxu0 %v9653_v32  ;;  %3883 = vmatprep.subr.bf16.mxu1 %v9655_v34  ;;  %v2315_v32 = vld [vmem:[%s18008_s3 + $0x130] sm:$0xff]  ;;  %v2312_v34 = vld [vmem:[%s18008_s3 + $0x118] sm:$0xff]  ;;  %v12557_v55 = vld [vmem:[%s18005_s1 + $0xa8] sm:$0xff]  }
 0x29d   :  { %v9657_v44 = vcombine.high %v2311_v30, %v2315_v32  ;;  %v9656_v59 = vcombine.low %v2311_v30, %v2315_v32  ;;  %v9658_v43 = vcombine.low %v2312_v34, %v2316_v36  ;;  %v12562_v30 = vld [vmem:[%s18005_s1 + $0x58] sm:$0xff]  }
 0x29e   :  { %v12563_v32 = vld [vmem:[%s18005_s1 + $0xd8] sm:$0xff]  }
 0x29f   :  { %3843 = vmatpush1.bf16.msra.mxu0 %v9652_v46  ;;  %3884 = vmatpush1.bf16.msra.mxu1 %v9654_v48  ;;  %v9659_v46 = vcombine.high %v2312_v34, %v2316_v36  ;;  %v2303_v48 = vld [vmem:[%s18008_s3 + $0xd0] sm:$0xff]  ;;  %v12564_v34 = vld [vmem:[%s18005_s1 + $0x18] sm:$0xff]  }
 0x2a0   :  { %3844 = vmatprep.subr.bf16.mxu0 %v9645_v35  ;;  %3885 = vmatprep.subr.bf16.mxu1 %v9647_v50  ;;  %v2307_v35 = vld [vmem:[%s18008_s3 + $0xf0] sm:$0xff]  ;;  %v2304_v50 = vld [vmem:[%s18008_s3 + $0xd8] sm:$0xff] }
 0x2a1   :  { %v9649_v25 = vcombine.high %v2303_v48, %v2307_v35  ;;  %v9648_v57 = vcombine.low %v2303_v48, %v2307_v35  ;;  %v9650_v27 = vcombine.low %v2304_v50, %v2308_v52  ;;  %v12565_v36 = vld [vmem:[%s18005_s1 + $0x98] sm:$0xff]   ;;  %v12570_v48 = vld [vmem:[%s18005_s1 + $0x48] sm:$0xff]  }
 0x2a2   :  { %v12571_v35 = vld [vmem:[%s18005_s1 + $0xc8] sm:$0xff]  }
 0x2a3   :  { %3845 = vmatpush1.bf16.msra.mxu0 %v9644_v19  ;;  %3886 = vmatpush1.bf16.msra.mxu1 %v9646_v31  ;;  %v9651_v19 = vcombine.high %v2304_v50, %v2308_v52  ;;  %v2295_v31 = vld [vmem:[%s18008_s3 + $0x90] sm:$0xff]  ;;  %v12572_v50 = vld [vmem:[%s18005_s1 + $0x8] sm:$0xff]  }
 0x2a4   :  { %3846 = vmatprep.subr.bf16.mxu0 %v9637_v54  ;;  %3887 = vmatprep.subr.bf16.mxu1 %v9639_v60  ;;  %v2299_v54 = vld [vmem:[%s18008_s3 + $0xb0] sm:$0xff]  ;;  %v2296_v60 = vld [vmem:[%s18008_s3 + $0x98] sm:$0xff]  ;;  %v12573_v52 = vld [vmem:[%s18005_s1 + $0x88] sm:$0xff]  }
 0x2a5   :  { %v9641_v15 = vcombine.high %v2295_v31, %v2299_v54  ;;  %v9640_v2 = vcombine.low %v2295_v31, %v2299_v54  ;;  %v9642_v56 = vcombine.low %v2296_v60, %v2300_v62  ;;  %v15008_v31 = vld [vmem:[%s18006_s0 + $0xd8] sm:$0xff]  ;;  %v15013_v54 = vld [vmem:[%s18006_s0 + $0xe0] sm:$0xff] }
 0x2a7   :  { %3847 = vmatpush1.bf16.msra.mxu0 %v9636_v23  ;;  %3888 = vmatpush1.bf16.msra.mxu1 %v9638_v37  ;;  %v9643_v23 = vcombine.high %v2296_v60, %v2300_v62  ;;  %v2287_v37 = vld [vmem:[%s18008_s3 + $0x50] sm:$0xff]  ;;  %v12576_v60 = vld [vmem:[%s18005_s1] sm:$0xff]  }
 0x2a8   :  { %3848 = vmatprep.subr.bf16.mxu0 %v9629_v17  ;;  %3889 = vmatprep.subr.bf16.mxu1 %v9631_v39  ;;  %v2291_v17 = vld [vmem:[%s18008_s3 + $0x70] sm:$0xff]  ;;  %v2288_v39 = vld [vmem:[%s18008_s3 + $0x58] sm:$0xff]  ;;  %v12577_v62 = vld [vmem:[%s18005_s1 + $0x80] sm:$0xff]  }
 0x2a9   :  { %v9633_v33 = vcombine.high %v2287_v37, %v2291_v17  ;;  %v9632_v0 = vcombine.low %v2287_v37, %v2291_v17  ;;  %v9634_v12 = vcombine.low %v2288_v39, %v2292_v28  ;;  %v12580_v37 = vld [vmem:[%s18005_s1 + $0x138] sm:$0xff]  }
 0x2aa   :  { %v12581_v17 = vld [vmem:[%s18005_s1 + $0x1b8] sm:$0xff]  }
 0x2ab   :  { %3849 = vmatpush1.bf16.msra.mxu0 %v9628_v4  ;;  %3890 = vmatpush1.bf16.msra.mxu1 %v9630_v21  ;;  %v9635_v4 = vcombine.high %v2288_v39, %v2292_v28  ;;  %v2279_v21 = vld [vmem:[%s18008_s3 + $0x10] sm:$0xff] }
 0x2ac   :  { %3850 = vmatprep.subr.bf16.mxu0 %v9621_v6  ;;  %3891 = vmatprep.subr.bf16.mxu1 %v9623_v8  ;;  %v2283_v6 = vld [vmem:[%s18008_s3 + $0x30] sm:$0xff]  ;;  %v2280_v8 = vld [vmem:[%s18008_s3 + $0x18] sm:$0xff] }
 0x2ad   :  { %v9625_v47 = vcombine.high %v2279_v21, %v2283_v6  ;;  %v9627_v49 = vcombine.high %v2280_v8, %v2284_v10  ;;  %v12582_v39 = vld [vmem:[%s18005_s1 + $0x170] sm:$0xff]  }
 0x2ae   :  { %v12583_v28 = vld [vmem:[%s18005_s1 + $0x1f0] sm:$0xff]  }
 0x2af   :  { %3851 = vmatpush1.bf16.msra.mxu0 %v9620_v53  ;;  %3892 = vmatpush1.bf16.msra.mxu1 %v9622_v14  ;;  %v9624_v53 = vcombine.low %v2279_v21, %v2283_v6  ;;  %v9626_v14 = vcombine.low %v2280_v8, %v2284_v10  ;;  %v12588_v21 = vld [vmem:[%s18005_s1 + $0x128] sm:$0xff]   ;;  %v12590_v8 = vld [vmem:[%s18005_s1 + $0x160] sm:$0xff]  }
 0x2b0   :  { %3918 = vmatprep.subr.bf16.mxu0 %v9681_v1  ;;  %3959 = vmatprep.subr.bf16.mxu1 %v9683_v3  ;;  %v14898_v1 = vld [vmem:[%s18006_s0 + $0xc8] sm:$0xff]  ;;  %v14903_v3 = vld [vmem:[%s18006_s0 + $0xd0] sm:$0xff]  ;;  %v12591_v10 = vld [vmem:[%s18005_s1 + $0x1e0] sm:$0xff]  }
 0x2b1   :  { %v9698_v7 = vcombine.high %v14898_v1, %v14898_v1  ;;  %v9700_v45 = vcombine.high %v14903_v3, %v14903_v3  ;;  %v12589_v6 = vld [vmem:[%s18005_s1 + $0x1a8] sm:$0xff]  }
 0x2b2   :  { %3869 = vmatmul.mubr.bf16.vlgmr.msra.gmra.mxu0 %v14817_v61  ;;  %3910 = vmatmul.mubr.bf16.vlgmr.msra.gmra.mxu1 %v14817_v61 }
 0x2b3   :  { %3919 = vmatpush1.bf16.msra.mxu0 %v9680_v9  ;;  %3960 = vmatpush1.bf16.msra.mxu1 %v9682_v11  ;;  %v12549_v9 = vld [vmem:[%s18005_s1 + $0xb8] sm:$0xff]   ;;  %v12550_v11 = vld [vmem:[%s18005_s1 + $0x70] sm:$0xff]  }
 0x2b4   :  { %3920 = vmatprep.subr.bf16.mxu0 %v9673_v42  ;;  %3961 = vmatprep.subr.bf16.mxu1 %v9675_v13  ;;  %v12551_v42 = vld [vmem:[%s18005_s1 + $0xf0] sm:$0xff]  }
 0x2b5   :  { %3950 = vmatprep.mubr.bf16.mxu0 %v12950_v20  ;;  %3991 = vmatprep.mubr.bf16.mxu1 %v12950_v20  ;;  %v12553_v13 = vld [vmem:[%s18005_s1 + $0xb0] sm:$0xff]  }
 0x2b7   :  { %3921 = vmatpush1.bf16.msra.mxu0 %v9672_v63  ;;  %3962 = vmatpush1.bf16.msra.mxu1 %v9674_v22  ;;  %v12558_v63 = vld [vmem:[%s18005_s1 + $0x60] sm:$0xff]  }
 0x2b8   :  { %3922 = vmatprep.subr.bf16.mxu0 %v9665_v24  ;;  %3963 = vmatprep.subr.bf16.mxu1 %v9667_v26  ;;  %v12559_v22 = vld [vmem:[%s18005_s1 + $0xe0] sm:$0xff]  }
 0x2b9   :  { %v12560_v24 = vld [vmem:[%s18005_s1 + $0x20] sm:$0xff]  }
 0x2ba   :  { %v12561_v26 = vld [vmem:[%s18005_s1 + $0xa0] sm:$0xff]  }
 0x2bb   :  { %3923 = vmatpush1.bf16.msra.mxu0 %v9664_v38  ;;  %3964 = vmatpush1.bf16.msra.mxu1 %v9666_v40  ;;  %v12566_v38 = vld [vmem:[%s18005_s1 + $0x50] sm:$0xff]  }
 0x2bc   :  { %3924 = vmatprep.subr.bf16.mxu0 %v9657_v44  ;;  %3965 = vmatprep.subr.bf16.mxu1 %v9659_v46  ;;  %v12567_v40 = vld [vmem:[%s18005_s1 + $0xd0] sm:$0xff]  }
 0x2bd   :  { %v12568_v44 = vld [vmem:[%s18005_s1 + $0x10] sm:$0xff]  }
 0x2be   :  { %v12569_v46 = vld [vmem:[%s18005_s1 + $0x90] sm:$0xff]  }
 0x2bf   :  { %3925 = vmatpush1.bf16.msra.mxu0 %v9656_v59  ;;  %3966 = vmatpush1.bf16.msra.mxu1 %v9658_v43  ;;  %v12574_v59 = vld [vmem:[%s18005_s1 + $0x40] sm:$0xff]  }
 0x2c0   :  { %3926 = vmatprep.subr.bf16.mxu0 %v9649_v25  ;;  %3967 = vmatprep.subr.bf16.mxu1 %v9651_v19  ;;  %v12575_v43 = vld [vmem:[%s18005_s1 + $0xc0] sm:$0xff]   ;;  %v9697_v25 = vcombine.low %v14898_v1, %v14898_v1  ;;  %v9699_v19 = vcombine.low %v14903_v3, %v14903_v3  ;;  %v12598_v1 = vld [vmem:[%s18005_s1 + $0x150] sm:$0xff]  }
 0x2c1   :  { %v12599_v3 = vld [vmem:[%s18005_s1 + $0x1d0] sm:$0xff]  }
 0x2c3   :  { %3927 = vmatpush1.bf16.msra.mxu0 %v9648_v57  ;;  %3968 = vmatpush1.bf16.msra.mxu1 %v9650_v27  ;;  %v12578_v57 = vld [vmem:[%s18005_s1 + $0x178] sm:$0xff]  }
 0x2c4   :  { %3928 = vmatprep.subr.bf16.mxu0 %v9641_v15  ;;  %3969 = vmatprep.subr.bf16.mxu1 %v9643_v23  ;;  %v12579_v27 = vld [vmem:[%s18005_s1 + $0x1f8] sm:$0xff]   ;;  %v9702_v15 = vcombine.high %v15008_v31, %v15008_v31  ;;  %v9704_v23 = vcombine.high %v15013_v54, %v15013_v54 }
 0x2c7   :  { %3929 = vmatpush1.bf16.msra.mxu0 %v9640_v2  ;;  %3970 = vmatpush1.bf16.msra.mxu1 %v9642_v56  ;;  %v12584_v2 = vld [vmem:[%s18005_s1 + $0x130] sm:$0xff]  }
 0x2c8   :  { %3930 = vmatprep.subr.bf16.mxu0 %v9633_v33  ;;  %3971 = vmatprep.subr.bf16.mxu1 %v9635_v4  ;;  %v12585_v56 = vld [vmem:[%s18005_s1 + $0x1b0] sm:$0xff]   ;;  %v12586_v33 = vld [vmem:[%s18005_s1 + $0x168] sm:$0xff]  }
 0x2c9   :  { %v12587_v4 = vld [vmem:[%s18005_s1 + $0x1e8] sm:$0xff]  }
 0x2cb   :  { %3931 = vmatpush1.bf16.msra.mxu0 %v9632_v0  ;;  %3972 = vmatpush1.bf16.msra.mxu1 %v9634_v12  ;;  %v12592_v0 = vld [vmem:[%s18005_s1 + $0x120] sm:$0xff]  }
 0x2cc   :  { %3932 = vmatprep.subr.bf16.mxu0 %v9625_v47  ;;  %3973 = vmatprep.subr.bf16.mxu1 %v9627_v49  ;;  %v12593_v12 = vld [vmem:[%s18005_s1 + $0x1a0] sm:$0xff]   ;;  %v12594_v47 = vld [vmem:[%s18005_s1 + $0x158] sm:$0xff]  }
 0x2cd   :  { %v12595_v49 = vld [vmem:[%s18005_s1 + $0x1d8] sm:$0xff]  }
 0x2cf   :  { %3933 = vmatpush1.bf16.msra.mxu0 %v9624_v53  ;;  %3974 = vmatpush1.bf16.msra.mxu1 %v9626_v14  ;;  %v12596_v53 = vld [vmem:[%s18005_s1 + $0x118] sm:$0xff]  }
 0x2d0   :  { %10916 = vmatprep.subr.bf16.mxu0 %v12546_v29  ;;  %10938 = vmatprep.subr.bf16.mxu1 %v12547_v5  ;;  %v12597_v14 = vld [vmem:[%s18005_s1 + $0x198] sm:$0xff]   ;;  %v12600_v29 = vld [vmem:[%s18005_s1 + $0x110] sm:$0xff]  }
 0x2d1   :  { %v12601_v5 = vld [vmem:[%s18005_s1 + $0x190] sm:$0xff]  }
 0x2d2   :  { %3951 = vmatmul.mubr.bf16.vlgmr.msra.gmra.mxu0 %v14817_v61  ;;  %3992 = vmatmul.mubr.bf16.vlgmr.msra.gmra.mxu1 %v14817_v61  ;;  %v12552_v61 = vld [vmem:[%s18005_s1 + $0x30] sm:$0xff]  }
 0x2d3   :  { %10917 = vmatpush3.bf16.msra.mxu0 %v12548_v58  ;;  %10939 = vmatpush3.bf16.msra.mxu1 %v12549_v9  ;;  %v12604_v58 = vld [vmem:[%s18005_s1 + $0x108] sm:$0xff]  }
 0x2d4   :  { %10918 = vmatprep.subr.bf16.mxu0 %v12550_v11  ;;  %10940 = vmatprep.subr.bf16.mxu1 %v12551_v42  ;;  %v12605_v9 = vld [vmem:[%s18005_s1 + $0x188] sm:$0xff]   ;;  %v12606_v11 = vld [vmem:[%s18005_s1 + $0x140] sm:$0xff]  }
 0x2d5   :  { %4134 = vmatprep.mubr.bf16.mxu0 %v9698_v7  ;;  %4174 = vmatprep.mubr.bf16.mxu1 %v9700_v45  ;;  %v12602_v7 = vld [vmem:[%s18005_s1 + $0x148] sm:$0xff]   ;;  %v12607_v42 = vld [vmem:[%s18005_s1 + $0x1c0] sm:$0xff]  }
 0x2d6   :  { %v12603_v45 = vld [vmem:[%s18005_s1 + $0x1c8] sm:$0xff]  }
 0x2d7   :  { %10919 = vmatpush3.bf16.msra.mxu0 %v12552_v61  ;;  %10941 = vmatpush3.bf16.msra.mxu1 %v12553_v13  ;;  %v9701_v61 = vcombine.low %v15008_v31, %v15008_v31  ;;  %v9703_v13 = vcombine.low %v15013_v54, %v15013_v54  ;;  %v12628_v31 = vld [vmem:[%s18005_s1 + $0x218] sm:$0xff]  }
 0x2d8   :  { %10920 = vmatprep.subr.bf16.mxu0 %v12554_v41  ;;  %10942 = vmatprep.subr.bf16.mxu1 %v12555_v16  ;;  %v15122_v41 = vld [vmem:[%s18006_s0 + $0xe8] sm:$0xff]  ;;  %v15127_v16 = vld [vmem:[%s18006_s0 + $0xf0] sm:$0xff]  ;;  %v12629_v54 = vld [vmem:[%s18005_s1 + $0x298] sm:$0xff]  }
 0x2db   :  { %10921 = vmatpush3.bf16.msra.mxu0 %v12556_v18  ;;  %10943 = vmatpush3.bf16.msra.mxu1 %v12557_v55  ;;  %v12608_v18 = vld [vmem:[%s18005_s1 + $0x100] sm:$0xff]  }
 0x2dc   :  { %10922 = vmatprep.subr.bf16.mxu0 %v12558_v63  ;;  %10944 = vmatprep.subr.bf16.mxu1 %v12559_v22  ;;  %v12609_v55 = vld [vmem:[%s18005_s1 + $0x180] sm:$0xff]   ;;  %v12610_v63 = vld [vmem:[%s18005_s1 + $0x278] sm:$0xff]  }
 0x2dd   :  { %v12611_v22 = vld [vmem:[%s18005_s1 + $0x2f8] sm:$0xff]  }
 0x2df   :  { %10923 = vmatpush3.bf16.msra.mxu0 %v12560_v24  ;;  %10945 = vmatpush3.bf16.msra.mxu1 %v12561_v26  ;;  %v9706_v24 = vcombine.high %v15122_v41, %v15122_v41  ;;  %v9708_v26 = vcombine.high %v15127_v16, %v15127_v16 }
 0x2e0   :  { %10924 = vmatprep.subr.bf16.mxu0 %v12562_v30  ;;  %10946 = vmatprep.subr.bf16.mxu1 %v12563_v32  ;;  %v12612_v30 = vld [vmem:[%s18005_s1 + $0x238] sm:$0xff]  }
 0x2e1   :  { %v12613_v32 = vld [vmem:[%s18005_s1 + $0x2b8] sm:$0xff]  }
 0x2e3   :  { %10925 = vmatpush3.bf16.msra.mxu0 %v12564_v34  ;;  %10947 = vmatpush3.bf16.msra.mxu1 %v12565_v36  ;;  %v12614_v34 = vld [vmem:[%s18005_s1 + $0x270] sm:$0xff]  }
 0x2e4   :  { %10926 = vmatprep.subr.bf16.mxu0 %v12566_v38  ;;  %10948 = vmatprep.subr.bf16.mxu1 %v12567_v40  ;;  %v12615_v36 = vld [vmem:[%s18005_s1 + $0x2f0] sm:$0xff]  }
 0x2e5   :  { %v12616_v38 = vld [vmem:[%s18005_s1 + $0x230] sm:$0xff]  }
 0x2e6   :  { %v12617_v40 = vld [vmem:[%s18005_s1 + $0x2b0] sm:$0xff]  }
 0x2e7   :  { %10927 = vmatpush3.bf16.msra.mxu0 %v12568_v44  ;;  %10949 = vmatpush3.bf16.msra.mxu1 %v12569_v46  ;;  %v12618_v44 = vld [vmem:[%s18005_s1 + $0x268] sm:$0xff]  }
 0x2e8   :  { %10928 = vmatprep.subr.bf16.mxu0 %v12570_v48  ;;  %10950 = vmatprep.subr.bf16.mxu1 %v12571_v35  ;;  %v12619_v46 = vld [vmem:[%s18005_s1 + $0x2e8] sm:$0xff]  }
 0x2e9   :  { %v12620_v48 = vld [vmem:[%s18005_s1 + $0x228] sm:$0xff]  }
 0x2ea   :  { %v12621_v35 = vld [vmem:[%s18005_s1 + $0x2a8] sm:$0xff]  }
 0x2eb   :  { %10929 = vmatpush3.bf16.msra.mxu0 %v12572_v50  ;;  %10951 = vmatpush3.bf16.msra.mxu1 %v12573_v52  ;;  %v12622_v50 = vld [vmem:[%s18005_s1 + $0x260] sm:$0xff]  }
 0x2ec   :  { %10930 = vmatprep.subr.bf16.mxu0 %v12574_v59  ;;  %10952 = vmatprep.subr.bf16.mxu1 %v12575_v43  ;;  %v12623_v52 = vld [vmem:[%s18005_s1 + $0x2e0] sm:$0xff]  }
 0x2ed   :  { %v12624_v59 = vld [vmem:[%s18005_s1 + $0x220] sm:$0xff]  }
 0x2ee   :  { %v12625_v43 = vld [vmem:[%s18005_s1 + $0x2a0] sm:$0xff]  }
 0x2ef   :  { %10931 = vmatpush3.bf16.msra.mxu0 %v12576_v60  ;;  %10953 = vmatpush3.bf16.msra.mxu1 %v12577_v62  ;;  %v12630_v60 = vld [vmem:[%s18005_s1 + $0x250] sm:$0xff]  }
 0x2f0   :  { %10960 = vmatprep.subr.bf16.mxu0 %v12578_v57  ;;  %10982 = vmatprep.subr.bf16.mxu1 %v12579_v27  ;;  %v12631_v62 = vld [vmem:[%s18005_s1 + $0x2d0] sm:$0xff]  }
 0x2f1   :  { %v12632_v57 = vld [vmem:[%s18005_s1 + $0x210] sm:$0xff]  }
 0x2f2   :  { %4135 = vmatmul.mubr.bf16.vlgmr.msra.gmra.mxu0 %v9697_v25  ;;  %4175 = vmatmul.mubr.bf16.vlgmr.msra.gmra.mxu1 %v9699_v19  ;;  %v12626_v25 = vld [vmem:[%s18005_s1 + $0x258] sm:$0xff]   ;;  %v12633_v27 = vld [vmem:[%s18005_s1 + $0x290] sm:$0xff]  }
 0x2f3   :  { %10961 = vmatpush3.bf16.msra.mxu0 %v12580_v37  ;;  %10983 = vmatpush3.bf16.msra.mxu1 %v12581_v17  ;;  %v12627_v19 = vld [vmem:[%s18005_s1 + $0x2d8] sm:$0xff]   ;;  %v12636_v37 = vld [vmem:[%s18005_s1 + $0x208] sm:$0xff]  }
 0x2f4   :  { %10962 = vmatprep.subr.bf16.mxu0 %v12582_v39  ;;  %10984 = vmatprep.subr.bf16.mxu1 %v12583_v28  ;;  %v12637_v17 = vld [vmem:[%s18005_s1 + $0x288] sm:$0xff]   ;;  %v12638_v39 = vld [vmem:[%s18005_s1 + $0x240] sm:$0xff]  }
 0x2f5   :  { %4214 = vmatprep.mubr.bf16.mxu0 %v9702_v15  ;;  %4254 = vmatprep.mubr.bf16.mxu1 %v9704_v23  ;;  %v12634_v15 = vld [vmem:[%s18005_s1 + $0x248] sm:$0xff]   ;;  %v12639_v28 = vld [vmem:[%s18005_s1 + $0x2c0] sm:$0xff]  }
 0x2f6   :  { %v12635_v23 = vld [vmem:[%s18005_s1 + $0x2c8] sm:$0xff]  }
 0x2f7   :  { %10963 = vmatpush3.bf16.msra.mxu0 %v12584_v2  ;;  %10985 = vmatpush3.bf16.msra.mxu1 %v12585_v56  ;;  %v9705_v2 = vcombine.low %v15122_v41, %v15122_v41  ;;  %v9707_v56 = vcombine.low %v15127_v16, %v15127_v16  ;;  %v12652_v41 = vld [vmem:[%s18005_s1 + $0x328] sm:$0xff]  }
 0x2f8   :  { %10964 = vmatprep.subr.bf16.mxu0 %v12586_v33  ;;  %10986 = vmatprep.subr.bf16.mxu1 %v12587_v4  ;;  %v15236_v33 = vld [vmem:[%s18006_s0 + $0xf8] sm:$0xff]  ;;  %v15241_v4 = vld [vmem:[%s18006_s0 + $0x100] sm:$0xff]  ;;  %v12653_v16 = vld [vmem:[%s18005_s1 + $0x3a8] sm:$0xff]  }
 0x2fb   :  { %10965 = vmatpush3.bf16.msra.mxu0 %v12588_v21  ;;  %10987 = vmatpush3.bf16.msra.mxu1 %v12589_v6  ;;  %v12640_v21 = vld [vmem:[%s18005_s1 + $0x200] sm:$0xff]  }
 0x2fc   :  { %10966 = vmatprep.subr.bf16.mxu0 %v12590_v8  ;;  %10988 = vmatprep.subr.bf16.mxu1 %v12591_v10  ;;  %v12641_v6 = vld [vmem:[%s18005_s1 + $0x280] sm:$0xff]   ;;  %v12642_v8 = vld [vmem:[%s18005_s1 + $0x378] sm:$0xff]  }
 0x2fd   :  { %v12643_v10 = vld [vmem:[%s18005_s1 + $0x3f8] sm:$0xff]  }
 0x2ff   :  { %10967 = vmatpush3.bf16.msra.mxu0 %v12592_v0  ;;  %10989 = vmatpush3.bf16.msra.mxu1 %v12593_v12  ;;  %v9710_v0 = vcombine.high %v15236_v33, %v15236_v33  ;;  %v9712_v12 = vcombine.high %v15241_v4, %v15241_v4 }
 0x300   :  { %10968 = vmatprep.subr.bf16.mxu0 %v12594_v47  ;;  %10990 = vmatprep.subr.bf16.mxu1 %v12595_v49 }
 0x303   :  { %10969 = vmatpush3.bf16.msra.mxu0 %v12596_v53  ;;  %10991 = vmatpush3.bf16.msra.mxu1 %v12597_v14  ;;  %v12644_v53 = vld [vmem:[%s18005_s1 + $0x338] sm:$0xff]  }
 0x304   :  { %10970 = vmatprep.subr.bf16.mxu0 %v12598_v1  ;;  %10992 = vmatprep.subr.bf16.mxu1 %v12599_v3  ;;  %v12645_v14 = vld [vmem:[%s18005_s1 + $0x3b8] sm:$0xff]  }
 0x307   :  { %10971 = vmatpush3.bf16.msra.mxu0 %v12600_v29  ;;  %10993 = vmatpush3.bf16.msra.mxu1 %v12601_v5  ;;  %v12646_v29 = vld [vmem:[%s18005_s1 + $0x370] sm:$0xff]  }
 0x308   :  { %10972 = vmatprep.subr.bf16.mxu0 %v12602_v7  ;;  %10994 = vmatprep.subr.bf16.mxu1 %v12603_v45  ;;  %v12647_v5 = vld [vmem:[%s18005_s1 + $0x3f0] sm:$0xff]  }
 0x30b   :  { %10973 = vmatpush3.bf16.msra.mxu0 %v12604_v58  ;;  %10995 = vmatpush3.bf16.msra.mxu1 %v12605_v9  ;;  %v12648_v58 = vld [vmem:[%s18005_s1 + $0x330] sm:$0xff]  }
 0x30c   :  { %10974 = vmatprep.subr.bf16.mxu0 %v12606_v11  ;;  %10996 = vmatprep.subr.bf16.mxu1 %v12607_v42  ;;  %v12649_v9 = vld [vmem:[%s18005_s1 + $0x3b0] sm:$0xff]  }
 0x30f   :  { %10975 = vmatpush3.bf16.msra.mxu0 %v12608_v18  ;;  %10997 = vmatpush3.bf16.msra.mxu1 %v12609_v55  ;;  %v12654_v18 = vld [vmem:[%s18005_s1 + $0x360] sm:$0xff]  }
 0x310   :  { %11004 = vmatprep.subr.bf16.mxu0 %v12610_v63  ;;  %11026 = vmatprep.subr.bf16.mxu1 %v12611_v22  ;;  %v12655_v55 = vld [vmem:[%s18005_s1 + $0x3e0] sm:$0xff]  }
 0x311   :  { %v12656_v63 = vld [vmem:[%s18005_s1 + $0x320] sm:$0xff]  }
 0x312   :  { %4215 = vmatmul.mubr.bf16.vlgmr.msra.gmra.mxu0 %v9701_v61  ;;  %4255 = vmatmul.mubr.bf16.vlgmr.msra.gmra.mxu1 %v9703_v13  ;;  %v12650_v61 = vld [vmem:[%s18005_s1 + $0x368] sm:$0xff]   ;;  %v12657_v22 = vld [vmem:[%s18005_s1 + $0x3a0] sm:$0xff]  }
 0x313   :  { %11005 = vmatpush3.bf16.msra.mxu0 %v12612_v30  ;;  %11027 = vmatpush3.bf16.msra.mxu1 %v12613_v32  ;;  %v12651_v13 = vld [vmem:[%s18005_s1 + $0x3e8] sm:$0xff]   ;;  %v12660_v30 = vld [vmem:[%s18005_s1 + $0x318] sm:$0xff]  }
 0x314   :  { %11006 = vmatprep.subr.bf16.mxu0 %v12614_v34  ;;  %11028 = vmatprep.subr.bf16.mxu1 %v12615_v36  ;;  %v12661_v32 = vld [vmem:[%s18005_s1 + $0x398] sm:$0xff]   ;;  %v12662_v34 = vld [vmem:[%s18005_s1 + $0x350] sm:$0xff]  }
 0x315   :  { %4294 = vmatprep.mubr.bf16.mxu0 %v9706_v24  ;;  %4334 = vmatprep.mubr.bf16.mxu1 %v9708_v26  ;;  %v12658_v24 = vld [vmem:[%s18005_s1 + $0x358] sm:$0xff]   ;;  %v12663_v36 = vld [vmem:[%s18005_s1 + $0x3d0] sm:$0xff]  }
 0x316   :  { %v12659_v26 = vld [vmem:[%s18005_s1 + $0x3d8] sm:$0xff]  }
 0x317   :  { %11007 = vmatpush3.bf16.msra.mxu0 %v12616_v38  ;;  %11029 = vmatpush3.bf16.msra.mxu1 %v12617_v40  ;;  %v12664_v38 = vld [vmem:[%s18005_s1 + $0x310] sm:$0xff]  }
 0x318   :  { %11008 = vmatprep.subr.bf16.mxu0 %v12618_v44  ;;  %11030 = vmatprep.subr.bf16.mxu1 %v12619_v46  ;;  %v12665_v40 = vld [vmem:[%s18005_s1 + $0x390] sm:$0xff]   ;;  %v12666_v44 = vld [vmem:[%s18005_s1 + $0x348] sm:$0xff]  }
 0x319   :  { %v12667_v46 = vld [vmem:[%s18005_s1 + $0x3c8] sm:$0xff]  }
 0x31b   :  { %11009 = vmatpush3.bf16.msra.mxu0 %v12620_v48  ;;  %11031 = vmatpush3.bf16.msra.mxu1 %v12621_v35  ;;  %v12668_v48 = vld [vmem:[%s18005_s1 + $0x308] sm:$0xff]  }
 0x31c   :  { %11010 = vmatprep.subr.bf16.mxu0 %v12622_v50  ;;  %11032 = vmatprep.subr.bf16.mxu1 %v12623_v52  ;;  %v12669_v35 = vld [vmem:[%s18005_s1 + $0x388] sm:$0xff]   ;;  %v12670_v50 = vld [vmem:[%s18005_s1 + $0x340] sm:$0xff]  }
 0x31d   :  { %v12671_v52 = vld [vmem:[%s18005_s1 + $0x3c0] sm:$0xff]  }
 0x31f   :  { %11011 = vmatpush3.bf16.msra.mxu0 %v12624_v59  ;;  %11033 = vmatpush3.bf16.msra.mxu1 %v12625_v43  ;;  %v9709_v59 = vcombine.low %v15236_v33, %v15236_v33  ;;  %v9711_v43 = vcombine.low %v15241_v4, %v15241_v4 }
 0x320   :  { %11012 = vmatprep.subr.bf16.mxu0 %v12626_v25  ;;  %11034 = vmatprep.subr.bf16.mxu1 %v12627_v19  ;;  %v15358_v25 = vld [vmem:[%s18006_s0 + $0x108] sm:$0xff]  ;;  %v15363_v19 = vld [vmem:[%s18006_s0 + $0x110] sm:$0xff] }
 0x323   :  { %11013 = vmatpush3.bf16.msra.mxu0 %v12628_v31  ;;  %11035 = vmatpush3.bf16.msra.mxu1 %v12629_v54  ;;  %v12672_v31 = vld [vmem:[%s18005_s1 + $0x300] sm:$0xff]  }
 0x324   :  { %11014 = vmatprep.subr.bf16.mxu0 %v12630_v60  ;;  %11036 = vmatprep.subr.bf16.mxu1 %v12631_v62  ;;  %v12673_v54 = vld [vmem:[%s18005_s1 + $0x380] sm:$0xff]   ;;  %v12674_v60 = vld [vmem:[%s18005_s1 + $0x478] sm:$0xff]  }
 0x325   :  { %v12675_v62 = vld [vmem:[%s18005_s1 + $0x4f8] sm:$0xff]  }
 0x327   :  { %11015 = vmatpush3.bf16.msra.mxu0 %v12632_v57  ;;  %11037 = vmatpush3.bf16.msra.mxu1 %v12633_v27  ;;  %v9714_v57 = vcombine.high %v15358_v25, %v15358_v25  ;;  %v9716_v27 = vcombine.high %v15363_v19, %v15363_v19 }
 0x328   :  { %11016 = vmatprep.subr.bf16.mxu0 %v12634_v15  ;;  %11038 = vmatprep.subr.bf16.mxu1 %v12635_v23 }
 0x32b   :  { %11017 = vmatpush3.bf16.msra.mxu0 %v12636_v37  ;;  %11039 = vmatpush3.bf16.msra.mxu1 %v12637_v17  ;;  %v12676_v37 = vld [vmem:[%s18005_s1 + $0x438] sm:$0xff]  }
 0x32c   :  { %11018 = vmatprep.subr.bf16.mxu0 %v12638_v39  ;;  %11040 = vmatprep.subr.bf16.mxu1 %v12639_v28  ;;  %v12677_v17 = vld [vmem:[%s18005_s1 + $0x4b8] sm:$0xff]  }
 0x32f   :  { %11019 = vmatpush3.bf16.msra.mxu0 %v12640_v21  ;;  %11041 = vmatpush3.bf16.msra.mxu1 %v12641_v6  ;;  %v12680_v21 = vld [vmem:[%s18005_s1 + $0x430] sm:$0xff]  }
 0x330   :  { %11048 = vmatprep.subr.bf16.mxu0 %v12642_v8  ;;  %11070 = vmatprep.subr.bf16.mxu1 %v12643_v10  ;;  %v12681_v6 = vld [vmem:[%s18005_s1 + $0x4b0] sm:$0xff]  }
 0x332   :  { %4295 = vmatmul.mubr.bf16.vlgmr.msra.gmra.mxu0 %v9705_v2  ;;  %v15259_v47 = vpop.f32.mrf.mxu0  ;;  %v15261_v49 = vpop.f32.mrf.mxu1  ;;  %4335 = vmatmul.mubr.bf16.vlgmr.msra.gmra.mxu1 %v9707_v56  ;;  %v12678_v2 = vld [vmem:[%s18005_s1 + $0x470] sm:$0xff]  }
 0x333   :  { %11049 = vmatpush3.bf16.msra.mxu0 %v12644_v53  ;;  %11071 = vmatpush3.bf16.msra.mxu1 %v12645_v14  ;;  %v12679_v56 = vld [vmem:[%s18005_s1 + $0x4f0] sm:$0xff]   ;;  %v12684_v53 = vld [vmem:[%s18005_s1 + $0x428] sm:$0xff]  }
 0x334   :  { %v15269_v1 = vpop.f32.mrf.mxu0  ;;  %v15271_v3 = vpop.f32.mrf.mxu1  ;;  %11050 = vmatprep.subr.bf16.mxu0 %v12646_v29  ;;  %11072 = vmatprep.subr.bf16.mxu1 %v12647_v5  ;;  %v12685_v14 = vld [vmem:[%s18005_s1 + $0x4a8] sm:$0xff]   ;;  %v12686_v29 = vld [vmem:[%s18005_s1 + $0x460] sm:$0xff]  }
 0x335   :  { %4374 = vmatprep.mubr.bf16.mxu0 %v9710_v0  ;;  %4414 = vmatprep.mubr.bf16.mxu1 %v9712_v12  ;;  %v12682_v0 = vld [vmem:[%s18005_s1 + $0x468] sm:$0xff]   ;;  %v12687_v5 = vld [vmem:[%s18005_s1 + $0x4e0] sm:$0xff]  }
 0x336   :  { %v3390_v7 = vpop.f32.mrf.mxu0  ;;  %v3431_v45 = vpop.f32.mrf.mxu1  ;;  %v12683_v12 = vld [vmem:[%s18005_s1 + $0x4e8] sm:$0xff]  }
 0x337   :  { %11051 = vmatpush3.bf16.msra.mxu0 %v12648_v58  ;;  %11073 = vmatpush3.bf16.msra.mxu1 %v12649_v9  ;;  %v12688_v7 = vld [vmem:[%s18005_s1 + $0x420] sm:$0xff]   ;;  %v12690_v58 = vld [vmem:[%s18005_s1 + $0x458] sm:$0xff]  }
 0x338   :  { %v3391_v11 = vpop.f32.mrf.mxu0  ;;  %v3432_v42 = vpop.f32.mrf.mxu1  ;;  %11052 = vmatprep.subr.bf16.mxu0 %v12650_v61  ;;  %11074 = vmatprep.subr.bf16.mxu1 %v12651_v13  ;;  %v12689_v45 = vld [vmem:[%s18005_s1 + $0x4a0] sm:$0xff]   ;;  %v12691_v9 = vld [vmem:[%s18005_s1 + $0x4d8] sm:$0xff]   ;;  %v12694_v61 = vld [vmem:[%s18005_s1 + $0x450] sm:$0xff]  }
 0x339   :  { %v12692_v11 = vld [vmem:[%s18005_s1 + $0x418] sm:$0xff]   ;;  %v12695_v13 = vld [vmem:[%s18005_s1 + $0x4d0] sm:$0xff]  }
 0x33a   :  { %v12693_v42 = vld [vmem:[%s18005_s1 + $0x498] sm:$0xff]  }
 0x33b   :  { %11053 = vmatpush3.bf16.msra.mxu0 %v12652_v41  ;;  %11075 = vmatpush3.bf16.msra.mxu1 %v12653_v16  ;;  %v12696_v41 = vld [vmem:[%s18005_s1 + $0x410] sm:$0xff]  }
 0x33c   :  { %11054 = vmatprep.subr.bf16.mxu0 %v12654_v18  ;;  %11076 = vmatprep.subr.bf16.mxu1 %v12655_v55  ;;  %v12697_v16 = vld [vmem:[%s18005_s1 + $0x490] sm:$0xff]   ;;  %v12698_v18 = vld [vmem:[%s18005_s1 + $0x448] sm:$0xff]  }
 0x33d   :  { %v12699_v55 = vld [vmem:[%s18005_s1 + $0x4c8] sm:$0xff]  }
 0x33f   :  { %11055 = vmatpush3.bf16.msra.mxu0 %v12656_v63  ;;  %11077 = vmatpush3.bf16.msra.mxu1 %v12657_v22  ;;  %v12700_v63 = vld [vmem:[%s18005_s1 + $0x408] sm:$0xff]  }
 0x340   :  { %11056 = vmatprep.subr.bf16.mxu0 %v12658_v24  ;;  %11078 = vmatprep.subr.bf16.mxu1 %v12659_v26  ;;  %v12701_v22 = vld [vmem:[%s18005_s1 + $0x488] sm:$0xff]   ;;  %v12702_v24 = vld [vmem:[%s18005_s1 + $0x440] sm:$0xff]  }
 0x341   :  { %v12703_v26 = vld [vmem:[%s18005_s1 + $0x4c0] sm:$0xff]  }
 0x343   :  { %11057 = vmatpush3.bf16.msra.mxu0 %v12660_v30  ;;  %11079 = vmatpush3.bf16.msra.mxu1 %v12661_v32  ;;  %v9713_v30 = vcombine.low %v15358_v25, %v15358_v25  ;;  %v9715_v32 = vcombine.low %v15363_v19, %v15363_v19  ;;  %v12708_v25 = vld [vmem:[%s18005_s1 + $0x538] sm:$0xff]  }
 0x344   :  { %11058 = vmatprep.subr.bf16.mxu0 %v12662_v34  ;;  %11080 = vmatprep.subr.bf16.mxu1 %v12663_v36  ;;  %v15480_v34 = vld [vmem:[%s18006_s0 + $0x118] sm:$0xff]  ;;  %v15485_v36 = vld [vmem:[%s18006_s0 + $0x120] sm:$0xff] }
 0x345   :  { %v12709_v19 = vld [vmem:[%s18005_s1 + $0x5b8] sm:$0xff]  }
 0x347   :  { %11059 = vmatpush3.bf16.msra.mxu0 %v12664_v38  ;;  %11081 = vmatpush3.bf16.msra.mxu1 %v12665_v40  ;;  %v12704_v38 = vld [vmem:[%s18005_s1 + $0x400] sm:$0xff]  }
 0x348   :  { %11060 = vmatprep.subr.bf16.mxu0 %v12666_v44  ;;  %11082 = vmatprep.subr.bf16.mxu1 %v12667_v46  ;;  %v12705_v40 = vld [vmem:[%s18005_s1 + $0x480] sm:$0xff]   ;;  %v12706_v44 = vld [vmem:[%s18005_s1 + $0x578] sm:$0xff]  }
 0x349   :  { %v12707_v46 = vld [vmem:[%s18005_s1 + $0x5f8] sm:$0xff]  }
 0x34b   :  { %11061 = vmatpush3.bf16.msra.mxu0 %v12668_v48  ;;  %11083 = vmatpush3.bf16.msra.mxu1 %v12669_v35  ;;  %v9718_v48 = vcombine.high %v15480_v34, %v15480_v34  ;;  %v9720_v35 = vcombine.high %v15485_v36, %v15485_v36 }
 0x34c   :  { %11062 = vmatprep.subr.bf16.mxu0 %v12670_v50  ;;  %11084 = vmatprep.subr.bf16.mxu1 %v12671_v52 }
 0x34f   :  { %11063 = vmatpush3.bf16.msra.mxu0 %v12672_v31  ;;  %11085 = vmatpush3.bf16.msra.mxu1 %v12673_v54 }
 0x350   :  { %11092 = vmatprep.subr.bf16.mxu0 %v12674_v60  ;;  %11114 = vmatprep.subr.bf16.mxu1 %v12675_v62 }
 0x352   :  { %v15381_v15 = vpop.f32.mrf.mxu0  ;;  %v15383_v23 = vpop.f32.mrf.mxu1  ;;  %4375 = vmatmul.mubr.bf16.vlgmr.msra.gmra.mxu0 %v9709_v59  ;;  %4415 = vmatmul.mubr.bf16.vlgmr.msra.gmra.mxu1 %v9711_v43 }
 0x353   :  { %11093 = vmatpush3.bf16.msra.mxu0 %v12676_v37  ;;  %11115 = vmatpush3.bf16.msra.mxu1 %v12677_v17  ;;  %v12712_v37 = vld [vmem:[%s18005_s1 + $0x530] sm:$0xff]  }
 0x354   :  { %v15391_v39 = vpop.f32.mrf.mxu0  ;;  %v15393_v28 = vpop.f32.mrf.mxu1  ;;  %11094 = vmatprep.subr.bf16.mxu0 %v12678_v2  ;;  %11116 = vmatprep.subr.bf16.mxu1 %v12679_v56  ;;  %v12713_v17 = vld [vmem:[%s18005_s1 + $0x5b0] sm:$0xff]   ;;  %v12715_v56 = vld [vmem:[%s18005_s1 + $0x5e8] sm:$0xff]  }
 0x355   :  { %4454 = vmatprep.mubr.bf16.mxu0 %v9714_v57  ;;  %4494 = vmatprep.mubr.bf16.mxu1 %v9716_v27 }
 0x356   :  { %v3472_v33 = vpop.f32.mrf.mxu0  ;;  %v3513_v4 = vpop.f32.mrf.mxu1 }
 0x357   :  { %11095 = vmatpush3.bf16.msra.mxu0 %v12680_v21  ;;  %11117 = vmatpush3.bf16.msra.mxu1 %v12681_v6  ;;  %v12716_v33 = vld [vmem:[%s18005_s1 + $0x528] sm:$0xff]   ;;  %v12718_v21 = vld [vmem:[%s18005_s1 + $0x560] sm:$0xff]  }
 0x358   :  { %v3473_v8 = vpop.f32.mrf.mxu0  ;;  %v3514_v10 = vpop.f32.mrf.mxu1  ;;  %11096 = vmatprep.subr.bf16.mxu0 %v12682_v0  ;;  %11118 = vmatprep.subr.bf16.mxu1 %v12683_v12  ;;  %v12717_v4 = vld [vmem:[%s18005_s1 + $0x5a8] sm:$0xff]   ;;  %v12719_v6 = vld [vmem:[%s18005_s1 + $0x5e0] sm:$0xff]   ;;  %v12722_v0 = vld [vmem:[%s18005_s1 + $0x558] sm:$0xff]  }
 0x359   :  { %v12720_v8 = vld [vmem:[%s18005_s1 + $0x520] sm:$0xff]   ;;  %v12723_v12 = vld [vmem:[%s18005_s1 + $0x5d8] sm:$0xff]  }
 0x35a   :  { %v12721_v10 = vld [vmem:[%s18005_s1 + $0x5a0] sm:$0xff]  }
 0x35b   :  { %11097 = vmatpush3.bf16.msra.mxu0 %v12684_v53  ;;  %11119 = vmatpush3.bf16.msra.mxu1 %v12685_v14  ;;  %v12724_v53 = vld [vmem:[%s18005_s1 + $0x518] sm:$0xff]  }
 0x35c   :  { %11098 = vmatprep.subr.bf16.mxu0 %v12686_v29  ;;  %11120 = vmatprep.subr.bf16.mxu1 %v12687_v5  ;;  %v12725_v14 = vld [vmem:[%s18005_s1 + $0x598] sm:$0xff]   ;;  %v12726_v29 = vld [vmem:[%s18005_s1 + $0x550] sm:$0xff]  }
 0x35d   :  { %v12727_v5 = vld [vmem:[%s18005_s1 + $0x5d0] sm:$0xff]  }
 0x35f   :  { %11099 = vmatpush3.bf16.msra.mxu0 %v12688_v7  ;;  %11121 = vmatpush3.bf16.msra.mxu1 %v12689_v45  ;;  %v12728_v7 = vld [vmem:[%s18005_s1 + $0x510] sm:$0xff]  }
 0x360   :  { %11100 = vmatprep.subr.bf16.mxu0 %v12690_v58  ;;  %11122 = vmatprep.subr.bf16.mxu1 %v12691_v9  ;;  %v12729_v45 = vld [vmem:[%s18005_s1 + $0x590] sm:$0xff]   ;;  %v12730_v58 = vld [vmem:[%s18005_s1 + $0x548] sm:$0xff]  }
 0x361   :  { %v12731_v9 = vld [vmem:[%s18005_s1 + $0x5c8] sm:$0xff]  }
 0x363   :  { %11101 = vmatpush3.bf16.msra.mxu0 %v12692_v11  ;;  %11123 = vmatpush3.bf16.msra.mxu1 %v12693_v42  ;;  %v12732_v11 = vld [vmem:[%s18005_s1 + $0x508] sm:$0xff]  }
 0x364   :  { %11102 = vmatprep.subr.bf16.mxu0 %v12694_v61  ;;  %11124 = vmatprep.subr.bf16.mxu1 %v12695_v13  ;;  %v12733_v42 = vld [vmem:[%s18005_s1 + $0x588] sm:$0xff]   ;;  %v12734_v61 = vld [vmem:[%s18005_s1 + $0x540] sm:$0xff]  }
 0x365   :  { %v12735_v13 = vld [vmem:[%s18005_s1 + $0x5c0] sm:$0xff]  }
 0x367   :  { %11103 = vmatpush3.bf16.msra.mxu0 %v12696_v41  ;;  %11125 = vmatpush3.bf16.msra.mxu1 %v12697_v16  ;;  %v9717_v41 = vcombine.low %v15480_v34, %v15480_v34  ;;  %v9719_v16 = vcombine.low %v15485_v36, %v15485_v36 }
 0x368   :  { %11104 = vmatprep.subr.bf16.mxu0 %v12698_v18  ;;  %11126 = vmatprep.subr.bf16.mxu1 %v12699_v55  ;;  %v12736_v18 = vld [vmem:[%s18005_s1 + $0x500] sm:$0xff]  }
 0x369   :  { %v12737_v55 = vld [vmem:[%s18005_s1 + $0x580] sm:$0xff]  }
 0x36b   :  { %11105 = vmatpush3.bf16.msra.mxu0 %v12700_v63  ;;  %11127 = vmatpush3.bf16.msra.mxu1 %v12701_v22 }
 0x36c   :  { %11106 = vmatprep.subr.bf16.mxu0 %v12702_v24  ;;  %11128 = vmatprep.subr.bf16.mxu1 %v12703_v26 }
 0x36f   :  { %11107 = vmatpush3.bf16.msra.mxu0 %v12704_v38  ;;  %11129 = vmatpush3.bf16.msra.mxu1 %v12705_v40  ;;  %v12739_v40 = vld [vmem:[%s18005_s1 + $0x630] sm:$0xff]  }
 0x370   :  { %11136 = vmatprep.subr.bf16.mxu0 %v12706_v44  ;;  %11158 = vmatprep.subr.bf16.mxu1 %v12707_v46 }
 0x372   :  { %v3870_v50 = vpop.f32.mrf.mxu0  ;;  %v3911_v52 = vpop.f32.mrf.mxu1  ;;  %4455 = vmatmul.mubr.bf16.vlgmr.msra.gmra.mxu0 %v9713_v30  ;;  %4495 = vmatmul.mubr.bf16.vlgmr.msra.gmra.mxu1 %v9715_v32  ;;  %v12738_v30 = vld [vmem:[%s18005_s1 + $0x638] sm:$0xff]  }
 0x373   :  { %v15504_v59 = vadd.f32 %v3870_v50, %v15259_v47  ;;  %v15507_v43 = vadd.f32 %v3911_v52, %v15261_v49  ;;  %11137 = vmatpush3.bf16.msra.mxu0 %v12708_v25  ;;  %11159 = vmatpush3.bf16.msra.mxu1 %v12709_v19  ;;  %v12710_v47 = vld [vmem:[%s18005_s1 + $0x570] sm:$0xff]   ;;  %v12744_v50 = vld [vmem:[%s18005_s1 + $0x608] sm:$0xff]   ;;  %v12745_v25 = vld [vmem:[%s18005_s1 + $0x600] sm:$0xff]  }
 0x374   :  { %v3872_v31 = vpop.f32.mrf.mxu0  ;;  %v3913_v54 = vpop.f32.mrf.mxu1  ;;  %11138 = vmatprep.subr.bf16.mxu0 %v12710_v47  ;;  %v12711_v49 = vld [vmem:[%s18005_s1 + $0x5f0] sm:$0xff]   ;;  %4534 = vmatprep.mubr.bf16.mxu0 %v9718_v48  ;;  %v12740_v48 = vld [vmem:[%s18005_s1 + $0x628] sm:$0xff]  }
 0x375   :  { %11160 = vmatprep.subr.bf16.mxu1 %v12711_v49  ;;  %v15522_v60 = vadd.f32 %v3872_v31, %v15269_v1  ;;  %v15525_v62 = vadd.f32 %v3913_v54, %v15271_v3  ;;  %4574 = vmatprep.mubr.bf16.mxu1 %v9720_v35  ;;  %v12714_v3 = vld [vmem:[%s18005_s1 + $0x568] sm:$0xff]   ;;  %v12743_v35 = vld [vmem:[%s18005_s1 + $0x610] sm:$0xff]  }
 0x376   :  { %v3874_v57 = vpop.f32.mrf.mxu0  ;;  %v3915_v27 = vpop.f32.mrf.mxu1  ;;  %v11863_v52 = vld [vmem:[%s18006_s0 + $0x128] ss:$0 sps:$4 sm:$0xff]  }
 0x377   :  { %11139 = vmatpush3.bf16.msra.mxu0 %v12712_v37  ;;  %11161 = vmatpush3.bf16.msra.mxu1 %v12713_v17  ;;  %v12746_v17 = vld [vmem:[%s18007_s2] ss:$0 sm:$0xff] }
 0x378   :  { %v3875_v2 = vpop.f32.mrf.mxu0  ;;  %v3916_v1 = vpop.f32.mrf.mxu1  ;;  %11140 = vmatprep.subr.bf16.mxu0 %v12714_v3  ;;  %11162 = vmatprep.subr.bf16.mxu1 %v12715_v56 }
 0x37b   :  { %11141 = vmatpush3.bf16.msra.mxu0 %v12716_v33  ;;  %11163 = vmatpush3.bf16.msra.mxu1 %v12717_v4 }
 0x37c   :  { %11142 = vmatprep.subr.bf16.mxu0 %v12718_v21  ;;  %11164 = vmatprep.subr.bf16.mxu1 %v12719_v6 }
 0x37f   :  { %11143 = vmatpush3.bf16.msra.mxu0 %v12720_v8  ;;  %11165 = vmatpush3.bf16.msra.mxu1 %v12721_v10 }
 0x380   :  { %11144 = vmatprep.subr.bf16.mxu0 %v12722_v0  ;;  %11166 = vmatprep.subr.bf16.mxu1 %v12723_v12 }
 0x383   :  { %11145 = vmatpush3.bf16.msra.mxu0 %v12724_v53  ;;  %11167 = vmatpush3.bf16.msra.mxu1 %v12725_v14  ;;  %v9778_v53 = vld [vmem:[%s18008_s3 + $0x5c0] sm:$0xff] }
 0x384   :  { %11146 = vmatprep.subr.bf16.mxu0 %v12726_v29  ;;  %11168 = vmatprep.subr.bf16.mxu1 %v12727_v5  ;;  %v9782_v14 = vld [vmem:[%s18008_s3 + $0x5e0] sm:$0xff]  ;;  %v9779_v29 = vld [vmem:[%s18008_s3 + $0x5c8] sm:$0xff] }
 0x387   :  { %11147 = vmatpush3.bf16.msra.mxu0 %v12728_v7  ;;  %11169 = vmatpush3.bf16.msra.mxu1 %v12729_v45  ;;  %v9843_v7 = vcombine.high %v9778_v53, %v9782_v14  ;;  %v9783_v45 = vld [vmem:[%s18008_s3 + $0x5e8] sm:$0xff] }
 0x388   :  { %11148 = vmatprep.subr.bf16.mxu0 %v12730_v58  ;;  %11170 = vmatprep.subr.bf16.mxu1 %v12731_v9 }
 0x38b   :  { %11149 = vmatpush3.bf16.msra.mxu0 %v12732_v11  ;;  %11171 = vmatpush3.bf16.msra.mxu1 %v12733_v42  ;;  %v9842_v11 = vcombine.low %v9778_v53, %v9782_v14  ;;  %v9844_v42 = vcombine.low %v9779_v29, %v9783_v45 }
 0x38c   :  { %11150 = vmatprep.subr.bf16.mxu0 %v12734_v61  ;;  %11172 = vmatprep.subr.bf16.mxu1 %v12735_v13  ;;  %v9845_v61 = vcombine.high %v9779_v29, %v9783_v45  ;;  %v9770_v13 = vld [vmem:[%s18008_s3 + $0x580] sm:$0xff] }
 0x38f   :  { %11151 = vmatpush3.bf16.msra.mxu0 %v12736_v18  ;;  %11173 = vmatpush3.bf16.msra.mxu1 %v12737_v55 }
 0x390   :  { %11546 = vmatprep.subr.bf16.mxu0 %v18047_v51  ;;  %5011 = vmatprep.subr.bf16.mxu1 %v9843_v7 }
 0x392   :  { %v3952_v63 = vpop.f32.mrf.mxu0  ;;  %v3993_v22 = vpop.f32.mrf.mxu1  ;;  %4535 = vmatmul.mubr.bf16.vlgmr.msra.gmra.mxu0 %v9717_v41  ;;  %4575 = vmatmul.mubr.bf16.vlgmr.msra.gmra.mxu1 %v9719_v16  ;;  %v9774_v41 = vld [vmem:[%s18008_s3 + $0x5a0] sm:$0xff]  ;;  %v9771_v16 = vld [vmem:[%s18008_s3 + $0x588] sm:$0xff] }
 0x393   :  { %v15611_v24 = vadd.f32 %v3952_v63, %v15381_v15  ;;  %v15614_v26 = vadd.f32 %v3993_v22, %v15383_v23  ;;  %11547 = vmatpush3.bf16.msra.mxu0 %v12738_v30  ;;  %11562 = vmatprep.mubr.msk.bf16.mxu0 %vm12949_vm0, %v18047_v51  ;;  %v9835_v55 = vcombine.high %v9770_v13, %v9774_v41  ;;  %v9775_v63 = vld [vmem:[%s18008_s3 + $0x5a8] sm:$0xff]  ;;  %v9762_v22 = vld [vmem:[%s18008_s3 + $0x540] sm:$0xff] }
 0x394   :  { %v3954_v32 = vpop.f32.mrf.mxu0  ;;  %v3995_v34 = vpop.f32.mrf.mxu1  ;;  %11548 = vmatprep.subr.bf16.mxu0 %v18047_v51  ;;  %5043 = vmatprep.mubr.bf16.mxu1 %v12950_v20  ;;  %v9766_v30 = vld [vmem:[%s18008_s3 + $0x560] sm:$0xff] }
 0x395   :  { %v15624_v15 = vadd.f32 %v3954_v32, %v15391_v39  ;;  %v15627_v23 = vadd.f32 %v3995_v34, %v15393_v28  ;;  %v12741_v39 = vld [vmem:[%s18005_s1 + $0x620] sm:$0xff]   ;;  %v12742_v28 = vld [vmem:[%s18005_s1 + $0x618] sm:$0xff]   ;;  %5012 = vmatpush1.bf16.msra.mxu1 %v9842_v11  ;;  %v9834_v32 = vcombine.low %v9770_v13, %v9774_v41  ;;  %v9837_v34 = vcombine.high %v9771_v16, %v9775_v63  ;;  %v9727_v41 = vld [vmem:[%s18008_s3 + $0x428] sm:$0xff] }
 0x396   :  { %v3956_v36 = vpop.f32.mrf.mxu0  ;;  %v3997_v38 = vpop.f32.mrf.mxu1  ;;  %5013 = vmatprep.subr.bf16.mxu1 %v9835_v55  ;;  %v9722_v11 = vld [vmem:[%s18008_s3 + $0x400] sm:$0xff] }
 0x397   :  { %11549 = vmatpush3.bf16.msra.mxu0 %v12739_v40  ;;  %v9763_v36 = vld [vmem:[%s18008_s3 + $0x548] sm:$0xff]  ;;  %v9836_v40 = vcombine.low %v9771_v16, %v9775_v63 }
 0x398   :  { %v3957_v44 = vpop.f32.mrf.mxu0  ;;  %v3998_v46 = vpop.f32.mrf.mxu1  ;;  %11550 = vmatprep.subr.bf16.mxu0 %v18047_v51  ;;  %v9767_v38 = vld [vmem:[%s18008_s3 + $0x568] sm:$0xff] }
 0x399   :  { %v9827_v44 = vcombine.high %v9762_v22, %v9766_v30  ;;  %v9829_v46 = vcombine.high %v9763_v36, %v9767_v38  ;;  %5014 = vmatpush1.bf16.msra.mxu1 %v9834_v32 }
 0x39b   :  { %11551 = vmatpush3.bf16.msra.mxu0 %v12740_v48  ;;  %v9754_v48 = vld [vmem:[%s18008_s3 + $0x500] sm:$0xff]  ;;  %5015 = vmatprep.subr.bf16.mxu1 %v9827_v44  ;;  %v15769_v44 = vld [vmem:[%s18008_s3 + $0x5f0] sm:$0xff] }
 0x39c   :  { %11552 = vmatprep.subr.bf16.mxu0 %v18047_v51 }
 0x39f   :  { %11553 = vmatpush3.bf16.msra.mxu0 %v12741_v39  ;;  %v9758_v39 = vld [vmem:[%s18008_s3 + $0x520] sm:$0xff] }
 0x3a0   :  { %11554 = vmatprep.subr.bf16.mxu0 %v18047_v51 }
 0x3a3   :  { %11555 = vmatpush3.bf16.msra.mxu0 %v12742_v28  ;;  %v9755_v28 = vld [vmem:[%s18008_s3 + $0x508] sm:$0xff] }
 0x3a4   :  { %11556 = vmatprep.subr.bf16.mxu0 %v18047_v51 }
 0x3a7   :  { %11557 = vmatpush3.bf16.msra.mxu0 %v12743_v35  ;;  %v9759_v35 = vld [vmem:[%s18008_s3 + $0x528] sm:$0xff] }
 0x3a8   :  { %11558 = vmatprep.subr.bf16.mxu0 %v18047_v51 }
 0x3ab   :  { %11559 = vmatpush3.bf16.msra.mxu0 %v12744_v50  ;;  %v9826_v50 = vcombine.low %v9762_v22, %v9766_v30 }
 0x3ac   :  { %11560 = vmatprep.subr.bf16.mxu0 %v18047_v51 }
 0x3ad   :  { %5016 = vmatpush1.bf16.msra.mxu1 %v9826_v50 }
 0x3af   :  { %11561 = vmatpush3.bf16.msra.mxu0 %v12745_v25  ;;  %v9819_v25 = vcombine.high %v9754_v48, %v9758_v39 }
 0x3b0   :  { %5052 = vmatprep.subr.bf16.mxu0 %v9845_v61  ;;  %v9723_v61 = vld [vmem:[%s18008_s3 + $0x408] sm:$0xff] }
 0x3b1   :  { %5017 = vmatprep.subr.bf16.mxu1 %v9819_v25  ;;  %v9788_v22 = vcombine.low %v9723_v61, %v9727_v41  ;;  %v9789_v30 = vcombine.high %v9723_v61, %v9727_v41 }
 0x3b2   :  { %v10932_v19 = vpop.f32.mrf.mxu0  ;;  %11563 = vmatmul.mubr.bf16.vlgmr.msra.gmra.mxu0 %v11863_v52  ;;  %v10954_v31 = vpop.f32.mrf.mxu1  ;;  %v9828_v52 = vcombine.low %v9763_v36, %v9767_v38 }
 0x3b3   :  { %5084 = vmatprep.mubr.bf16.mxu0 %v12950_v20  ;;  %5053 = vmatpush1.bf16.msra.mxu0 %v9844_v42  ;;  %v9726_v42 = vld [vmem:[%s18008_s3 + $0x420] sm:$0xff] }
 0x3b4   :  { %v10933_v54 = vpop.f32.mrf.mxu0  ;;  %v10955_v47 = vpop.f32.mrf.mxu1  ;;  %5054 = vmatprep.subr.bf16.mxu0 %v9837_v34  ;;  %v9787_v13 = vcombine.high %v9722_v11, %v9726_v42  ;;  %v9786_v63 = vcombine.low %v9722_v11, %v9726_v42 }
 0x3b5   :  { %v10934_v49 = vadd.f32 %v10933_v54, %v10932_v19  ;;  %v10956_v57 = vadd.f32 %v10955_v47, %v10954_v31  ;;  %v9821_v19 = vcombine.high %v9755_v28, %v9759_v35  ;;  %v9746_v31 = vld [vmem:[%s18008_s3 + $0x4c0] sm:$0xff]  ;;  %v9747_v47 = vld [vmem:[%s18008_s3 + $0x4c8] sm:$0xff] }
 0x3b6   :  { %v10935_v27 = vpop.f32.mrf.mxu0  ;;  %v10957_v37 = vpop.f32.mrf.mxu1  ;;  %v9750_v54 = vld [vmem:[%s18008_s3 + $0x4e0] sm:$0xff] }
 0x3b7   :  { %v4137_v2 = vadd.f32 %v12746_v17, %v10934_v49  ;;  %5055 = vmatpush1.bf16.msra.mxu0 %v9836_v40  ;;  %v9751_v49 = vld [vmem:[%s18008_s3 + $0x4e8] sm:$0xff]  ;;  %v9820_v27 = vcombine.low %v9755_v28, %v9759_v35  ;;  %v9811_v37 = vcombine.high %v9746_v31, %v9750_v54  ;;  %v15764_v40 = vld [vmem:[%s18008_s3 + $0x5d0] sm:$0xff]  ;;  %v15782_v28 = vld [vmem:[%s18008_s3 + $0x5f8] sm:$0xff] }
 0x3b8   :  { %v10936_v1 = vpop.f32.mrf.mxu0  ;;  %v10958_v3 = vpop.f32.mrf.mxu1  ;;  %5056 = vmatprep.subr.bf16.mxu0 %v9829_v46  ;;  %v9813_v17 = vcombine.high %v9747_v47, %v9751_v49  ;;  %v15774_v46 = vld [vmem:[%s18008_s3 + $0x5d8] sm:$0xff] }
 0x3b9   :  { %v4177_v56 = vadd.f32 %v10956_v57, %v4137_v2  ;;  %v9818_v57 = vcombine.low %v9754_v48, %v9758_v39  ;;  %v9738_v2 = vld [vmem:[%s18008_s3 + $0x480] sm:$0xff]  ;;  %v9739_v3 = vld [vmem:[%s18008_s3 + $0x488] sm:$0xff]  ;;  %v9847_v39 = vcombine.high %v15764_v40, %v15769_v44  ;;  %v9848_v25 = vcombine.low %v15774_v46, %v15782_v28 }
 0x3ba   :  { %v9742_v1 = vld [vmem:[%s18008_s3 + $0x4a0] sm:$0xff] }
 0x3bb   :  { %5057 = vmatpush1.bf16.msra.mxu0 %v9828_v52  ;;  %5018 = vmatpush1.bf16.msra.mxu1 %v9818_v57  ;;  %v9802_v53 = vcombine.low %v9738_v2, %v9742_v1  ;;  %v9846_v52 = vcombine.low %v15764_v40, %v15769_v44  ;;  %v9773_v40 = vld [vmem:[%s18008_s3 + $0x598] sm:$0xff] }
 0x3bc   :  { %5058 = vmatprep.subr.bf16.mxu0 %v9821_v19  ;;  %5019 = vmatprep.subr.bf16.mxu1 %v9811_v37  ;;  %v9777_v44 = vld [vmem:[%s18008_s3 + $0x5b8] sm:$0xff] }
 0x3bf   :  { %5059 = vmatpush1.bf16.msra.mxu0 %v9820_v27 }
 0x3c0   :  { %5060 = vmatprep.subr.bf16.mxu0 %v9813_v17 }
 0x3d2   :  { %v10976_v33 = vpop.f32.mrf.mxu0  ;;  %v10998_v4 = vpop.f32.mrf.mxu1 }
 0x3d4   :  { %v10977_v21 = vpop.f32.mrf.mxu0  ;;  %v10999_v6 = vpop.f32.mrf.mxu1 }
 0x3d5   :  { %v10978_v8 = vadd.f32 %v10977_v21, %v10976_v33  ;;  %v11000_v10 = vadd.f32 %v10999_v6, %v10998_v4  ;;  %v9810_v33 = vcombine.low %v9746_v31, %v9750_v54  ;;  %v9812_v4 = vcombine.low %v9747_v47, %v9751_v49 }
 0x3d6   :  { %v10979_v0 = vpop.f32.mrf.mxu0  ;;  %v11001_v12 = vpop.f32.mrf.mxu1  ;;  %v9803_v21 = vcombine.high %v9738_v2, %v9742_v1 }
 0x3d7   :  { %v4217_v5 = vadd.f32 %v10978_v8, %v4177_v56  ;;  %v9743_v56 = vld [vmem:[%s18008_s3 + $0x4a8] sm:$0xff]  ;;  %v9730_v8 = vld [vmem:[%s18008_s3 + $0x440] sm:$0xff]  ;;  %5020 = vmatpush1.bf16.msra.mxu1 %v9810_v33  ;;  %5061 = vmatpush1.bf16.msra.mxu0 %v9812_v4 }
 0x3d8   :  { %v10980_v58 = vpop.f32.mrf.mxu0  ;;  %v11002_v9 = vpop.f32.mrf.mxu1  ;;  %v9805_v6 = vcombine.high %v9739_v3, %v9743_v56  ;;  %v9731_v0 = vld [vmem:[%s18008_s3 + $0x448] sm:$0xff]  ;;  %5021 = vmatprep.subr.bf16.mxu1 %v9803_v21  ;;  %v9804_v14 = vcombine.low %v9739_v3, %v9743_v56 }
 0x3d9   :  { %v15684_v18 = vadd.f32 %v11000_v10, %v4217_v5  ;;  %v9734_v10 = vld [vmem:[%s18008_s3 + $0x460] sm:$0xff]  ;;  %v9735_v12 = vld [vmem:[%s18008_s3 + $0x468] sm:$0xff] }
 0x3da   :  { %v9795_v29 = vcombine.high %v9730_v8, %v9734_v10  ;;  %5062 = vmatprep.subr.bf16.mxu0 %v9805_v6  ;;  %v9797_v5 = vcombine.high %v9731_v0, %v9735_v12  ;;  %v9794_v7 = vcombine.low %v9730_v8, %v9734_v10  ;;  %v9796_v45 = vcombine.low %v9731_v0, %v9735_v12 }
 0x3db   :  { %5022 = vmatpush1.bf16.msra.mxu1 %v9802_v53  ;;  %5063 = vmatpush1.bf16.msra.mxu0 %v9804_v14 }
 0x3dc   :  { %5023 = vmatprep.subr.bf16.mxu1 %v9795_v29  ;;  %5064 = vmatprep.subr.bf16.mxu0 %v9797_v5 }
 0x3df   :  { %5024 = vmatpush1.bf16.msra.mxu1 %v9794_v7  ;;  %5065 = vmatpush1.bf16.msra.mxu0 %v9796_v45 }
 0x3e0   :  { %5025 = vmatprep.subr.bf16.mxu1 %v9787_v13  ;;  %5066 = vmatprep.subr.bf16.mxu0 %v9789_v30 }
 0x3e3   :  { %5026 = vmatpush1.bf16.msra.mxu1 %v9786_v63  ;;  %5067 = vmatpush1.bf16.msra.mxu0 %v9788_v22 }
 0x3e4   :  { %5093 = vmatprep.subr.bf16.mxu1 %v9847_v39 }
 0x3f2   :  { %v11020_v58 = vpop.f32.mrf.mxu0  ;;  %v11042_v9 = vpop.f32.mrf.mxu1 }
 0x3f4   :  { %v11021_v16 = vpop.f32.mrf.mxu0  ;;  %v11043_v55 = vpop.f32.mrf.mxu1 }
 0x3f5   :  { %v11022_v32 = vadd.f32 %v11021_v16, %v11020_v58  ;;  %v11044_v34 = vadd.f32 %v11043_v55, %v11042_v9 }
 0x3f6   :  { %v11023_v36 = vpop.f32.mrf.mxu0  ;;  %v11045_v38 = vpop.f32.mrf.mxu1 }
 0x3f7   :  { %v4297_v48 = vadd.f32 %v11022_v32, %v15684_v18  ;;  %v9849_v18 = vcombine.high %v15774_v46, %v15782_v28  ;;  %v9776_v38 = vld [vmem:[%s18008_s3 + $0x5b0] sm:$0xff] }
 0x3f8   :  { %v11024_v35 = vpop.f32.mrf.mxu0  ;;  %v11046_v50 = vpop.f32.mrf.mxu1 }
 0x3f9   :  { %v4337_v19 = vadd.f32 %v11044_v34, %v4297_v48  ;;  %5134 = vmatprep.subr.bf16.mxu0 %v9849_v18  ;;  %v9772_v34 = vld [vmem:[%s18008_s3 + $0x590] sm:$0xff]  ;;  %v9841_v50 = vcombine.high %v9773_v40, %v9777_v44 }
 0x3fa   :  { %v9839_v35 = vcombine.high %v9772_v34, %v9776_v38  ;;  %v9764_v18 = vld [vmem:[%s18008_s3 + $0x550] sm:$0xff] }
 0x412   :  { %v11064_v31 = vpop.f32.mrf.mxu0  ;;  %v11086_v54 = vpop.f32.mrf.mxu1 }
 0x414   :  { %v11065_v47 = vpop.f32.mrf.mxu0  ;;  %v11087_v49 = vpop.f32.mrf.mxu1 }
 0x415   :  { %v11066_v57 = vadd.f32 %v11065_v47, %v11064_v31  ;;  %v11088_v27 = vadd.f32 %v11087_v49, %v11086_v54  ;;  %v9765_v31 = vld [vmem:[%s18008_s3 + $0x558] sm:$0xff]  ;;  %v9838_v47 = vcombine.low %v9772_v34, %v9776_v38  ;;  %v9840_v49 = vcombine.low %v9773_v40, %v9777_v44 }
 0x416   :  { %v11067_v37 = vpop.f32.mrf.mxu0  ;;  %v11089_v17 = vpop.f32.mrf.mxu1  ;;  %v9769_v54 = vld [vmem:[%s18008_s3 + $0x578] sm:$0xff] }
 0x417   :  { %v4377_v2 = vadd.f32 %v11066_v57, %v4337_v19  ;;  %v9768_v19 = vld [vmem:[%s18008_s3 + $0x570] sm:$0xff]  ;;  %v9729_v34 = vld [vmem:[%s18008_s3 + $0x438] sm:$0xff] }
 0x418   :  { %v11068_v1 = vpop.f32.mrf.mxu0  ;;  %v11090_v3 = vpop.f32.mrf.mxu1  ;;  %v9831_v57 = vcombine.high %v9764_v18, %v9768_v19  ;;  %v9756_v37 = vld [vmem:[%s18008_s3 + $0x510] sm:$0xff] }
 0x419   :  { %v4417_v56 = vadd.f32 %v11088_v27, %v4377_v2  ;;  %v9833_v27 = vcombine.high %v9765_v31, %v9769_v54  ;;  %v9760_v17 = vld [vmem:[%s18008_s3 + $0x530] sm:$0xff]  ;;  %v9757_v2 = vld [vmem:[%s18008_s3 + $0x518] sm:$0xff]  ;;  %v9832_v1 = vcombine.low %v9765_v31, %v9769_v54 }
 0x41a   :  { %v9823_v3 = vcombine.high %v9756_v37, %v9760_v17  ;;  %v12749_v54 = vld [vmem:[%s18005_s1 + $0x38] sm:$0xff]  }
 0x432   :  { %v11108_v33 = vpop.f32.mrf.mxu0  ;;  %v11130_v4 = vpop.f32.mrf.mxu1 }
 0x434   :  { %v11109_v21 = vpop.f32.mrf.mxu0  ;;  %v11131_v6 = vpop.f32.mrf.mxu1 }
 0x435   :  { %v11110_v11 = vadd.f32 %v11109_v21, %v11108_v33  ;;  %v11132_v61 = vadd.f32 %v11131_v6, %v11130_v4  ;;  %v9748_v33 = vld [vmem:[%s18008_s3 + $0x4d0] sm:$0xff]  ;;  %v9749_v21 = vld [vmem:[%s18008_s3 + $0x4d8] sm:$0xff] }
 0x436   :  { %v11111_v8 = vpop.f32.mrf.mxu0  ;;  %v11133_v10 = vpop.f32.mrf.mxu1  ;;  %v9752_v4 = vld [vmem:[%s18008_s3 + $0x4f0] sm:$0xff]  ;;  %v9753_v6 = vld [vmem:[%s18008_s3 + $0x4f8] sm:$0xff] }
 0x437   :  { %v4457_v42 = vadd.f32 %v11110_v11, %v4417_v56  ;;  %v9822_v8 = vcombine.low %v9756_v37, %v9760_v17  ;;  %v9732_v11 = vld [vmem:[%s18008_s3 + $0x450] sm:$0xff]  ;;  %v12755_v37 = vld [vmem:[%s18005_s1 + $0x68] sm:$0xff]  }
 0x438   :  { %v11112_v0 = vpop.f32.mrf.mxu0  ;;  %v11134_v12 = vpop.f32.mrf.mxu1  ;;  %v12756_v17 = vld [vmem:[%s18005_s1 + $0xe8] sm:$0xff]  }
 0x439   :  { %v4497_v41 = vadd.f32 %v11132_v61, %v4457_v42  ;;  %v9815_v0 = vcombine.high %v9748_v33, %v9752_v4  ;;  %v9817_v12 = vcombine.high %v9749_v21, %v9753_v6  ;;  %v9736_v42 = vld [vmem:[%s18008_s3 + $0x470] sm:$0xff]  ;;  %v9733_v61 = vld [vmem:[%s18008_s3 + $0x458] sm:$0xff] }
 0x452   :  { %v11152_v53 = vpop.f32.mrf.mxu0  ;;  %v11174_v14 = vpop.f32.mrf.mxu1 }
 0x454   :  { %v11153_v29 = vpop.f32.mrf.mxu0  ;;  %v11175_v5 = vpop.f32.mrf.mxu1 }
 0x455   :  { %v11154_v13 = vadd.f32 %v11153_v29, %v11152_v53  ;;  %v11176_v55 = vadd.f32 %v11175_v5, %v11174_v14  ;;  %v9740_v53 = vld [vmem:[%s18008_s3 + $0x490] sm:$0xff]  ;;  %v9741_v29 = vld [vmem:[%s18008_s3 + $0x498] sm:$0xff] }
 0x456   :  { %v11155_v7 = vpop.f32.mrf.mxu0  ;;  %v11177_v45 = vpop.f32.mrf.mxu1  ;;  %v9744_v14 = vld [vmem:[%s18008_s3 + $0x4b0] sm:$0xff]  ;;  %v9745_v5 = vld [vmem:[%s18008_s3 + $0x4b8] sm:$0xff] }
 0x457   :  { %v4537_v16 = vadd.f32 %v11154_v13, %v4497_v41  ;;  %v9814_v7 = vcombine.low %v9748_v33, %v9752_v4  ;;  %v9816_v45 = vcombine.low %v9749_v21, %v9753_v6  ;;  %v9737_v13 = vld [vmem:[%s18008_s3 + $0x478] sm:$0xff]  ;;  %v9806_v41 = vcombine.low %v9740_v53, %v9744_v14 }
 0x458   :  { %v11156_v58 = vpop.f32.mrf.mxu0  ;;  %v11178_v9 = vpop.f32.mrf.mxu1  ;;  %v9800_v38 = vcombine.low %v9733_v61, %v9737_v13  ;;  %v12763_v33 = vld [vmem:[%s18005_s1 + $0x58] sm:$0xff]  }
 0x459   :  { %v4577_v63 = vadd.f32 %v11176_v55, %v4537_v16  ;;  %v9807_v58 = vcombine.high %v9740_v53, %v9744_v14  ;;  %v9809_v9 = vcombine.high %v9741_v29, %v9745_v5  ;;  %v9808_v16 = vcombine.low %v9741_v29, %v9745_v5  ;;  %v12764_v4 = vld [vmem:[%s18005_s1 + $0xd8] sm:$0xff]   ;;  %v12771_v53 = vld [vmem:[%s18005_s1 + $0x48] sm:$0xff]  }
 0x45a   :  { %v9799_v55 = vcombine.high %v9732_v11, %v9736_v42  ;;  %v12765_v21 = vld [vmem:[%s18005_s1 + $0x18] sm:$0xff]   ;;  %v12772_v14 = vld [vmem:[%s18005_s1 + $0xc8] sm:$0xff]  }
 0x45b   :  { %v12766_v6 = vld [vmem:[%s18005_s1 + $0x98] sm:$0xff]   ;;  %v12773_v29 = vld [vmem:[%s18005_s1 + $0x8] sm:$0xff]  }
 0x45c   :  { %v12774_v5 = vld [vmem:[%s18005_s1 + $0x88] sm:$0xff]  }
 0x472   :  { %v4616_v22 = vpop.f32.mrf.mxu0 }
 0x473   :  { %v4617_v30 = vadd.f32 %v4616_v22, %v4577_v63  ;;  %v9801_v63 = vcombine.high %v9733_v61, %v9737_v13  ;;  %v9724_v22 = vld [vmem:[%s18008_s3 + $0x410] sm:$0xff]  ;;  %v12777_v61 = vld [vmem:[%s18005_s1] sm:$0xff]  }
 0x474   :  { %v11564_v32 = vpop.f32.mrf.mxu0  ;;  %v12778_v13 = vld [vmem:[%s18005_s1 + $0x80] sm:$0xff]  }
 0x475   :  { %vm4622_vm3 = vcmp.gt.f32.partialorder %v4617_v30, 0.0  ;;  %v4623_v36 = vmul.f32 0.2, %v4617_v30  ;;  %v9725_v32 = vld [vmem:[%s18008_s3 + $0x418] sm:$0xff] }
 0x476   :  { %v4619_v46 = vpop.f32.mrf.mxu0  ;;  %v9793_v44 = vcombine.high %v9725_v32, %v9729_v34 }
 0x477   :  { %v4624_v48 = vsel %vm4622_vm3, %v4617_v30, %v4623_v36  ;;  %v9728_v30 = vld [vmem:[%s18008_s3 + $0x430] sm:$0xff]  ;;  %v9798_v36 = vcombine.low %v9732_v11, %v9736_v42  ;;  %v15993_v11 = vld [vmem:[%s18006_s0 + $0x13c] sm:$0xff]  ;;  %v15998_v42 = vld [vmem:[%s18006_s0 + $0x144] sm:$0xff] }
 0x478   :  { %v15802_v39 = vpack.c.bf16 %v4624_v48, %v4624_v48  ;;  %v11565_v28 = vpop.f32.mrf.mxu0  ;;  %v9791_v40 = vcombine.high %v9724_v22, %v9728_v30  ;;  %v9790_v46 = vcombine.low %v9724_v22, %v9728_v30  ;;  %v9792_v48 = vcombine.low %v9725_v32, %v9729_v34  ;;  %v12781_v22 = vld [vmem:[%s18005_s1 + $0x138] sm:$0xff]   ;;  %v12783_v32 = vld [vmem:[%s18005_s1 + $0x170] sm:$0xff]  }
 0x479   :  { %v15883_v28 = vld [vmem:[%s18006_s0 + $0x12c] sm:$0xff]  ;;  %v12782_v30 = vld [vmem:[%s18005_s1 + $0x1b8] sm:$0xff]  }
 0x47a   :  { %5044 = vmatmul.mubr.bf16.vlgmr.msra.gmra.mxu1 %v15802_v39  ;;  %5085 = vmatmul.mubr.bf16.vlgmr.msra.gmra.mxu0 %v15802_v39  ;;  %v12784_v34 = vld [vmem:[%s18005_s1 + $0x1f0] sm:$0xff]  }
 0x47b   :  { %5094 = vmatpush1.bf16.msra.mxu1 %v9846_v52  ;;  %5135 = vmatpush1.bf16.msra.mxu0 %v9848_v25  ;;  %v9761_v52 = vld [vmem:[%s18008_s3 + $0x538] sm:$0xff]  ;;  %v9830_v25 = vcombine.low %v9764_v18, %v9768_v19  ;;  %v9864_v19 = vcombine.high %v15883_v28, %v15883_v28 }
 0x47c   :  { %5095 = vmatprep.subr.bf16.mxu1 %v9839_v35  ;;  %5136 = vmatprep.subr.bf16.mxu0 %v9841_v50  ;;  %v9825_v56 = vcombine.high %v9757_v2, %v9761_v52  ;;  %v9824_v10 = vcombine.low %v9757_v2, %v9761_v52  ;;  %v15888_v35 = vld [vmem:[%s18006_s0 + $0x134] sm:$0xff]  ;;  %v12757_v2 = vld [vmem:[%s18005_s1 + $0x28] sm:$0xff]  }
 0x47d   :  { %5125 = vmatprep.mubr.bf16.mxu1 %v12950_v20  ;;  %5166 = vmatprep.mubr.bf16.mxu0 %v12950_v20  ;;  %v12747_v50 = vld [vmem:[%s18005_s1 + $0x78] sm:$0xff]   ;;  %v9866_v31 = vcombine.high %v15888_v35, %v15888_v35  ;;  %v12758_v52 = vld [vmem:[%s18005_s1 + $0xa8] sm:$0xff]  }
 0x47e   :  { %v12748_v18 = vld [vmem:[%s18005_s1 + $0xf8] sm:$0xff]  }
 0x47f   :  { %5096 = vmatpush1.bf16.msra.mxu1 %v9838_v47  ;;  %5137 = vmatpush1.bf16.msra.mxu0 %v9840_v49  ;;  %v12750_v47 = vld [vmem:[%s18005_s1 + $0xb8] sm:$0xff]   ;;  %v12751_v49 = vld [vmem:[%s18005_s1 + $0x70] sm:$0xff]  }
 0x480   :  { %5097 = vmatprep.subr.bf16.mxu1 %v9831_v57  ;;  %5138 = vmatprep.subr.bf16.mxu0 %v9833_v27  ;;  %v12752_v57 = vld [vmem:[%s18005_s1 + $0xf0] sm:$0xff]  }
 0x481   :  { %v12754_v27 = vld [vmem:[%s18005_s1 + $0xb0] sm:$0xff]  }
 0x483   :  { %5098 = vmatpush1.bf16.msra.mxu1 %v9830_v25  ;;  %5139 = vmatpush1.bf16.msra.mxu0 %v9832_v1  ;;  %v12759_v25 = vld [vmem:[%s18005_s1 + $0x60] sm:$0xff]  }
 0x484   :  { %5099 = vmatprep.subr.bf16.mxu1 %v9823_v3  ;;  %5140 = vmatprep.subr.bf16.mxu0 %v9825_v56  ;;  %v12760_v1 = vld [vmem:[%s18005_s1 + $0xe0] sm:$0xff]  }
 0x485   :  { %v12761_v3 = vld [vmem:[%s18005_s1 + $0x20] sm:$0xff]  }
 0x486   :  { %v12762_v56 = vld [vmem:[%s18005_s1 + $0xa0] sm:$0xff]  }
 0x487   :  { %5100 = vmatpush1.bf16.msra.mxu1 %v9822_v8  ;;  %5141 = vmatpush1.bf16.msra.mxu0 %v9824_v10  ;;  %v12767_v8 = vld [vmem:[%s18005_s1 + $0x50] sm:$0xff]  }
 0x488   :  { %5101 = vmatprep.subr.bf16.mxu1 %v9815_v0  ;;  %5142 = vmatprep.subr.bf16.mxu0 %v9817_v12  ;;  %v12768_v10 = vld [vmem:[%s18005_s1 + $0xd0] sm:$0xff]  }
 0x489   :  { %v12769_v0 = vld [vmem:[%s18005_s1 + $0x10] sm:$0xff]  }
 0x48a   :  { %v12770_v12 = vld [vmem:[%s18005_s1 + $0x90] sm:$0xff]  }
 0x48b   :  { %5102 = vmatpush1.bf16.msra.mxu1 %v9814_v7  ;;  %5143 = vmatpush1.bf16.msra.mxu0 %v9816_v45  ;;  %v12775_v7 = vld [vmem:[%s18005_s1 + $0x40] sm:$0xff]  }
 0x48c   :  { %5103 = vmatprep.subr.bf16.mxu1 %v9807_v58  ;;  %5144 = vmatprep.subr.bf16.mxu0 %v9809_v9  ;;  %v12776_v45 = vld [vmem:[%s18005_s1 + $0xc0] sm:$0xff]   ;;  %v9863_v58 = vcombine.low %v15883_v28, %v15883_v28  ;;  %v9865_v9 = vcombine.low %v15888_v35, %v15888_v35 }
 0x48d   :  { %v12791_v28 = vld [vmem:[%s18005_s1 + $0x160] sm:$0xff]  }
 0x48e   :  { %v12792_v35 = vld [vmem:[%s18005_s1 + $0x1e0] sm:$0xff]  }
 0x48f   :  { %5104 = vmatpush1.bf16.msra.mxu1 %v9806_v41  ;;  %5145 = vmatpush1.bf16.msra.mxu0 %v9808_v16  ;;  %v12779_v41 = vld [vmem:[%s18005_s1 + $0x178] sm:$0xff]  }
 0x490   :  { %5105 = vmatprep.subr.bf16.mxu1 %v9799_v55  ;;  %5146 = vmatprep.subr.bf16.mxu0 %v9801_v63  ;;  %v12780_v16 = vld [vmem:[%s18005_s1 + $0x1f8] sm:$0xff]   ;;  %v9868_v55 = vcombine.high %v15993_v11, %v15993_v11  ;;  %v9870_v63 = vcombine.high %v15998_v42, %v15998_v42 }
 0x493   :  { %5106 = vmatpush1.bf16.msra.mxu1 %v9798_v36  ;;  %5147 = vmatpush1.bf16.msra.mxu0 %v9800_v38  ;;  %v12785_v36 = vld [vmem:[%s18005_s1 + $0x130] sm:$0xff]  }
 0x494   :  { %5107 = vmatprep.subr.bf16.mxu1 %v9791_v40  ;;  %5148 = vmatprep.subr.bf16.mxu0 %v9793_v44  ;;  %v12786_v38 = vld [vmem:[%s18005_s1 + $0x1b0] sm:$0xff]   ;;  %v12787_v40 = vld [vmem:[%s18005_s1 + $0x168] sm:$0xff]  }
 0x495   :  { %v12788_v44 = vld [vmem:[%s18005_s1 + $0x1e8] sm:$0xff]  }
 0x497   :  { %5108 = vmatpush1.bf16.msra.mxu1 %v9790_v46  ;;  %5149 = vmatpush1.bf16.msra.mxu0 %v9792_v48  ;;  %v12789_v46 = vld [vmem:[%s18005_s1 + $0x128] sm:$0xff]  }
 0x498   :  { %11189 = vmatprep.subr.bf16.mxu1 %v12747_v50  ;;  %11211 = vmatprep.subr.bf16.mxu0 %v12748_v18  ;;  %v12790_v48 = vld [vmem:[%s18005_s1 + $0x1a8] sm:$0xff]   ;;  %v12793_v50 = vld [vmem:[%s18005_s1 + $0x120] sm:$0xff]  }
 0x499   :  { %v12794_v18 = vld [vmem:[%s18005_s1 + $0x1a0] sm:$0xff]  }
 0x49a   :  { %5126 = vmatmul.mubr.bf16.vlgmr.msra.gmra.mxu1 %v15802_v39  ;;  %5167 = vmatmul.mubr.bf16.vlgmr.msra.gmra.mxu0 %v15802_v39  ;;  %v12753_v39 = vld [vmem:[%s18005_s1 + $0x30] sm:$0xff]  }
 0x49b   :  { %11190 = vmatpush3.bf16.msra.mxu1 %v12749_v54  ;;  %11212 = vmatpush3.bf16.msra.mxu0 %v12750_v47  ;;  %v12797_v54 = vld [vmem:[%s18005_s1 + $0x118] sm:$0xff]  }
 0x49c   :  { %11191 = vmatprep.subr.bf16.mxu1 %v12751_v49  ;;  %11213 = vmatprep.subr.bf16.mxu0 %v12752_v57  ;;  %v12798_v47 = vld [vmem:[%s18005_s1 + $0x198] sm:$0xff]   ;;  %v12799_v49 = vld [vmem:[%s18005_s1 + $0x150] sm:$0xff]  }
 0x49d   :  { %5317 = vmatprep.mubr.bf16.mxu1 %v9864_v19  ;;  %5357 = vmatprep.mubr.bf16.mxu0 %v9866_v31  ;;  %v12795_v19 = vld [vmem:[%s18005_s1 + $0x158] sm:$0xff]   ;;  %v12800_v57 = vld [vmem:[%s18005_s1 + $0x1d0] sm:$0xff]  }
 0x49e   :  { %v12796_v31 = vld [vmem:[%s18005_s1 + $0x1d8] sm:$0xff]  }
 0x49f   :  { %11192 = vmatpush3.bf16.msra.mxu1 %v12753_v39  ;;  %11214 = vmatpush3.bf16.msra.mxu0 %v12754_v27  ;;  %v12801_v39 = vld [vmem:[%s18005_s1 + $0x110] sm:$0xff]  }
 0x4a0   :  { %11193 = vmatprep.subr.bf16.mxu1 %v12755_v37  ;;  %11215 = vmatprep.subr.bf16.mxu0 %v12756_v17  ;;  %v12802_v27 = vld [vmem:[%s18005_s1 + $0x190] sm:$0xff]   ;;  %v12803_v37 = vld [vmem:[%s18005_s1 + $0x148] sm:$0xff]  }
 0x4a1   :  { %v12804_v17 = vld [vmem:[%s18005_s1 + $0x1c8] sm:$0xff]  }
 0x4a3   :  { %11194 = vmatpush3.bf16.msra.mxu1 %v12757_v2  ;;  %11216 = vmatpush3.bf16.msra.mxu0 %v12758_v52  ;;  %v12805_v2 = vld [vmem:[%s18005_s1 + $0x108] sm:$0xff]  }
 0x4a4   :  { %11195 = vmatprep.subr.bf16.mxu1 %v12759_v25  ;;  %11217 = vmatprep.subr.bf16.mxu0 %v12760_v1  ;;  %v12806_v52 = vld [vmem:[%s18005_s1 + $0x188] sm:$0xff]   ;;  %v12807_v25 = vld [vmem:[%s18005_s1 + $0x140] sm:$0xff]  }
 0x4a5   :  { %v12808_v1 = vld [vmem:[%s18005_s1 + $0x1c0] sm:$0xff]  }
 0x4a7   :  { %11196 = vmatpush3.bf16.msra.mxu1 %v12761_v3  ;;  %11218 = vmatpush3.bf16.msra.mxu0 %v12762_v56  ;;  %v9867_v3 = vcombine.low %v15993_v11, %v15993_v11  ;;  %v9869_v56 = vcombine.low %v15998_v42, %v15998_v42  ;;  %v12821_v11 = vld [vmem:[%s18005_s1 + $0x228] sm:$0xff]  }
 0x4a8   :  { %11197 = vmatprep.subr.bf16.mxu1 %v12763_v33  ;;  %11219 = vmatprep.subr.bf16.mxu0 %v12764_v4  ;;  %v16107_v33 = vld [vmem:[%s18006_s0 + $0x14c] sm:$0xff]  ;;  %v16112_v4 = vld [vmem:[%s18006_s0 + $0x154] sm:$0xff] }
 0x4a9   :  { %v12822_v42 = vld [vmem:[%s18005_s1 + $0x2a8] sm:$0xff]  }
 0x4ab   :  { %11198 = vmatpush3.bf16.msra.mxu1 %v12765_v21  ;;  %11220 = vmatpush3.bf16.msra.mxu0 %v12766_v6  ;;  %v12809_v21 = vld [vmem:[%s18005_s1 + $0x100] sm:$0xff]  }
 0x4ac   :  { %11199 = vmatprep.subr.bf16.mxu1 %v12767_v8  ;;  %11221 = vmatprep.subr.bf16.mxu0 %v12768_v10  ;;  %v12810_v6 = vld [vmem:[%s18005_s1 + $0x180] sm:$0xff]   ;;  %v12811_v8 = vld [vmem:[%s18005_s1 + $0x278] sm:$0xff]  }
 0x4ad   :  { %v12812_v10 = vld [vmem:[%s18005_s1 + $0x2f8] sm:$0xff]  }
 0x4af   :  { %11200 = vmatpush3.bf16.msra.mxu1 %v12769_v0  ;;  %11222 = vmatpush3.bf16.msra.mxu0 %v12770_v12  ;;  %v9872_v0 = vcombine.high %v16107_v33, %v16107_v33  ;;  %v9874_v12 = vcombine.high %v16112_v4, %v16112_v4 }
 0x4b0   :  { %11201 = vmatprep.subr.bf16.mxu1 %v12771_v53  ;;  %11223 = vmatprep.subr.bf16.mxu0 %v12772_v14  ;;  %v12813_v53 = vld [vmem:[%s18005_s1 + $0x238] sm:$0xff]  }
 0x4b1   :  { %v12814_v14 = vld [vmem:[%s18005_s1 + $0x2b8] sm:$0xff]  }
 0x4b3   :  { %11202 = vmatpush3.bf16.msra.mxu1 %v12773_v29  ;;  %11224 = vmatpush3.bf16.msra.mxu0 %v12774_v5  ;;  %v12815_v29 = vld [vmem:[%s18005_s1 + $0x270] sm:$0xff]  }
 0x4b4   :  { %11203 = vmatprep.subr.bf16.mxu1 %v12775_v7  ;;  %11225 = vmatprep.subr.bf16.mxu0 %v12776_v45  ;;  %v12816_v5 = vld [vmem:[%s18005_s1 + $0x2f0] sm:$0xff]  }
 0x4b5   :  { %v12817_v7 = vld [vmem:[%s18005_s1 + $0x230] sm:$0xff]  }
 0x4b6   :  { %v12818_v45 = vld [vmem:[%s18005_s1 + $0x2b0] sm:$0xff]  }
 0x4b7   :  { %11204 = vmatpush3.bf16.msra.mxu1 %v12777_v61  ;;  %11226 = vmatpush3.bf16.msra.mxu0 %v12778_v13  ;;  %v12823_v61 = vld [vmem:[%s18005_s1 + $0x260] sm:$0xff]  }
 0x4b8   :  { %11233 = vmatprep.subr.bf16.mxu1 %v12779_v41  ;;  %11255 = vmatprep.subr.bf16.mxu0 %v12780_v16  ;;  %v12824_v13 = vld [vmem:[%s18005_s1 + $0x2e0] sm:$0xff]  }
 0x4b9   :  { %v12825_v41 = vld [vmem:[%s18005_s1 + $0x220] sm:$0xff]  }
 0x4ba   :  { %5318 = vmatmul.mubr.bf16.vlgmr.msra.gmra.mxu1 %v9863_v58  ;;  %5358 = vmatmul.mubr.bf16.vlgmr.msra.gmra.mxu0 %v9865_v9  ;;  %v12819_v58 = vld [vmem:[%s18005_s1 + $0x268] sm:$0xff]   ;;  %v12826_v16 = vld [vmem:[%s18005_s1 + $0x2a0] sm:$0xff]  }
 0x4bb   :  { %11234 = vmatpush3.bf16.msra.mxu1 %v12781_v22  ;;  %11256 = vmatpush3.bf16.msra.mxu0 %v12782_v30  ;;  %v12820_v9 = vld [vmem:[%s18005_s1 + $0x2e8] sm:$0xff]   ;;  %v12829_v22 = vld [vmem:[%s18005_s1 + $0x218] sm:$0xff]  }
 0x4bc   :  { %11235 = vmatprep.subr.bf16.mxu1 %v12783_v32  ;;  %11257 = vmatprep.subr.bf16.mxu0 %v12784_v34  ;;  %v12830_v30 = vld [vmem:[%s18005_s1 + $0x298] sm:$0xff]   ;;  %v12831_v32 = vld [vmem:[%s18005_s1 + $0x250] sm:$0xff]  }
 0x4bd   :  { %5397 = vmatprep.mubr.bf16.mxu1 %v9868_v55  ;;  %5437 = vmatprep.mubr.bf16.mxu0 %v9870_v63  ;;  %v12827_v55 = vld [vmem:[%s18005_s1 + $0x258] sm:$0xff]   ;;  %v12832_v34 = vld [vmem:[%s18005_s1 + $0x2d0] sm:$0xff]  }
 0x4be   :  { %v12828_v63 = vld [vmem:[%s18005_s1 + $0x2d8] sm:$0xff]  }
 0x4bf   :  { %11236 = vmatpush3.bf16.msra.mxu1 %v12785_v36  ;;  %11258 = vmatpush3.bf16.msra.mxu0 %v12786_v38  ;;  %v12833_v36 = vld [vmem:[%s18005_s1 + $0x210] sm:$0xff]  }
 0x4c0   :  { %11237 = vmatprep.subr.bf16.mxu1 %v12787_v40  ;;  %11259 = vmatprep.subr.bf16.mxu0 %v12788_v44  ;;  %v12834_v38 = vld [vmem:[%s18005_s1 + $0x290] sm:$0xff]   ;;  %v12835_v40 = vld [vmem:[%s18005_s1 + $0x248] sm:$0xff]  }
 0x4c1   :  { %v12836_v44 = vld [vmem:[%s18005_s1 + $0x2c8] sm:$0xff]  }
 0x4c3   :  { %11238 = vmatpush3.bf16.msra.mxu1 %v12789_v46  ;;  %11260 = vmatpush3.bf16.msra.mxu0 %v12790_v48  ;;  %v12837_v46 = vld [vmem:[%s18005_s1 + $0x208] sm:$0xff]  }
 0x4c4   :  { %11239 = vmatprep.subr.bf16.mxu1 %v12791_v28  ;;  %11261 = vmatprep.subr.bf16.mxu0 %v12792_v35  ;;  %v12838_v48 = vld [vmem:[%s18005_s1 + $0x288] sm:$0xff]   ;;  %v12839_v28 = vld [vmem:[%s18005_s1 + $0x240] sm:$0xff]  }
 0x4c5   :  { %v12840_v35 = vld [vmem:[%s18005_s1 + $0x2c0] sm:$0xff]  }
 0x4c7   :  { %11240 = vmatpush3.bf16.msra.mxu1 %v12793_v50  ;;  %11262 = vmatpush3.bf16.msra.mxu0 %v12794_v18  ;;  %v9871_v50 = vcombine.low %v16107_v33, %v16107_v33  ;;  %v9873_v18 = vcombine.low %v16112_v4, %v16112_v4  ;;  %v12853_v33 = vld [vmem:[%s18005_s1 + $0x328] sm:$0xff]  }
 0x4c8   :  { %11241 = vmatprep.subr.bf16.mxu1 %v12795_v19  ;;  %11263 = vmatprep.subr.bf16.mxu0 %v12796_v31  ;;  %v16221_v19 = vld [vmem:[%s18006_s0 + $0x15c] sm:$0xff]  ;;  %v16226_v31 = vld [vmem:[%s18006_s0 + $0x164] sm:$0xff] }
 0x4c9   :  { %v12854_v4 = vld [vmem:[%s18005_s1 + $0x3a8] sm:$0xff]  }
 0x4cb   :  { %11242 = vmatpush3.bf16.msra.mxu1 %v12797_v54  ;;  %11264 = vmatpush3.bf16.msra.mxu0 %v12798_v47  ;;  %v12841_v54 = vld [vmem:[%s18005_s1 + $0x200] sm:$0xff]  }
 0x4cc   :  { %11243 = vmatprep.subr.bf16.mxu1 %v12799_v49  ;;  %11265 = vmatprep.subr.bf16.mxu0 %v12800_v57  ;;  %v12842_v47 = vld [vmem:[%s18005_s1 + $0x280] sm:$0xff]   ;;  %v12843_v49 = vld [vmem:[%s18005_s1 + $0x378] sm:$0xff]  }
 0x4cd   :  { %v12844_v57 = vld [vmem:[%s18005_s1 + $0x3f8] sm:$0xff]  }
 0x4cf   :  { %11244 = vmatpush3.bf16.msra.mxu1 %v12801_v39  ;;  %11266 = vmatpush3.bf16.msra.mxu0 %v12802_v27  ;;  %v9876_v39 = vcombine.high %v16221_v19, %v16221_v19  ;;  %v9878_v27 = vcombine.high %v16226_v31, %v16226_v31 }
 0x4d0   :  { %11245 = vmatprep.subr.bf16.mxu1 %v12803_v37  ;;  %11267 = vmatprep.subr.bf16.mxu0 %v12804_v17  ;;  %v12845_v37 = vld [vmem:[%s18005_s1 + $0x338] sm:$0xff]  }
 0x4d1   :  { %v12846_v17 = vld [vmem:[%s18005_s1 + $0x3b8] sm:$0xff]  }
 0x4d3   :  { %11246 = vmatpush3.bf16.msra.mxu1 %v12805_v2  ;;  %11268 = vmatpush3.bf16.msra.mxu0 %v12806_v52  ;;  %v12847_v2 = vld [vmem:[%s18005_s1 + $0x370] sm:$0xff]  }
 0x4d4   :  { %11247 = vmatprep.subr.bf16.mxu1 %v12807_v25  ;;  %11269 = vmatprep.subr.bf16.mxu0 %v12808_v1  ;;  %v12848_v52 = vld [vmem:[%s18005_s1 + $0x3f0] sm:$0xff]  }
 0x4d5   :  { %v12849_v25 = vld [vmem:[%s18005_s1 + $0x330] sm:$0xff]  }
 0x4d6   :  { %v12850_v1 = vld [vmem:[%s18005_s1 + $0x3b0] sm:$0xff]  }
 0x4d7   :  { %11248 = vmatpush3.bf16.msra.mxu1 %v12809_v21  ;;  %11270 = vmatpush3.bf16.msra.mxu0 %v12810_v6  ;;  %v12855_v21 = vld [vmem:[%s18005_s1 + $0x360] sm:$0xff]  }
 0x4d8   :  { %11277 = vmatprep.subr.bf16.mxu1 %v12811_v8  ;;  %11299 = vmatprep.subr.bf16.mxu0 %v12812_v10  ;;  %v12856_v6 = vld [vmem:[%s18005_s1 + $0x3e0] sm:$0xff]  }
 0x4d9   :  { %v12857_v8 = vld [vmem:[%s18005_s1 + $0x320] sm:$0xff]  }
 0x4da   :  { %5398 = vmatmul.mubr.bf16.vlgmr.msra.gmra.mxu1 %v9867_v3  ;;  %5438 = vmatmul.mubr.bf16.vlgmr.msra.gmra.mxu0 %v9869_v56  ;;  %v12851_v3 = vld [vmem:[%s18005_s1 + $0x368] sm:$0xff]   ;;  %v12858_v10 = vld [vmem:[%s18005_s1 + $0x3a0] sm:$0xff]  }
 0x4db   :  { %11278 = vmatpush3.bf16.msra.mxu1 %v12813_v53  ;;  %11300 = vmatpush3.bf16.msra.mxu0 %v12814_v14  ;;  %v12852_v56 = vld [vmem:[%s18005_s1 + $0x3e8] sm:$0xff]   ;;  %v12861_v53 = vld [vmem:[%s18005_s1 + $0x318] sm:$0xff]  }
 0x4dc   :  { %11279 = vmatprep.subr.bf16.mxu1 %v12815_v29  ;;  %11301 = vmatprep.subr.bf16.mxu0 %v12816_v5  ;;  %v12862_v14 = vld [vmem:[%s18005_s1 + $0x398] sm:$0xff]   ;;  %v12863_v29 = vld [vmem:[%s18005_s1 + $0x350] sm:$0xff]  }
 0x4dd   :  { %5477 = vmatprep.mubr.bf16.mxu1 %v9872_v0  ;;  %5517 = vmatprep.mubr.bf16.mxu0 %v9874_v12  ;;  %v12859_v0 = vld [vmem:[%s18005_s1 + $0x358] sm:$0xff]   ;;  %v12864_v5 = vld [vmem:[%s18005_s1 + $0x3d0] sm:$0xff]  }
 0x4de   :  { %v12860_v12 = vld [vmem:[%s18005_s1 + $0x3d8] sm:$0xff]  }
 0x4df   :  { %11280 = vmatpush3.bf16.msra.mxu1 %v12817_v7  ;;  %11302 = vmatpush3.bf16.msra.mxu0 %v12818_v45  ;;  %v12865_v7 = vld [vmem:[%s18005_s1 + $0x310] sm:$0xff]  }
 0x4e0   :  { %11281 = vmatprep.subr.bf16.mxu1 %v12819_v58  ;;  %11303 = vmatprep.subr.bf16.mxu0 %v12820_v9  ;;  %v12866_v45 = vld [vmem:[%s18005_s1 + $0x390] sm:$0xff]   ;;  %v12867_v58 = vld [vmem:[%s18005_s1 + $0x348] sm:$0xff]  }
 0x4e1   :  { %v12868_v9 = vld [vmem:[%s18005_s1 + $0x3c8] sm:$0xff]  }
 0x4e3   :  { %11282 = vmatpush3.bf16.msra.mxu1 %v12821_v11  ;;  %11304 = vmatpush3.bf16.msra.mxu0 %v12822_v42  ;;  %v12869_v11 = vld [vmem:[%s18005_s1 + $0x308] sm:$0xff]  }
 0x4e4   :  { %11283 = vmatprep.subr.bf16.mxu1 %v12823_v61  ;;  %11305 = vmatprep.subr.bf16.mxu0 %v12824_v13  ;;  %v12870_v42 = vld [vmem:[%s18005_s1 + $0x388] sm:$0xff]   ;;  %v12871_v61 = vld [vmem:[%s18005_s1 + $0x340] sm:$0xff]  }
 0x4e5   :  { %v12872_v13 = vld [vmem:[%s18005_s1 + $0x3c0] sm:$0xff]  }
 0x4e7   :  { %11284 = vmatpush3.bf16.msra.mxu1 %v12825_v41  ;;  %11306 = vmatpush3.bf16.msra.mxu0 %v12826_v16  ;;  %v9875_v41 = vcombine.low %v16221_v19, %v16221_v19  ;;  %v9877_v16 = vcombine.low %v16226_v31, %v16226_v31  ;;  %v12885_v19 = vld [vmem:[%s18005_s1 + $0x428] sm:$0xff]  }
 0x4e8   :  { %11285 = vmatprep.subr.bf16.mxu1 %v12827_v55  ;;  %11307 = vmatprep.subr.bf16.mxu0 %v12828_v63  ;;  %v16335_v55 = vld [vmem:[%s18006_s0 + $0x16c] sm:$0xff]  ;;  %v16340_v63 = vld [vmem:[%s18006_s0 + $0x174] sm:$0xff] }
 0x4e9   :  { %v12886_v31 = vld [vmem:[%s18005_s1 + $0x4a8] sm:$0xff]  }
 0x4eb   :  { %11286 = vmatpush3.bf16.msra.mxu1 %v12829_v22  ;;  %11308 = vmatpush3.bf16.msra.mxu0 %v12830_v30  ;;  %v12873_v22 = vld [vmem:[%s18005_s1 + $0x300] sm:$0xff]  }
 0x4ec   :  { %11287 = vmatprep.subr.bf16.mxu1 %v12831_v32  ;;  %11309 = vmatprep.subr.bf16.mxu0 %v12832_v34  ;;  %v12874_v30 = vld [vmem:[%s18005_s1 + $0x380] sm:$0xff]   ;;  %v12875_v32 = vld [vmem:[%s18005_s1 + $0x478] sm:$0xff]  }
 0x4ed   :  { %v12876_v34 = vld [vmem:[%s18005_s1 + $0x4f8] sm:$0xff]  }
 0x4ef   :  { %11288 = vmatpush3.bf16.msra.mxu1 %v12833_v36  ;;  %11310 = vmatpush3.bf16.msra.mxu0 %v12834_v38  ;;  %v9880_v36 = vcombine.high %v16335_v55, %v16335_v55  ;;  %v9882_v38 = vcombine.high %v16340_v63, %v16340_v63 }
 0x4f0   :  { %11289 = vmatprep.subr.bf16.mxu1 %v12835_v40  ;;  %11311 = vmatprep.subr.bf16.mxu0 %v12836_v44  ;;  %v12877_v40 = vld [vmem:[%s18005_s1 + $0x438] sm:$0xff]  }
 0x4f1   :  { %v12878_v44 = vld [vmem:[%s18005_s1 + $0x4b8] sm:$0xff]  }
 0x4f3   :  { %11290 = vmatpush3.bf16.msra.mxu1 %v12837_v46  ;;  %11312 = vmatpush3.bf16.msra.mxu0 %v12838_v48  ;;  %v12879_v46 = vld [vmem:[%s18005_s1 + $0x470] sm:$0xff]  }
 0x4f4   :  { %11291 = vmatprep.subr.bf16.mxu1 %v12839_v28  ;;  %11313 = vmatprep.subr.bf16.mxu0 %v12840_v35  ;;  %v12880_v48 = vld [vmem:[%s18005_s1 + $0x4f0] sm:$0xff]  }
 0x4f5   :  { %v12881_v28 = vld [vmem:[%s18005_s1 + $0x430] sm:$0xff]  }
 0x4f6   :  { %v12882_v35 = vld [vmem:[%s18005_s1 + $0x4b0] sm:$0xff]  }
 0x4f7   :  { %11292 = vmatpush3.bf16.msra.mxu1 %v12841_v54  ;;  %11314 = vmatpush3.bf16.msra.mxu0 %v12842_v47  ;;  %v12887_v54 = vld [vmem:[%s18005_s1 + $0x460] sm:$0xff]  }
 0x4f8   :  { %11321 = vmatprep.subr.bf16.mxu1 %v12843_v49  ;;  %11343 = vmatprep.subr.bf16.mxu0 %v12844_v57  ;;  %v12888_v47 = vld [vmem:[%s18005_s1 + $0x4e0] sm:$0xff]  }
 0x4f9   :  { %v12889_v49 = vld [vmem:[%s18005_s1 + $0x420] sm:$0xff]  }
 0x4fa   :  { %5478 = vmatmul.mubr.bf16.vlgmr.msra.gmra.mxu1 %v9871_v50  ;;  %5518 = vmatmul.mubr.bf16.vlgmr.msra.gmra.mxu0 %v9873_v18  ;;  %v12883_v50 = vld [vmem:[%s18005_s1 + $0x468] sm:$0xff]   ;;  %v12890_v57 = vld [vmem:[%s18005_s1 + $0x4a0] sm:$0xff]  }
 0x4fb   :  { %11322 = vmatpush3.bf16.msra.mxu1 %v12845_v37  ;;  %11344 = vmatpush3.bf16.msra.mxu0 %v12846_v17  ;;  %v12884_v18 = vld [vmem:[%s18005_s1 + $0x4e8] sm:$0xff]   ;;  %v12893_v37 = vld [vmem:[%s18005_s1 + $0x418] sm:$0xff]  }
 0x4fc   :  { %11323 = vmatprep.subr.bf16.mxu1 %v12847_v2  ;;  %11345 = vmatprep.subr.bf16.mxu0 %v12848_v52  ;;  %v12894_v17 = vld [vmem:[%s18005_s1 + $0x498] sm:$0xff]   ;;  %v12895_v2 = vld [vmem:[%s18005_s1 + $0x450] sm:$0xff]  }
 0x4fd   :  { %5557 = vmatprep.mubr.bf16.mxu1 %v9876_v39  ;;  %5597 = vmatprep.mubr.bf16.mxu0 %v9878_v27  ;;  %v12891_v39 = vld [vmem:[%s18005_s1 + $0x458] sm:$0xff]   ;;  %v12896_v52 = vld [vmem:[%s18005_s1 + $0x4d0] sm:$0xff]  }
 0x4fe   :  { %v12892_v27 = vld [vmem:[%s18005_s1 + $0x4d8] sm:$0xff]  }
 0x4ff   :  { %11324 = vmatpush3.bf16.msra.mxu1 %v12849_v25  ;;  %11346 = vmatpush3.bf16.msra.mxu0 %v12850_v1  ;;  %v12897_v25 = vld [vmem:[%s18005_s1 + $0x410] sm:$0xff]  }
 0x500   :  { %11325 = vmatprep.subr.bf16.mxu1 %v12851_v3  ;;  %11347 = vmatprep.subr.bf16.mxu0 %v12852_v56  ;;  %v12898_v1 = vld [vmem:[%s18005_s1 + $0x490] sm:$0xff]   ;;  %v12899_v3 = vld [vmem:[%s18005_s1 + $0x448] sm:$0xff]  }
 0x501   :  { %v12900_v56 = vld [vmem:[%s18005_s1 + $0x4c8] sm:$0xff]  }
 0x503   :  { %11326 = vmatpush3.bf16.msra.mxu1 %v12853_v33  ;;  %11348 = vmatpush3.bf16.msra.mxu0 %v12854_v4  ;;  %v12901_v33 = vld [vmem:[%s18005_s1 + $0x408] sm:$0xff]  }
 0x504   :  { %11327 = vmatprep.subr.bf16.mxu1 %v12855_v21  ;;  %11349 = vmatprep.subr.bf16.mxu0 %v12856_v6  ;;  %v12902_v4 = vld [vmem:[%s18005_s1 + $0x488] sm:$0xff]   ;;  %v12903_v21 = vld [vmem:[%s18005_s1 + $0x440] sm:$0xff]  }
 0x505   :  { %v12904_v6 = vld [vmem:[%s18005_s1 + $0x4c0] sm:$0xff]  }
 0x507   :  { %11328 = vmatpush3.bf16.msra.mxu1 %v12857_v8  ;;  %11350 = vmatpush3.bf16.msra.mxu0 %v12858_v10  ;;  %v9879_v8 = vcombine.low %v16335_v55, %v16335_v55  ;;  %v9881_v10 = vcombine.low %v16340_v63, %v16340_v63 }
 0x508   :  { %11329 = vmatprep.subr.bf16.mxu1 %v12859_v0  ;;  %11351 = vmatprep.subr.bf16.mxu0 %v12860_v12  ;;  %v16449_v0 = vld [vmem:[%s18006_s0 + $0x17c] sm:$0xff]  ;;  %v16454_v12 = vld [vmem:[%s18006_s0 + $0x184] sm:$0xff] }
 0x50b   :  { %11330 = vmatpush3.bf16.msra.mxu1 %v12861_v53  ;;  %11352 = vmatpush3.bf16.msra.mxu0 %v12862_v14  ;;  %v12905_v53 = vld [vmem:[%s18005_s1 + $0x400] sm:$0xff]  }
 0x50c   :  { %11331 = vmatprep.subr.bf16.mxu1 %v12863_v29  ;;  %11353 = vmatprep.subr.bf16.mxu0 %v12864_v5  ;;  %v12906_v14 = vld [vmem:[%s18005_s1 + $0x480] sm:$0xff]   ;;  %v12907_v29 = vld [vmem:[%s18005_s1 + $0x578] sm:$0xff]  }
 0x50d   :  { %v12908_v5 = vld [vmem:[%s18005_s1 + $0x5f8] sm:$0xff]  }
 0x50f   :  { %11332 = vmatpush3.bf16.msra.mxu1 %v12865_v7  ;;  %11354 = vmatpush3.bf16.msra.mxu0 %v12866_v45  ;;  %v9884_v7 = vcombine.high %v16449_v0, %v16449_v0  ;;  %v9886_v45 = vcombine.high %v16454_v12, %v16454_v12 }
 0x510   :  { %11333 = vmatprep.subr.bf16.mxu1 %v12867_v58  ;;  %11355 = vmatprep.subr.bf16.mxu0 %v12868_v9 }
 0x513   :  { %11334 = vmatpush3.bf16.msra.mxu1 %v12869_v11  ;;  %11356 = vmatpush3.bf16.msra.mxu0 %v12870_v42 }
 0x514   :  { %11335 = vmatprep.subr.bf16.mxu1 %v12871_v61  ;;  %11357 = vmatprep.subr.bf16.mxu0 %v12872_v13  ;;  %v12909_v61 = vld [vmem:[%s18005_s1 + $0x538] sm:$0xff]  }
 0x515   :  { %v12910_v13 = vld [vmem:[%s18005_s1 + $0x5b8] sm:$0xff]  }
 0x517   :  { %11336 = vmatpush3.bf16.msra.mxu1 %v12873_v22  ;;  %11358 = vmatpush3.bf16.msra.mxu0 %v12874_v30 }
 0x518   :  { %11365 = vmatprep.subr.bf16.mxu1 %v12875_v32  ;;  %11387 = vmatprep.subr.bf16.mxu0 %v12876_v34  ;;  %v12913_v32 = vld [vmem:[%s18005_s1 + $0x530] sm:$0xff]  }
 0x519   :  { %v12914_v34 = vld [vmem:[%s18005_s1 + $0x5b0] sm:$0xff]  }
 0x51a   :  { %5558 = vmatmul.mubr.bf16.vlgmr.msra.gmra.mxu1 %v9875_v41  ;;  %5598 = vmatmul.mubr.bf16.vlgmr.msra.gmra.mxu0 %v9877_v16 }
 0x51b   :  { %11366 = vmatpush3.bf16.msra.mxu1 %v12877_v40  ;;  %11388 = vmatpush3.bf16.msra.mxu0 %v12878_v44  ;;  %v12917_v40 = vld [vmem:[%s18005_s1 + $0x528] sm:$0xff]  }
 0x51c   :  { %11367 = vmatprep.subr.bf16.mxu1 %v12879_v46  ;;  %11389 = vmatprep.subr.bf16.mxu0 %v12880_v48  ;;  %v12918_v44 = vld [vmem:[%s18005_s1 + $0x5a8] sm:$0xff]   ;;  %v12919_v46 = vld [vmem:[%s18005_s1 + $0x560] sm:$0xff]  }
 0x51d   :  { %5637 = vmatprep.mubr.bf16.mxu1 %v9880_v36  ;;  %5677 = vmatprep.mubr.bf16.mxu0 %v9882_v38  ;;  %v12916_v38 = vld [vmem:[%s18005_s1 + $0x5e8] sm:$0xff]   ;;  %v12920_v48 = vld [vmem:[%s18005_s1 + $0x5e0] sm:$0xff]  }
 0x51f   :  { %11368 = vmatpush3.bf16.msra.mxu1 %v12881_v28  ;;  %11390 = vmatpush3.bf16.msra.mxu0 %v12882_v35  ;;  %v12921_v28 = vld [vmem:[%s18005_s1 + $0x520] sm:$0xff]  }
 0x520   :  { %11369 = vmatprep.subr.bf16.mxu1 %v12883_v50  ;;  %11391 = vmatprep.subr.bf16.mxu0 %v12884_v18  ;;  %v12922_v35 = vld [vmem:[%s18005_s1 + $0x5a0] sm:$0xff]   ;;  %v12923_v50 = vld [vmem:[%s18005_s1 + $0x558] sm:$0xff]  }
 0x521   :  { %v12924_v18 = vld [vmem:[%s18005_s1 + $0x5d8] sm:$0xff]  }
 0x523   :  { %11370 = vmatpush3.bf16.msra.mxu1 %v12885_v19  ;;  %11392 = vmatpush3.bf16.msra.mxu0 %v12886_v31  ;;  %v12925_v19 = vld [vmem:[%s18005_s1 + $0x518] sm:$0xff]  }
 0x524   :  { %11371 = vmatprep.subr.bf16.mxu1 %v12887_v54  ;;  %11393 = vmatprep.subr.bf16.mxu0 %v12888_v47  ;;  %v12926_v31 = vld [vmem:[%s18005_s1 + $0x598] sm:$0xff]   ;;  %v12927_v54 = vld [vmem:[%s18005_s1 + $0x550] sm:$0xff]  }
 0x525   :  { %v12928_v47 = vld [vmem:[%s18005_s1 + $0x5d0] sm:$0xff]  }
 0x527   :  { %11372 = vmatpush3.bf16.msra.mxu1 %v12889_v49  ;;  %11394 = vmatpush3.bf16.msra.mxu0 %v12890_v57  ;;  %v12929_v49 = vld [vmem:[%s18005_s1 + $0x510] sm:$0xff]  }
 0x528   :  { %11373 = vmatprep.subr.bf16.mxu1 %v12891_v39  ;;  %11395 = vmatprep.subr.bf16.mxu0 %v12892_v27  ;;  %v12930_v57 = vld [vmem:[%s18005_s1 + $0x590] sm:$0xff]   ;;  %v12931_v39 = vld [vmem:[%s18005_s1 + $0x548] sm:$0xff]  }
 0x529   :  { %v12932_v27 = vld [vmem:[%s18005_s1 + $0x5c8] sm:$0xff]  }
 0x52b   :  { %11374 = vmatpush3.bf16.msra.mxu1 %v12893_v37  ;;  %11396 = vmatpush3.bf16.msra.mxu0 %v12894_v17  ;;  %v12933_v37 = vld [vmem:[%s18005_s1 + $0x508] sm:$0xff]  }
 0x52c   :  { %11375 = vmatprep.subr.bf16.mxu1 %v12895_v2  ;;  %11397 = vmatprep.subr.bf16.mxu0 %v12896_v52  ;;  %v12934_v17 = vld [vmem:[%s18005_s1 + $0x588] sm:$0xff]   ;;  %v12935_v2 = vld [vmem:[%s18005_s1 + $0x540] sm:$0xff]  }
 0x52d   :  { %v12936_v52 = vld [vmem:[%s18005_s1 + $0x5c0] sm:$0xff]  }
 0x52f   :  { %11376 = vmatpush3.bf16.msra.mxu1 %v12897_v25  ;;  %11398 = vmatpush3.bf16.msra.mxu0 %v12898_v1  ;;  %v9883_v25 = vcombine.low %v16449_v0, %v16449_v0  ;;  %v9885_v1 = vcombine.low %v16454_v12, %v16454_v12 }
 0x530   :  { %11377 = vmatprep.subr.bf16.mxu1 %v12899_v3  ;;  %11399 = vmatprep.subr.bf16.mxu0 %v12900_v56  ;;  %v12937_v3 = vld [vmem:[%s18005_s1 + $0x500] sm:$0xff]  }
 0x531   :  { %v12938_v56 = vld [vmem:[%s18005_s1 + $0x580] sm:$0xff]  }
 0x533   :  { %11378 = vmatpush3.bf16.msra.mxu1 %v12901_v33  ;;  %11400 = vmatpush3.bf16.msra.mxu0 %v12902_v4 }
 0x534   :  { %11379 = vmatprep.subr.bf16.mxu1 %v12903_v21  ;;  %11401 = vmatprep.subr.bf16.mxu0 %v12904_v6 }
 0x537   :  { %11380 = vmatpush3.bf16.msra.mxu1 %v12905_v53  ;;  %11402 = vmatpush3.bf16.msra.mxu0 %v12906_v14  ;;  %v12940_v14 = vld [vmem:[%s18005_s1 + $0x630] sm:$0xff]  }
 0x538   :  { %11409 = vmatprep.subr.bf16.mxu1 %v12907_v29  ;;  %11431 = vmatprep.subr.bf16.mxu0 %v12908_v5 }
 0x53a   :  { %5638 = vmatmul.mubr.bf16.vlgmr.msra.gmra.mxu1 %v9879_v8  ;;  %v5045_v58 = vpop.f32.mrf.mxu1  ;;  %v5086_v9 = vpop.f32.mrf.mxu0  ;;  %5678 = vmatmul.mubr.bf16.vlgmr.msra.gmra.mxu0 %v9881_v10  ;;  %v12939_v8 = vld [vmem:[%s18005_s1 + $0x638] sm:$0xff]  }
 0x53b   :  { %v16473_v11 = vadd.f32 %v5045_v58, %v15504_v59  ;;  %v16476_v42 = vadd.f32 %v5086_v9, %v15507_v43  ;;  %11410 = vmatpush3.bf16.msra.mxu1 %v12909_v61  ;;  %11432 = vmatpush3.bf16.msra.mxu0 %v12910_v13  ;;  %v12911_v59 = vld [vmem:[%s18005_s1 + $0x570] sm:$0xff]   ;;  %v12945_v58 = vld [vmem:[%s18005_s1 + $0x608] sm:$0xff]   ;;  %v12946_v61 = vld [vmem:[%s18005_s1 + $0x600] sm:$0xff]  }
 0x53c   :  { %v5047_v41 = vpop.f32.mrf.mxu1  ;;  %v5088_v16 = vpop.f32.mrf.mxu0  ;;  %11411 = vmatprep.subr.bf16.mxu1 %v12911_v59  ;;  %v12912_v43 = vld [vmem:[%s18005_s1 + $0x5f0] sm:$0xff]   ;;  %5717 = vmatprep.mubr.bf16.mxu1 %v9884_v7  ;;  %v12941_v7 = vld [vmem:[%s18005_s1 + $0x628] sm:$0xff]  }
 0x53d   :  { %11433 = vmatprep.subr.bf16.mxu0 %v12912_v43  ;;  %v16491_v55 = vadd.f32 %v5047_v41, %v15522_v60  ;;  %v16494_v63 = vadd.f32 %v5088_v16, %v15525_v62  ;;  %5757 = vmatprep.mubr.bf16.mxu0 %v9886_v45  ;;  %v12915_v62 = vld [vmem:[%s18005_s1 + $0x568] sm:$0xff]   ;;  %v12944_v45 = vld [vmem:[%s18005_s1 + $0x610] sm:$0xff]  }
 0x53e   :  { %v5049_v22 = vpop.f32.mrf.mxu1  ;;  %v5090_v30 = vpop.f32.mrf.mxu0  ;;  %v11888_v9 = vld [vmem:[%s18006_s0 + $0x18c] ss:$0 sps:$4 sm:$0xff]  }
 0x53f   :  { %11412 = vmatpush3.bf16.msra.mxu1 %v12913_v32  ;;  %11434 = vmatpush3.bf16.msra.mxu0 %v12914_v34  ;;  %v12947_v32 = vld [vmem:[%s18007_s2] ss:$0 sm:$0xff] }
 0x540   :  { %v5050_v36 = vpop.f32.mrf.mxu1  ;;  %v5091_v60 = vpop.f32.mrf.mxu0  ;;  %11413 = vmatprep.subr.bf16.mxu1 %v12915_v62  ;;  %11435 = vmatprep.subr.bf16.mxu0 %v12916_v38 }
 0x543   :  { %11414 = vmatpush3.bf16.msra.mxu1 %v12917_v40  ;;  %11436 = vmatpush3.bf16.msra.mxu0 %v12918_v44 }
 0x544   :  { %11415 = vmatprep.subr.bf16.mxu1 %v12919_v46  ;;  %11437 = vmatprep.subr.bf16.mxu0 %v12920_v48 }
 0x547   :  { %11416 = vmatpush3.bf16.msra.mxu1 %v12921_v28  ;;  %11438 = vmatpush3.bf16.msra.mxu0 %v12922_v35 }
 0x548   :  { %11417 = vmatprep.subr.bf16.mxu1 %v12923_v50  ;;  %11439 = vmatprep.subr.bf16.mxu0 %v12924_v18  ;;  %v9944_v18 = vld [vmem:[%s18008_s3 + $0x7c0] sm:$0xff] }
 0x54b   :  { %11418 = vmatpush3.bf16.msra.mxu1 %v12925_v19  ;;  %11440 = vmatpush3.bf16.msra.mxu0 %v12926_v31  ;;  %v9948_v19 = vld [vmem:[%s18008_s3 + $0x7e0] sm:$0xff]  ;;  %v9945_v31 = vld [vmem:[%s18008_s3 + $0x7c8] sm:$0xff] }
 0x54c   :  { %11419 = vmatprep.subr.bf16.mxu1 %v12927_v54  ;;  %11441 = vmatprep.subr.bf16.mxu0 %v12928_v47  ;;  %v10009_v47 = vcombine.high %v9944_v18, %v9948_v19 }
 0x54f   :  { %11420 = vmatpush3.bf16.msra.mxu1 %v12929_v49  ;;  %11442 = vmatpush3.bf16.msra.mxu0 %v12930_v57  ;;  %v9949_v49 = vld [vmem:[%s18008_s3 + $0x7e8] sm:$0xff] }
 0x550   :  { %11421 = vmatprep.subr.bf16.mxu1 %v12931_v39  ;;  %11443 = vmatprep.subr.bf16.mxu0 %v12932_v27  ;;  %v10008_v27 = vcombine.low %v9944_v18, %v9948_v19 }
 0x553   :  { %11422 = vmatpush3.bf16.msra.mxu1 %v12933_v37  ;;  %11444 = vmatpush3.bf16.msra.mxu0 %v12934_v17  ;;  %v10010_v37 = vcombine.low %v9945_v31, %v9949_v49  ;;  %v10011_v17 = vcombine.high %v9945_v31, %v9949_v49 }
 0x554   :  { %11423 = vmatprep.subr.bf16.mxu1 %v12935_v2  ;;  %11445 = vmatprep.subr.bf16.mxu0 %v12936_v52  ;;  %v9936_v2 = vld [vmem:[%s18008_s3 + $0x780] sm:$0xff] }
 0x555   :  { %v9940_v52 = vld [vmem:[%s18008_s3 + $0x7a0] sm:$0xff] }
 0x557   :  { %11424 = vmatpush3.bf16.msra.mxu1 %v12937_v3  ;;  %11446 = vmatpush3.bf16.msra.mxu0 %v12938_v56  ;;  %v10001_v3 = vcombine.high %v9936_v2, %v9940_v52  ;;  %v9941_v56 = vld [vmem:[%s18008_s3 + $0x7a8] sm:$0xff] }
 0x558   :  { %11566 = vmatprep.subr.bf16.mxu1 %v18047_v51  ;;  %6194 = vmatprep.subr.bf16.mxu0 %v10009_v47 }
 0x55a   :  { %v5127_v33 = vpop.f32.mrf.mxu1  ;;  %v5168_v4 = vpop.f32.mrf.mxu0  ;;  %5718 = vmatmul.mubr.bf16.vlgmr.msra.gmra.mxu1 %v9883_v25  ;;  %5758 = vmatmul.mubr.bf16.vlgmr.msra.gmra.mxu0 %v9885_v1  ;;  %v9937_v25 = vld [vmem:[%s18008_s3 + $0x788] sm:$0xff] }
 0x55b   :  { %v16580_v21 = vadd.f32 %v5127_v33, %v15611_v24  ;;  %v16583_v6 = vadd.f32 %v5168_v4, %v15614_v26  ;;  %11567 = vmatpush3.bf16.msra.mxu1 %v12939_v8  ;;  %11582 = vmatprep.mubr.msk.bf16.mxu1 %vm12949_vm0, %v18047_v51  ;;  %v9928_v33 = vld [vmem:[%s18008_s3 + $0x740] sm:$0xff]  ;;  %v10000_v8 = vcombine.low %v9936_v2, %v9940_v52  ;;  %v9893_v2 = vld [vmem:[%s18008_s3 + $0x628] sm:$0xff] }
 0x55c   :  { %v5129_v10 = vpop.f32.mrf.mxu1  ;;  %v5170_v0 = vpop.f32.mrf.mxu0  ;;  %11568 = vmatprep.subr.bf16.mxu1 %v18047_v51  ;;  %6226 = vmatprep.mubr.bf16.mxu0 %v12950_v20  ;;  %v9932_v4 = vld [vmem:[%s18008_s3 + $0x760] sm:$0xff] }
 0x55d   :  { %v16593_v24 = vadd.f32 %v5129_v10, %v15624_v15  ;;  %v16596_v26 = vadd.f32 %v5170_v0, %v15627_v23  ;;  %v12942_v15 = vld [vmem:[%s18005_s1 + $0x620] sm:$0xff]   ;;  %v12943_v23 = vld [vmem:[%s18005_s1 + $0x618] sm:$0xff]   ;;  %6195 = vmatpush1.bf16.msra.mxu0 %v10008_v27  ;;  %v10003_v10 = vcombine.high %v9937_v25, %v9941_v56  ;;  %v9929_v0 = vld [vmem:[%s18008_s3 + $0x748] sm:$0xff] }
 0x55e   :  { %v5131_v12 = vpop.f32.mrf.mxu1  ;;  %v5172_v53 = vpop.f32.mrf.mxu0  ;;  %6196 = vmatprep.subr.bf16.mxu0 %v10001_v3  ;;  %v9892_v27 = vld [vmem:[%s18008_s3 + $0x620] sm:$0xff] }
 0x55f   :  { %11569 = vmatpush3.bf16.msra.mxu1 %v12940_v14  ;;  %v9933_v12 = vld [vmem:[%s18008_s3 + $0x768] sm:$0xff]  ;;  %v10002_v53 = vcombine.low %v9937_v25, %v9941_v56  ;;  %v9993_v14 = vcombine.high %v9928_v33, %v9932_v4 }
 0x560   :  { %v5132_v29 = vpop.f32.mrf.mxu1  ;;  %v5173_v5 = vpop.f32.mrf.mxu0  ;;  %11570 = vmatprep.subr.bf16.mxu1 %v18047_v51 }
 0x561   :  { %v9995_v29 = vcombine.high %v9929_v0, %v9933_v12  ;;  %v9920_v5 = vld [vmem:[%s18008_s3 + $0x700] sm:$0xff]  ;;  %6197 = vmatpush1.bf16.msra.mxu0 %v10000_v8 }
 0x562   :  { %6198 = vmatprep.subr.bf16.mxu0 %v9993_v14  ;;  %v16743_v14 = vld [vmem:[%s18008_s3 + $0x7d8] sm:$0xff] }
 0x563   :  { %11571 = vmatpush3.bf16.msra.mxu1 %v12941_v7  ;;  %v9924_v7 = vld [vmem:[%s18008_s3 + $0x720] sm:$0xff] }
 0x564   :  { %11572 = vmatprep.subr.bf16.mxu1 %v18047_v51 }
 0x567   :  { %11573 = vmatpush3.bf16.msra.mxu1 %v12942_v15  ;;  %v9921_v15 = vld [vmem:[%s18008_s3 + $0x708] sm:$0xff] }
 0x568   :  { %11574 = vmatprep.subr.bf16.mxu1 %v18047_v51 }
 0x56b   :  { %11575 = vmatpush3.bf16.msra.mxu1 %v12943_v23  ;;  %v9925_v23 = vld [vmem:[%s18008_s3 + $0x728] sm:$0xff] }
 0x56c   :  { %11576 = vmatprep.subr.bf16.mxu1 %v18047_v51 }
 0x56f   :  { %11577 = vmatpush3.bf16.msra.mxu1 %v12944_v45  ;;  %v9992_v45 = vcombine.low %v9928_v33, %v9932_v4 }
 0x570   :  { %11578 = vmatprep.subr.bf16.mxu1 %v18047_v51 }
 0x571   :  { %6199 = vmatpush1.bf16.msra.mxu0 %v9992_v45 }
 0x573   :  { %11579 = vmatpush3.bf16.msra.mxu1 %v12945_v58  ;;  %v9994_v58 = vcombine.low %v9929_v0, %v9933_v12  ;;  %v16733_v12 = vld [vmem:[%s18008_s3 + $0x7d0] sm:$0xff] }
 0x574   :  { %11580 = vmatprep.subr.bf16.mxu1 %v18047_v51 }
 0x577   :  { %11581 = vmatpush3.bf16.msra.mxu1 %v12946_v61  ;;  %v9987_v61 = vcombine.high %v9921_v15, %v9925_v23 }
 0x578   :  { %6235 = vmatprep.subr.bf16.mxu1 %v10011_v17 }
 0x57a   :  { %v11205_v13 = vpop.f32.mrf.mxu1  ;;  %11583 = vmatmul.mubr.bf16.vlgmr.msra.gmra.mxu1 %v11888_v9  ;;  %v11227_v41 = vpop.f32.mrf.mxu0  ;;  %v9985_v9 = vcombine.high %v9920_v5, %v9924_v7 }
 0x57b   :  { %6267 = vmatprep.mubr.bf16.mxu1 %v12950_v20  ;;  %6236 = vmatpush1.bf16.msra.mxu1 %v10010_v37  ;;  %v9889_v37 = vld [vmem:[%s18008_s3 + $0x608] sm:$0xff] }
 0x57c   :  { %v11206_v16 = vpop.f32.mrf.mxu1  ;;  %v11228_v59 = vpop.f32.mrf.mxu0  ;;  %6237 = vmatprep.subr.bf16.mxu1 %v10003_v10  ;;  %6200 = vmatprep.subr.bf16.mxu0 %v9985_v9  ;;  %v9954_v56 = vcombine.low %v9889_v37, %v9893_v2  ;;  %v9955_v33 = vcombine.high %v9889_v37, %v9893_v2 }
 0x57d   :  { %v11207_v43 = vadd.f32 %v11206_v16, %v11205_v13  ;;  %v11229_v22 = vadd.f32 %v11228_v59, %v11227_v41  ;;  %v9912_v13 = vld [vmem:[%s18008_s3 + $0x6c0] sm:$0xff]  ;;  %v9913_v16 = vld [vmem:[%s18008_s3 + $0x6c8] sm:$0xff] }
 0x57e   :  { %v11208_v30 = vpop.f32.mrf.mxu1  ;;  %v11230_v51 = vpop.f32.mrf.mxu0  ;;  %v9916_v41 = vld [vmem:[%s18008_s3 + $0x6e0] sm:$0xff]  ;;  %v9917_v59 = vld [vmem:[%s18008_s3 + $0x6e8] sm:$0xff] }
 0x57f   :  { %v5320_v34 = vadd.f32 %v12947_v32, %v11207_v43  ;;  %6238 = vmatpush1.bf16.msra.mxu1 %v10002_v53  ;;  %v9984_v43 = vcombine.low %v9920_v5, %v9924_v7  ;;  %v9977_v30 = vcombine.high %v9912_v13, %v9916_v41  ;;  %v9979_v51 = vcombine.high %v9913_v16, %v9917_v59  ;;  %v9904_v32 = vld [vmem:[%s18008_s3 + $0x680] sm:$0xff]  ;;  %v16738_v53 = vld [vmem:[%s18008_s3 + $0x7f0] sm:$0xff]  ;;  %v16751_v7 = vld [vmem:[%s18008_s3 + $0x7f8] sm:$0xff] }
 0x580   :  { %v11209_v36 = vpop.f32.mrf.mxu1  ;;  %v11231_v60 = vpop.f32.mrf.mxu0  ;;  %6239 = vmatprep.subr.bf16.mxu1 %v9995_v29  ;;  %v10013_v5 = vcombine.high %v16733_v12, %v16738_v53  ;;  %v10012_v45 = vcombine.low %v16733_v12, %v16738_v53  ;;  %v9923_v12 = vld [vmem:[%s18008_s3 + $0x718] sm:$0xff] }
 0x581   :  { %v5360_v62 = vadd.f32 %v11229_v22, %v5320_v34  ;;  %v9986_v22 = vcombine.low %v9921_v15, %v9925_v23  ;;  %v9908_v34 = vld [vmem:[%s18008_s3 + $0x6a0] sm:$0xff]  ;;  %v9905_v36 = vld [vmem:[%s18008_s3 + $0x688] sm:$0xff]  ;;  %6201 = vmatpush1.bf16.msra.mxu0 %v9984_v43  ;;  %v9927_v53 = vld [vmem:[%s18008_s3 + $0x738] sm:$0xff] }
 0x582   :  { %v9909_v60 = vld [vmem:[%s18008_s3 + $0x6a8] sm:$0xff]  ;;  %6202 = vmatprep.subr.bf16.mxu0 %v9977_v30 }
 0x583   :  { %6240 = vmatpush1.bf16.msra.mxu1 %v9994_v58  ;;  %v9970_v18 = vcombine.low %v9905_v36, %v9909_v60  ;;  %v10014_v58 = vcombine.low %v16743_v14, %v16751_v7 }
 0x584   :  { %6241 = vmatprep.subr.bf16.mxu1 %v9987_v61 }
 0x587   :  { %6242 = vmatpush1.bf16.msra.mxu1 %v9986_v22 }
 0x588   :  { %6243 = vmatprep.subr.bf16.mxu1 %v9979_v51 }
 0x59a   :  { %v11249_v38 = vpop.f32.mrf.mxu1  ;;  %v11271_v40 = vpop.f32.mrf.mxu0 }
 0x59c   :  { %v11250_v44 = vpop.f32.mrf.mxu1  ;;  %v11272_v46 = vpop.f32.mrf.mxu0 }
 0x59d   :  { %v11251_v48 = vadd.f32 %v11250_v44, %v11249_v38  ;;  %v11273_v28 = vadd.f32 %v11272_v46, %v11271_v40  ;;  %v9978_v38 = vcombine.low %v9913_v16, %v9917_v59  ;;  %v9969_v40 = vcombine.high %v9904_v32, %v9908_v34  ;;  %v9896_v46 = vld [vmem:[%s18008_s3 + $0x640] sm:$0xff] }
 0x59e   :  { %v11252_v35 = vpop.f32.mrf.mxu1  ;;  %v11274_v50 = vpop.f32.mrf.mxu0  ;;  %v9971_v44 = vcombine.high %v9905_v36, %v9909_v60 }
 0x59f   :  { %v5400_v54 = vadd.f32 %v11251_v48, %v5360_v62  ;;  %v9976_v62 = vcombine.low %v9912_v13, %v9916_v41  ;;  %v9900_v48 = vld [vmem:[%s18008_s3 + $0x660] sm:$0xff]  ;;  %v9901_v35 = vld [vmem:[%s18008_s3 + $0x668] sm:$0xff]  ;;  %v9968_v50 = vcombine.low %v9904_v32, %v9908_v34  ;;  %6244 = vmatpush1.bf16.msra.mxu1 %v9978_v38 }
 0x5a0   :  { %v11253_v57 = vpop.f32.mrf.mxu1  ;;  %v11275_v39 = vpop.f32.mrf.mxu0  ;;  %v9961_v19 = vcombine.high %v9896_v46, %v9900_v48  ;;  %6245 = vmatprep.subr.bf16.mxu1 %v9971_v44 }
 0x5a1   :  { %v16653_v1 = vadd.f32 %v11273_v28, %v5400_v54  ;;  %v9897_v28 = vld [vmem:[%s18008_s3 + $0x648] sm:$0xff]  ;;  %6203 = vmatpush1.bf16.msra.mxu0 %v9976_v62  ;;  %v9960_v54 = vcombine.low %v9896_v46, %v9900_v48  ;;  %v9888_v39 = vld [vmem:[%s18008_s3 + $0x600] sm:$0xff] }
 0x5a2   :  { %6204 = vmatprep.subr.bf16.mxu0 %v9969_v40  ;;  %v9963_v31 = vcombine.high %v9897_v28, %v9901_v35  ;;  %v9962_v47 = vcombine.low %v9897_v28, %v9901_v35  ;;  %v9953_v17 = vcombine.high %v9888_v39, %v9892_v27  ;;  %v9952_v3 = vcombine.low %v9888_v39, %v9892_v27 }
 0x5a3   :  { %6246 = vmatpush1.bf16.msra.mxu1 %v9970_v18 }
 0x5a4   :  { %6247 = vmatprep.subr.bf16.mxu1 %v9963_v31 }
 0x5a5   :  { %6205 = vmatpush1.bf16.msra.mxu0 %v9968_v50 }
 0x5a6   :  { %6206 = vmatprep.subr.bf16.mxu0 %v9961_v19 }
 0x5a7   :  { %6248 = vmatpush1.bf16.msra.mxu1 %v9962_v47 }
 0x5a8   :  { %6249 = vmatprep.subr.bf16.mxu1 %v9955_v33 }
 0x5a9   :  { %6207 = vmatpush1.bf16.msra.mxu0 %v9960_v54 }
 0x5aa   :  { %6208 = vmatprep.subr.bf16.mxu0 %v9953_v17 }
 0x5ab   :  { %6250 = vmatpush1.bf16.msra.mxu1 %v9954_v56 }
 0x5ad   :  { %6209 = vmatpush1.bf16.msra.mxu0 %v9952_v3 }
 0x5ae   :  { %6276 = vmatprep.subr.bf16.mxu0 %v10013_v5 }
 0x5ba   :  { %v11293_v49 = vpop.f32.mrf.mxu1  ;;  %v11315_v57 = vpop.f32.mrf.mxu0 }
 0x5bc   :  { %v11294_v52 = vpop.f32.mrf.mxu1  ;;  %v11316_v25 = vpop.f32.mrf.mxu0 }
 0x5bd   :  { %v11295_v4 = vadd.f32 %v11294_v52, %v11293_v49  ;;  %v11317_v8 = vadd.f32 %v11316_v25, %v11315_v57 }
 0x5be   :  { %v11296_v10 = vpop.f32.mrf.mxu1  ;;  %v11318_v0 = vpop.f32.mrf.mxu0 }
 0x5bf   :  { %v5480_v29 = vadd.f32 %v11295_v4, %v16653_v1  ;;  %v10015_v1 = vcombine.high %v16743_v14, %v16751_v7  ;;  %v9938_v4 = vld [vmem:[%s18008_s3 + $0x790] sm:$0xff]  ;;  %v9939_v0 = vld [vmem:[%s18008_s3 + $0x798] sm:$0xff] }
 0x5c0   :  { %v11297_v15 = vpop.f32.mrf.mxu1  ;;  %v11319_v23 = vpop.f32.mrf.mxu0  ;;  %v9942_v10 = vld [vmem:[%s18008_s3 + $0x7b0] sm:$0xff] }
 0x5c1   :  { %v5520_v9 = vadd.f32 %v11317_v8, %v5480_v29  ;;  %6317 = vmatprep.subr.bf16.mxu1 %v10015_v1  ;;  %v9943_v29 = vld [vmem:[%s18008_s3 + $0x7b8] sm:$0xff] }
 0x5da   :  { %v11337_v61 = vpop.f32.mrf.mxu1  ;;  %v11359_v13 = vpop.f32.mrf.mxu0 }
 0x5dc   :  { %v11338_v41 = vpop.f32.mrf.mxu1  ;;  %v11360_v16 = vpop.f32.mrf.mxu0 }
 0x5dd   :  { %v11339_v59 = vadd.f32 %v11338_v41, %v11337_v61  ;;  %v11361_v43 = vadd.f32 %v11360_v16, %v11359_v13  ;;  %v10007_v61 = vcombine.high %v9939_v0, %v9943_v29  ;;  %v9930_v13 = vld [vmem:[%s18008_s3 + $0x750] sm:$0xff]  ;;  %v9931_v16 = vld [vmem:[%s18008_s3 + $0x758] sm:$0xff] }
 0x5de   :  { %v11340_v22 = vpop.f32.mrf.mxu1  ;;  %v11362_v30 = vpop.f32.mrf.mxu0  ;;  %v9934_v41 = vld [vmem:[%s18008_s3 + $0x770] sm:$0xff] }
 0x5df   :  { %v5560_v51 = vadd.f32 %v11339_v59, %v5520_v9  ;;  %v10005_v9 = vcombine.high %v9938_v4, %v9942_v10  ;;  %v9935_v59 = vld [vmem:[%s18008_s3 + $0x778] sm:$0xff]  ;;  %v10006_v22 = vcombine.low %v9939_v0, %v9943_v29  ;;  %v9997_v30 = vcombine.high %v9930_v13, %v9934_v41 }
 0x5e0   :  { %v11341_v32 = vpop.f32.mrf.mxu1  ;;  %v11363_v34 = vpop.f32.mrf.mxu0  ;;  %v9996_v14 = vcombine.low %v9930_v13, %v9934_v41  ;;  %v9998_v7 = vcombine.low %v9931_v16, %v9935_v59  ;;  %v11900_v13 = vld [vmem:[%s18009_s5 + $0x164] ss:$8 sps:$4 sm:$0xff]   ;;  %v11895_v41 = vld [vmem:[%s18009_s5 + $0x60] ss:$8 sps:$4 sm:$0xff]  }
 0x5e1   :  { %v5600_v36 = vadd.f32 %v11361_v43, %v5560_v51  ;;  %v10004_v43 = vcombine.low %v9938_v4, %v9942_v10  ;;  %v9999_v51 = vcombine.high %v9931_v16, %v9935_v59  ;;  %v9922_v32 = vld [vmem:[%s18008_s3 + $0x710] sm:$0xff]  ;;  %v11898_v16 = vld [vmem:[%s18009_s5 + $0x160] ss:$8 sps:$4 sm:$0xff]  }
 0x5e2   :  { %v9926_v34 = vld [vmem:[%s18008_s3 + $0x730] sm:$0xff] }
 0x5e3   :  { %v11903_v59 = vld [vmem:[%s18009_s5 + $0x54] ss:$8 sps:$4 sm:$0xff]  }
 0x5fa   :  { %v11381_v60 = vpop.f32.mrf.mxu1  ;;  %v11403_v62 = vpop.f32.mrf.mxu0 }
 0x5fc   :  { %v11382_v38 = vpop.f32.mrf.mxu1  ;;  %v11404_v40 = vpop.f32.mrf.mxu0 }
 0x5fd   :  { %v11383_v57 = vadd.f32 %v11382_v38, %v11381_v60  ;;  %v11405_v27 = vadd.f32 %v11404_v40, %v11403_v62  ;;  %v9918_v60 = vld [vmem:[%s18008_s3 + $0x6f0] sm:$0xff]  ;;  %v9919_v62 = vld [vmem:[%s18008_s3 + $0x6f8] sm:$0xff]  ;;  %v9988_v38 = vcombine.low %v9922_v32, %v9926_v34  ;;  %v9990_v40 = vcombine.low %v9923_v12, %v9927_v53 }
 0x5fe   :  { %v11384_v44 = vpop.f32.mrf.mxu1  ;;  %v11406_v46 = vpop.f32.mrf.mxu0 }
 0x5ff   :  { %v5640_v39 = vadd.f32 %v11383_v57, %v5600_v36  ;;  %v9914_v36 = vld [vmem:[%s18008_s3 + $0x6d0] sm:$0xff]  ;;  %v9899_v57 = vld [vmem:[%s18008_s3 + $0x658] sm:$0xff] }
 0x600   :  { %v11385_v48 = vpop.f32.mrf.mxu1  ;;  %v11407_v28 = vpop.f32.mrf.mxu0  ;;  %v9981_v44 = vcombine.high %v9914_v36, %v9918_v60 }
 0x601   :  { %v5680_v17 = vadd.f32 %v11405_v27, %v5640_v39  ;;  %v9906_v48 = vld [vmem:[%s18008_s3 + $0x690] sm:$0xff]  ;;  %v9903_v39 = vld [vmem:[%s18008_s3 + $0x678] sm:$0xff] }
 0x602   :  { %v9910_v28 = vld [vmem:[%s18008_s3 + $0x6b0] sm:$0xff]  ;;  %v9966_v4 = vcombine.low %v9899_v57, %v9903_v39 }
 0x603   :  { %v9972_v27 = vcombine.low %v9906_v48, %v9910_v28 }
 0x61a   :  { %v11425_v35 = vpop.f32.mrf.mxu1  ;;  %v11447_v50 = vpop.f32.mrf.mxu0 }
 0x61c   :  { %v11426_v18 = vpop.f32.mrf.mxu1  ;;  %v11448_v19 = vpop.f32.mrf.mxu0 }
 0x61d   :  { %v11427_v37 = vadd.f32 %v11426_v18, %v11425_v35  ;;  %v11449_v52 = vadd.f32 %v11448_v19, %v11447_v50  ;;  %v9907_v35 = vld [vmem:[%s18008_s3 + $0x698] sm:$0xff]  ;;  %v9980_v18 = vcombine.low %v9914_v36, %v9918_v60  ;;  %v11919_v36 = vld [vmem:[%s18009_s5 + $0x20] ss:$8 sps:$4 sm:$0xff]  }
 0x61e   :  { %v11428_v31 = vpop.f32.mrf.mxu1  ;;  %v11450_v54 = vpop.f32.mrf.mxu0  ;;  %v9911_v50 = vld [vmem:[%s18008_s3 + $0x6b8] sm:$0xff]  ;;  %v11922_v60 = vld [vmem:[%s18009_s5 + $0x120] ss:$8 sps:$4 sm:$0xff]  }
 0x61f   :  { %v5720_v2 = vadd.f32 %v11427_v37, %v5680_v17  ;;  %v9973_v31 = vcombine.high %v9906_v48, %v9910_v28  ;;  %v9975_v54 = vcombine.high %v9907_v35, %v9911_v50  ;;  %v9974_v37 = vcombine.low %v9907_v35, %v9911_v50  ;;  %v11931_v48 = vld [vmem:[%s18009_s5] ss:$8 sps:$4 sm:$0xff]   ;;  %v11939_v35 = vld [vmem:[%s18009_s5 + $0xf4] ss:$8 sps:$4 sm:$0xff]  }
 0x620   :  { %v11429_v47 = vpop.f32.mrf.mxu1  ;;  %v11451_v49 = vpop.f32.mrf.mxu0  ;;  %v11934_v28 = vld [vmem:[%s18009_s5 + $0x100] ss:$8 sps:$4 sm:$0xff]   ;;  %v11942_v50 = vld [vmem:[%s18009_s5 + $0x1f4] ss:$8 sps:$4 sm:$0xff]  }
 0x621   :  { %v5760_v25 = vadd.f32 %v11449_v52, %v5720_v2  ;;  %v9898_v47 = vld [vmem:[%s18008_s3 + $0x650] sm:$0xff]  ;;  %v9967_v2 = vcombine.high %v9899_v57, %v9903_v39 }
 0x622   :  { %v9902_v49 = vld [vmem:[%s18008_s3 + $0x670] sm:$0xff] }
 0x623   :  { %v9965_v17 = vcombine.high %v9898_v47, %v9902_v49  ;;  %v9890_v52 = vld [vmem:[%s18008_s3 + $0x610] sm:$0xff] }
 0x624   :  { %v11951_v57 = vld [vmem:[%s18009_s5 + $0xd4] ss:$8 sps:$4 sm:$0xff]  }
 0x625   :  { %v11954_v39 = vld [vmem:[%s18009_s5 + $0x1d4] ss:$8 sps:$4 sm:$0xff]  }
 0x63a   :  { %v5799_v3 = vpop.f32.mrf.mxu1 }
 0x63b   :  { %v5800_v56 = vadd.f32 %v5799_v3, %v5760_v25  ;;  %v9894_v25 = vld [vmem:[%s18008_s3 + $0x630] sm:$0xff]  ;;  %v9891_v3 = vld [vmem:[%s18008_s3 + $0x618] sm:$0xff] }
 0x63c   :  { %v11584_v33 = vpop.f32.mrf.mxu1  ;;  %v9956_v0 = vcombine.low %v9890_v52, %v9894_v25 }
 0x63d   :  { %vm5805_vm4 = vcmp.gt.f32.partialorder %v5800_v56, 0.0  ;;  %v5806_v8 = vmul.f32 0.2, %v5800_v56  ;;  %v9964_v33 = vcombine.low %v9898_v47, %v9902_v49  ;;  %v11943_v47 = vld [vmem:[%s18009_s5 + $0xe0] ss:$8 sps:$4 sm:$0xff]  }
 0x63e   :  { %v5802_v5 = vpop.f32.mrf.mxu1  ;;  %v11946_v49 = vld [vmem:[%s18009_s5 + $0x1e0] ss:$8 sps:$4 sm:$0xff]  }
 0x63f   :  { %v5807_v15 = vsel %vm5805_vm4, %v5800_v56, %v5806_v8  ;;  %v9895_v56 = vld [vmem:[%s18008_s3 + $0x638] sm:$0xff]  ;;  %v9957_v8 = vcombine.high %v9890_v52, %v9894_v25  ;;  %v11955_v52 = vld [vmem:[%s18009_s5 + $0xc0] ss:$8 sps:$4 sm:$0xff]  }
 0x640   :  { %v16771_v23 = vpack.c.bf16 %v5807_v15, %v5807_v15  ;;  %v11585_v1 = vpop.f32.mrf.mxu1  ;;  %v9959_v10 = vcombine.high %v9891_v3, %v9895_v56  ;;  %v9958_v29 = vcombine.low %v9891_v3, %v9895_v56  ;;  %v11891_v5 = vld [vmem:[%s18009_s5 + $0x74] ss:$8 sps:$4 sm:$0xff]   ;;  %v11958_v25 = vld [vmem:[%s18009_s5 + $0x1c0] ss:$8 sps:$4 sm:$0xff]  }
 0x641   :  { %v11894_v15 = vld [vmem:[%s18009_s5 + $0x174] ss:$8 sps:$4 sm:$0xff]   ;;  %v11889_v1 = vld [vmem:[%s18009_s5 + $0x70] ss:$8 sps:$4 sm:$0xff]  }
 0x642   :  { %6227 = vmatmul.mubr.bf16.vlgmr.msra.gmra.mxu0 %v16771_v23  ;;  %6268 = vmatmul.mubr.bf16.vlgmr.msra.gmra.mxu1 %v16771_v23  ;;  %v11963_v3 = vld [vmem:[%s18009_s5 + $0xb4] ss:$8 sps:$4 sm:$0xff]  }
 0x643   :  { %6277 = vmatpush1.bf16.msra.mxu0 %v10012_v45  ;;  %6318 = vmatpush1.bf16.msra.mxu1 %v10014_v58  ;;  %v9989_v45 = vcombine.high %v9922_v32, %v9926_v34  ;;  %v9991_v58 = vcombine.high %v9923_v12, %v9927_v53  ;;  %v11907_v32 = vld [vmem:[%s18009_s5 + $0x40] ss:$8 sps:$4 sm:$0xff]   ;;  %v11915_v12 = vld [vmem:[%s18009_s5 + $0x34] ss:$8 sps:$4 sm:$0xff]  }
 0x644   :  { %6278 = vmatprep.subr.bf16.mxu0 %v10005_v9  ;;  %6319 = vmatprep.subr.bf16.mxu1 %v10007_v61  ;;  %v11892_v9 = vld [vmem:[%s18009_s5 + $0x170] ss:$8 sps:$4 sm:$0xff]   ;;  %v11897_v61 = vld [vmem:[%s18009_s5 + $0x64] ss:$8 sps:$4 sm:$0xff]   ;;  %v11910_v34 = vld [vmem:[%s18009_s5 + $0x140] ss:$8 sps:$4 sm:$0xff]  }
 0x645   :  { %6308 = vmatprep.mubr.bf16.mxu0 %v12950_v20  ;;  %6349 = vmatprep.mubr.bf16.mxu1 %v12950_v20  ;;  %v9915_v20 = vld [vmem:[%s18008_s3 + $0x6d8] sm:$0xff] }
 0x646   :  { %v9983_v46 = vcombine.high %v9915_v20, %v9919_v62  ;;  %v9982_v19 = vcombine.low %v9915_v20, %v9919_v62  ;;  %v11918_v53 = vld [vmem:[%s18009_s5 + $0x134] ss:$8 sps:$4 sm:$0xff]  }
 0x647   :  { %6279 = vmatpush1.bf16.msra.mxu0 %v10004_v43  ;;  %6320 = vmatpush1.bf16.msra.mxu1 %v10006_v22  ;;  %v11901_v43 = vld [vmem:[%s18009_s5 + $0x50] ss:$8 sps:$4 sm:$0xff]   ;;  %v11927_v20 = vld [vmem:[%s18009_s5 + $0x14] ss:$8 sps:$4 sm:$0xff]  }
 0x648   :  { %6280 = vmatprep.subr.bf16.mxu0 %v9997_v30  ;;  %6321 = vmatprep.subr.bf16.mxu1 %v9999_v51  ;;  %v11904_v22 = vld [vmem:[%s18009_s5 + $0x150] ss:$8 sps:$4 sm:$0xff]   ;;  %v11909_v30 = vld [vmem:[%s18009_s5 + $0x44] ss:$8 sps:$4 sm:$0xff]   ;;  %v11930_v62 = vld [vmem:[%s18009_s5 + $0x114] ss:$8 sps:$4 sm:$0xff]  }
 0x649   :  { %v11912_v51 = vld [vmem:[%s18009_s5 + $0x144] ss:$8 sps:$4 sm:$0xff]   ;;  %v11966_v56 = vld [vmem:[%s18009_s5 + $0x1b4] ss:$8 sps:$4 sm:$0xff]  }
 0x64b   :  { %6281 = vmatpush1.bf16.msra.mxu0 %v9996_v14  ;;  %6322 = vmatpush1.bf16.msra.mxu1 %v9998_v7  ;;  %v11913_v14 = vld [vmem:[%s18009_s5 + $0x30] ss:$8 sps:$4 sm:$0xff]  }
 0x64c   :  { %6282 = vmatprep.subr.bf16.mxu0 %v9989_v45  ;;  %6323 = vmatprep.subr.bf16.mxu1 %v9991_v58  ;;  %v11916_v7 = vld [vmem:[%s18009_s5 + $0x130] ss:$8 sps:$4 sm:$0xff]   ;;  %v11921_v45 = vld [vmem:[%s18009_s5 + $0x24] ss:$8 sps:$4 sm:$0xff]  }
 0x64d   :  { %v11924_v58 = vld [vmem:[%s18009_s5 + $0x124] ss:$8 sps:$4 sm:$0xff]  }
 0x64f   :  { %6283 = vmatpush1.bf16.msra.mxu0 %v9988_v38  ;;  %6324 = vmatpush1.bf16.msra.mxu1 %v9990_v40  ;;  %v11925_v38 = vld [vmem:[%s18009_s5 + $0x10] ss:$8 sps:$4 sm:$0xff]  }
 0x650   :  { %6284 = vmatprep.subr.bf16.mxu0 %v9981_v44  ;;  %6325 = vmatprep.subr.bf16.mxu1 %v9983_v46  ;;  %v11928_v40 = vld [vmem:[%s18009_s5 + $0x110] ss:$8 sps:$4 sm:$0xff]   ;;  %v11933_v44 = vld [vmem:[%s18009_s5 + $0x4] ss:$8 sps:$4 sm:$0xff]  }
 0x651   :  { %v11936_v46 = vld [vmem:[%s18009_s5 + $0x104] ss:$8 sps:$4 sm:$0xff]  }
 0x653   :  { %6285 = vmatpush1.bf16.msra.mxu0 %v9980_v18  ;;  %6326 = vmatpush1.bf16.msra.mxu1 %v9982_v19  ;;  %v11937_v18 = vld [vmem:[%s18009_s5 + $0xf0] ss:$8 sps:$4 sm:$0xff]  }
 0x654   :  { %6286 = vmatprep.subr.bf16.mxu0 %v9973_v31  ;;  %6327 = vmatprep.subr.bf16.mxu1 %v9975_v54  ;;  %v11940_v19 = vld [vmem:[%s18009_s5 + $0x1f0] ss:$8 sps:$4 sm:$0xff]   ;;  %v11945_v31 = vld [vmem:[%s18009_s5 + $0xe4] ss:$8 sps:$4 sm:$0xff]  }
 0x655   :  { %v11948_v54 = vld [vmem:[%s18009_s5 + $0x1e4] ss:$8 sps:$4 sm:$0xff]  }
 0x657   :  { %6287 = vmatpush1.bf16.msra.mxu0 %v9972_v27  ;;  %6328 = vmatpush1.bf16.msra.mxu1 %v9974_v37  ;;  %v11949_v27 = vld [vmem:[%s18009_s5 + $0xd0] ss:$8 sps:$4 sm:$0xff]  }
 0x658   :  { %6288 = vmatprep.subr.bf16.mxu0 %v9965_v17  ;;  %6329 = vmatprep.subr.bf16.mxu1 %v9967_v2  ;;  %v11952_v37 = vld [vmem:[%s18009_s5 + $0x1d0] ss:$8 sps:$4 sm:$0xff]   ;;  %v11957_v17 = vld [vmem:[%s18009_s5 + $0xc4] ss:$8 sps:$4 sm:$0xff]  }
 0x659   :  { %v11960_v2 = vld [vmem:[%s18009_s5 + $0x1c4] ss:$8 sps:$4 sm:$0xff]  }
 0x65b   :  { %6289 = vmatpush1.bf16.msra.mxu0 %v9964_v33  ;;  %6330 = vmatpush1.bf16.msra.mxu1 %v9966_v4  ;;  %v11961_v33 = vld [vmem:[%s18009_s5 + $0xb0] ss:$8 sps:$4 sm:$0xff]  }
 0x65c   :  { %6290 = vmatprep.subr.bf16.mxu0 %v9957_v8  ;;  %6331 = vmatprep.subr.bf16.mxu1 %v9959_v10  ;;  %v11964_v4 = vld [vmem:[%s18009_s5 + $0x1b0] ss:$8 sps:$4 sm:$0xff]   ;;  %v11969_v8 = vld [vmem:[%s18009_s5 + $0xa4] ss:$8 sps:$4 sm:$0xff]  }
 0x65d   :  { %v11972_v10 = vld [vmem:[%s18009_s5 + $0x1a4] ss:$8 sps:$4 sm:$0xff]  }
 0x65f   :  { %6291 = vmatpush1.bf16.msra.mxu0 %v9956_v0  ;;  %6332 = vmatpush1.bf16.msra.mxu1 %v9958_v29  ;;  %v11967_v0 = vld [vmem:[%s18009_s5 + $0xa0] ss:$8 sps:$4 sm:$0xff]  }
 0x660   :  { %7228 = vmatprep.subr.bf16.mxu0 %v11891_v5  ;;  %7269 = vmatprep.subr.bf16.mxu1 %v11894_v15  ;;  %v11970_v29 = vld [vmem:[%s18009_s5 + $0x1a0] ss:$8 sps:$4 sm:$0xff]   ;;  %v11975_v5 = vld [vmem:[%s18009_s5 + $0x94] ss:$8 sps:$4 sm:$0xff]  }
 0x661   :  { %v11978_v15 = vld [vmem:[%s18009_s5 + $0x194] ss:$8 sps:$4 sm:$0xff]  }
 0x662   :  { %6309 = vmatmul.mubr.bf16.vlgmr.msra.gmra.mxu0 %v16771_v23  ;;  %6350 = vmatmul.mubr.bf16.vlgmr.msra.gmra.mxu1 %v16771_v23  ;;  %v11906_v23 = vld [vmem:[%s18009_s5 + $0x154] ss:$8 sps:$4 sm:$0xff]  }
 0x663   :  { %7229 = vmatpush1.bf16.msra.mxu0 %v11889_v1  ;;  %7270 = vmatpush1.bf16.msra.mxu1 %v11892_v9  ;;  %v11973_v1 = vld [vmem:[%s18009_s5 + $0x90] ss:$8 sps:$4 sm:$0xff]  }
 0x664   :  { %7230 = vmatprep.subr.bf16.mxu0 %v11897_v61  ;;  %7271 = vmatprep.subr.bf16.mxu1 %v11900_v13  ;;  %v11976_v9 = vld [vmem:[%s18009_s5 + $0x190] ss:$8 sps:$4 sm:$0xff]   ;;  %v11981_v61 = vld [vmem:[%s18009_s5 + $0x84] ss:$8 sps:$4 sm:$0xff]  }
 0x665   :  { %v11984_v13 = vld [vmem:[%s18009_s5 + $0x184] ss:$8 sps:$4 sm:$0xff]  }
 0x667   :  { %7231 = vmatpush1.bf16.msra.mxu0 %v11895_v41  ;;  %7272 = vmatpush1.bf16.msra.mxu1 %v11898_v16  ;;  %v11979_v41 = vld [vmem:[%s18009_s5 + $0x80] ss:$8 sps:$4 sm:$0xff]  }
 0x668   :  { %7232 = vmatprep.subr.bf16.mxu0 %v11903_v59  ;;  %7273 = vmatprep.subr.bf16.mxu1 %v11906_v23  ;;  %v11982_v16 = vld [vmem:[%s18009_s5 + $0x180] ss:$8 sps:$4 sm:$0xff]   ;;  %v6368_v59 = vlaneseq  ;;  %v11987_v23 = vld [vmem:[%s18009_s5 + $0x274] ss:$8 sps:$4 sm:$0xff]  }
 0x66b   :  { %7233 = vmatpush1.bf16.msra.mxu0 %v11901_v43  ;;  %7274 = vmatpush1.bf16.msra.mxu1 %v11904_v22  ;;  %v11990_v43 = vld [vmem:[%s18009_s5 + $0x374] ss:$8 sps:$4 sm:$0xff]   ;;  %v17055_v22 = vshrl.u32 %v6368_v59, 7 }
 0x66c   :  { %7234 = vmatprep.subr.bf16.mxu0 %v11909_v30  ;;  %7275 = vmatprep.subr.bf16.mxu1 %v11912_v51  ;;  %v12014_v59 = vld [vmem:[%s18009_s5 + $0x334] ss:$8 sps:$4 sm:$0xff]  }
 0x66d   :  { %v6386_v30 = vsub.s32 4, %v17055_v22  ;;  %v6394_v51 = vsub.s32 6, %v17055_v22 }
 0x66f   :  { %7235 = vmatpush1.bf16.msra.mxu0 %v11907_v32  ;;  %7276 = vmatpush1.bf16.msra.mxu1 %v11910_v34  ;;  %v17062_v32 = vld [vmem:[%s18010_s4] sm:$0xff] }
 0x670   :  { %7236 = vmatprep.subr.bf16.mxu0 %v11915_v12  ;;  %7277 = vmatprep.subr.bf16.mxu1 %v11918_v53  ;;  %v17065_v34 = vrot.slane %v17062_v32, %v6386_v30  ;;  %v17068_v12 = vrot.slane %v17062_v32, %v6394_v51  ;;  %v17071_v53 = vsub.s32 0, %v17055_v22  ;;  %v12017_v30 = vld [vmem:[%s18009_s5 + $0x224] ss:$8 sps:$4 sm:$0xff]  }
 0x671   :  { %v12020_v51 = vld [vmem:[%s18009_s5 + $0x324] ss:$8 sps:$4 sm:$0xff]  }
 0x673   :  { %7237 = vmatpush1.bf16.msra.mxu0 %v11913_v14  ;;  %7278 = vmatpush1.bf16.msra.mxu1 %v11916_v7  ;;  %v17074_v14 = vsub.s32 2, %v17055_v22  ;;  %v17077_v7 = vsub.s32 1, %v17055_v22 }
 0x674   :  { %7238 = vmatprep.subr.bf16.mxu0 %v11921_v45  ;;  %7279 = vmatprep.subr.bf16.mxu1 %v11924_v58  ;;  %v17080_v45 = vsub.s32 3, %v17055_v22  ;;  %v6371_v58 = vrot.slane %v17062_v32, %v17071_v53 }
 0x677   :  { %7239 = vmatpush1.bf16.msra.mxu0 %v11919_v36  ;;  %7280 = vmatpush1.bf16.msra.mxu1 %v11922_v60  ;;  %v6379_v36 = vrot.slane %v17062_v32, %v17074_v14 }
 0x678   :  { %7240 = vmatprep.subr.bf16.mxu0 %v11927_v20  ;;  %7281 = vmatprep.subr.bf16.mxu1 %v11930_v62 }
 0x67b   :  { %7241 = vmatpush1.bf16.msra.mxu0 %v11925_v38  ;;  %7282 = vmatpush1.bf16.msra.mxu1 %v11928_v40 }
 0x67c   :  { %7242 = vmatprep.subr.bf16.mxu0 %v11933_v44  ;;  %7283 = vmatprep.subr.bf16.mxu1 %v11936_v46  ;;  %v6375_v44 = vrot.slane %v17062_v32, %v17077_v7 }
 0x67f   :  { %7243 = vmatpush1.bf16.msra.mxu0 %v11931_v48  ;;  %7284 = vmatpush1.bf16.msra.mxu1 %v11934_v28  ;;  %v6383_v48 = vrot.slane %v17062_v32, %v17080_v45 }
 0x680   :  { %7244 = vmatprep.subr.bf16.mxu0 %v11939_v35  ;;  %7285 = vmatprep.subr.bf16.mxu1 %v11942_v50 }
 0x683   :  { %7245 = vmatpush2.bf16.msra.mxu0 %v11937_v18  ;;  %7286 = vmatpush2.bf16.msra.mxu1 %v11940_v19 }
 0x684   :  { %7246 = vmatprep.subr.bf16.mxu0 %v11945_v31  ;;  %7287 = vmatprep.subr.bf16.mxu1 %v11948_v54 }
 0x687   :  { %7247 = vmatpush2.bf16.msra.mxu0 %v11943_v47  ;;  %7288 = vmatpush2.bf16.msra.mxu1 %v11946_v49 }
 0x688   :  { %7248 = vmatprep.subr.bf16.mxu0 %v11951_v57  ;;  %7289 = vmatprep.subr.bf16.mxu1 %v11954_v39 }
 0x68b   :  { %7249 = vmatpush2.bf16.msra.mxu0 %v11949_v27  ;;  %7290 = vmatpush2.bf16.msra.mxu1 %v11952_v37 }
 0x68c   :  { %7250 = vmatprep.subr.bf16.mxu0 %v11957_v17  ;;  %7291 = vmatprep.subr.bf16.mxu1 %v11960_v2 }
 0x68f   :  { %7251 = vmatpush2.bf16.msra.mxu0 %v11955_v52  ;;  %7292 = vmatpush2.bf16.msra.mxu1 %v11958_v25  ;;  %v11985_v25 = vld [vmem:[%s18009_s5 + $0x270] ss:$8 sps:$4 sm:$0xff]  }
 0x690   :  { %7252 = vmatprep.subr.bf16.mxu0 %v11963_v3  ;;  %7293 = vmatprep.subr.bf16.mxu1 %v11966_v56  ;;  %v11988_v3 = vld [vmem:[%s18009_s5 + $0x370] ss:$8 sps:$4 sm:$0xff]  }
 0x693   :  { %7253 = vmatpush2.bf16.msra.mxu0 %v11961_v33  ;;  %7294 = vmatpush2.bf16.msra.mxu1 %v11964_v4  ;;  %v11993_v4 = vld [vmem:[%s18009_s5 + $0x264] ss:$8 sps:$4 sm:$0xff]  }
 0x694   :  { %7254 = vmatprep.subr.bf16.mxu0 %v11969_v8  ;;  %7295 = vmatprep.subr.bf16.mxu1 %v11972_v10  ;;  %v11996_v8 = vld [vmem:[%s18009_s5 + $0x364] ss:$8 sps:$4 sm:$0xff]   ;;  %v11991_v10 = vld [vmem:[%s18009_s5 + $0x260] ss:$8 sps:$4 sm:$0xff]  }
 0x697   :  { %7255 = vmatpush2.bf16.msra.mxu0 %v11967_v0  ;;  %7296 = vmatpush2.bf16.msra.mxu1 %v11970_v29  ;;  %v11994_v0 = vld [vmem:[%s18009_s5 + $0x360] ss:$8 sps:$4 sm:$0xff]   ;;  %v11999_v29 = vld [vmem:[%s18009_s5 + $0x254] ss:$8 sps:$4 sm:$0xff]  }
 0x698   :  { %7256 = vmatprep.subr.bf16.mxu0 %v11975_v5  ;;  %7297 = vmatprep.subr.bf16.mxu1 %v11978_v15  ;;  %v12002_v5 = vld [vmem:[%s18009_s5 + $0x354] ss:$8 sps:$4 sm:$0xff]   ;;  %v11997_v15 = vld [vmem:[%s18009_s5 + $0x250] ss:$8 sps:$4 sm:$0xff]  }
 0x69b   :  { %7257 = vmatpush2.bf16.msra.mxu0 %v11973_v1  ;;  %7298 = vmatpush2.bf16.msra.mxu1 %v11976_v9  ;;  %v12000_v1 = vld [vmem:[%s18009_s5 + $0x350] ss:$8 sps:$4 sm:$0xff]   ;;  %v12005_v9 = vld [vmem:[%s18009_s5 + $0x244] ss:$8 sps:$4 sm:$0xff]  }
 0x69c   :  { %7258 = vmatprep.subr.bf16.mxu0 %v11981_v61  ;;  %7299 = vmatprep.subr.bf16.mxu1 %v11984_v13  ;;  %v12008_v61 = vld [vmem:[%s18009_s5 + $0x344] ss:$8 sps:$4 sm:$0xff]   ;;  %v12003_v13 = vld [vmem:[%s18009_s5 + $0x240] ss:$8 sps:$4 sm:$0xff]  }
 0x69f   :  { %7259 = vmatpush2.bf16.msra.mxu0 %v11979_v41  ;;  %7300 = vmatpush2.bf16.msra.mxu1 %v11982_v16  ;;  %v12006_v41 = vld [vmem:[%s18009_s5 + $0x340] ss:$8 sps:$4 sm:$0xff]   ;;  %v12011_v16 = vld [vmem:[%s18009_s5 + $0x234] ss:$8 sps:$4 sm:$0xff]  }
 0x6a0   :  { %7310 = vmatprep.subr.bf16.mxu0 %v11987_v23  ;;  %7351 = vmatprep.subr.bf16.mxu1 %v11990_v43  ;;  %v12009_v23 = vld [vmem:[%s18009_s5 + $0x230] ss:$8 sps:$4 sm:$0xff]  }
 0x6a1   :  { %v12012_v43 = vld [vmem:[%s18009_s5 + $0x330] ss:$8 sps:$4 sm:$0xff]  }
 0x702   :  { %v6228_v60 = vpop.f32.mrf.mxu0  ;;  %v6269_v20 = vpop.f32.mrf.mxu1 }
 0x703   :  { %v6358_v62 = vadd.f32 %v6228_v60, %v16473_v11  ;;  %v6360_v38 = vadd.f32 %v6269_v20, %v16476_v42  ;;  %v12015_v60 = vld [vmem:[%s18009_s5 + $0x220] ss:$8 sps:$4 sm:$0xff]  }
 0x704   :  { %v6230_v40 = vpop.f32.mrf.mxu0  ;;  %v6271_v46 = vpop.f32.mrf.mxu1 }
 0x705   :  { %v6408_v28 = vadd.f32 %v6371_v58, %v6358_v62  ;;  %v6410_v35 = vadd.f32 %v6379_v36, %v6360_v38  ;;  %v6359_v50 = vadd.f32 %v6230_v40, %v16491_v55  ;;  %v6361_v18 = vadd.f32 %v6271_v46, %v16494_v63  ;;  %v12018_v38 = vld [vmem:[%s18009_s5 + $0x320] ss:$8 sps:$4 sm:$0xff]   ;;  %v12023_v40 = vld [vmem:[%s18009_s5 + $0x214] ss:$8 sps:$4 sm:$0xff]  }
 0x706   :  { %v6232_v19 = vpop.f32.mrf.mxu0  ;;  %v6273_v31 = vpop.f32.mrf.mxu1  ;;  %v6390_v58 = vsub.s32 5, %v17055_v22  ;;  %v6398_v36 = vsub.s32 7, %v17055_v22  ;;  %v12026_v46 = vld [vmem:[%s18009_s5 + $0x314] ss:$8 sps:$4 sm:$0xff]  }
 0x707   :  { %v6424_v54 = vmul.f32 0.2, %v6408_v28  ;;  %v6426_v11 = vmul.f32 0.2, %v6410_v35  ;;  %vm6416_vm5 = vcmp.gt.f32.partialorder %v6408_v28, 0.0  ;;  %vm6418_vm6 = vcmp.gt.f32.partialorder %v6410_v35, 0.0 }
 0x708   :  { %v6409_v42 = vadd.f32 %v6375_v44, %v6359_v50  ;;  %v6411_v47 = vadd.f32 %v6383_v48, %v6361_v18  ;;  %v6233_v49 = vpop.f32.mrf.mxu0  ;;  %v6274_v57 = vpop.f32.mrf.mxu1  ;;  %v6399_v50 = vrot.slane %v17062_v32, %v6398_v36  ;;  %v12021_v31 = vld [vmem:[%s18009_s5 + $0x210] ss:$8 sps:$4 sm:$0xff]   ;;  %v12074_v36 = vld [vmem:[%s18009_s5 + $0x394] ss:$8 sps:$4 sm:$0xff]  }
 0x709   :  { %v6432_v37 = vsel %vm6416_vm5, %v6408_v28, %v6424_v54  ;;  %v6434_v17 = vsel %vm6418_vm6, %v6410_v35, %v6426_v11  ;;  %v6391_v28 = vrot.slane %v17062_v32, %v6390_v58  ;;  %v12024_v32 = vld [vmem:[%s18009_s5 + $0x310] ss:$8 sps:$4 sm:$0xff]   ;;  %v12027_v49 = vld [vmem:[%s18009_s5 + $0x200] ss:$8 sps:$4 sm:$0xff]   ;;  %v12071_v58 = vld [vmem:[%s18009_s5 + $0x294] ss:$8 sps:$4 sm:$0xff]  }
 0x70a   :  { %v6425_v39 = vmul.f32 0.2, %v6409_v42  ;;  %v6427_v27 = vmul.f32 0.2, %v6411_v47  ;;  %vm6417_vm7 = vcmp.gt.f32.partialorder %v6409_v42, 0.0  ;;  %vm6419_vm8 = vcmp.gt.f32.partialorder %v6411_v47, 0.0 }
 0x70b   :  { %v6440_v56 = vpack.c.bf16 %v6432_v37, %v6432_v37  ;;  %v6442_v33 = vpack.c.bf16 %v6434_v17, %v6434_v17  ;;  %v12030_v57 = vld [vmem:[%s18009_s5 + $0x300] ss:$8 sps:$4 sm:$0xff]   ;;  %v12035_v37 = vld [vmem:[%s18009_s5 + $0x2f4] ss:$8 sps:$4 sm:$0xff]  }
 0x70c   :  { %v6433_v2 = vsel %vm6417_vm7, %v6409_v42, %v6425_v39  ;;  %v6435_v55 = vsel %vm6419_vm8, %v6411_v47, %v6427_v27 }
 0x70d   :  { %v6441_v52 = vpack.c.bf16 %v6433_v2, %v6433_v2  ;;  %v6443_v63 = vpack.c.bf16 %v6435_v55, %v6435_v55  ;;  %v12038_v55 = vld [vmem:[%s18009_s5 + $0x3f4] ss:$8 sps:$4 sm:$0xff]  }
 0x70f   :  { %7260 = vmatprep.mubr.bf16.mxu0 %v6441_v52  ;;  %7301 = vmatprep.mubr.bf16.mxu1 %v6443_v63 }
 0x710   :  { %7261 = vmatmul.mubr.bf16.vlgmr.msra.gmra.mxu0 %v6440_v56  ;;  %7302 = vmatmul.mubr.bf16.vlgmr.msra.gmra.mxu1 %v6442_v33  ;;  %v12041_v56 = vld [vmem:[%s18009_s5 + $0x2e4] ss:$8 sps:$4 sm:$0xff]  }
 0x711   :  { %7311 = vmatpush1.bf16.msra.mxu0 %v11985_v25  ;;  %7352 = vmatpush1.bf16.msra.mxu1 %v11988_v3  ;;  %v12033_v25 = vld [vmem:[%s18009_s5 + $0x2f0] ss:$8 sps:$4 sm:$0xff]   ;;  %v12044_v33 = vld [vmem:[%s18009_s5 + $0x3e4] ss:$8 sps:$4 sm:$0xff]  }
 0x712   :  { %7312 = vmatprep.subr.bf16.mxu0 %v11993_v4  ;;  %7353 = vmatprep.subr.bf16.mxu1 %v11996_v8  ;;  %v12036_v3 = vld [vmem:[%s18009_s5 + $0x3f0] ss:$8 sps:$4 sm:$0xff]   ;;  %v12039_v4 = vld [vmem:[%s18009_s5 + $0x2e0] ss:$8 sps:$4 sm:$0xff]  }
 0x713   :  { %v12042_v8 = vld [vmem:[%s18009_s5 + $0x3e0] ss:$8 sps:$4 sm:$0xff]  }
 0x715   :  { %7313 = vmatpush1.bf16.msra.mxu0 %v11991_v10  ;;  %7354 = vmatpush1.bf16.msra.mxu1 %v11994_v0  ;;  %v12047_v10 = vld [vmem:[%s18009_s5 + $0x2d4] ss:$8 sps:$4 sm:$0xff]  }
 0x716   :  { %7314 = vmatprep.subr.bf16.mxu0 %v11999_v29  ;;  %7355 = vmatprep.subr.bf16.mxu1 %v12002_v5  ;;  %v12050_v0 = vld [vmem:[%s18009_s5 + $0x3d4] ss:$8 sps:$4 sm:$0xff]   ;;  %v12045_v29 = vld [vmem:[%s18009_s5 + $0x2d0] ss:$8 sps:$4 sm:$0xff]  }
 0x717   :  { %v12048_v5 = vld [vmem:[%s18009_s5 + $0x3d0] ss:$8 sps:$4 sm:$0xff]  }
 0x719   :  { %7315 = vmatpush1.bf16.msra.mxu0 %v11997_v15  ;;  %7356 = vmatpush1.bf16.msra.mxu1 %v12000_v1  ;;  %v12053_v15 = vld [vmem:[%s18009_s5 + $0x2c4] ss:$8 sps:$4 sm:$0xff]  }
 0x71a   :  { %7316 = vmatprep.subr.bf16.mxu0 %v12005_v9  ;;  %7357 = vmatprep.subr.bf16.mxu1 %v12008_v61  ;;  %v12056_v1 = vld [vmem:[%s18009_s5 + $0x3c4] ss:$8 sps:$4 sm:$0xff]   ;;  %v12051_v9 = vld [vmem:[%s18009_s5 + $0x2c0] ss:$8 sps:$4 sm:$0xff]  }
 0x71b   :  { %v12054_v61 = vld [vmem:[%s18009_s5 + $0x3c0] ss:$8 sps:$4 sm:$0xff]  }
 0x71d   :  { %7317 = vmatpush1.bf16.msra.mxu0 %v12003_v13  ;;  %7358 = vmatpush1.bf16.msra.mxu1 %v12006_v41  ;;  %v12059_v13 = vld [vmem:[%s18009_s5 + $0x2b4] ss:$8 sps:$4 sm:$0xff]  }
 0x71e   :  { %7318 = vmatprep.subr.bf16.mxu0 %v12011_v16  ;;  %7359 = vmatprep.subr.bf16.mxu1 %v12014_v59  ;;  %v12062_v41 = vld [vmem:[%s18009_s5 + $0x3b4] ss:$8 sps:$4 sm:$0xff]   ;;  %v12057_v16 = vld [vmem:[%s18009_s5 + $0x2b0] ss:$8 sps:$4 sm:$0xff]  }
 0x71f   :  { %v12060_v59 = vld [vmem:[%s18009_s5 + $0x3b0] ss:$8 sps:$4 sm:$0xff]  }
 0x721   :  { %7319 = vmatpush1.bf16.msra.mxu0 %v12009_v23  ;;  %7360 = vmatpush1.bf16.msra.mxu1 %v12012_v43  ;;  %v12065_v23 = vld [vmem:[%s18009_s5 + $0x2a4] ss:$8 sps:$4 sm:$0xff]  }
 0x722   :  { %v6310_v20 = vpop.f32.mrf.mxu0  ;;  %v6351_v62 = vpop.f32.mrf.mxu1  ;;  %7320 = vmatprep.subr.bf16.mxu0 %v12017_v30  ;;  %7361 = vmatprep.subr.bf16.mxu1 %v12020_v51  ;;  %v12068_v43 = vld [vmem:[%s18009_s5 + $0x3a4] ss:$8 sps:$4 sm:$0xff]   ;;  %v12063_v30 = vld [vmem:[%s18009_s5 + $0x2a0] ss:$8 sps:$4 sm:$0xff]  }
 0x723   :  { %v6362_v22 = vadd.f32 %v6310_v20, %v16580_v21  ;;  %v6364_v44 = vadd.f32 %v6351_v62, %v16583_v6  ;;  %v12066_v51 = vld [vmem:[%s18009_s5 + $0x3a0] ss:$8 sps:$4 sm:$0xff]   ;;  %v12072_v20 = vld [vmem:[%s18009_s5 + $0x390] ss:$8 sps:$4 sm:$0xff]   ;;  %v12077_v62 = vld [vmem:[%s18009_s5 + $0x284] ss:$8 sps:$4 sm:$0xff]  }
 0x724   :  { %v6312_v48 = vpop.f32.mrf.mxu0  ;;  %v6353_v35 = vpop.f32.mrf.mxu1 }
 0x725   :  { %v17173_v18 = vadd.f32 %v17065_v34, %v6362_v22  ;;  %v17176_v19 = vadd.f32 %v17068_v12, %v6364_v44  ;;  %v6363_v21 = vadd.f32 %v6312_v48, %v16593_v24  ;;  %v6365_v6 = vadd.f32 %v6353_v35, %v16596_v26  ;;  %7321 = vmatpush1.bf16.msra.mxu0 %v12015_v60  ;;  %v12029_v34 = vld [vmem:[%s18009_s5 + $0x204] ss:$8 sps:$4 sm:$0xff]   ;;  %v12069_v60 = vld [vmem:[%s18009_s5 + $0x290] ss:$8 sps:$4 sm:$0xff]   ;;  %v12075_v44 = vld [vmem:[%s18009_s5 + $0x280] ss:$8 sps:$4 sm:$0xff]  }
 0x726   :  { %7362 = vmatpush1.bf16.msra.mxu1 %v12018_v38  ;;  %v6314_v54 = vpop.f32.mrf.mxu0  ;;  %v6355_v11 = vpop.f32.mrf.mxu1  ;;  %7322 = vmatprep.subr.bf16.mxu0 %v12023_v40  ;;  %v12032_v24 = vld [vmem:[%s18009_s5 + $0x304] ss:$8 sps:$4 sm:$0xff]  }
 0x727   :  { %7363 = vmatprep.subr.bf16.mxu1 %v12026_v46  ;;  %v6413_v26 = vadd.f32 %v6391_v28, %v6363_v21  ;;  %v6415_v12 = vadd.f32 %v6399_v50, %v6365_v6  ;;  %v6428_v38 = vmul.f32 0.2, %v17173_v18  ;;  %v12080_v40 = vld [vmem:[%s18009_s5 + $0x384] ss:$8 sps:$4 sm:$0xff]   ;;  %vm6420_vm11 = vcmp.gt.f32.partialorder %v17173_v18, 0.0 }
 0x728   :  { %v6315_v42 = vpop.f32.mrf.mxu0  ;;  %v6356_v47 = vpop.f32.mrf.mxu1  ;;  %v6430_v22 = vmul.f32 0.2, %v17176_v19  ;;  %vm6422_vm12 = vcmp.gt.f32.partialorder %v17176_v19, 0.0  ;;  %v12078_v46 = vld [vmem:[%s18009_s5 + $0x380] ss:$8 sps:$4 sm:$0xff]  }
 0x729   :  { %7323 = vmatpush1.bf16.msra.mxu0 %v12021_v31  ;;  %v6429_v39 = vmul.f32 0.2, %v6413_v26  ;;  %v6431_v27 = vmul.f32 0.2, %v6415_v12  ;;  %vm6421_vm9 = vcmp.gt.f32.partialorder %v6413_v26, 0.0  ;;  %vm6423_vm10 = vcmp.gt.f32.partialorder %v6415_v12, 0.0 }
 0x72a   :  { %7364 = vmatpush1.bf16.msra.mxu1 %v12024_v32  ;;  %7324 = vmatprep.subr.bf16.mxu0 %v12029_v34  ;;  %v6436_v48 = vsel %vm6420_vm11, %v17173_v18, %v6428_v38  ;;  %v6438_v28 = vsel %vm6422_vm12, %v17176_v19, %v6430_v22  ;;  %v12081_v21 = vld [vmem:[%s18011_s7 + $0xe0] ss:$16 sps:$4 sm:$0xff]   ;;  %v12083_v6 = vld [vmem:[%s18011_s7 + $0xe4] ss:$16 sps:$4 sm:$0xff]   ;;  %v12084_v18 = vld [vmem:[%s18011_s7 + $0xe8] ss:$16 sps:$4 sm:$0xff]  }
 0x72b   :  { %7365 = vmatprep.subr.bf16.mxu1 %v12032_v24  ;;  %v6437_v17 = vsel %vm6421_vm9, %v6413_v26, %v6429_v39  ;;  %v6439_v2 = vsel %vm6423_vm10, %v6415_v12, %v6431_v27  ;;  %v6444_v35 = vpack.c.bf16 %v6436_v48, %v6436_v48  ;;  %v6446_v50 = vpack.c.bf16 %v6438_v28, %v6438_v28  ;;  %v12086_v19 = vld [vmem:[%s18011_s7 + $0xec] ss:$16 sps:$4 sm:$0xff]   ;;  %v12087_v31 = vld [vmem:[%s18011_s7 + $0xc0] ss:$16 sps:$4 sm:$0xff]   ;;  %v12089_v54 = vld [vmem:[%s18011_s7 + $0xc4] ss:$16 sps:$4 sm:$0xff]  }
 0x72c   :  { %v6445_v52 = vpack.c.bf16 %v6437_v17, %v6437_v17  ;;  %v6447_v63 = vpack.c.bf16 %v6439_v2, %v6439_v2  ;;  %v12090_v11 = vld [vmem:[%s18011_s7 + $0xc8] ss:$16 sps:$4 sm:$0xff]   ;;  %v12092_v32 = vld [vmem:[%s18011_s7 + $0xcc] ss:$16 sps:$4 sm:$0xff]   ;;  %v12095_v34 = vld [vmem:[%s18011_s7 + $0xa4] ss:$16 sps:$4 sm:$0xff]  }
 0x72d   :  { %7325 = vmatpush1.bf16.msra.mxu0 %v12027_v49  ;;  %v12093_v24 = vld [vmem:[%s18011_s7 + $0xa0] ss:$16 sps:$4 sm:$0xff]   ;;  %v12098_v26 = vld [vmem:[%s18011_s7 + $0xac] ss:$16 sps:$4 sm:$0xff]   ;;  %v12096_v12 = vld [vmem:[%s18011_s7 + $0xa8] ss:$16 sps:$4 sm:$0xff]  }
 0x72e   :  { %7366 = vmatpush1.bf16.msra.mxu1 %v12030_v57  ;;  %7326 = vmatprep.subr.bf16.mxu0 %v12035_v37  ;;  %v12101_v42 = vld [vmem:[%s18011_s7 + $0x84] ss:$16 sps:$4 sm:$0xff]   ;;  %v12104_v47 = vld [vmem:[%s18011_s7 + $0x8c] ss:$16 sps:$4 sm:$0xff]   ;;  %v12099_v49 = vld [vmem:[%s18011_s7 + $0x80] ss:$16 sps:$4 sm:$0xff]  }
 0x72f   :  { %7342 = vmatprep.mubr.bf16.mxu0 %v6445_v52  ;;  %7383 = vmatprep.mubr.bf16.mxu1 %v6447_v63  ;;  %v12102_v57 = vld [vmem:[%s18011_s7 + $0x88] ss:$16 sps:$4 sm:$0xff]   ;;  %v12107_v39 = vld [vmem:[%s18011_s7 + $0x64] ss:$16 sps:$4 sm:$0xff]   ;;  %v12110_v27 = vld [vmem:[%s18011_s7 + $0x6c] ss:$16 sps:$4 sm:$0xff]  }
 0x730   :  { %7367 = vmatprep.subr.bf16.mxu1 %v12038_v55  ;;  %v12105_v37 = vld [vmem:[%s18011_s7 + $0x60] ss:$16 sps:$4 sm:$0xff]   ;;  %v12108_v17 = vld [vmem:[%s18011_s7 + $0x68] ss:$16 sps:$4 sm:$0xff]   ;;  %v12113_v2 = vld [vmem:[%s18011_s7 + $0x44] ss:$16 sps:$4 sm:$0xff]  }
 0x731   :  { %7327 = vmatpush2.bf16.msra.mxu0 %v12033_v25  ;;  %v12116_v55 = vld [vmem:[%s18011_s7 + $0x4c] ss:$16 sps:$4 sm:$0xff]   ;;  %v12111_v52 = vld [vmem:[%s18011_s7 + $0x40] ss:$16 sps:$4 sm:$0xff]   ;;  %v12114_v63 = vld [vmem:[%s18011_s7 + $0x48] ss:$16 sps:$4 sm:$0xff]  }
 0x732   :  { %7368 = vmatpush2.bf16.msra.mxu1 %v12036_v3  ;;  %7328 = vmatprep.subr.bf16.mxu0 %v12041_v56  ;;  %v12119_v25 = vld [vmem:[%s18011_s7 + $0x24] ss:$16 sps:$4 sm:$0xff]   ;;  %v12122_v3 = vld [vmem:[%s18011_s7 + $0x2c] ss:$16 sps:$4 sm:$0xff]   ;;  %v12117_v56 = vld [vmem:[%s18011_s7 + $0x20] ss:$16 sps:$4 sm:$0xff]  }
 0x733   :  { %7369 = vmatprep.subr.bf16.mxu1 %v12044_v33  ;;  %v12120_v33 = vld [vmem:[%s18011_s7 + $0x28] ss:$16 sps:$4 sm:$0xff]   ;;  %v12164_v22 = vld [vmem:[%s18011_s7 + $0x14c] ss:$16 sps:$4 sm:$0xff]   ;;  %v12167_v48 = vld [vmem:[%s18011_s7 + $0x124] ss:$16 sps:$4 sm:$0xff]  }
 0x734   :  { %v12156_v38 = vld [vmem:[%s18011_s7 + $0x168] ss:$16 sps:$4 sm:$0xff]   ;;  %v12170_v28 = vld [vmem:[%s18011_s7 + $0x12c] ss:$16 sps:$4 sm:$0xff]  }
 0x735   :  { %7329 = vmatpush2.bf16.msra.mxu0 %v12039_v4  ;;  %v12125_v4 = vld [vmem:[%s18011_s7 + $0x4] ss:$16 sps:$4 sm:$0xff]  }
 0x736   :  { %7370 = vmatpush2.bf16.msra.mxu1 %v12042_v8  ;;  %7330 = vmatprep.subr.bf16.mxu0 %v12047_v10  ;;  %v12128_v8 = vld [vmem:[%s18011_s7 + $0xc] ss:$16 sps:$4 sm:$0xff]   ;;  %v12123_v10 = vld [vmem:[%s18011_s7] ss:$16 sps:$4 sm:$0xff]  }
 0x737   :  { %7371 = vmatprep.subr.bf16.mxu1 %v12050_v0  ;;  %v12126_v0 = vld [vmem:[%s18011_s7 + $0x8] ss:$16 sps:$4 sm:$0xff]  }
 0x739   :  { %7331 = vmatpush2.bf16.msra.mxu0 %v12045_v29  ;;  %v12131_v29 = vld [vmem:[%s18011_s7 + $0x1e4] ss:$16 sps:$4 sm:$0xff]  }
 0x73a   :  { %7372 = vmatpush2.bf16.msra.mxu1 %v12048_v5  ;;  %7332 = vmatprep.subr.bf16.mxu0 %v12053_v15  ;;  %v12134_v5 = vld [vmem:[%s18011_s7 + $0x1ec] ss:$16 sps:$4 sm:$0xff]   ;;  %v12129_v15 = vld [vmem:[%s18011_s7 + $0x1e0] ss:$16 sps:$4 sm:$0xff]  }
 0x73b   :  { %7373 = vmatprep.subr.bf16.mxu1 %v12056_v1  ;;  %v12132_v1 = vld [vmem:[%s18011_s7 + $0x1e8] ss:$16 sps:$4 sm:$0xff]  }
 0x73d   :  { %7333 = vmatpush2.bf16.msra.mxu0 %v12051_v9  ;;  %v12137_v9 = vld [vmem:[%s18011_s7 + $0x1c4] ss:$16 sps:$4 sm:$0xff]  }
 0x73e   :  { %7374 = vmatpush2.bf16.msra.mxu1 %v12054_v61  ;;  %7334 = vmatprep.subr.bf16.mxu0 %v12059_v13  ;;  %v12135_v61 = vld [vmem:[%s18011_s7 + $0x1c0] ss:$16 sps:$4 sm:$0xff]   ;;  %v12140_v13 = vld [vmem:[%s18011_s7 + $0x1cc] ss:$16 sps:$4 sm:$0xff]  }
 0x73f   :  { %7375 = vmatprep.subr.bf16.mxu1 %v12062_v41  ;;  %v12138_v41 = vld [vmem:[%s18011_s7 + $0x1c8] ss:$16 sps:$4 sm:$0xff]  }
 0x741   :  { %7335 = vmatpush2.bf16.msra.mxu0 %v12057_v16  ;;  %v12143_v16 = vld [vmem:[%s18011_s7 + $0x1a4] ss:$16 sps:$4 sm:$0xff]  }
 0x742   :  { %7376 = vmatpush2.bf16.msra.mxu1 %v12060_v59  ;;  %7336 = vmatprep.subr.bf16.mxu0 %v12065_v23  ;;  %v12146_v59 = vld [vmem:[%s18011_s7 + $0x1ac] ss:$16 sps:$4 sm:$0xff]   ;;  %v12141_v23 = vld [vmem:[%s18011_s7 + $0x1a0] ss:$16 sps:$4 sm:$0xff]  }
 0x743   :  { %7377 = vmatprep.subr.bf16.mxu1 %v12068_v43  ;;  %v12144_v43 = vld [vmem:[%s18011_s7 + $0x1a8] ss:$16 sps:$4 sm:$0xff]  }
 0x745   :  { %7337 = vmatpush2.bf16.msra.mxu0 %v12063_v30  ;;  %v12149_v30 = vld [vmem:[%s18011_s7 + $0x184] ss:$16 sps:$4 sm:$0xff]  }
 0x746   :  { %7378 = vmatpush2.bf16.msra.mxu1 %v12066_v51  ;;  %7338 = vmatprep.subr.bf16.mxu0 %v12071_v58  ;;  %v12152_v51 = vld [vmem:[%s18011_s7 + $0x18c] ss:$16 sps:$4 sm:$0xff]   ;;  %v12147_v58 = vld [vmem:[%s18011_s7 + $0x180] ss:$16 sps:$4 sm:$0xff]  }
 0x747   :  { %7379 = vmatprep.subr.bf16.mxu1 %v12074_v36  ;;  %v12150_v36 = vld [vmem:[%s18011_s7 + $0x188] ss:$16 sps:$4 sm:$0xff]  }
 0x749   :  { %7339 = vmatpush2.bf16.msra.mxu0 %v12069_v60  ;;  %v12155_v60 = vld [vmem:[%s18011_s7 + $0x164] ss:$16 sps:$4 sm:$0xff]  }
 0x74a   :  { %7380 = vmatpush2.bf16.msra.mxu1 %v12072_v20  ;;  %7340 = vmatprep.subr.bf16.mxu0 %v12077_v62  ;;  %v12158_v20 = vld [vmem:[%s18011_s7 + $0x16c] ss:$16 sps:$4 sm:$0xff]   ;;  %v12153_v62 = vld [vmem:[%s18011_s7 + $0x160] ss:$16 sps:$4 sm:$0xff]  }
 0x74b   :  { %7381 = vmatprep.subr.bf16.mxu1 %v12080_v40  ;;  %v12161_v40 = vld [vmem:[%s18011_s7 + $0x144] ss:$16 sps:$4 sm:$0xff]  }
 0x74d   :  { %7341 = vmatpush2.bf16.msra.mxu0 %v12075_v44  ;;  %v12159_v44 = vld [vmem:[%s18011_s7 + $0x140] ss:$16 sps:$4 sm:$0xff]  }
 0x74e   :  { %7382 = vmatpush2.bf16.msra.mxu1 %v12078_v46  ;;  %7806 = vmatprep.subr.bf16.mxu0 %v12083_v6  ;;  %v12162_v46 = vld [vmem:[%s18011_s7 + $0x148] ss:$16 sps:$4 sm:$0xff]   ;;  %v12173_v6 = vld [vmem:[%s18011_s7 + $0x104] ss:$16 sps:$4 sm:$0xff]  }
 0x74f   :  { %7847 = vmatprep.subr.bf16.mxu1 %v12086_v19  ;;  %v12176_v19 = vld [vmem:[%s18011_s7 + $0x10c] ss:$16 sps:$4 sm:$0xff]  }
 0x750   :  { %7343 = vmatmul.mubr.bf16.vlgmr.msra.gmra.mxu0 %v6444_v35  ;;  %v12165_v35 = vld [vmem:[%s18011_s7 + $0x120] ss:$16 sps:$4 sm:$0xff]  }
 0x751   :  { %7384 = vmatmul.mubr.bf16.vlgmr.msra.gmra.mxu1 %v6446_v50  ;;  %7807 = vmatpush1.bf16.msra.mxu0 %v12081_v21  ;;  %v12168_v50 = vld [vmem:[%s18011_s7 + $0x128] ss:$16 sps:$4 sm:$0xff]   ;;  %v12171_v21 = vld [vmem:[%s18011_s7 + $0x100] ss:$16 sps:$4 sm:$0xff]  }
 0x752   :  { %7848 = vmatpush1.bf16.msra.mxu1 %v12084_v18  ;;  %7808 = vmatprep.subr.bf16.mxu0 %v12089_v54  ;;  %v12174_v18 = vld [vmem:[%s18011_s7 + $0x108] ss:$16 sps:$4 sm:$0xff]   ;;  %v12182_v54 = vld [vmem:[%s18012_s9 + $0x2e4] ss:$16 sps:$4 sm:$0xff]  }
 0x753   :  { %7849 = vmatprep.subr.bf16.mxu1 %v12092_v32 }
 0x755   :  { %7809 = vmatpush1.bf16.msra.mxu0 %v12087_v31  ;;  %v12179_v31 = vld [vmem:[%s18012_s9 + $0xe4] ss:$16 sps:$4 sm:$0xff]  }
 0x756   :  { %7850 = vmatpush1.bf16.msra.mxu1 %v12090_v11  ;;  %7810 = vmatprep.subr.bf16.mxu0 %v12095_v34 }
 0x757   :  { %7851 = vmatprep.subr.bf16.mxu1 %v12098_v26 }
 0x759   :  { %7811 = vmatpush1.bf16.msra.mxu0 %v12093_v24 }
 0x75a   :  { %7852 = vmatpush1.bf16.msra.mxu1 %v12096_v12  ;;  %7812 = vmatprep.subr.bf16.mxu0 %v12101_v42 }
 0x75b   :  { %7853 = vmatprep.subr.bf16.mxu1 %v12104_v47 }
 0x75d   :  { %7813 = vmatpush1.bf16.msra.mxu0 %v12099_v49  ;;  %v6576_v49 = vld [vmem:[%s18013_s6] sm:$0x3] }
 0x75e   :  { %7854 = vmatpush1.bf16.msra.mxu1 %v12102_v57  ;;  %7814 = vmatprep.subr.bf16.mxu0 %v12107_v39  ;;  %v6581_v57 = vrot.slane %v6576_v49, %v17071_v53  ;;  %v6585_v39 = vrot.slane %v6576_v49, %v17077_v7  ;;  %v12236_v49 = vld [vmem:[%s18012_s9 + $0x3c4] ss:$16 sps:$4 sm:$0xff]  }
 0x75f   :  { %7855 = vmatprep.subr.bf16.mxu1 %v12110_v27 }
 0x761   :  { %7815 = vmatpush1.bf16.msra.mxu0 %v12105_v37 }
 0x762   :  { %7856 = vmatpush1.bf16.msra.mxu1 %v12108_v17  ;;  %7816 = vmatprep.subr.bf16.mxu0 %v12113_v2 }
 0x763   :  { %7857 = vmatprep.subr.bf16.mxu1 %v12116_v55 }
 0x765   :  { %7817 = vmatpush1.bf16.msra.mxu0 %v12111_v52 }
 0x766   :  { %7858 = vmatpush1.bf16.msra.mxu1 %v12114_v63  ;;  %7818 = vmatprep.subr.bf16.mxu0 %v12119_v25 }
 0x767   :  { %7859 = vmatprep.subr.bf16.mxu1 %v12122_v3 }
 0x769   :  { %7819 = vmatpush1.bf16.msra.mxu0 %v12117_v56 }
 0x76a   :  { %7860 = vmatpush1.bf16.msra.mxu1 %v12120_v33  ;;  %7820 = vmatprep.subr.bf16.mxu0 %v12125_v4 }
 0x76b   :  { %7861 = vmatprep.subr.bf16.mxu1 %v12128_v8 }
 0x76d   :  { %7821 = vmatpush1.bf16.msra.mxu0 %v12123_v10 }
 0x76e   :  { %7862 = vmatpush1.bf16.msra.mxu1 %v12126_v0  ;;  %7822 = vmatprep.subr.bf16.mxu0 %v12131_v29 }
 0x76f   :  { %7863 = vmatprep.subr.bf16.mxu1 %v12134_v5 }
 0x771   :  { %7823 = vmatpush2.bf16.msra.mxu0 %v12129_v15 }
 0x772   :  { %7864 = vmatpush2.bf16.msra.mxu1 %v12132_v1  ;;  %7824 = vmatprep.subr.bf16.mxu0 %v12137_v9 }
 0x773   :  { %7865 = vmatprep.subr.bf16.mxu1 %v12140_v13  ;;  %v12177_v13 = vld [vmem:[%s18012_s9 + $0xe0] ss:$16 sps:$4 sm:$0xff]  }
 0x775   :  { %7825 = vmatpush2.bf16.msra.mxu0 %v12135_v61 }
 0x776   :  { %7866 = vmatpush2.bf16.msra.mxu1 %v12138_v41  ;;  %7826 = vmatprep.subr.bf16.mxu0 %v12143_v16  ;;  %v12180_v41 = vld [vmem:[%s18012_s9 + $0x2e0] ss:$16 sps:$4 sm:$0xff]  }
 0x777   :  { %7867 = vmatprep.subr.bf16.mxu1 %v12146_v59  ;;  %v12185_v59 = vld [vmem:[%s18012_s9 + $0xc4] ss:$16 sps:$4 sm:$0xff]  }
 0x779   :  { %7827 = vmatpush2.bf16.msra.mxu0 %v12141_v23  ;;  %v12188_v23 = vld [vmem:[%s18012_s9 + $0x2c4] ss:$16 sps:$4 sm:$0xff]  }
 0x77a   :  { %7868 = vmatpush2.bf16.msra.mxu1 %v12144_v43  ;;  %7828 = vmatprep.subr.bf16.mxu0 %v12149_v30  ;;  %v12183_v43 = vld [vmem:[%s18012_s9 + $0xc0] ss:$16 sps:$4 sm:$0xff]  }
 0x77b   :  { %7869 = vmatprep.subr.bf16.mxu1 %v12152_v51  ;;  %v12186_v30 = vld [vmem:[%s18012_s9 + $0x2c0] ss:$16 sps:$4 sm:$0xff]   ;;  %v12191_v51 = vld [vmem:[%s18012_s9 + $0xa4] ss:$16 sps:$4 sm:$0xff]  }
 0x77d   :  { %7829 = vmatpush2.bf16.msra.mxu0 %v12147_v58  ;;  %v12194_v58 = vld [vmem:[%s18012_s9 + $0x2a4] ss:$16 sps:$4 sm:$0xff]  }
 0x77e   :  { %7870 = vmatpush2.bf16.msra.mxu1 %v12150_v36  ;;  %7830 = vmatprep.subr.bf16.mxu0 %v12155_v60  ;;  %v12189_v36 = vld [vmem:[%s18012_s9 + $0xa0] ss:$16 sps:$4 sm:$0xff]  }
 0x77f   :  { %7871 = vmatprep.subr.bf16.mxu1 %v12158_v20  ;;  %v12192_v60 = vld [vmem:[%s18012_s9 + $0x2a0] ss:$16 sps:$4 sm:$0xff]   ;;  %v12197_v20 = vld [vmem:[%s18012_s9 + $0x84] ss:$16 sps:$4 sm:$0xff]  }
 0x781   :  { %7831 = vmatpush2.bf16.msra.mxu0 %v12153_v62  ;;  %v12200_v62 = vld [vmem:[%s18012_s9 + $0x284] ss:$16 sps:$4 sm:$0xff]  }
 0x782   :  { %7872 = vmatpush2.bf16.msra.mxu1 %v12156_v38  ;;  %7832 = vmatprep.subr.bf16.mxu0 %v12161_v40  ;;  %v12195_v38 = vld [vmem:[%s18012_s9 + $0x80] ss:$16 sps:$4 sm:$0xff]  }
 0x783   :  { %7873 = vmatprep.subr.bf16.mxu1 %v12164_v22  ;;  %v12198_v40 = vld [vmem:[%s18012_s9 + $0x280] ss:$16 sps:$4 sm:$0xff]   ;;  %v12203_v22 = vld [vmem:[%s18012_s9 + $0x64] ss:$16 sps:$4 sm:$0xff]  }
 0x785   :  { %7833 = vmatpush2.bf16.msra.mxu0 %v12159_v44  ;;  %v12206_v44 = vld [vmem:[%s18012_s9 + $0x264] ss:$16 sps:$4 sm:$0xff]  }
 0x786   :  { %7874 = vmatpush2.bf16.msra.mxu1 %v12162_v46  ;;  %7834 = vmatprep.subr.bf16.mxu0 %v12167_v48  ;;  %v12201_v46 = vld [vmem:[%s18012_s9 + $0x60] ss:$16 sps:$4 sm:$0xff]  }
 0x787   :  { %7875 = vmatprep.subr.bf16.mxu1 %v12170_v28  ;;  %v12204_v48 = vld [vmem:[%s18012_s9 + $0x260] ss:$16 sps:$4 sm:$0xff]   ;;  %v12209_v28 = vld [vmem:[%s18012_s9 + $0x44] ss:$16 sps:$4 sm:$0xff]  }
 0x789   :  { %7835 = vmatpush2.bf16.msra.mxu0 %v12165_v35  ;;  %v12212_v35 = vld [vmem:[%s18012_s9 + $0x244] ss:$16 sps:$4 sm:$0xff]  }
 0x78a   :  { %7876 = vmatpush2.bf16.msra.mxu1 %v12168_v50  ;;  %7836 = vmatprep.subr.bf16.mxu0 %v12173_v6  ;;  %v12207_v50 = vld [vmem:[%s18012_s9 + $0x40] ss:$16 sps:$4 sm:$0xff]   ;;  %v12215_v6 = vld [vmem:[%s18012_s9 + $0x24] ss:$16 sps:$4 sm:$0xff]  }
 0x78b   :  { %7877 = vmatprep.subr.bf16.mxu1 %v12176_v19  ;;  %v12213_v19 = vld [vmem:[%s18012_s9 + $0x20] ss:$16 sps:$4 sm:$0xff]  }
 0x78d   :  { %7837 = vmatpush2.bf16.msra.mxu0 %v12171_v21  ;;  %v12210_v21 = vld [vmem:[%s18012_s9 + $0x240] ss:$16 sps:$4 sm:$0xff]  }
 0x78e   :  { %7878 = vmatpush2.bf16.msra.mxu1 %v12174_v18  ;;  %8694 = vmatprep.subr.bf16.mxu0 %v12179_v31  ;;  %v12218_v18 = vld [vmem:[%s18012_s9 + $0x224] ss:$16 sps:$4 sm:$0xff]   ;;  %v12216_v31 = vld [vmem:[%s18012_s9 + $0x220] ss:$16 sps:$4 sm:$0xff]  }
 0x78f   :  { %8735 = vmatprep.subr.bf16.mxu1 %v12182_v54  ;;  %v12221_v54 = vld [vmem:[%s18012_s9 + $0x4] ss:$16 sps:$4 sm:$0xff]  }
 0x7d0   :  { %v7262_v11 = vpop.f32.mrf.mxu0  ;;  %v7303_v32 = vpop.f32.mrf.mxu1 }
 0x7d1   :  { %v7263_v27 = vadd.f32 %v7262_v11, %v6581_v57  ;;  %v12224_v11 = vld [vmem:[%s18012_s9 + $0x204] ss:$16 sps:$4 sm:$0xff]   ;;  %v12231_v57 = vld [vmem:[%s18012_s9 + $0x1c0] ss:$16 sps:$4 sm:$0xff]  }
 0x7d2   :  { %v7264_v34 = vpop.f32.mrf.mxu0  ;;  %v7305_v24 = vpop.f32.mrf.mxu1 }
 0x7d3   :  { %v7265_v37 = vadd.f32 %v7264_v34, %v6585_v39  ;;  %v7304_v17 = vadd.f32 %v7303_v32, %v7263_v27  ;;  %v12219_v32 = vld [vmem:[%s18012_s9] ss:$16 sps:$4 sm:$0xff]   ;;  %v12239_v27 = vld [vmem:[%s18012_s9 + $0x1a4] ss:$16 sps:$4 sm:$0xff]  }
 0x7d4   :  { %v7266_v26 = vpop.f32.mrf.mxu0  ;;  %v7307_v12 = vpop.f32.mrf.mxu1  ;;  %v12222_v34 = vld [vmem:[%s18012_s9 + $0x200] ss:$16 sps:$4 sm:$0xff]  }
 0x7d5   :  { %v7306_v55 = vadd.f32 %v7305_v24, %v7265_v37  ;;  %v12227_v24 = vld [vmem:[%s18012_s9 + $0x1e4] ss:$16 sps:$4 sm:$0xff]   ;;  %v12225_v12 = vld [vmem:[%s18012_s9 + $0x1e0] ss:$16 sps:$4 sm:$0xff]  }
 0x7d6   :  { %v7267_v42 = vpop.f32.mrf.mxu0  ;;  %v7308_v47 = vpop.f32.mrf.mxu1  ;;  %v12230_v26 = vld [vmem:[%s18012_s9 + $0x3e4] ss:$16 sps:$4 sm:$0xff]   ;;  %v12234_v39 = vld [vmem:[%s18012_s9 + $0x3c0] ss:$16 sps:$4 sm:$0xff]  }
 0x7d7   :  { %v12228_v42 = vld [vmem:[%s18012_s9 + $0x3e0] ss:$16 sps:$4 sm:$0xff]   ;;  %v12233_v47 = vld [vmem:[%s18012_s9 + $0x1c4] ss:$16 sps:$4 sm:$0xff]  }
 0x7d8   :  { %v12242_v37 = vld [vmem:[%s18012_s9 + $0x3a4] ss:$16 sps:$4 sm:$0xff]  }
 0x810   :  { %v7344_v2 = vpop.f32.mrf.mxu0 }
 0x811   :  { %v7345_v52 = vadd.f32 %v7344_v2, %v7304_v17  ;;  %v7385_v63 = vpop.f32.mrf.mxu1  ;;  %v12237_v17 = vld [vmem:[%s18012_s9 + $0x1a0] ss:$16 sps:$4 sm:$0xff]  }
 0x812   :  { %v7346_v25 = vpop.f32.mrf.mxu0  ;;  %v12240_v2 = vld [vmem:[%s18012_s9 + $0x3a0] ss:$16 sps:$4 sm:$0xff]  }
 0x813   :  { %v7386_v3 = vadd.f32 %v7385_v63, %v7345_v52  ;;  %v7347_v56 = vadd.f32 %v7346_v25, %v7306_v55  ;;  %v7387_v33 = vpop.f32.mrf.mxu1  ;;  %v12245_v55 = vld [vmem:[%s18012_s9 + $0x184] ss:$16 sps:$4 sm:$0xff]   ;;  %v12243_v63 = vld [vmem:[%s18012_s9 + $0x180] ss:$16 sps:$4 sm:$0xff]  }
 0x814   :  { %v7348_v4 = vpop.f32.mrf.mxu0  ;;  %v12248_v52 = vld [vmem:[%s18012_s9 + $0x384] ss:$16 sps:$4 sm:$0xff]   ;;  %v12246_v25 = vld [vmem:[%s18012_s9 + $0x380] ss:$16 sps:$4 sm:$0xff]  }
 0x815   :  { %vm7392_vm13 = vcmp.gt.f32.partialorder %v7386_v3, 0.0  ;;  %v7394_v8 = vmul.f32 0.2, %v7386_v3  ;;  %v7388_v10 = vadd.f32 %v7387_v33, %v7347_v56  ;;  %v7389_v0 = vpop.f32.mrf.mxu1  ;;  %v12254_v56 = vld [vmem:[%s18012_s9 + $0x364] ss:$16 sps:$4 sm:$0xff]  }
 0x816   :  { %v7349_v29 = vpop.f32.mrf.mxu0  ;;  %v12249_v33 = vld [vmem:[%s18012_s9 + $0x160] ss:$16 sps:$4 sm:$0xff]  }
 0x817   :  { %vm7393_vm14 = vcmp.gt.f32.partialorder %v7388_v10, 0.0  ;;  %v7395_v5 = vmul.f32 0.2, %v7388_v10  ;;  %v7390_v15 = vpop.f32.mrf.mxu1  ;;  %v7396_v1 = vsel %vm7392_vm13, %v7386_v3, %v7394_v8  ;;  %v12251_v3 = vld [vmem:[%s18012_s9 + $0x164] ss:$16 sps:$4 sm:$0xff]  }
 0x818   :  { %v7398_v16 = vpack.c.bf16 %v7396_v1, %v7396_v1  ;;  %v12252_v4 = vld [vmem:[%s18012_s9 + $0x360] ss:$16 sps:$4 sm:$0xff]   ;;  %v12257_v8 = vld [vmem:[%s18012_s9 + $0x144] ss:$16 sps:$4 sm:$0xff]  }
 0x819   :  { %v7397_v9 = vsel %vm7393_vm14, %v7388_v10, %v7395_v5  ;;  %v12260_v10 = vld [vmem:[%s18012_s9 + $0x344] ss:$16 sps:$4 sm:$0xff]   ;;  %v12255_v0 = vld [vmem:[%s18012_s9 + $0x140] ss:$16 sps:$4 sm:$0xff]  }
 0x81a   :  { %v7399_v61 = vpack.c.bf16 %v7397_v9, %v7397_v9  ;;  %v12258_v29 = vld [vmem:[%s18012_s9 + $0x340] ss:$16 sps:$4 sm:$0xff]   ;;  %v12263_v5 = vld [vmem:[%s18012_s9 + $0x124] ss:$16 sps:$4 sm:$0xff]  }
 0x81b   :  { %v12266_v15 = vld [vmem:[%s18012_s9 + $0x324] ss:$16 sps:$4 sm:$0xff]   ;;  %v12261_v1 = vld [vmem:[%s18012_s9 + $0x120] ss:$16 sps:$4 sm:$0xff]  }
 0x81c   :  { %7838 = vmatprep.mubr.bf16.mxu0 %v7399_v61  ;;  %7879 = vmatprep.mubr.bf16.mxu1 %v7399_v61  ;;  %v12264_v9 = vld [vmem:[%s18012_s9 + $0x320] ss:$16 sps:$4 sm:$0xff]   ;;  %v12269_v61 = vld [vmem:[%s18012_s9 + $0x104] ss:$16 sps:$4 sm:$0xff]  }
 0x81d   :  { %7839 = vmatmul.mubr.bf16.vlgmr.msra.gmra.mxu0 %v7398_v16  ;;  %7880 = vmatmul.mubr.bf16.vlgmr.msra.gmra.mxu1 %v7398_v16  ;;  %v12270_v16 = vld [vmem:[%s18012_s9 + $0x300] ss:$16 sps:$4 sm:$0xff]  }
 0x81e   :  { %8695 = vmatpush1.bf16.msra.mxu0 %v12177_v13  ;;  %8736 = vmatpush1.bf16.msra.mxu1 %v12180_v41  ;;  %v12272_v13 = vld [vmem:[%s18012_s9 + $0x304] ss:$16 sps:$4 sm:$0xff]   ;;  %v12267_v41 = vld [vmem:[%s18012_s9 + $0x100] ss:$16 sps:$4 sm:$0xff]  }
 0x81f   :  { %8696 = vmatprep.subr.bf16.mxu0 %v12185_v59  ;;  %8737 = vmatprep.subr.bf16.mxu1 %v12188_v23  ;;  %v12275_v59 = vld [vmem:[%s18012_s9 + $0xec] ss:$16 sps:$4 sm:$0xff]  }
 0x820   :  { %v12278_v23 = vld [vmem:[%s18012_s9 + $0x2ec] ss:$16 sps:$4 sm:$0xff]  }
 0x822   :  { %8697 = vmatpush1.bf16.msra.mxu0 %v12183_v43  ;;  %8738 = vmatpush1.bf16.msra.mxu1 %v12186_v30  ;;  %v7464_v43 = vld [vmem:[%s18015_s8] sm:$0xf] }
 0x823   :  { %8698 = vmatprep.subr.bf16.mxu0 %v12191_v51  ;;  %8739 = vmatprep.subr.bf16.mxu1 %v12194_v58  ;;  %v7469_v30 = vrot.slane %v7464_v43, %v17071_v53  ;;  %v7477_v51 = vrot.slane %v7464_v43, %v17074_v14 }
 0x826   :  { %8699 = vmatpush1.bf16.msra.mxu0 %v12189_v36  ;;  %8740 = vmatpush1.bf16.msra.mxu1 %v12192_v60  ;;  %v7473_v60 = vrot.slane %v7464_v43, %v17077_v7 }
 0x827   :  { %8700 = vmatprep.subr.bf16.mxu0 %v12197_v20  ;;  %8741 = vmatprep.subr.bf16.mxu1 %v12200_v62  ;;  %v7481_v20 = vrot.slane %v7464_v43, %v17080_v45  ;;  %v12326_v43 = vld [vmem:[%s18012_s9 + $0x3ec] ss:$16 sps:$4 sm:$0xff]  }
 0x82a   :  { %8701 = vmatpush1.bf16.msra.mxu0 %v12195_v38  ;;  %8742 = vmatpush1.bf16.msra.mxu1 %v12198_v40 }
 0x82b   :  { %8702 = vmatprep.subr.bf16.mxu0 %v12203_v22  ;;  %8743 = vmatprep.subr.bf16.mxu1 %v12206_v44 }
 0x82e   :  { %8703 = vmatpush1.bf16.msra.mxu0 %v12201_v46  ;;  %8744 = vmatpush1.bf16.msra.mxu1 %v12204_v48 }
 0x82f   :  { %8704 = vmatprep.subr.bf16.mxu0 %v12209_v28  ;;  %8745 = vmatprep.subr.bf16.mxu1 %v12212_v35 }
 0x832   :  { %8705 = vmatpush1.bf16.msra.mxu0 %v12207_v50  ;;  %8746 = vmatpush1.bf16.msra.mxu1 %v12210_v21 }
 0x833   :  { %8706 = vmatprep.subr.bf16.mxu0 %v12215_v6  ;;  %8747 = vmatprep.subr.bf16.mxu1 %v12218_v18 }
 0x836   :  { %8707 = vmatpush1.bf16.msra.mxu0 %v12213_v19  ;;  %8748 = vmatpush1.bf16.msra.mxu1 %v12216_v31 }
 0x837   :  { %8708 = vmatprep.subr.bf16.mxu0 %v12221_v54  ;;  %8749 = vmatprep.subr.bf16.mxu1 %v12224_v11 }
 0x83a   :  { %8709 = vmatpush1.bf16.msra.mxu0 %v12219_v32  ;;  %8750 = vmatpush1.bf16.msra.mxu1 %v12222_v34 }
 0x83b   :  { %8710 = vmatprep.subr.bf16.mxu0 %v12227_v24  ;;  %8751 = vmatprep.subr.bf16.mxu1 %v12230_v26  ;;  %v12273_v24 = vld [vmem:[%s18012_s9 + $0xe8] ss:$16 sps:$4 sm:$0xff]  }
 0x83e   :  { %8711 = vmatpush2.bf16.msra.mxu0 %v12225_v12  ;;  %8752 = vmatpush2.bf16.msra.mxu1 %v12228_v42  ;;  %v12276_v42 = vld [vmem:[%s18012_s9 + $0x2e8] ss:$16 sps:$4 sm:$0xff]  }
 0x83f   :  { %8712 = vmatprep.subr.bf16.mxu0 %v12233_v47  ;;  %8753 = vmatprep.subr.bf16.mxu1 %v12236_v49  ;;  %v12281_v49 = vld [vmem:[%s18012_s9 + $0xcc] ss:$16 sps:$4 sm:$0xff]  }
 0x842   :  { %8713 = vmatpush2.bf16.msra.mxu0 %v12231_v57  ;;  %8754 = vmatpush2.bf16.msra.mxu1 %v12234_v39  ;;  %v12284_v57 = vld [vmem:[%s18012_s9 + $0x2cc] ss:$16 sps:$4 sm:$0xff]   ;;  %v12279_v39 = vld [vmem:[%s18012_s9 + $0xc8] ss:$16 sps:$4 sm:$0xff]  }
 0x843   :  { %8714 = vmatprep.subr.bf16.mxu0 %v12239_v27  ;;  %8755 = vmatprep.subr.bf16.mxu1 %v12242_v37  ;;  %v12282_v27 = vld [vmem:[%s18012_s9 + $0x2c8] ss:$16 sps:$4 sm:$0xff]   ;;  %v12287_v37 = vld [vmem:[%s18012_s9 + $0xac] ss:$16 sps:$4 sm:$0xff]  }
 0x846   :  { %8715 = vmatpush2.bf16.msra.mxu0 %v12237_v17  ;;  %8756 = vmatpush2.bf16.msra.mxu1 %v12240_v2  ;;  %v12290_v17 = vld [vmem:[%s18012_s9 + $0x2ac] ss:$16 sps:$4 sm:$0xff]   ;;  %v12285_v2 = vld [vmem:[%s18012_s9 + $0xa8] ss:$16 sps:$4 sm:$0xff]  }
 0x847   :  { %8716 = vmatprep.subr.bf16.mxu0 %v12245_v55  ;;  %8757 = vmatprep.subr.bf16.mxu1 %v12248_v52  ;;  %v12288_v55 = vld [vmem:[%s18012_s9 + $0x2a8] ss:$16 sps:$4 sm:$0xff]   ;;  %v12293_v52 = vld [vmem:[%s18012_s9 + $0x8c] ss:$16 sps:$4 sm:$0xff]  }
 0x84a   :  { %8717 = vmatpush2.bf16.msra.mxu0 %v12243_v63  ;;  %8758 = vmatpush2.bf16.msra.mxu1 %v12246_v25  ;;  %v12296_v63 = vld [vmem:[%s18012_s9 + $0x28c] ss:$16 sps:$4 sm:$0xff]   ;;  %v12291_v25 = vld [vmem:[%s18012_s9 + $0x88] ss:$16 sps:$4 sm:$0xff]  }
 0x84b   :  { %8718 = vmatprep.subr.bf16.mxu0 %v12251_v3  ;;  %8759 = vmatprep.subr.bf16.mxu1 %v12254_v56  ;;  %v12294_v3 = vld [vmem:[%s18012_s9 + $0x288] ss:$16 sps:$4 sm:$0xff]   ;;  %v12299_v56 = vld [vmem:[%s18012_s9 + $0x6c] ss:$16 sps:$4 sm:$0xff]  }
 0x84e   :  { %8719 = vmatpush2.bf16.msra.mxu0 %v12249_v33  ;;  %8760 = vmatpush2.bf16.msra.mxu1 %v12252_v4  ;;  %v12302_v33 = vld [vmem:[%s18012_s9 + $0x26c] ss:$16 sps:$4 sm:$0xff]   ;;  %v12297_v4 = vld [vmem:[%s18012_s9 + $0x68] ss:$16 sps:$4 sm:$0xff]  }
 0x84f   :  { %8720 = vmatprep.subr.bf16.mxu0 %v12257_v8  ;;  %8761 = vmatprep.subr.bf16.mxu1 %v12260_v10  ;;  %v12300_v8 = vld [vmem:[%s18012_s9 + $0x268] ss:$16 sps:$4 sm:$0xff]   ;;  %v12305_v10 = vld [vmem:[%s18012_s9 + $0x4c] ss:$16 sps:$4 sm:$0xff]  }
 0x852   :  { %8721 = vmatpush2.bf16.msra.mxu0 %v12255_v0  ;;  %8762 = vmatpush2.bf16.msra.mxu1 %v12258_v29  ;;  %v12308_v0 = vld [vmem:[%s18012_s9 + $0x24c] ss:$16 sps:$4 sm:$0xff]   ;;  %v12303_v29 = vld [vmem:[%s18012_s9 + $0x48] ss:$16 sps:$4 sm:$0xff]  }
 0x853   :  { %8722 = vmatprep.subr.bf16.mxu0 %v12263_v5  ;;  %8763 = vmatprep.subr.bf16.mxu1 %v12266_v15  ;;  %v12306_v5 = vld [vmem:[%s18012_s9 + $0x248] ss:$16 sps:$4 sm:$0xff]   ;;  %v12311_v15 = vld [vmem:[%s18012_s9 + $0x2c] ss:$16 sps:$4 sm:$0xff]  }
 0x856   :  { %8723 = vmatpush2.bf16.msra.mxu0 %v12261_v1  ;;  %8764 = vmatpush2.bf16.msra.mxu1 %v12264_v9  ;;  %v12314_v1 = vld [vmem:[%s18012_s9 + $0x22c] ss:$16 sps:$4 sm:$0xff]   ;;  %v12309_v9 = vld [vmem:[%s18012_s9 + $0x28] ss:$16 sps:$4 sm:$0xff]  }
 0x857   :  { %8724 = vmatprep.subr.bf16.mxu0 %v12269_v61  ;;  %8765 = vmatprep.subr.bf16.mxu1 %v12272_v13  ;;  %v12312_v61 = vld [vmem:[%s18012_s9 + $0x228] ss:$16 sps:$4 sm:$0xff]   ;;  %v12317_v13 = vld [vmem:[%s18012_s9 + $0xc] ss:$16 sps:$4 sm:$0xff]  }
 0x85a   :  { %8725 = vmatpush2.bf16.msra.mxu0 %v12267_v41  ;;  %8766 = vmatpush2.bf16.msra.mxu1 %v12270_v16  ;;  %v12320_v41 = vld [vmem:[%s18012_s9 + $0x20c] ss:$16 sps:$4 sm:$0xff]   ;;  %v12315_v16 = vld [vmem:[%s18012_s9 + $0x8] ss:$16 sps:$4 sm:$0xff]  }
 0x85b   :  { %8776 = vmatprep.subr.bf16.mxu0 %v12275_v59  ;;  %8817 = vmatprep.subr.bf16.mxu1 %v12278_v23  ;;  %v12318_v59 = vld [vmem:[%s18012_s9 + $0x208] ss:$16 sps:$4 sm:$0xff]   ;;  %v12323_v23 = vld [vmem:[%s18012_s9 + $0x1ec] ss:$16 sps:$4 sm:$0xff]  }
 0x8dd   :  { %v7840_v58 = vpop.f32.mrf.mxu0  ;;  %v7881_v36 = vpop.f32.mrf.mxu1 }
 0x8de   :  { %v7841_v62 = vadd.f32 %v7840_v58, %v7469_v30  ;;  %v7882_v38 = vadd.f32 %v7881_v36, %v7477_v51  ;;  %v12321_v30 = vld [vmem:[%s18012_s9 + $0x1e8] ss:$16 sps:$4 sm:$0xff]   ;;  %v12329_v58 = vld [vmem:[%s18012_s9 + $0x1cc] ss:$16 sps:$4 sm:$0xff]  }
 0x8df   :  { %v7842_v40 = vpop.f32.mrf.mxu0  ;;  %v7883_v22 = vpop.f32.mrf.mxu1  ;;  %v12324_v51 = vld [vmem:[%s18012_s9 + $0x3e8] ss:$16 sps:$4 sm:$0xff]   ;;  %v12332_v36 = vld [vmem:[%s18012_s9 + $0x3cc] ss:$16 sps:$4 sm:$0xff]  }
 0x8e0   :  { %v7892_v44 = vmul.f32 0.2, %v7841_v62  ;;  %vm7888_vm15 = vcmp.gt.f32.partialorder %v7841_v62, 0.0  ;;  %v7894_v46 = vmul.f32 0.2, %v7882_v38  ;;  %v7843_v48 = vadd.f32 %v7842_v40, %v7473_v60 }
 0x8e1   :  { %v7884_v28 = vadd.f32 %v7883_v22, %v7481_v20  ;;  %v7844_v35 = vpop.f32.mrf.mxu0  ;;  %v7885_v50 = vpop.f32.mrf.mxu1  ;;  %vm7890_vm0 = vcmp.gt.f32.partialorder %v7882_v38, 0.0  ;;  %v12327_v60 = vld [vmem:[%s18012_s9 + $0x1c8] ss:$16 sps:$4 sm:$0xff]  }
 0x8e2   :  { %vm7889_vm1 = vcmp.gt.f32.partialorder %v7843_v48, 0.0  ;;  %v7893_v21 = vmul.f32 0.2, %v7843_v48  ;;  %v7896_v19 = vsel %vm7888_vm15, %v7841_v62, %v7892_v44  ;;  %v7898_v54 = vsel %vm7890_vm0, %v7882_v38, %v7894_v46  ;;  %v12330_v20 = vld [vmem:[%s18012_s9 + $0x3c8] ss:$16 sps:$4 sm:$0xff]  }
 0x8e3   :  { %v7845_v6 = vpop.f32.mrf.mxu0  ;;  %v7886_v18 = vpop.f32.mrf.mxu1  ;;  %vm7891_vm2 = vcmp.gt.f32.partialorder %v7884_v28, 0.0  ;;  %v7895_v31 = vmul.f32 0.2, %v7884_v28  ;;  %v17705_v26 = vpack.c.bf16 %v7896_v19, %v7896_v19  ;;  %v17710_v47 = vpack.c.bf16 %v7898_v54, %v7898_v54  ;;  %v12335_v62 = vld [vmem:[%s18012_s9 + $0x1ac] ss:$16 sps:$4 sm:$0xff]  }
 0x8e4   :  { %v7897_v11 = vsel %vm7889_vm1, %v7843_v48, %v7893_v21  ;;  %v12338_v38 = vld [vmem:[%s18012_s9 + $0x3ac] ss:$16 sps:$4 sm:$0xff]   ;;  %v12333_v40 = vld [vmem:[%s18012_s9 + $0x1a8] ss:$16 sps:$4 sm:$0xff]  }
 0x8e5   :  { %v7901_v32 = vpack.c.bf16 %v7897_v11, %v7897_v11  ;;  %v7899_v34 = vsel %vm7891_vm2, %v7884_v28, %v7895_v31  ;;  %v12336_v22 = vld [vmem:[%s18012_s9 + $0x3a8] ss:$16 sps:$4 sm:$0xff]   ;;  %v12341_v44 = vld [vmem:[%s18012_s9 + $0x18c] ss:$16 sps:$4 sm:$0xff]  }
 0x8e6   :  { %v7903_v12 = vpack.c.bf16 %v7899_v34, %v7899_v34  ;;  %v12344_v46 = vld [vmem:[%s18012_s9 + $0x38c] ss:$16 sps:$4 sm:$0xff]   ;;  %v12339_v48 = vld [vmem:[%s18012_s9 + $0x188] ss:$16 sps:$4 sm:$0xff]  }
 0x8e7   :  { %8726 = vmatprep.mubr.bf16.mxu0 %v7901_v32  ;;  %v12342_v28 = vld [vmem:[%s18012_s9 + $0x388] ss:$16 sps:$4 sm:$0xff]   ;;  %v12347_v35 = vld [vmem:[%s18012_s9 + $0x16c] ss:$16 sps:$4 sm:$0xff]  }
 0x8e8   :  { %8767 = vmatprep.mubr.bf16.mxu1 %v7903_v12  ;;  %8727 = vmatmul.mubr.bf16.vlgmr.msra.gmra.mxu0 %v17705_v26  ;;  %v12350_v50 = vld [vmem:[%s18012_s9 + $0x36c] ss:$16 sps:$4 sm:$0xff]   ;;  %v12345_v21 = vld [vmem:[%s18012_s9 + $0x168] ss:$16 sps:$4 sm:$0xff]  }
 0x8e9   :  { %8768 = vmatmul.mubr.bf16.vlgmr.msra.gmra.mxu1 %v17710_v47  ;;  %8777 = vmatpush1.bf16.msra.mxu0 %v12273_v24  ;;  %v12348_v6 = vld [vmem:[%s18012_s9 + $0x368] ss:$16 sps:$4 sm:$0xff]   ;;  %v12353_v18 = vld [vmem:[%s18012_s9 + $0x14c] ss:$16 sps:$4 sm:$0xff]  }
 0x8ea   :  { %8818 = vmatpush1.bf16.msra.mxu1 %v12276_v42  ;;  %8808 = vmatprep.mubr.bf16.mxu0 %v7901_v32  ;;  %v12356_v19 = vld [vmem:[%s18012_s9 + $0x34c] ss:$16 sps:$4 sm:$0xff]   ;;  %v12351_v31 = vld [vmem:[%s18012_s9 + $0x148] ss:$16 sps:$4 sm:$0xff]  }
 0x8eb   :  { %8849 = vmatprep.mubr.bf16.mxu1 %v7903_v12  ;;  %8778 = vmatprep.subr.bf16.mxu0 %v12281_v49  ;;  %v12354_v54 = vld [vmem:[%s18012_s9 + $0x348] ss:$16 sps:$4 sm:$0xff]   ;;  %v12359_v11 = vld [vmem:[%s18012_s9 + $0x12c] ss:$16 sps:$4 sm:$0xff]  }
 0x8ec   :  { %8819 = vmatprep.subr.bf16.mxu1 %v12284_v57  ;;  %v12362_v32 = vld [vmem:[%s18012_s9 + $0x32c] ss:$16 sps:$4 sm:$0xff]   ;;  %v12357_v34 = vld [vmem:[%s18012_s9 + $0x128] ss:$16 sps:$4 sm:$0xff]  }
 0x8ed   :  { %8779 = vmatpush1.bf16.msra.mxu0 %v12279_v39  ;;  %v12360_v24 = vld [vmem:[%s18012_s9 + $0x328] ss:$16 sps:$4 sm:$0xff]   ;;  %v12365_v12 = vld [vmem:[%s18012_s9 + $0x10c] ss:$16 sps:$4 sm:$0xff]  }
 0x8ee   :  { %8820 = vmatpush1.bf16.msra.mxu1 %v12282_v27  ;;  %8780 = vmatprep.subr.bf16.mxu0 %v12287_v37  ;;  %v12368_v42 = vld [vmem:[%s18012_s9 + $0x30c] ss:$16 sps:$4 sm:$0xff]   ;;  %v12363_v49 = vld [vmem:[%s18012_s9 + $0x108] ss:$16 sps:$4 sm:$0xff]   ;;  %v12371_v37 = vld [vmem:[%s18014_s11 + $0x70] sm:$0xff]  }
 0x8ef   :  { %8821 = vmatprep.subr.bf16.mxu1 %v12290_v17  ;;  %v12366_v57 = vld [vmem:[%s18012_s9 + $0x308] ss:$16 sps:$4 sm:$0xff]   ;;  %v12372_v17 = vld [vmem:[%s18014_s11 + $0x30] sm:$0xff]  }
 0x8f0   :  { %v12369_v39 = vld [vmem:[%s18014_s11 + $0x78] sm:$0xff]  }
 0x8f1   :  { %8781 = vmatpush1.bf16.msra.mxu0 %v12285_v2  ;;  %v12370_v27 = vld [vmem:[%s18014_s11 + $0x38] sm:$0xff]   ;;  %v12373_v2 = vld [vmem:[%s18014_s11 + $0x68] sm:$0xff]  }
 0x8f2   :  { %8822 = vmatpush1.bf16.msra.mxu1 %v12288_v55  ;;  %8782 = vmatprep.subr.bf16.mxu0 %v12293_v52  ;;  %v12374_v55 = vld [vmem:[%s18014_s11 + $0x28] sm:$0xff]   ;;  %v12377_v52 = vld [vmem:[%s18014_s11 + $0x58] sm:$0xff]  }
 0x8f3   :  { %8823 = vmatprep.subr.bf16.mxu1 %v12296_v63  ;;  %v12378_v63 = vld [vmem:[%s18014_s11 + $0x18] sm:$0xff]  }
 0x8f5   :  { %8783 = vmatpush1.bf16.msra.mxu0 %v12291_v25  ;;  %v12385_v25 = vld [vmem:[%s18014_s11 + $0xf8] sm:$0xff]  }
 0x8f6   :  { %8824 = vmatpush1.bf16.msra.mxu1 %v12294_v3  ;;  %8784 = vmatprep.subr.bf16.mxu0 %v12299_v56  ;;  %v12386_v3 = vld [vmem:[%s18014_s11 + $0xb8] sm:$0xff]   ;;  %v12387_v56 = vld [vmem:[%s18014_s11 + $0xf0] sm:$0xff]  }
 0x8f7   :  { %8825 = vmatprep.subr.bf16.mxu1 %v12302_v33  ;;  %v12379_v33 = vld [vmem:[%s18014_s11 + $0x50] sm:$0xff]  }
 0x8f9   :  { %8785 = vmatpush1.bf16.msra.mxu0 %v12297_v4  ;;  %v12388_v4 = vld [vmem:[%s18014_s11 + $0xb0] sm:$0xff]  }
 0x8fa   :  { %8826 = vmatpush1.bf16.msra.mxu1 %v12300_v8  ;;  %8786 = vmatprep.subr.bf16.mxu0 %v12305_v10  ;;  %v12380_v8 = vld [vmem:[%s18014_s11 + $0x10] sm:$0xff]   ;;  %v12389_v10 = vld [vmem:[%s18014_s11 + $0xe8] sm:$0xff]  }
 0x8fb   :  { %8827 = vmatprep.subr.bf16.mxu1 %v12308_v0  ;;  %v12381_v0 = vld [vmem:[%s18014_s11 + $0x48] sm:$0xff]  }
 0x8fd   :  { %8787 = vmatpush1.bf16.msra.mxu0 %v12303_v29  ;;  %v12390_v29 = vld [vmem:[%s18014_s11 + $0xa8] sm:$0xff]  }
 0x8fe   :  { %8828 = vmatpush1.bf16.msra.mxu1 %v12306_v5  ;;  %8788 = vmatprep.subr.bf16.mxu0 %v12311_v15  ;;  %v12382_v5 = vld [vmem:[%s18014_s11 + $0x8] sm:$0xff]   ;;  %v12391_v15 = vld [vmem:[%s18014_s11 + $0xe0] sm:$0xff]  }
 0x8ff   :  { %8829 = vmatprep.subr.bf16.mxu1 %v12314_v1  ;;  %v12383_v1 = vld [vmem:[%s18014_s11 + $0x40] sm:$0xff]  }
 0x901   :  { %8789 = vmatpush1.bf16.msra.mxu0 %v12309_v9  ;;  %v12392_v9 = vld [vmem:[%s18014_s11 + $0xa0] sm:$0xff]  }
 0x902   :  { %8830 = vmatpush1.bf16.msra.mxu1 %v12312_v61  ;;  %8790 = vmatprep.subr.bf16.mxu0 %v12317_v13  ;;  %v12384_v61 = vld [vmem:[%s18014_s11] sm:$0xff]   ;;  %v12393_v13 = vld [vmem:[%s18014_s11 + $0xd8] sm:$0xff]  }
 0x903   :  { %8831 = vmatprep.subr.bf16.mxu1 %v12320_v41  ;;  %v12394_v41 = vld [vmem:[%s18014_s11 + $0x98] sm:$0xff]  }
 0x905   :  { %8791 = vmatpush1.bf16.msra.mxu0 %v12315_v16  ;;  %v12395_v16 = vld [vmem:[%s18014_s11 + $0xd0] sm:$0xff]  }
 0x906   :  { %8832 = vmatpush1.bf16.msra.mxu1 %v12318_v59  ;;  %8792 = vmatprep.subr.bf16.mxu0 %v12323_v23  ;;  %v12396_v59 = vld [vmem:[%s18014_s11 + $0x90] sm:$0xff]   ;;  %v12397_v23 = vld [vmem:[%s18014_s11 + $0xc8] sm:$0xff]  }
 0x907   :  { %8833 = vmatprep.subr.bf16.mxu1 %v12326_v43  ;;  %v12398_v43 = vld [vmem:[%s18014_s11 + $0x88] sm:$0xff]  }
 0x909   :  { %8793 = vmatpush2.bf16.msra.mxu0 %v12321_v30  ;;  %v12399_v30 = vld [vmem:[%s18014_s11 + $0xc0] sm:$0xff]  }
 0x90a   :  { %8834 = vmatpush2.bf16.msra.mxu1 %v12324_v51  ;;  %8794 = vmatprep.subr.bf16.mxu0 %v12329_v58  ;;  %v12400_v51 = vld [vmem:[%s18014_s11 + $0x80] sm:$0xff]  }
 0x90b   :  { %8835 = vmatprep.subr.bf16.mxu1 %v12332_v36  ;;  %v8032_v58 = vld [vmem:[%s18016_s10] sm:$0xf] }
 0x90c   :  { %v8037_v36 = vrot.slane %v8032_v58, %v17071_v53 }
 0x90d   :  { %8795 = vmatpush2.bf16.msra.mxu0 %v12327_v60  ;;  %v8041_v60 = vrot.slane %v8032_v58, %v17077_v7 }
 0x90e   :  { %8836 = vmatpush2.bf16.msra.mxu1 %v12330_v20  ;;  %8796 = vmatprep.subr.bf16.mxu0 %v12335_v62 }
 0x90f   :  { %8837 = vmatprep.subr.bf16.mxu1 %v12338_v38 }
 0x911   :  { %8797 = vmatpush2.bf16.msra.mxu0 %v12333_v40 }
 0x912   :  { %8838 = vmatpush2.bf16.msra.mxu1 %v12336_v22  ;;  %8798 = vmatprep.subr.bf16.mxu0 %v12341_v44 }
 0x913   :  { %8839 = vmatprep.subr.bf16.mxu1 %v12344_v46 }
 0x915   :  { %8799 = vmatpush2.bf16.msra.mxu0 %v12339_v48 }
 0x916   :  { %8840 = vmatpush2.bf16.msra.mxu1 %v12342_v28  ;;  %8800 = vmatprep.subr.bf16.mxu0 %v12347_v35 }
 0x917   :  { %8841 = vmatprep.subr.bf16.mxu1 %v12350_v50 }
 0x919   :  { %8801 = vmatpush2.bf16.msra.mxu0 %v12345_v21 }
 0x91a   :  { %8842 = vmatpush2.bf16.msra.mxu1 %v12348_v6  ;;  %8802 = vmatprep.subr.bf16.mxu0 %v12353_v18 }
 0x91b   :  { %8843 = vmatprep.subr.bf16.mxu1 %v12356_v19 }
 0x91d   :  { %8803 = vmatpush2.bf16.msra.mxu0 %v12351_v31 }
 0x91e   :  { %8844 = vmatpush2.bf16.msra.mxu1 %v12354_v54  ;;  %8804 = vmatprep.subr.bf16.mxu0 %v12359_v11  ;;  %v8045_v54 = vrot.slane %v8032_v58, %v17074_v14  ;;  %v8049_v11 = vrot.slane %v8032_v58, %v17080_v45 }
 0x91f   :  { %8845 = vmatprep.subr.bf16.mxu1 %v12362_v32 }
 0x921   :  { %8805 = vmatpush2.bf16.msra.mxu0 %v12357_v34 }
 0x922   :  { %8846 = vmatpush2.bf16.msra.mxu1 %v12360_v24  ;;  %8806 = vmatprep.subr.bf16.mxu0 %v12365_v12 }
 0x923   :  { %8847 = vmatprep.subr.bf16.mxu1 %v12368_v42 }
 0x925   :  { %8807 = vmatpush2.bf16.msra.mxu0 %v12363_v49 }
 0x926   :  { %8848 = vmatpush2.bf16.msra.mxu1 %v12366_v57  ;;  %11462 = vmatprep.subr.bf16.mxu0 %v12369_v39 }
 0x927   :  { %11484 = vmatprep.subr.bf16.mxu1 %v12385_v25 }
 0x928   :  { %8809 = vmatmul.mubr.bf16.vlgmr.msra.gmra.mxu0 %v17705_v26  ;;  %v12375_v26 = vld [vmem:[%s18014_s11 + $0x60] sm:$0xff]  }
 0x929   :  { %8850 = vmatmul.mubr.bf16.vlgmr.msra.gmra.mxu1 %v17710_v47  ;;  %11463 = vmatpush3.bf16.msra.mxu0 %v12370_v27  ;;  %v12376_v47 = vld [vmem:[%s18014_s11 + $0x20] sm:$0xff]  }
 0x92a   :  { %11464 = vmatprep.subr.bf16.mxu0 %v12371_v37  ;;  %11485 = vmatpush3.bf16.msra.mxu1 %v12386_v3 }
 0x92b   :  { %11486 = vmatprep.subr.bf16.mxu1 %v12387_v56 }
 0x92d   :  { %11465 = vmatpush3.bf16.msra.mxu0 %v12372_v17 }
 0x92e   :  { %11466 = vmatprep.subr.bf16.mxu0 %v12373_v2  ;;  %11487 = vmatpush3.bf16.msra.mxu1 %v12388_v4  ;;  %v10336_v4 = vld [vmem:[%s18017_s12] ss:$0 sm:$0xff] }
 0x92f   :  { %11488 = vmatprep.subr.bf16.mxu1 %v12389_v10 }
 0x931   :  { %11467 = vmatpush3.bf16.msra.mxu0 %v12374_v55 }
 0x932   :  { %11468 = vmatprep.subr.bf16.mxu0 %v12375_v26  ;;  %11489 = vmatpush3.bf16.msra.mxu1 %v12390_v29 }
 0x933   :  { %11490 = vmatprep.subr.bf16.mxu1 %v12391_v15 }
 0x935   :  { %11469 = vmatpush3.bf16.msra.mxu0 %v12376_v47 }
 0x936   :  { %11470 = vmatprep.subr.bf16.mxu0 %v12377_v52  ;;  %11491 = vmatpush3.bf16.msra.mxu1 %v12392_v9 }
 0x937   :  { %11492 = vmatprep.subr.bf16.mxu1 %v12393_v13 }
 0x939   :  { %11471 = vmatpush3.bf16.msra.mxu0 %v12378_v63 }
 0x93a   :  { %11472 = vmatprep.subr.bf16.mxu0 %v12379_v33  ;;  %11493 = vmatpush3.bf16.msra.mxu1 %v12394_v41 }
 0x93b   :  { %11494 = vmatprep.subr.bf16.mxu1 %v12395_v16 }
 0x93d   :  { %11473 = vmatpush3.bf16.msra.mxu0 %v12380_v8 }
 0x93e   :  { %11474 = vmatprep.subr.bf16.mxu0 %v12381_v0  ;;  %11495 = vmatpush3.bf16.msra.mxu1 %v12396_v59 }
 0x93f   :  { %11496 = vmatprep.subr.bf16.mxu1 %v12397_v23 }
 0x941   :  { %11475 = vmatpush3.bf16.msra.mxu0 %v12382_v5 }
 0x942   :  { %11476 = vmatprep.subr.bf16.mxu0 %v12383_v1  ;;  %11497 = vmatpush3.bf16.msra.mxu1 %v12398_v43 }
 0x943   :  { %11498 = vmatprep.subr.bf16.mxu1 %v12399_v30 }
 0x945   :  { %11477 = vmatpush3.bf16.msra.mxu0 %v12384_v61 }
 0x946   :  { %11499 = vmatpush3.bf16.msra.mxu1 %v12400_v51 }
 0x9a8   :  { %v8728_v20 = vpop.f32.mrf.mxu0 }
 0x9a9   :  { %v8729_v62 = vadd.f32 %v8728_v20, %v8037_v36  ;;  %v8769_v38 = vpop.f32.mrf.mxu1 }
 0x9aa   :  { %v8730_v40 = vpop.f32.mrf.mxu0 }
 0x9ab   :  { %v8770_v22 = vadd.f32 %v8769_v38, %v8729_v62  ;;  %v8731_v44 = vadd.f32 %v8730_v40, %v8041_v60  ;;  %v8771_v46 = vpop.f32.mrf.mxu1 }
 0x9ac   :  { %v8732_v48 = vpop.f32.mrf.mxu0 }
 0x9ad   :  { %vm8858_vm3 = vcmp.gt.f32.partialorder %v8770_v22, 0.0  ;;  %v8862_v28 = vmul.f32 0.2, %v8770_v22  ;;  %v8772_v35 = vadd.f32 %v8771_v46, %v8731_v44  ;;  %v8773_v50 = vpop.f32.mrf.mxu1 }
 0x9ae   :  { %v8733_v21 = vpop.f32.mrf.mxu0 }
 0x9af   :  { %vm8859_vm4 = vcmp.gt.f32.partialorder %v8772_v35, 0.0  ;;  %v8863_v6 = vmul.f32 0.2, %v8772_v35  ;;  %v8774_v18 = vpop.f32.mrf.mxu1  ;;  %v8866_v19 = vsel %vm8858_vm3, %v8770_v22, %v8862_v28 }
 0x9b0   :  { %v8870_v7 = vpack.c.bf16 %v8866_v19, %v8866_v19 }
 0x9b1   :  { %v8867_v53 = vsel %vm8859_vm4, %v8772_v35, %v8863_v6 }
 0x9b2   :  { %v8871_v31 = vpack.c.bf16 %v8867_v53, %v8867_v53 }
 0x9b4   :  { %9169 = vmatprep.mubr.bf16.mxu0 %v8871_v31 }
 0x9b5   :  { %9170 = vmatmul.mubr.bf16.vlgmr.msra.gmra.mxu0 %v8870_v7 }
 0x9e8   :  { %v8810_v32 = vpop.f32.mrf.mxu0 }
 0x9e9   :  { %v8811_v34 = vadd.f32 %v8810_v32, %v8045_v54  ;;  %v8851_v24 = vpop.f32.mrf.mxu1 }
 0x9ea   :  { %v8812_v12 = vpop.f32.mrf.mxu0 }
 0x9eb   :  { %v8852_v42 = vadd.f32 %v8851_v24, %v8811_v34  ;;  %v8813_v49 = vadd.f32 %v8812_v12, %v8049_v11  ;;  %v8853_v57 = vpop.f32.mrf.mxu1 }
 0x9ec   :  { %v8814_v39 = vpop.f32.mrf.mxu0 }
 0x9ed   :  { %vm8860_vm5 = vcmp.gt.f32.partialorder %v8852_v42, 0.0  ;;  %v8864_v27 = vmul.f32 0.2, %v8852_v42  ;;  %v8854_v37 = vadd.f32 %v8853_v57, %v8813_v49  ;;  %v8855_v17 = vpop.f32.mrf.mxu1 }
 0x9ee   :  { %v8815_v2 = vpop.f32.mrf.mxu0 }
 0x9ef   :  { %vm8861_vm6 = vcmp.gt.f32.partialorder %v8854_v37, 0.0  ;;  %v8865_v55 = vmul.f32 0.2, %v8854_v37  ;;  %v8856_v26 = vpop.f32.mrf.mxu1  ;;  %v8868_v47 = vsel %vm8860_vm5, %v8852_v42, %v8864_v27 }
 0x9f0   :  { %v8872_v45 = vpack.c.bf16 %v8868_v47, %v8868_v47 }
 0x9f1   :  { %v8869_v14 = vsel %vm8861_vm6, %v8854_v37, %v8865_v55 }
 0x9f2   :  { %v8873_v52 = vpack.c.bf16 %v8869_v14, %v8869_v14 }
 0x9f4   :  { %9209 = vmatprep.mubr.bf16.mxu1 %v8873_v52 }
 0x9f5   :  { %9210 = vmatmul.mubr.bf16.vlgmr.msra.gmra.mxu1 %v8872_v45 }
 0xa75   :  { %v11478_v63 = vpop.f32.mrf.mxu0 }
 0xa77   :  { %v11479_v25 = vpop.f32.mrf.mxu0 }
 0xa78   :  { %v11480_v33 = vadd.f32 %v11479_v25, %v11478_v63 }
 0xa79   :  { %v11481_v3 = vpop.f32.mrf.mxu0 }
 0xa7a   :  { %v9172_v0 = vadd.f32 %v11480_v33, %v10336_v4 }
 0xa7b   :  { %v11482_v56 = vpop.f32.mrf.mxu0 }
 0xab5   :  { %v11500_v8 = vpop.f32.mrf.mxu1 }
 0xab7   :  { %v11501_v10 = vpop.f32.mrf.mxu1 }
 0xab8   :  { %v11502_v29 = vadd.f32 %v11501_v10, %v11500_v8 }
 0xab9   :  { %v11503_v5 = vpop.f32.mrf.mxu1 }
 0xaba   :  { %v9212_v15 = vadd.f32 %v11502_v29, %v9172_v0 }
 0xabb   :  { %v11504_v1 = vpop.f32.mrf.mxu1 }
 0xabc   :  { %v10369_v9 = vmul.f32 -1.442695, %v9212_v15 }
 0xabe   :  { %12401 = vpow2.f32 %v10369_v9 }
 0xacb   :  { %v12402_v61 = vpop.eup %12401 }
 0xacc   :  { %v9220_v13 = vadd.f32 1.0, %v12402_v61 }
 0xace   :  { %12403 = vrcp.f32 %v9220_v13 }
 0xadb   :  { %v12404_v41 = vpop.eup %12403 }
 0xadc   :  { %9223 = vst [vmem:[%s18018_s13] sm:$0xff] %v12404_v41 }

</bundles_post_ra>
